<compile_context>
chip_gen: v6e
topology: v6e:2x2x1
jax: 0.10.0
libtpu: 0.0.40
codegen_flags: <defaults>
</compile_context>

<pallas_src>
import functools

import jax
import jax.numpy as jnp
from jax import lax
from jax.experimental import pallas as pl
from jax.experimental.pallas import tpu as pltpu


# ----------------------------- Pallas kernels ------------------------------ #

def _fused_kernel(xw_ref, xs_ref, w1a_ref, w2_ref, b2_ref, w3_ref, b3_ref,
                  out_ref, sum_ref, sq_ref, h1_ref, *,
                  k, tile_t, hp, wpp, h, w, f, skip):
    """c1+ReLU -> halo k^3 conv (c2)+ReLU -> c3+ReLU -> skip -> BN partials."""
    th = tile_t + k - 1
    r = tile_t * h * w

    # --- _c1 + _a1: 1x1x1 conv as per-frame matmul.  The bias is folded into
    # the validity channel, so zero-padded halo voxels produce exactly 0.
    for tau in range(th):
        frame = jnp.dot(xw_ref[0, tau], w1a_ref[...],
                        preferred_element_type=jnp.float32)
        h1_ref[tau] = jnp.maximum(frame, 0.0).reshape(hp, wpp, f)

    # --- _c2 + _a2: k^3 conv over the VMEM halo block (no HBM im2col).
    # Unrolled tap accumulation in an f32 accumulator.
    acc = jnp.zeros((r, f), jnp.float32)
    for dt in range(k):
        for dh in range(k):
            for dw in range(k):
                tap = h1_ref[dt:dt + tile_t, dh:dh + h, dw:dw + w, :]
                acc = acc + jnp.dot(tap.reshape(r, f),
                                    w2_ref[dt * k * k + dh * k + dw],
                                    preferred_element_type=jnp.float32)
    ff = jnp.maximum(acc + b2_ref[...], 0.0)

    # --- _c3 + _a3 + Dropout3d(p=0) (identity) + residual skip.
    # TODO(synk): Dropout3d with p > 0 (channel dropout) is not implemented;
    # the module's default dropout=0 makes it an identity, which is matched.
    h3 = jnp.dot(ff, w3_ref[...], preferred_element_type=jnp.float32)
    h3 = jnp.maximum(h3 + b3_ref[...], 0.0)
    out = (xs_ref[0] + h3) if skip else h3
    out_ref[0] = out

    # --- per-block partial BatchNorm statistics (sum, sum of squares).
    sum_ref[0] = jnp.sum(out, axis=0, keepdims=True)
    sq_ref[0] = jnp.sum(out * out, axis=0, keepdims=True)


def _bn_kernel(o_ref, sum_ref, sq_ref, g_ref, b_ref, y_ref, *, inv_m, eps):
    """Training-mode BatchNorm3d from cross-block partial sums (biased var)."""
    mean = jnp.sum(sum_ref[:, 0, :], axis=0, keepdims=True) * inv_m   # (1, C)
    ex2 = jnp.sum(sq_ref[:, 0, :], axis=0, keepdims=True) * inv_m     # (1, C)
    var = ex2 - mean * mean
    scale = g_ref[...] * lax.rsqrt(var + eps)
    y_ref[0] = (o_ref[0] - mean) * scale + b_ref[...]


# ------------------------------- wrapper ----------------------------------- #

def _pick_tile_t(t, target_rows, hw):
    """Largest divisor of t such that tile_t * H * W <= target_rows."""
    want = max(1, target_rows // max(hw, 1))
    best = 1
    for cand in range(1, t + 1):
        if t % cand == 0 and cand <= want:
            best = cand
    return best


def temp_conv_layer(x_ncdhw, params, *, k=3, causal=False, target_rows=2048):
    """Forward pass of TempConvLayer.  x_ncdhw: (B, Cin, T, H, W) float32."""
    assert k % 2 == 1, "odd conv kernel size assumed (module default k=5)"
    B, Cin, T, H, W = x_ncdhw.shape
    w1, b1 = params["w1"], params["b1"]
    w2, b2 = params["w2"], params["b2"]
    w3, b3 = params["w3"], params["b3"]
    gamma, beta = params["gamma"], params["beta"]
    F = w1.shape[1]
    Cout = w3.shape[1]
    Ca = Cin + 1                       # augmented with the validity channel
    skip = (Cout == Cin)

    fp = k // 2
    pad = k - 1 if causal else fp
    # PyTorch pads T symmetrically by `pad` then crops the trailing `pad`
    # frames when causal; left-only padding of `pad` is exactly equivalent.
    lp, rp = (pad, 0) if causal else (fp, fp)

    tile_t = _pick_tile_t(T, target_rows, H * W)
    # TODO(synk): T not divisible by a reasonable tile would need masked
    # partial tiles for the BN statistics; _pick_tile_t always returns a
    # divisor so this path is exact.
    nT = T // tile_t
    NB = B * nT
    Th = tile_t + k - 1                # halo block depth along T
    R = tile_t * H * W                 # rows produced per grid step
    Hp = H + 2 * fp
    Wp = W + 2 * fp
    Wpp = -(-Wp // 8) * 8              # 8-align so in-kernel reshapes retile
    M = B * T * H * W

    x = jnp.transpose(x_ncdhw, (0, 2, 3, 4, 1)).astype(jnp.float32)  # NDHWC

    # Augmented input: extra channel of ones carries the _c1 bias, so zero
    # padding commutes with relu(conv1x1(.)) inside the fused kernel.
    x_aug = jnp.concatenate(
        [x, jnp.ones((B, T, H, W, 1), jnp.float32)], axis=-1)
    xp = jnp.pad(x_aug, ((0, 0), (lp, rp), (fp, fp),
                         (fp, fp + (Wpp - Wp)), (0, 0)))              # (B,Tp,Hp,Wpp,Ca)
    # Overlapping (halo) T windows: pure data movement, duplication factor
    # (tile_t + k - 1)/tile_t on the small (Cin+1)-channel input only.
    xw = jnp.stack([xp[:, i * tile_t:i * tile_t + Th] for i in range(nT)],
                   axis=1)                                            # (B,nT,Th,Hp,Wpp,Ca)
    xw = xw.reshape(NB, Th, Hp * Wpp, Ca)

    x_skip = x.reshape(B, nT, tile_t, H, W, Cin).reshape(NB, R, Cin)

    w1a = jnp.concatenate([w1, b1[None, :]], axis=0)                  # (Ca, F)
    w2t = w2.reshape(k * k * k, F, F)                                 # (k^3, Fin, Fout)

    cparams = pltpu.CompilerParams(
        dimension_semantics=("parallel",),
        vmem_limit_bytes=32 * 1024 * 1024)

    fused = functools.partial(
        _fused_kernel, k=k, tile_t=tile_t, hp=Hp, wpp=Wpp, h=H, w=W, f=F,
        skip=skip)

    out3d, bsum, bsq = pl.pallas_call(
        fused,
        grid=(NB,),
        out_shape=(jax.ShapeDtypeStruct((NB, R, Cout), jnp.float32),
                   jax.ShapeDtypeStruct((NB, 1, Cout), jnp.float32),
                   jax.ShapeDtypeStruct((NB, 1, Cout), jnp.float32)),
        in_specs=[
            pl.BlockSpec((1, Th, Hp * Wpp, Ca), lambda i: (i, 0, 0, 0)),
            pl.BlockSpec((1, R, Cin), lambda i: (i, 0, 0)),
            pl.BlockSpec((Ca, F), lambda i: (0, 0)),
            pl.BlockSpec((k * k * k, F, F), lambda i: (0, 0, 0)),
            pl.BlockSpec((1, F), lambda i: (0, 0)),
            pl.BlockSpec((F, Cout), lambda i: (0, 0)),
            pl.BlockSpec((1, Cout), lambda i: (0, 0)),
        ],
        out_specs=(
            pl.BlockSpec((1, R, Cout), lambda i: (i, 0, 0)),
            pl.BlockSpec((1, 1, Cout), lambda i: (i, 0, 0)),
            pl.BlockSpec((1, 1, Cout), lambda i: (i, 0, 0)),
        ),
        scratch_shapes=[pltpu.VMEM((Th, Hp, Wpp, F), jnp.float32)],
        compiler_params=cparams,
    )(xw, x_skip, w1a, w2t, b2.reshape(1, F), w3, b3.reshape(1, Cout))

    y3d = pl.pallas_call(
        functools.partial(_bn_kernel, inv_m=1.0 / M, eps=1e-5),
        grid=(NB,),
        out_shape=jax.ShapeDtypeStruct((NB, R, Cout), jnp.float32),
        in_specs=[
            pl.BlockSpec((1, R, Cout), lambda i: (i, 0, 0)),
            pl.BlockSpec((NB, 1, Cout), lambda i: (0, 0, 0)),
            pl.BlockSpec((NB, 1, Cout), lambda i: (0, 0, 0)),
            pl.BlockSpec((1, Cout), lambda i: (0, 0)),
            pl.BlockSpec((1, Cout), lambda i: (0, 0)),
        ],
        out_specs=pl.BlockSpec((1, R, Cout), lambda i: (i, 0, 0)),
        compiler_params=cparams,
    )(out3d, bsum, bsq, gamma.reshape(1, Cout), beta.reshape(1, Cout))

    y = y3d.reshape(B, nT, tile_t, H, W, Cout).reshape(B, T, H, W, Cout)
    return jnp.transpose(y, (0, 4, 1, 2, 3))                          # NCDHW


# -------------------------- plain-JAX reference ----------------------------- #

def temp_conv_layer_ref(x_ncdhw, params, *, k=3, causal=False):
    B, Cin, T, H, W = x_ncdhw.shape
    w1, b1 = params["w1"], params["b1"]
    w2, b2 = params["w2"], params["b2"]
    w3, b3 = params["w3"], params["b3"]
    gamma, beta = params["gamma"], params["beta"]
    Cout = w3.shape[1]
    skip = (Cout == Cin)
    fp = k // 2
    pad = k - 1 if causal else fp
    t_pad = (pad, 0) if causal else (fp, fp)

    x = jnp.transpose(x_ncdhw, (0, 2, 3, 4, 1)).astype(jnp.float32)
    h1 = jnp.maximum(
        jnp.einsum("bthwc,cf->bthwf", x, w1, precision="highest") + b1, 0.0)
    h2 = lax.conv_general_dilated(
        h1, w2, window_strides=(1, 1, 1),
        padding=(t_pad, (fp, fp), (fp, fp)),
        dimension_numbers=("NDHWC", "DHWIO", "NDHWC"),
        precision=lax.Precision.HIGHEST) + b2
    h2 = jnp.maximum(h2, 0.0)
    h3 = jnp.maximum(
        jnp.einsum("bthwf,fc->bthwc", h2, w3, precision="highest") + b3, 0.0)
    out = x + h3 if skip else h3
    mean = out.mean(axis=(0, 1, 2, 3), keepdims=True)
    var = ((out - mean) ** 2).mean(axis=(0, 1, 2, 3), keepdims=True)
    y = (out - mean) * lax.rsqrt(var + 1e-5) * gamma + beta
    return jnp.transpose(y, (0, 4, 1, 2, 3))


# --------------------------------- main ------------------------------------ #

if __name__ == "__main__":
    key = jax.random.PRNGKey(0)
    B, Cin, Cout, T, H, W = 2, 4, 4, 4, 8, 8
    F = 32          # feedforward_dim (kept small for the demo; real = 512)
    k = 3           # conv kernel size (module ctor arg)
    causal = False

    ks = jax.random.split(key, 8)
    params = dict(
        w1=jax.random.normal(ks[0], (Cin, F), jnp.float32) / jnp.sqrt(Cin),
        b1=0.1 * jax.random.normal(ks[1], (F,), jnp.float32),
        w2=jax.random.normal(ks[2], (k, k, k, F, F), jnp.float32)
           / jnp.sqrt(k * k * k * F),
        b2=0.1 * jax.random.normal(ks[3], (F,), jnp.float32),
        w3=jax.random.normal(ks[4], (F, Cout), jnp.float32) / jnp.sqrt(F),
        b3=0.1 * jax.random.normal(ks[5], (Cout,), jnp.float32),
        gamma=jnp.ones((Cout,), jnp.float32),   # fresh BatchNorm3d weight
        beta=jnp.zeros((Cout,), jnp.float32),   # fresh BatchNorm3d bias
    )
    x = jax.random.normal(ks[6], (B, Cin, T, H, W), jnp.float32)

    fwd = jax.jit(lambda xv, pv: temp_conv_layer(xv, pv, k=k, causal=causal))
    out = jax.block_until_ready(fwd(x, params))
    ref = jax.block_until_ready(
        temp_conv_layer_ref(x, params, k=k, causal=causal))

    assert out.shape == (B, Cout, T, H, W)
    assert bool(jnp.all(jnp.isfinite(out)))
    max_err = float(jnp.max(jnp.abs(out - ref)))
    assert max_err < 1e-2, f"mismatch vs reference: max abs err {max_err}"
    print("KERNEL_OK")
</pallas_src>

<mosaic_0001>
module attributes {stable_mosaic.version = 11 : i64} {
  func.func @_bn_kernel(%arg0: i32, %arg1: memref<1x256x4xf32, #tpu.memory_space<vmem>>, %arg2: memref<2x1x4xf32, #tpu.memory_space<vmem>>, %arg3: memref<2x1x4xf32, #tpu.memory_space<vmem>>, %arg4: memref<1x4xf32, #tpu.memory_space<vmem>>, %arg5: memref<1x4xf32, #tpu.memory_space<vmem>>, %arg6: memref<1x256x4xf32, #tpu.memory_space<vmem>>) attributes {dimension_semantics = [#tpu.dimension_semantics<parallel>], iteration_bounds = array<i64: 2>, scalar_prefetch = 0 : i64, scratch_operands = 0 : i64, tpu.core_type = #tpu.core_type<tc>, window_params = [{transform_indices = @transform_0, window_bounds = array<i64: 1, 256, 4>}, {pipeline_mode = #tpu.pipeline_mode<synchronous>, transform_indices = @transform_1, window_bounds = array<i64: 2, 1, 4>}, {pipeline_mode = #tpu.pipeline_mode<synchronous>, transform_indices = @transform_2, window_bounds = array<i64: 2, 1, 4>}, {pipeline_mode = #tpu.pipeline_mode<synchronous>, transform_indices = @transform_3, window_bounds = array<i64: 1, 4>}, {pipeline_mode = #tpu.pipeline_mode<synchronous>, transform_indices = @transform_4, window_bounds = array<i64: 1, 4>}, {transform_indices = @transform_5, window_bounds = array<i64: 1, 256, 4>}]} {
    %c0 = arith.constant 0 : index
    %c0_0 = arith.constant 0 : index
    %c0_1 = arith.constant 0 : index
    %0 = vector.load %arg2[%c0, %c0_0, %c0_1] : memref<2x1x4xf32, #tpu.memory_space<vmem>>, vector<2x1x4xf32>
    %1 = vector.shape_cast %0 : vector<2x1x4xf32> to vector<2x4xf32>
    %cst = arith.constant dense<0.000000e+00> : vector<4xf32>
    %2 = vector.multi_reduction <add>, %1, %cst [0] : vector<2x4xf32> to vector<4xf32>
    %3 = vector.shape_cast %2 : vector<4xf32> to vector<1x4xf32>
    %cst_2 = arith.constant 0.001953125 : f32
    %4 = vector.broadcast %cst_2 : f32 to vector<1x4xf32>
    %5 = arith.mulf %3, %4 : vector<1x4xf32>
    %c0_3 = arith.constant 0 : index
    %c0_4 = arith.constant 0 : index
    %c0_5 = arith.constant 0 : index
    %6 = vector.load %arg3[%c0_3, %c0_4, %c0_5] : memref<2x1x4xf32, #tpu.memory_space<vmem>>, vector<2x1x4xf32>
    %7 = vector.shape_cast %6 : vector<2x1x4xf32> to vector<2x4xf32>
    %cst_6 = arith.constant dense<0.000000e+00> : vector<4xf32>
    %8 = vector.multi_reduction <add>, %7, %cst_6 [0] : vector<2x4xf32> to vector<4xf32>
    %9 = vector.shape_cast %8 : vector<4xf32> to vector<1x4xf32>
    %cst_7 = arith.constant 0.001953125 : f32
    %10 = vector.broadcast %cst_7 : f32 to vector<1x4xf32>
    %11 = arith.mulf %9, %10 : vector<1x4xf32>
    %12 = arith.mulf %5, %5 : vector<1x4xf32>
    %13 = arith.subf %11, %12 : vector<1x4xf32>
    %c0_8 = arith.constant 0 : index
    %c0_9 = arith.constant 0 : index
    %14 = vector.load %arg4[%c0_8, %c0_9] : memref<1x4xf32, #tpu.memory_space<vmem>>, vector<1x4xf32>
    %cst_10 = arith.constant 9.99999974E-6 : f32
    %15 = vector.broadcast %cst_10 : f32 to vector<1x4xf32>
    %16 = arith.addf %13, %15 : vector<1x4xf32>
    %17 = math.rsqrt %16 : vector<1x4xf32>
    %18 = arith.mulf %14, %17 : vector<1x4xf32>
    %c0_11 = arith.constant 0 : index
    %c0_12 = arith.constant 0 : index
    %c0_13 = arith.constant 0 : index
    %19 = vector.load %arg1[%c0_11, %c0_12, %c0_13] : memref<1x256x4xf32, #tpu.memory_space<vmem>>, vector<1x256x4xf32>
    %20 = vector.shape_cast %19 : vector<1x256x4xf32> to vector<256x4xf32>
    %21 = vector.broadcast %5 : vector<1x4xf32> to vector<256x4xf32>
    %22 = arith.subf %20, %21 : vector<256x4xf32>
    %23 = vector.broadcast %18 : vector<1x4xf32> to vector<256x4xf32>
    %24 = arith.mulf %22, %23 : vector<256x4xf32>
    %c0_14 = arith.constant 0 : index
    %c0_15 = arith.constant 0 : index
    %25 = vector.load %arg5[%c0_14, %c0_15] : memref<1x4xf32, #tpu.memory_space<vmem>>, vector<1x4xf32>
    %26 = vector.broadcast %25 : vector<1x4xf32> to vector<256x4xf32>
    %27 = arith.addf %24, %26 : vector<256x4xf32>
    %c0_16 = arith.constant 0 : index
    %c0_17 = arith.constant 0 : index
    %c0_18 = arith.constant 0 : index
    %28 = vector.load %arg6[%c0_16, %c0_17, %c0_18] : memref<1x256x4xf32, #tpu.memory_space<vmem>>, vector<1x256x4xf32>
    %29 = vector.shape_cast %28 : vector<1x256x4xf32> to vector<256x4xf32>
    %30 = vector.shape_cast %27 : vector<256x4xf32> to vector<1x256x4xf32>
    tpu.vector_store %arg6[%c0_16, %c0_17, %c0_18], %30 {strides = array<i32>} : memref<1x256x4xf32, #tpu.memory_space<vmem>>, vector<1x256x4xf32>,
    return
  }
  func.func @transform_0(%arg0: i32) -> (i32, i32, i32) {
    %c0_i32 = arith.constant 0 : i32
    %c0_i32_0 = arith.constant 0 : i32
    %c0_i32_1 = arith.constant 0 : i32
    return %arg0, %c0_i32, %c0_i32_0 : i32, i32, i32
  }
  func.func @transform_1(%arg0: i32) -> (i32, i32, i32) {
    %c0_i32 = arith.constant 0 : i32
    %c0_i32_0 = arith.constant 0 : i32
    %c0_i32_1 = arith.constant 0 : i32
    %c0_i32_2 = arith.constant 0 : i32
    return %c0_i32, %c0_i32_0, %c0_i32_1 : i32, i32, i32
  }
  func.func @transform_2(%arg0: i32) -> (i32, i32, i32) {
    %c0_i32 = arith.constant 0 : i32
    %c0_i32_0 = arith.constant 0 : i32
    %c0_i32_1 = arith.constant 0 : i32
    %c0_i32_2 = arith.constant 0 : i32
    return %c0_i32, %c0_i32_0, %c0_i32_1 : i32, i32, i32
  }
  func.func @transform_3(%arg0: i32) -> (i32, i32) {
    %c0_i32 = arith.constant 0 : i32
    %c0_i32_0 = arith.constant 0 : i32
    %c0_i32_1 = arith.constant 0 : i32
    return %c0_i32, %c0_i32_0 : i32, i32
  }
  func.func @transform_4(%arg0: i32) -> (i32, i32) {
    %c0_i32 = arith.constant 0 : i32
    %c0_i32_0 = arith.constant 0 : i32
    %c0_i32_1 = arith.constant 0 : i32
    return %c0_i32, %c0_i32_0 : i32, i32
  }
  func.func @transform_5(%arg0: i32) -> (i32, i32, i32) {
    %c0_i32 = arith.constant 0 : i32
    %c0_i32_0 = arith.constant 0 : i32
    %c0_i32_1 = arith.constant 0 : i32
    return %arg0, %c0_i32, %c0_i32_0 : i32, i32, i32
  }
}

module attributes {stable_mosaic.version = 11 : i64} {
  func.func @_fused_kernel(%arg0: i32, %arg1: memref<1x6x160x5xf32, #tpu.memory_space<vmem>>, %arg2: memref<1x256x4xf32, #tpu.memory_space<vmem>>, %arg3: memref<5x32xf32, #tpu.memory_space<vmem>>, %arg4: memref<27x32x32xf32, #tpu.memory_space<vmem>>, %arg5: memref<1x32xf32, #tpu.memory_space<vmem>>, %arg6: memref<32x4xf32, #tpu.memory_space<vmem>>, %arg7: memref<1x4xf32, #tpu.memory_space<vmem>>, %arg8: memref<1x256x4xf32, #tpu.memory_space<vmem>>, %arg9: memref<1x1x4xf32, #tpu.memory_space<vmem>>, %arg10: memref<1x1x4xf32, #tpu.memory_space<vmem>>, %arg11: memref<6x10x16x32xf32, #tpu.memory_space<vmem>>) attributes {dimension_semantics = [#tpu.dimension_semantics<parallel>], iteration_bounds = array<i64: 2>, scalar_prefetch = 0 : i64, scratch_operands = 1 : i64, tpu.core_type = #tpu.core_type<tc>, window_params = [{transform_indices = @transform_0, window_bounds = array<i64: 1, 6, 160, 5>}, {transform_indices = @transform_1, window_bounds = array<i64: 1, 256, 4>}, {pipeline_mode = #tpu.pipeline_mode<synchronous>, transform_indices = @transform_2, window_bounds = array<i64: 5, 32>}, {pipeline_mode = #tpu.pipeline_mode<synchronous>, transform_indices = @transform_3, window_bounds = array<i64: 27, 32, 32>}, {pipeline_mode = #tpu.pipeline_mode<synchronous>, transform_indices = @transform_4, window_bounds = array<i64: 1, 32>}, {pipeline_mode = #tpu.pipeline_mode<synchronous>, transform_indices = @transform_5, window_bounds = array<i64: 32, 4>}, {pipeline_mode = #tpu.pipeline_mode<synchronous>, transform_indices = @transform_6, window_bounds = array<i64: 1, 4>}, {transform_indices = @transform_7, window_bounds = array<i64: 1, 256, 4>}, {transform_indices = @transform_8, window_bounds = array<i64: 1, 1, 4>}, {transform_indices = @transform_9, window_bounds = array<i64: 1, 1, 4>}]} {
    %c0 = arith.constant 0 : index
    %c0_0 = arith.constant 0 : index
    %c0_1 = arith.constant 0 : index
    %c0_2 = arith.constant 0 : index
    %0 = vector.load %arg1[%c0, %c0_0, %c0_1, %c0_2] : memref<1x6x160x5xf32, #tpu.memory_space<vmem>>, vector<1x1x160x5xf32>
    %1 = vector.shape_cast %0 : vector<1x1x160x5xf32> to vector<160x5xf32>
    %c0_3 = arith.constant 0 : index
    %c0_4 = arith.constant 0 : index
    %2 = vector.load %arg3[%c0_3, %c0_4] : memref<5x32xf32, #tpu.memory_space<vmem>>, vector<5x32xf32>
    %cst = arith.constant dense<0.000000e+00> : vector<160x32xf32>
    %3 = tpu.matmul %1, %2, %cst {dimension_numbers = #tpu.dot_dimension_numbers<[1], [0], [0], [1], [0, 0, 1, 1], [], []>} : vector<160x5xf32>, vector<5x32xf32>, vector<160x32xf32> -> vector<160x32xf32>
    %cst_5 = arith.constant 0.000000e+00 : f32
    %4 = vector.broadcast %cst_5 : f32 to vector<160x32xf32>
    %5 = arith.maximumf %3, %4 : vector<160x32xf32>
    %6 = vector.shape_cast %5 : vector<160x32xf32> to vector<10x16x32xf32>
    %c0_6 = arith.constant 0 : index
    %c0_7 = arith.constant 0 : index
    %c0_8 = arith.constant 0 : index
    %c0_9 = arith.constant 0 : index
    %7 = vector.load %arg11[%c0_6, %c0_7, %c0_8, %c0_9] : memref<6x10x16x32xf32, #tpu.memory_space<vmem>>, vector<1x10x16x32xf32>
    %8 = vector.shape_cast %7 : vector<1x10x16x32xf32> to vector<10x16x32xf32>
    %9 = vector.shape_cast %6 : vector<10x16x32xf32> to vector<1x10x16x32xf32>
    tpu.vector_store %arg11[%c0_6, %c0_7, %c0_8, %c0_9], %9 {strides = array<i32>} : memref<6x10x16x32xf32, #tpu.memory_space<vmem>>, vector<1x10x16x32xf32>,
    %c0_10 = arith.constant 0 : index
    %c1 = arith.constant 1 : index
    %c0_11 = arith.constant 0 : index
    %c0_12 = arith.constant 0 : index
    %10 = vector.load %arg1[%c0_10, %c1, %c0_11, %c0_12] : memref<1x6x160x5xf32, #tpu.memory_space<vmem>>, vector<1x1x160x5xf32>
    %11 = vector.shape_cast %10 : vector<1x1x160x5xf32> to vector<160x5xf32>
    %c0_13 = arith.constant 0 : index
    %c0_14 = arith.constant 0 : index
    %12 = vector.load %arg3[%c0_13, %c0_14] : memref<5x32xf32, #tpu.memory_space<vmem>>, vector<5x32xf32>
    %cst_15 = arith.constant dense<0.000000e+00> : vector<160x32xf32>
    %13 = tpu.matmul %11, %12, %cst_15 {dimension_numbers = #tpu.dot_dimension_numbers<[1], [0], [0], [1], [0, 0, 1, 1], [], []>} : vector<160x5xf32>, vector<5x32xf32>, vector<160x32xf32> -> vector<160x32xf32>
    %cst_16 = arith.constant 0.000000e+00 : f32
    %14 = vector.broadcast %cst_16 : f32 to vector<160x32xf32>
    %15 = arith.maximumf %13, %14 : vector<160x32xf32>
    %16 = vector.shape_cast %15 : vector<160x32xf32> to vector<10x16x32xf32>
    %c1_17 = arith.constant 1 : index
    %c0_18 = arith.constant 0 : index
    %c0_19 = arith.constant 0 : index
    %c0_20 = arith.constant 0 : index
    %17 = vector.load %arg11[%c1_17, %c0_18, %c0_19, %c0_20] : memref<6x10x16x32xf32, #tpu.memory_space<vmem>>, vector<1x10x16x32xf32>
    %18 = vector.shape_cast %17 : vector<1x10x16x32xf32> to vector<10x16x32xf32>
    %19 = vector.shape_cast %16 : vector<10x16x32xf32> to vector<1x10x16x32xf32>
    tpu.vector_store %arg11[%c1_17, %c0_18, %c0_19, %c0_20], %19 {strides = array<i32>} : memref<6x10x16x32xf32, #tpu.memory_space<vmem>>, vector<1x10x16x32xf32>,
    %c0_21 = arith.constant 0 : index
    %c2 = arith.constant 2 : index
    %c0_22 = arith.constant 0 : index
    %c0_23 = arith.constant 0 : index
    %20 = vector.load %arg1[%c0_21, %c2, %c0_22, %c0_23] : memref<1x6x160x5xf32, #tpu.memory_space<vmem>>, vector<1x1x160x5xf32>
    %21 = vector.shape_cast %20 : vector<1x1x160x5xf32> to vector<160x5xf32>
    %c0_24 = arith.constant 0 : index
    %c0_25 = arith.constant 0 : index
    %22 = vector.load %arg3[%c0_24, %c0_25] : memref<5x32xf32, #tpu.memory_space<vmem>>, vector<5x32xf32>
    %cst_26 = arith.constant dense<0.000000e+00> : vector<160x32xf32>
    %23 = tpu.matmul %21, %22, %cst_26 {dimension_numbers = #tpu.dot_dimension_numbers<[1], [0], [0], [1], [0, 0, 1, 1], [], []>} : vector<160x5xf32>, vector<5x32xf32>, vector<160x32xf32> -> vector<160x32xf32>
    %cst_27 = arith.constant 0.000000e+00 : f32
    %24 = vector.broadcast %cst_27 : f32 to vector<160x32xf32>
    %25 = arith.maximumf %23, %24 : vector<160x32xf32>
    %26 = vector.shape_cast %25 : vector<160x32xf32> to vector<10x16x32xf32>
    %c2_28 = arith.constant 2 : index
    %c0_29 = arith.constant 0 : index
    %c0_30 = arith.constant 0 : index
    %c0_31 = arith.constant 0 : index
    %27 = vector.load %arg11[%c2_28, %c0_29, %c0_30, %c0_31] : memref<6x10x16x32xf32, #tpu.memory_space<vmem>>, vector<1x10x16x32xf32>
    %28 = vector.shape_cast %27 : vector<1x10x16x32xf32> to vector<10x16x32xf32>
    %29 = vector.shape_cast %26 : vector<10x16x32xf32> to vector<1x10x16x32xf32>
    tpu.vector_store %arg11[%c2_28, %c0_29, %c0_30, %c0_31], %29 {strides = array<i32>} : memref<6x10x16x32xf32, #tpu.memory_space<vmem>>, vector<1x10x16x32xf32>,
    %c0_32 = arith.constant 0 : index
    %c3 = arith.constant 3 : index
    %c0_33 = arith.constant 0 : index
    %c0_34 = arith.constant 0 : index
    %30 = vector.load %arg1[%c0_32, %c3, %c0_33, %c0_34] : memref<1x6x160x5xf32, #tpu.memory_space<vmem>>, vector<1x1x160x5xf32>
    %31 = vector.shape_cast %30 : vector<1x1x160x5xf32> to vector<160x5xf32>
    %c0_35 = arith.constant 0 : index
    %c0_36 = arith.constant 0 : index
    %32 = vector.load %arg3[%c0_35, %c0_36] : memref<5x32xf32, #tpu.memory_space<vmem>>, vector<5x32xf32>
    %cst_37 = arith.constant dense<0.000000e+00> : vector<160x32xf32>
    %33 = tpu.matmul %31, %32, %cst_37 {dimension_numbers = #tpu.dot_dimension_numbers<[1], [0], [0], [1], [0, 0, 1, 1], [], []>} : vector<160x5xf32>, vector<5x32xf32>, vector<160x32xf32> -> vector<160x32xf32>
    %cst_38 = arith.constant 0.000000e+00 : f32
    %34 = vector.broadcast %cst_38 : f32 to vector<160x32xf32>
    %35 = arith.maximumf %33, %34 : vector<160x32xf32>
    %36 = vector.shape_cast %35 : vector<160x32xf32> to vector<10x16x32xf32>
    %c3_39 = arith.constant 3 : index
    %c0_40 = arith.constant 0 : index
    %c0_41 = arith.constant 0 : index
    %c0_42 = arith.constant 0 : index
    %37 = vector.load %arg11[%c3_39, %c0_40, %c0_41, %c0_42] : memref<6x10x16x32xf32, #tpu.memory_space<vmem>>, vector<1x10x16x32xf32>
    %38 = vector.shape_cast %37 : vector<1x10x16x32xf32> to vector<10x16x32xf32>
    %39 = vector.shape_cast %36 : vector<10x16x32xf32> to vector<1x10x16x32xf32>
    tpu.vector_store %arg11[%c3_39, %c0_40, %c0_41, %c0_42], %39 {strides = array<i32>} : memref<6x10x16x32xf32, #tpu.memory_space<vmem>>, vector<1x10x16x32xf32>,
    %c0_43 = arith.constant 0 : index
    %c4 = arith.constant 4 : index
    %c0_44 = arith.constant 0 : index
    %c0_45 = arith.constant 0 : index
    %40 = vector.load %arg1[%c0_43, %c4, %c0_44, %c0_45] : memref<1x6x160x5xf32, #tpu.memory_space<vmem>>, vector<1x1x160x5xf32>
    %41 = vector.shape_cast %40 : vector<1x1x160x5xf32> to vector<160x5xf32>
    %c0_46 = arith.constant 0 : index
    %c0_47 = arith.constant 0 : index
    %42 = vector.load %arg3[%c0_46, %c0_47] : memref<5x32xf32, #tpu.memory_space<vmem>>, vector<5x32xf32>
    %cst_48 = arith.constant dense<0.000000e+00> : vector<160x32xf32>
    %43 = tpu.matmul %41, %42, %cst_48 {dimension_numbers = #tpu.dot_dimension_numbers<[1], [0], [0], [1], [0, 0, 1, 1], [], []>} : vector<160x5xf32>, vector<5x32xf32>, vector<160x32xf32> -> vector<160x32xf32>
    %cst_49 = arith.constant 0.000000e+00 : f32
    %44 = vector.broadcast %cst_49 : f32 to vector<160x32xf32>
    %45 = arith.maximumf %43, %44 : vector<160x32xf32>
    %46 = vector.shape_cast %45 : vector<160x32xf32> to vector<10x16x32xf32>
    %c4_50 = arith.constant 4 : index
    %c0_51 = arith.constant 0 : index
    %c0_52 = arith.constant 0 : index
    %c0_53 = arith.constant 0 : index
    %47 = vector.load %arg11[%c4_50, %c0_51, %c0_52, %c0_53] : memref<6x10x16x32xf32, #tpu.memory_space<vmem>>, vector<1x10x16x32xf32>
    %48 = vector.shape_cast %47 : vector<1x10x16x32xf32> to vector<10x16x32xf32>
    %49 = vector.shape_cast %46 : vector<10x16x32xf32> to vector<1x10x16x32xf32>
    tpu.vector_store %arg11[%c4_50, %c0_51, %c0_52, %c0_53], %49 {strides = array<i32>} : memref<6x10x16x32xf32, #tpu.memory_space<vmem>>, vector<1x10x16x32xf32>,
    %c0_54 = arith.constant 0 : index
    %c5 = arith.constant 5 : index
    %c0_55 = arith.constant 0 : index
    %c0_56 = arith.constant 0 : index
    %50 = vector.load %arg1[%c0_54, %c5, %c0_55, %c0_56] : memref<1x6x160x5xf32, #tpu.memory_space<vmem>>, vector<1x1x160x5xf32>
    %51 = vector.shape_cast %50 : vector<1x1x160x5xf32> to vector<160x5xf32>
    %c0_57 = arith.constant 0 : index
    %c0_58 = arith.constant 0 : index
    %52 = vector.load %arg3[%c0_57, %c0_58] : memref<5x32xf32, #tpu.memory_space<vmem>>, vector<5x32xf32>
    %cst_59 = arith.constant dense<0.000000e+00> : vector<160x32xf32>
    %53 = tpu.matmul %51, %52, %cst_59 {dimension_numbers = #tpu.dot_dimension_numbers<[1], [0], [0], [1], [0, 0, 1, 1], [], []>} : vector<160x5xf32>, vector<5x32xf32>, vector<160x32xf32> -> vector<160x32xf32>
    %cst_60 = arith.constant 0.000000e+00 : f32
    %54 = vector.broadcast %cst_60 : f32 to vector<160x32xf32>
    %55 = arith.maximumf %53, %54 : vector<160x32xf32>
    %56 = vector.shape_cast %55 : vector<160x32xf32> to vector<10x16x32xf32>
    %c5_61 = arith.constant 5 : index
    %c0_62 = arith.constant 0 : index
    %c0_63 = arith.constant 0 : index
    %c0_64 = arith.constant 0 : index
    %57 = vector.load %arg11[%c5_61, %c0_62, %c0_63, %c0_64] : memref<6x10x16x32xf32, #tpu.memory_space<vmem>>, vector<1x10x16x32xf32>
    %58 = vector.shape_cast %57 : vector<1x10x16x32xf32> to vector<10x16x32xf32>
    %59 = vector.shape_cast %56 : vector<10x16x32xf32> to vector<1x10x16x32xf32>
    tpu.vector_store %arg11[%c5_61, %c0_62, %c0_63, %c0_64], %59 {strides = array<i32>} : memref<6x10x16x32xf32, #tpu.memory_space<vmem>>, vector<1x10x16x32xf32>,
    %cst_65 = arith.constant 0.000000e+00 : f32
    %60 = vector.broadcast %cst_65 : f32 to vector<256x32xf32>
    %c0_66 = arith.constant 0 : index
    %c0_67 = arith.constant 0 : index
    %c0_68 = arith.constant 0 : index
    %c0_69 = arith.constant 0 : index
    %61 = vector.load %arg11[%c0_66, %c0_67, %c0_68, %c0_69] : memref<6x10x16x32xf32, #tpu.memory_space<vmem>>, vector<4x8x8x32xf32>
    %62 = vector.shape_cast %61 : vector<4x8x8x32xf32> to vector<256x32xf32>
    %c0_70 = arith.constant 0 : index
    %c0_71 = arith.constant 0 : index
    %c0_72 = arith.constant 0 : index
    %63 = vector.load %arg4[%c0_70, %c0_71, %c0_72] : memref<27x32x32xf32, #tpu.memory_space<vmem>>, vector<1x32x32xf32>
    %64 = vector.shape_cast %63 : vector<1x32x32xf32> to vector<32x32xf32>
    %cst_73 = arith.constant dense<0.000000e+00> : vector<256x32xf32>
    %65 = tpu.matmul %62, %64, %cst_73 {dimension_numbers = #tpu.dot_dimension_numbers<[1], [0], [0], [1], [0, 0, 1, 1], [], []>} : vector<256x32xf32>, vector<32x32xf32>, vector<256x32xf32> -> vector<256x32xf32>
    %66 = arith.addf %60, %65 : vector<256x32xf32>
    %c0_74 = arith.constant 0 : index
    %c0_75 = arith.constant 0 : index
    %c1_76 = arith.constant 1 : index
    %c0_77 = arith.constant 0 : index
    %67 = vector.load %arg11[%c0_74, %c0_75, %c1_76, %c0_77] : memref<6x10x16x32xf32, #tpu.memory_space<vmem>>, vector<4x8x8x32xf32>
    %68 = vector.shape_cast %67 : vector<4x8x8x32xf32> to vector<256x32xf32>
    %c1_78 = arith.constant 1 : index
    %c0_79 = arith.constant 0 : index
    %c0_80 = arith.constant 0 : index
    %69 = vector.load %arg4[%c1_78, %c0_79, %c0_80] : memref<27x32x32xf32, #tpu.memory_space<vmem>>, vector<1x32x32xf32>
    %70 = vector.shape_cast %69 : vector<1x32x32xf32> to vector<32x32xf32>
    %cst_81 = arith.constant dense<0.000000e+00> : vector<256x32xf32>
    %71 = tpu.matmul %68, %70, %cst_81 {dimension_numbers = #tpu.dot_dimension_numbers<[1], [0], [0], [1], [0, 0, 1, 1], [], []>} : vector<256x32xf32>, vector<32x32xf32>, vector<256x32xf32> -> vector<256x32xf32>
    %72 = arith.addf %66, %71 : vector<256x32xf32>
    %c0_82 = arith.constant 0 : index
    %c0_83 = arith.constant 0 : index
    %c2_84 = arith.constant 2 : index
    %c0_85 = arith.constant 0 : index
    %73 = vector.load %arg11[%c0_82, %c0_83, %c2_84, %c0_85] : memref<6x10x16x32xf32, #tpu.memory_space<vmem>>, vector<4x8x8x32xf32>
    %74 = vector.shape_cast %73 : vector<4x8x8x32xf32> to vector<256x32xf32>
    %c2_86 = arith.constant 2 : index
    %c0_87 = arith.constant 0 : index
    %c0_88 = arith.constant 0 : index
    %75 = vector.load %arg4[%c2_86, %c0_87, %c0_88] : memref<27x32x32xf32, #tpu.memory_space<vmem>>, vector<1x32x32xf32>
    %76 = vector.shape_cast %75 : vector<1x32x32xf32> to vector<32x32xf32>
    %cst_89 = arith.constant dense<0.000000e+00> : vector<256x32xf32>
    %77 = tpu.matmul %74, %76, %cst_89 {dimension_numbers = #tpu.dot_dimension_numbers<[1], [0], [0], [1], [0, 0, 1, 1], [], []>} : vector<256x32xf32>, vector<32x32xf32>, vector<256x32xf32> -> vector<256x32xf32>
    %78 = arith.addf %72, %77 : vector<256x32xf32>
    %c0_90 = arith.constant 0 : index
    %c1_91 = arith.constant 1 : index
    %c0_92 = arith.constant 0 : index
    %c0_93 = arith.constant 0 : index
    %79 = vector.load %arg11[%c0_90, %c1_91, %c0_92, %c0_93] : memref<6x10x16x32xf32, #tpu.memory_space<vmem>>, vector<4x8x8x32xf32>
    %80 = vector.shape_cast %79 : vector<4x8x8x32xf32> to vector<256x32xf32>
    %c3_94 = arith.constant 3 : index
    %c0_95 = arith.constant 0 : index
    %c0_96 = arith.constant 0 : index
    %81 = vector.load %arg4[%c3_94, %c0_95, %c0_96] : memref<27x32x32xf32, #tpu.memory_space<vmem>>, vector<1x32x32xf32>
    %82 = vector.shape_cast %81 : vector<1x32x32xf32> to vector<32x32xf32>
    %cst_97 = arith.constant dense<0.000000e+00> : vector<256x32xf32>
    %83 = tpu.matmul %80, %82, %cst_97 {dimension_numbers = #tpu.dot_dimension_numbers<[1], [0], [0], [1], [0, 0, 1, 1], [], []>} : vector<256x32xf32>, vector<32x32xf32>, vector<256x32xf32> -> vector<256x32xf32>
    %84 = arith.addf %78, %83 : vector<256x32xf32>
    %c0_98 = arith.constant 0 : index
    %c1_99 = arith.constant 1 : index
    %c1_100 = arith.constant 1 : index
    %c0_101 = arith.constant 0 : index
    %85 = vector.load %arg11[%c0_98, %c1_99, %c1_100, %c0_101] : memref<6x10x16x32xf32, #tpu.memory_space<vmem>>, vector<4x8x8x32xf32>
    %86 = vector.shape_cast %85 : vector<4x8x8x32xf32> to vector<256x32xf32>
    %c4_102 = arith.constant 4 : index
    %c0_103 = arith.constant 0 : index
    %c0_104 = arith.constant 0 : index
    %87 = vector.load %arg4[%c4_102, %c0_103, %c0_104] : memref<27x32x32xf32, #tpu.memory_space<vmem>>, vector<1x32x32xf32>
    %88 = vector.shape_cast %87 : vector<1x32x32xf32> to vector<32x32xf32>
    %cst_105 = arith.constant dense<0.000000e+00> : vector<256x32xf32>
    %89 = tpu.matmul %86, %88, %cst_105 {dimension_numbers = #tpu.dot_dimension_numbers<[1], [0], [0], [1], [0, 0, 1, 1], [], []>} : vector<256x32xf32>, vector<32x32xf32>, vector<256x32xf32> -> vector<256x32xf32>
    %90 = arith.addf %84, %89 : vector<256x32xf32>
    %c0_106 = arith.constant 0 : index
    %c1_107 = arith.constant 1 : index
    %c2_108 = arith.constant 2 : index
    %c0_109 = arith.constant 0 : index
    %91 = vector.load %arg11[%c0_106, %c1_107, %c2_108, %c0_109] : memref<6x10x16x32xf32, #tpu.memory_space<vmem>>, vector<4x8x8x32xf32>
    %92 = vector.shape_cast %91 : vector<4x8x8x32xf32> to vector<256x32xf32>
    %c5_110 = arith.constant 5 : index
    %c0_111 = arith.constant 0 : index
    %c0_112 = arith.constant 0 : index
    %93 = vector.load %arg4[%c5_110, %c0_111, %c0_112] : memref<27x32x32xf32, #tpu.memory_space<vmem>>, vector<1x32x32xf32>
    %94 = vector.shape_cast %93 : vector<1x32x32xf32> to vector<32x32xf32>
    %cst_113 = arith.constant dense<0.000000e+00> : vector<256x32xf32>
    %95 = tpu.matmul %92, %94, %cst_113 {dimension_numbers = #tpu.dot_dimension_numbers<[1], [0], [0], [1], [0, 0, 1, 1], [], []>} : vector<256x32xf32>, vector<32x32xf32>, vector<256x32xf32> -> vector<256x32xf32>
    %96 = arith.addf %90, %95 : vector<256x32xf32>
    %c0_114 = arith.constant 0 : index
    %c2_115 = arith.constant 2 : index
    %c0_116 = arith.constant 0 : index
    %c0_117 = arith.constant 0 : index
    %97 = vector.load %arg11[%c0_114, %c2_115, %c0_116, %c0_117] : memref<6x10x16x32xf32, #tpu.memory_space<vmem>>, vector<4x8x8x32xf32>
    %98 = vector.shape_cast %97 : vector<4x8x8x32xf32> to vector<256x32xf32>
    %c6 = arith.constant 6 : index
    %c0_118 = arith.constant 0 : index
    %c0_119 = arith.constant 0 : index
    %99 = vector.load %arg4[%c6, %c0_118, %c0_119] : memref<27x32x32xf32, #tpu.memory_space<vmem>>, vector<1x32x32xf32>
    %100 = vector.shape_cast %99 : vector<1x32x32xf32> to vector<32x32xf32>
    %cst_120 = arith.constant dense<0.000000e+00> : vector<256x32xf32>
    %101 = tpu.matmul %98, %100, %cst_120 {dimension_numbers = #tpu.dot_dimension_numbers<[1], [0], [0], [1], [0, 0, 1, 1], [], []>} : vector<256x32xf32>, vector<32x32xf32>, vector<256x32xf32> -> vector<256x32xf32>
    %102 = arith.addf %96, %101 : vector<256x32xf32>
    %c0_121 = arith.constant 0 : index
    %c2_122 = arith.constant 2 : index
    %c1_123 = arith.constant 1 : index
    %c0_124 = arith.constant 0 : index
    %103 = vector.load %arg11[%c0_121, %c2_122, %c1_123, %c0_124] : memref<6x10x16x32xf32, #tpu.memory_space<vmem>>, vector<4x8x8x32xf32>
    %104 = vector.shape_cast %103 : vector<4x8x8x32xf32> to vector<256x32xf32>
    %c7 = arith.constant 7 : index
    %c0_125 = arith.constant 0 : index
    %c0_126 = arith.constant 0 : index
    %105 = vector.load %arg4[%c7, %c0_125, %c0_126] : memref<27x32x32xf32, #tpu.memory_space<vmem>>, vector<1x32x32xf32>
    %106 = vector.shape_cast %105 : vector<1x32x32xf32> to vector<32x32xf32>
    %cst_127 = arith.constant dense<0.000000e+00> : vector<256x32xf32>
    %107 = tpu.matmul %104, %106, %cst_127 {dimension_numbers = #tpu.dot_dimension_numbers<[1], [0], [0], [1], [0, 0, 1, 1], [], []>} : vector<256x32xf32>, vector<32x32xf32>, vector<256x32xf32> -> vector<256x32xf32>
    %108 = arith.addf %102, %107 : vector<256x32xf32>
    %c0_128 = arith.constant 0 : index
    %c2_129 = arith.constant 2 : index
    %c2_130 = arith.constant 2 : index
    %c0_131 = arith.constant 0 : index
    %109 = vector.load %arg11[%c0_128, %c2_129, %c2_130, %c0_131] : memref<6x10x16x32xf32, #tpu.memory_space<vmem>>, vector<4x8x8x32xf32>
    %110 = vector.shape_cast %109 : vector<4x8x8x32xf32> to vector<256x32xf32>
    %c8 = arith.constant 8 : index
    %c0_132 = arith.constant 0 : index
    %c0_133 = arith.constant 0 : index
    %111 = vector.load %arg4[%c8, %c0_132, %c0_133] : memref<27x32x32xf32, #tpu.memory_space<vmem>>, vector<1x32x32xf32>
    %112 = vector.shape_cast %111 : vector<1x32x32xf32> to vector<32x32xf32>
    %cst_134 = arith.constant dense<0.000000e+00> : vector<256x32xf32>
    %113 = tpu.matmul %110, %112, %cst_134 {dimension_numbers = #tpu.dot_dimension_numbers<[1], [0], [0], [1], [0, 0, 1, 1], [], []>} : vector<256x32xf32>, vector<32x32xf32>, vector<256x32xf32> -> vector<256x32xf32>
    %114 = arith.addf %108, %113 : vector<256x32xf32>
    %c1_135 = arith.constant 1 : index
    %c0_136 = arith.constant 0 : index
    %c0_137 = arith.constant 0 : index
    %c0_138 = arith.constant 0 : index
    %115 = vector.load %arg11[%c1_135, %c0_136, %c0_137, %c0_138] : memref<6x10x16x32xf32, #tpu.memory_space<vmem>>, vector<4x8x8x32xf32>
    %116 = vector.shape_cast %115 : vector<4x8x8x32xf32> to vector<256x32xf32>
    %c9 = arith.constant 9 : index
    %c0_139 = arith.constant 0 : index
    %c0_140 = arith.constant 0 : index
    %117 = vector.load %arg4[%c9, %c0_139, %c0_140] : memref<27x32x32xf32, #tpu.memory_space<vmem>>, vector<1x32x32xf32>
    %118 = vector.shape_cast %117 : vector<1x32x32xf32> to vector<32x32xf32>
    %cst_141 = arith.constant dense<0.000000e+00> : vector<256x32xf32>
    %119 = tpu.matmul %116, %118, %cst_141 {dimension_numbers = #tpu.dot_dimension_numbers<[1], [0], [0], [1], [0, 0, 1, 1], [], []>} : vector<256x32xf32>, vector<32x32xf32>, vector<256x32xf32> -> vector<256x32xf32>
    %120 = arith.addf %114, %119 : vector<256x32xf32>
    %c1_142 = arith.constant 1 : index
    %c0_143 = arith.constant 0 : index
    %c1_144 = arith.constant 1 : index
    %c0_145 = arith.constant 0 : index
    %121 = vector.load %arg11[%c1_142, %c0_143, %c1_144, %c0_145] : memref<6x10x16x32xf32, #tpu.memory_space<vmem>>, vector<4x8x8x32xf32>
    %122 = vector.shape_cast %121 : vector<4x8x8x32xf32> to vector<256x32xf32>
    %c10 = arith.constant 10 : index
    %c0_146 = arith.constant 0 : index
    %c0_147 = arith.constant 0 : index
    %123 = vector.load %arg4[%c10, %c0_146, %c0_147] : memref<27x32x32xf32, #tpu.memory_space<vmem>>, vector<1x32x32xf32>
    %124 = vector.shape_cast %123 : vector<1x32x32xf32> to vector<32x32xf32>
    %cst_148 = arith.constant dense<0.000000e+00> : vector<256x32xf32>
    %125 = tpu.matmul %122, %124, %cst_148 {dimension_numbers = #tpu.dot_dimension_numbers<[1], [0], [0], [1], [0, 0, 1, 1], [], []>} : vector<256x32xf32>, vector<32x32xf32>, vector<256x32xf32> -> vector<256x32xf32>
    %126 = arith.addf %120, %125 : vector<256x32xf32>
    %c1_149 = arith.constant 1 : index
    %c0_150 = arith.constant 0 : index
    %c2_151 = arith.constant 2 : index
    %c0_152 = arith.constant 0 : index
    %127 = vector.load %arg11[%c1_149, %c0_150, %c2_151, %c0_152] : memref<6x10x16x32xf32, #tpu.memory_space<vmem>>, vector<4x8x8x32xf32>
    %128 = vector.shape_cast %127 : vector<4x8x8x32xf32> to vector<256x32xf32>
    %c11 = arith.constant 11 : index
    %c0_153 = arith.constant 0 : index
    %c0_154 = arith.constant 0 : index
    %129 = vector.load %arg4[%c11, %c0_153, %c0_154] : memref<27x32x32xf32, #tpu.memory_space<vmem>>, vector<1x32x32xf32>
    %130 = vector.shape_cast %129 : vector<1x32x32xf32> to vector<32x32xf32>
    %cst_155 = arith.constant dense<0.000000e+00> : vector<256x32xf32>
    %131 = tpu.matmul %128, %130, %cst_155 {dimension_numbers = #tpu.dot_dimension_numbers<[1], [0], [0], [1], [0, 0, 1, 1], [], []>} : vector<256x32xf32>, vector<32x32xf32>, vector<256x32xf32> -> vector<256x32xf32>
    %132 = arith.addf %126, %131 : vector<256x32xf32>
    %c1_156 = arith.constant 1 : index
    %c1_157 = arith.constant 1 : index
    %c0_158 = arith.constant 0 : index
    %c0_159 = arith.constant 0 : index
    %133 = vector.load %arg11[%c1_156, %c1_157, %c0_158, %c0_159] : memref<6x10x16x32xf32, #tpu.memory_space<vmem>>, vector<4x8x8x32xf32>
    %134 = vector.shape_cast %133 : vector<4x8x8x32xf32> to vector<256x32xf32>
    %c12 = arith.constant 12 : index
    %c0_160 = arith.constant 0 : index
    %c0_161 = arith.constant 0 : index
    %135 = vector.load %arg4[%c12, %c0_160, %c0_161] : memref<27x32x32xf32, #tpu.memory_space<vmem>>, vector<1x32x32xf32>
    %136 = vector.shape_cast %135 : vector<1x32x32xf32> to vector<32x32xf32>
    %cst_162 = arith.constant dense<0.000000e+00> : vector<256x32xf32>
    %137 = tpu.matmul %134, %136, %cst_162 {dimension_numbers = #tpu.dot_dimension_numbers<[1], [0], [0], [1], [0, 0, 1, 1], [], []>} : vector<256x32xf32>, vector<32x32xf32>, vector<256x32xf32> -> vector<256x32xf32>
    %138 = arith.addf %132, %137 : vector<256x32xf32>
    %c1_163 = arith.constant 1 : index
    %c1_164 = arith.constant 1 : index
    %c1_165 = arith.constant 1 : index
    %c0_166 = arith.constant 0 : index
    %139 = vector.load %arg11[%c1_163, %c1_164, %c1_165, %c0_166] : memref<6x10x16x32xf32, #tpu.memory_space<vmem>>, vector<4x8x8x32xf32>
    %140 = vector.shape_cast %139 : vector<4x8x8x32xf32> to vector<256x32xf32>
    %c13 = arith.constant 13 : index
    %c0_167 = arith.constant 0 : index
    %c0_168 = arith.constant 0 : index
    %141 = vector.load %arg4[%c13, %c0_167, %c0_168] : memref<27x32x32xf32, #tpu.memory_space<vmem>>, vector<1x32x32xf32>
    %142 = vector.shape_cast %141 : vector<1x32x32xf32> to vector<32x32xf32>
    %cst_169 = arith.constant dense<0.000000e+00> : vector<256x32xf32>
    %143 = tpu.matmul %140, %142, %cst_169 {dimension_numbers = #tpu.dot_dimension_numbers<[1], [0], [0], [1], [0, 0, 1, 1], [], []>} : vector<256x32xf32>, vector<32x32xf32>, vector<256x32xf32> -> vector<256x32xf32>
    %144 = arith.addf %138, %143 : vector<256x32xf32>
    %c1_170 = arith.constant 1 : index
    %c1_171 = arith.constant 1 : index
    %c2_172 = arith.constant 2 : index
    %c0_173 = arith.constant 0 : index
    %145 = vector.load %arg11[%c1_170, %c1_171, %c2_172, %c0_173] : memref<6x10x16x32xf32, #tpu.memory_space<vmem>>, vector<4x8x8x32xf32>
    %146 = vector.shape_cast %145 : vector<4x8x8x32xf32> to vector<256x32xf32>
    %c14 = arith.constant 14 : index
    %c0_174 = arith.constant 0 : index
    %c0_175 = arith.constant 0 : index
    %147 = vector.load %arg4[%c14, %c0_174, %c0_175] : memref<27x32x32xf32, #tpu.memory_space<vmem>>, vector<1x32x32xf32>
    %148 = vector.shape_cast %147 : vector<1x32x32xf32> to vector<32x32xf32>
    %cst_176 = arith.constant dense<0.000000e+00> : vector<256x32xf32>
    %149 = tpu.matmul %146, %148, %cst_176 {dimension_numbers = #tpu.dot_dimension_numbers<[1], [0], [0], [1], [0, 0, 1, 1], [], []>} : vector<256x32xf32>, vector<32x32xf32>, vector<256x32xf32> -> vector<256x32xf32>
    %150 = arith.addf %144, %149 : vector<256x32xf32>
    %c1_177 = arith.constant 1 : index
    %c2_178 = arith.constant 2 : index
    %c0_179 = arith.constant 0 : index
    %c0_180 = arith.constant 0 : index
    %151 = vector.load %arg11[%c1_177, %c2_178, %c0_179, %c0_180] : memref<6x10x16x32xf32, #tpu.memory_space<vmem>>, vector<4x8x8x32xf32>
    %152 = vector.shape_cast %151 : vector<4x8x8x32xf32> to vector<256x32xf32>
    %c15 = arith.constant 15 : index
    %c0_181 = arith.constant 0 : index
    %c0_182 = arith.constant 0 : index
    %153 = vector.load %arg4[%c15, %c0_181, %c0_182] : memref<27x32x32xf32, #tpu.memory_space<vmem>>, vector<1x32x32xf32>
    %154 = vector.shape_cast %153 : vector<1x32x32xf32> to vector<32x32xf32>
    %cst_183 = arith.constant dense<0.000000e+00> : vector<256x32xf32>
    %155 = tpu.matmul %152, %154, %cst_183 {dimension_numbers = #tpu.dot_dimension_numbers<[1], [0], [0], [1], [0, 0, 1, 1], [], []>} : vector<256x32xf32>, vector<32x32xf32>, vector<256x32xf32> -> vector<256x32xf32>
    %156 = arith.addf %150, %155 : vector<256x32xf32>
    %c1_184 = arith.constant 1 : index
    %c2_185 = arith.constant 2 : index
    %c1_186 = arith.constant 1 : index
    %c0_187 = arith.constant 0 : index
    %157 = vector.load %arg11[%c1_184, %c2_185, %c1_186, %c0_187] : memref<6x10x16x32xf32, #tpu.memory_space<vmem>>, vector<4x8x8x32xf32>
    %158 = vector.shape_cast %157 : vector<4x8x8x32xf32> to vector<256x32xf32>
    %c16 = arith.constant 16 : index
    %c0_188 = arith.constant 0 : index
    %c0_189 = arith.constant 0 : index
    %159 = vector.load %arg4[%c16, %c0_188, %c0_189] : memref<27x32x32xf32, #tpu.memory_space<vmem>>, vector<1x32x32xf32>
    %160 = vector.shape_cast %159 : vector<1x32x32xf32> to vector<32x32xf32>
    %cst_190 = arith.constant dense<0.000000e+00> : vector<256x32xf32>
    %161 = tpu.matmul %158, %160, %cst_190 {dimension_numbers = #tpu.dot_dimension_numbers<[1], [0], [0], [1], [0, 0, 1, 1], [], []>} : vector<256x32xf32>, vector<32x32xf32>, vector<256x32xf32> -> vector<256x32xf32>
    %162 = arith.addf %156, %161 : vector<256x32xf32>
    %c1_191 = arith.constant 1 : index
    %c2_192 = arith.constant 2 : index
    %c2_193 = arith.constant 2 : index
    %c0_194 = arith.constant 0 : index
    %163 = vector.load %arg11[%c1_191, %c2_192, %c2_193, %c0_194] : memref<6x10x16x32xf32, #tpu.memory_space<vmem>>, vector<4x8x8x32xf32>
    %164 = vector.shape_cast %163 : vector<4x8x8x32xf32> to vector<256x32xf32>
    %c17 = arith.constant 17 : index
    %c0_195 = arith.constant 0 : index
    %c0_196 = arith.constant 0 : index
    %165 = vector.load %arg4[%c17, %c0_195, %c0_196] : memref<27x32x32xf32, #tpu.memory_space<vmem>>, vector<1x32x32xf32>
    %166 = vector.shape_cast %165 : vector<1x32x32xf32> to vector<32x32xf32>
    %cst_197 = arith.constant dense<0.000000e+00> : vector<256x32xf32>
    %167 = tpu.matmul %164, %166, %cst_197 {dimension_numbers = #tpu.dot_dimension_numbers<[1], [0], [0], [1], [0, 0, 1, 1], [], []>} : vector<256x32xf32>, vector<32x32xf32>, vector<256x32xf32> -> vector<256x32xf32>
    %168 = arith.addf %162, %167 : vector<256x32xf32>
    %c2_198 = arith.constant 2 : index
    %c0_199 = arith.constant 0 : index
    %c0_200 = arith.constant 0 : index
    %c0_201 = arith.constant 0 : index
    %169 = vector.load %arg11[%c2_198, %c0_199, %c0_200, %c0_201] : memref<6x10x16x32xf32, #tpu.memory_space<vmem>>, vector<4x8x8x32xf32>
    %170 = vector.shape_cast %169 : vector<4x8x8x32xf32> to vector<256x32xf32>
    %c18 = arith.constant 18 : index
    %c0_202 = arith.constant 0 : index
    %c0_203 = arith.constant 0 : index
    %171 = vector.load %arg4[%c18, %c0_202, %c0_203] : memref<27x32x32xf32, #tpu.memory_space<vmem>>, vector<1x32x32xf32>
    %172 = vector.shape_cast %171 : vector<1x32x32xf32> to vector<32x32xf32>
    %cst_204 = arith.constant dense<0.000000e+00> : vector<256x32xf32>
    %173 = tpu.matmul %170, %172, %cst_204 {dimension_numbers = #tpu.dot_dimension_numbers<[1], [0], [0], [1], [0, 0, 1, 1], [], []>} : vector<256x32xf32>, vector<32x32xf32>, vector<256x32xf32> -> vector<256x32xf32>
    %174 = arith.addf %168, %173 : vector<256x32xf32>
    %c2_205 = arith.constant 2 : index
    %c0_206 = arith.constant 0 : index
    %c1_207 = arith.constant 1 : index
    %c0_208 = arith.constant 0 : index
    %175 = vector.load %arg11[%c2_205, %c0_206, %c1_207, %c0_208] : memref<6x10x16x32xf32, #tpu.memory_space<vmem>>, vector<4x8x8x32xf32>
    %176 = vector.shape_cast %175 : vector<4x8x8x32xf32> to vector<256x32xf32>
    %c19 = arith.constant 19 : index
    %c0_209 = arith.constant 0 : index
    %c0_210 = arith.constant 0 : index
    %177 = vector.load %arg4[%c19, %c0_209, %c0_210] : memref<27x32x32xf32, #tpu.memory_space<vmem>>, vector<1x32x32xf32>
    %178 = vector.shape_cast %177 : vector<1x32x32xf32> to vector<32x32xf32>
    %cst_211 = arith.constant dense<0.000000e+00> : vector<256x32xf32>
    %179 = tpu.matmul %176, %178, %cst_211 {dimension_numbers = #tpu.dot_dimension_numbers<[1], [0], [0], [1], [0, 0, 1, 1], [], []>} : vector<256x32xf32>, vector<32x32xf32>, vector<256x32xf32> -> vector<256x32xf32>
    %180 = arith.addf %174, %179 : vector<256x32xf32>
    %c2_212 = arith.constant 2 : index
    %c0_213 = arith.constant 0 : index
    %c2_214 = arith.constant 2 : index
    %c0_215 = arith.constant 0 : index
    %181 = vector.load %arg11[%c2_212, %c0_213, %c2_214, %c0_215] : memref<6x10x16x32xf32, #tpu.memory_space<vmem>>, vector<4x8x8x32xf32>
    %182 = vector.shape_cast %181 : vector<4x8x8x32xf32> to vector<256x32xf32>
    %c20 = arith.constant 20 : index
    %c0_216 = arith.constant 0 : index
    %c0_217 = arith.constant 0 : index
    %183 = vector.load %arg4[%c20, %c0_216, %c0_217] : memref<27x32x32xf32, #tpu.memory_space<vmem>>, vector<1x32x32xf32>
    %184 = vector.shape_cast %183 : vector<1x32x32xf32> to vector<32x32xf32>
    %cst_218 = arith.constant dense<0.000000e+00> : vector<256x32xf32>
    %185 = tpu.matmul %182, %184, %cst_218 {dimension_numbers = #tpu.dot_dimension_numbers<[1], [0], [0], [1], [0, 0, 1, 1], [], []>} : vector<256x32xf32>, vector<32x32xf32>, vector<256x32xf32> -> vector<256x32xf32>
    %186 = arith.addf %180, %185 : vector<256x32xf32>
    %c2_219 = arith.constant 2 : index
    %c1_220 = arith.constant 1 : index
    %c0_221 = arith.constant 0 : index
    %c0_222 = arith.constant 0 : index
    %187 = vector.load %arg11[%c2_219, %c1_220, %c0_221, %c0_222] : memref<6x10x16x32xf32, #tpu.memory_space<vmem>>, vector<4x8x8x32xf32>
    %188 = vector.shape_cast %187 : vector<4x8x8x32xf32> to vector<256x32xf32>
    %c21 = arith.constant 21 : index
    %c0_223 = arith.constant 0 : index
    %c0_224 = arith.constant 0 : index
    %189 = vector.load %arg4[%c21, %c0_223, %c0_224] : memref<27x32x32xf32, #tpu.memory_space<vmem>>, vector<1x32x32xf32>
    %190 = vector.shape_cast %189 : vector<1x32x32xf32> to vector<32x32xf32>
    %cst_225 = arith.constant dense<0.000000e+00> : vector<256x32xf32>
    %191 = tpu.matmul %188, %190, %cst_225 {dimension_numbers = #tpu.dot_dimension_numbers<[1], [0], [0], [1], [0, 0, 1, 1], [], []>} : vector<256x32xf32>, vector<32x32xf32>, vector<256x32xf32> -> vector<256x32xf32>
    %192 = arith.addf %186, %191 : vector<256x32xf32>
    %c2_226 = arith.constant 2 : index
    %c1_227 = arith.constant 1 : index
    %c1_228 = arith.constant 1 : index
    %c0_229 = arith.constant 0 : index
    %193 = vector.load %arg11[%c2_226, %c1_227, %c1_228, %c0_229] : memref<6x10x16x32xf32, #tpu.memory_space<vmem>>, vector<4x8x8x32xf32>
    %194 = vector.shape_cast %193 : vector<4x8x8x32xf32> to vector<256x32xf32>
    %c22 = arith.constant 22 : index
    %c0_230 = arith.constant 0 : index
    %c0_231 = arith.constant 0 : index
    %195 = vector.load %arg4[%c22, %c0_230, %c0_231] : memref<27x32x32xf32, #tpu.memory_space<vmem>>, vector<1x32x32xf32>
    %196 = vector.shape_cast %195 : vector<1x32x32xf32> to vector<32x32xf32>
    %cst_232 = arith.constant dense<0.000000e+00> : vector<256x32xf32>
    %197 = tpu.matmul %194, %196, %cst_232 {dimension_numbers = #tpu.dot_dimension_numbers<[1], [0], [0], [1], [0, 0, 1, 1], [], []>} : vector<256x32xf32>, vector<32x32xf32>, vector<256x32xf32> -> vector<256x32xf32>
    %198 = arith.addf %192, %197 : vector<256x32xf32>
    %c2_233 = arith.constant 2 : index
    %c1_234 = arith.constant 1 : index
    %c2_235 = arith.constant 2 : index
    %c0_236 = arith.constant 0 : index
    %199 = vector.load %arg11[%c2_233, %c1_234, %c2_235, %c0_236] : memref<6x10x16x32xf32, #tpu.memory_space<vmem>>, vector<4x8x8x32xf32>
    %200 = vector.shape_cast %199 : vector<4x8x8x32xf32> to vector<256x32xf32>
    %c23 = arith.constant 23 : index
    %c0_237 = arith.constant 0 : index
    %c0_238 = arith.constant 0 : index
    %201 = vector.load %arg4[%c23, %c0_237, %c0_238] : memref<27x32x32xf32, #tpu.memory_space<vmem>>, vector<1x32x32xf32>
    %202 = vector.shape_cast %201 : vector<1x32x32xf32> to vector<32x32xf32>
    %cst_239 = arith.constant dense<0.000000e+00> : vector<256x32xf32>
    %203 = tpu.matmul %200, %202, %cst_239 {dimension_numbers = #tpu.dot_dimension_numbers<[1], [0], [0], [1], [0, 0, 1, 1], [], []>} : vector<256x32xf32>, vector<32x32xf32>, vector<256x32xf32> -> vector<256x32xf32>
    %204 = arith.addf %198, %203 : vector<256x32xf32>
    %c2_240 = arith.constant 2 : index
    %c2_241 = arith.constant 2 : index
    %c0_242 = arith.constant 0 : index
    %c0_243 = arith.constant 0 : index
    %205 = vector.load %arg11[%c2_240, %c2_241, %c0_242, %c0_243] : memref<6x10x16x32xf32, #tpu.memory_space<vmem>>, vector<4x8x8x32xf32>
    %206 = vector.shape_cast %205 : vector<4x8x8x32xf32> to vector<256x32xf32>
    %c24 = arith.constant 24 : index
    %c0_244 = arith.constant 0 : index
    %c0_245 = arith.constant 0 : index
    %207 = vector.load %arg4[%c24, %c0_244, %c0_245] : memref<27x32x32xf32, #tpu.memory_space<vmem>>, vector<1x32x32xf32>
    %208 = vector.shape_cast %207 : vector<1x32x32xf32> to vector<32x32xf32>
    %cst_246 = arith.constant dense<0.000000e+00> : vector<256x32xf32>
    %209 = tpu.matmul %206, %208, %cst_246 {dimension_numbers = #tpu.dot_dimension_numbers<[1], [0], [0], [1], [0, 0, 1, 1], [], []>} : vector<256x32xf32>, vector<32x32xf32>, vector<256x32xf32> -> vector<256x32xf32>
    %210 = arith.addf %204, %209 : vector<256x32xf32>
    %c2_247 = arith.constant 2 : index
    %c2_248 = arith.constant 2 : index
    %c1_249 = arith.constant 1 : index
    %c0_250 = arith.constant 0 : index
    %211 = vector.load %arg11[%c2_247, %c2_248, %c1_249, %c0_250] : memref<6x10x16x32xf32, #tpu.memory_space<vmem>>, vector<4x8x8x32xf32>
    %212 = vector.shape_cast %211 : vector<4x8x8x32xf32> to vector<256x32xf32>
    %c25 = arith.constant 25 : index
    %c0_251 = arith.constant 0 : index
    %c0_252 = arith.constant 0 : index
    %213 = vector.load %arg4[%c25, %c0_251, %c0_252] : memref<27x32x32xf32, #tpu.memory_space<vmem>>, vector<1x32x32xf32>
    %214 = vector.shape_cast %213 : vector<1x32x32xf32> to vector<32x32xf32>
    %cst_253 = arith.constant dense<0.000000e+00> : vector<256x32xf32>
    %215 = tpu.matmul %212, %214, %cst_253 {dimension_numbers = #tpu.dot_dimension_numbers<[1], [0], [0], [1], [0, 0, 1, 1], [], []>} : vector<256x32xf32>, vector<32x32xf32>, vector<256x32xf32> -> vector<256x32xf32>
    %216 = arith.addf %210, %215 : vector<256x32xf32>
    %c2_254 = arith.constant 2 : index
    %c2_255 = arith.constant 2 : index
    %c2_256 = arith.constant 2 : index
    %c0_257 = arith.constant 0 : index
    %217 = vector.load %arg11[%c2_254, %c2_255, %c2_256, %c0_257] : memref<6x10x16x32xf32, #tpu.memory_space<vmem>>, vector<4x8x8x32xf32>
    %218 = vector.shape_cast %217 : vector<4x8x8x32xf32> to vector<256x32xf32>
    %c26 = arith.constant 26 : index
    %c0_258 = arith.constant 0 : index
    %c0_259 = arith.constant 0 : index
    %219 = vector.load %arg4[%c26, %c0_258, %c0_259] : memref<27x32x32xf32, #tpu.memory_space<vmem>>, vector<1x32x32xf32>
    %220 = vector.shape_cast %219 : vector<1x32x32xf32> to vector<32x32xf32>
    %cst_260 = arith.constant dense<0.000000e+00> : vector<256x32xf32>
    %221 = tpu.matmul %218, %220, %cst_260 {dimension_numbers = #tpu.dot_dimension_numbers<[1], [0], [0], [1], [0, 0, 1, 1], [], []>} : vector<256x32xf32>, vector<32x32xf32>, vector<256x32xf32> -> vector<256x32xf32>
    %222 = arith.addf %216, %221 : vector<256x32xf32>
    %c0_261 = arith.constant 0 : index
    %c0_262 = arith.constant 0 : index
    %223 = vector.load %arg5[%c0_261, %c0_262] : memref<1x32xf32, #tpu.memory_space<vmem>>, vector<1x32xf32>
    %224 = vector.broadcast %223 : vector<1x32xf32> to vector<256x32xf32>
    %225 = arith.addf %222, %224 : vector<256x32xf32>
    %cst_263 = arith.constant 0.000000e+00 : f32
    %226 = vector.broadcast %cst_263 : f32 to vector<256x32xf32>
    %227 = arith.maximumf %225, %226 : vector<256x32xf32>
    %c0_264 = arith.constant 0 : index
    %c0_265 = arith.constant 0 : index
    %228 = vector.load %arg6[%c0_264, %c0_265] : memref<32x4xf32, #tpu.memory_space<vmem>>, vector<32x4xf32>
    %cst_266 = arith.constant dense<0.000000e+00> : vector<256x4xf32>
    %229 = tpu.matmul %227, %228, %cst_266 {dimension_numbers = #tpu.dot_dimension_numbers<[1], [0], [0], [1], [0, 0, 1, 1], [], []>} : vector<256x32xf32>, vector<32x4xf32>, vector<256x4xf32> -> vector<256x4xf32>
    %c0_267 = arith.constant 0 : index
    %c0_268 = arith.constant 0 : index
    %230 = vector.load %arg7[%c0_267, %c0_268] : memref<1x4xf32, #tpu.memory_space<vmem>>, vector<1x4xf32>
    %231 = vector.broadcast %230 : vector<1x4xf32> to vector<256x4xf32>
    %232 = arith.addf %229, %231 : vector<256x4xf32>
    %cst_269 = arith.constant 0.000000e+00 : f32
    %233 = vector.broadcast %cst_269 : f32 to vector<256x4xf32>
    %234 = arith.maximumf %232, %233 : vector<256x4xf32>
    %c0_270 = arith.constant 0 : index
    %c0_271 = arith.constant 0 : index
    %c0_272 = arith.constant 0 : index
    %235 = vector.load %arg2[%c0_270, %c0_271, %c0_272] : memref<1x256x4xf32, #tpu.memory_space<vmem>>, vector<1x256x4xf32>
    %236 = vector.shape_cast %235 : vector<1x256x4xf32> to vector<256x4xf32>
    %237 = arith.addf %236, %234 : vector<256x4xf32>
    %c0_273 = arith.constant 0 : index
    %c0_274 = arith.constant 0 : index
    %c0_275 = arith.constant 0 : index
    %238 = vector.load %arg8[%c0_273, %c0_274, %c0_275] : memref<1x256x4xf32, #tpu.memory_space<vmem>>, vector<1x256x4xf32>
    %239 = vector.shape_cast %238 : vector<1x256x4xf32> to vector<256x4xf32>
    %240 = vector.shape_cast %237 : vector<256x4xf32> to vector<1x256x4xf32>
    tpu.vector_store %arg8[%c0_273, %c0_274, %c0_275], %240 {strides = array<i32>} : memref<1x256x4xf32, #tpu.memory_space<vmem>>, vector<1x256x4xf32>,
    %cst_276 = arith.constant dense<0.000000e+00> : vector<4xf32>
    %241 = vector.multi_reduction <add>, %237, %cst_276 [0] : vector<256x4xf32> to vector<4xf32>
    %242 = vector.shape_cast %241 : vector<4xf32> to vector<1x4xf32>
    %c0_277 = arith.constant 0 : index
    %c0_278 = arith.constant 0 : index
    %c0_279 = arith.constant 0 : index
    %243 = vector.load %arg9[%c0_277, %c0_278, %c0_279] : memref<1x1x4xf32, #tpu.memory_space<vmem>>, vector<1x1x4xf32>
    %244 = vector.shape_cast %243 : vector<1x1x4xf32> to vector<1x4xf32>
    %245 = vector.shape_cast %242 : vector<1x4xf32> to vector<1x1x4xf32>
    tpu.vector_store %arg9[%c0_277, %c0_278, %c0_279], %245 {strides = array<i32>} : memref<1x1x4xf32, #tpu.memory_space<vmem>>, vector<1x1x4xf32>,
    %246 = arith.mulf %237, %237 : vector<256x4xf32>
    %cst_280 = arith.constant dense<0.000000e+00> : vector<4xf32>
    %247 = vector.multi_reduction <add>, %246, %cst_280 [0] : vector<256x4xf32> to vector<4xf32>
    %248 = vector.shape_cast %247 : vector<4xf32> to vector<1x4xf32>
    %c0_281 = arith.constant 0 : index
    %c0_282 = arith.constant 0 : index
    %c0_283 = arith.constant 0 : index
    %249 = vector.load %arg10[%c0_281, %c0_282, %c0_283] : memref<1x1x4xf32, #tpu.memory_space<vmem>>, vector<1x1x4xf32>
    %250 = vector.shape_cast %249 : vector<1x1x4xf32> to vector<1x4xf32>
    %251 = vector.shape_cast %248 : vector<1x4xf32> to vector<1x1x4xf32>
    tpu.vector_store %arg10[%c0_281, %c0_282, %c0_283], %251 {strides = array<i32>} : memref<1x1x4xf32, #tpu.memory_space<vmem>>, vector<1x1x4xf32>,
    return
  }
  func.func @transform_0(%arg0: i32) -> (i32, i32, i32, i32) {
    %c0_i32 = arith.constant 0 : i32
    %c0_i32_0 = arith.constant 0 : i32
    %c0_i32_1 = arith.constant 0 : i32
    %c0_i32_2 = arith.constant 0 : i32
    return %arg0, %c0_i32, %c0_i32_0, %c0_i32_1 : i32, i32, i32, i32
  }
  func.func @transform_1(%arg0: i32) -> (i32, i32, i32) {
    %c0_i32 = arith.constant 0 : i32
    %c0_i32_0 = arith.constant 0 : i32
    %c0_i32_1 = arith.constant 0 : i32
    return %arg0, %c0_i32, %c0_i32_0 : i32, i32, i32
  }
  func.func @transform_2(%arg0: i32) -> (i32, i32) {
    %c0_i32 = arith.constant 0 : i32
    %c0_i32_0 = arith.constant 0 : i32
    %c0_i32_1 = arith.constant 0 : i32
    return %c0_i32, %c0_i32_0 : i32, i32
  }
  func.func @transform_3(%arg0: i32) -> (i32, i32, i32) {
    %c0_i32 = arith.constant 0 : i32
    %c0_i32_0 = arith.constant 0 : i32
    %c0_i32_1 = arith.constant 0 : i32
    %c0_i32_2 = arith.constant 0 : i32
    return %c0_i32, %c0_i32_0, %c0_i32_1 : i32, i32, i32
  }
  func.func @transform_4(%arg0: i32) -> (i32, i32) {
    %c0_i32 = arith.constant 0 : i32
    %c0_i32_0 = arith.constant 0 : i32
    %c0_i32_1 = arith.constant 0 : i32
    return %c0_i32, %c0_i32_0 : i32, i32
  }
  func.func @transform_5(%arg0: i32) -> (i32, i32) {
    %c0_i32 = arith.constant 0 : i32
    %c0_i32_0 = arith.constant 0 : i32
    %c0_i32_1 = arith.constant 0 : i32
    return %c0_i32, %c0_i32_0 : i32, i32
  }
  func.func @transform_6(%arg0: i32) -> (i32, i32) {
    %c0_i32 = arith.constant 0 : i32
    %c0_i32_0 = arith.constant 0 : i32
    %c0_i32_1 = arith.constant 0 : i32
    return %c0_i32, %c0_i32_0 : i32, i32
  }
  func.func @transform_7(%arg0: i32) -> (i32, i32, i32) {
    %c0_i32 = arith.constant 0 : i32
    %c0_i32_0 = arith.constant 0 : i32
    %c0_i32_1 = arith.constant 0 : i32
    return %arg0, %c0_i32, %c0_i32_0 : i32, i32, i32
  }
  func.func @transform_8(%arg0: i32) -> (i32, i32, i32) {
    %c0_i32 = arith.constant 0 : i32
    %c0_i32_0 = arith.constant 0 : i32
    %c0_i32_1 = arith.constant 0 : i32
    return %arg0, %c0_i32, %c0_i32_0 : i32, i32, i32
  }
  func.func @transform_9(%arg0: i32) -> (i32, i32, i32) {
    %c0_i32 = arith.constant 0 : i32
    %c0_i32_0 = arith.constant 0 : i32
    %c0_i32_1 = arith.constant 0 : i32
    return %arg0, %c0_i32, %c0_i32_0 : i32, i32, i32
  }
}

</mosaic_0001>

<bundles_post_ra>
// kernel: _lambda_.3
= control target key start
LH: loop header
LB: loop body
LE: loop exit
PB: predicated region body
PF: predicated region fallthrough
CT: control target
= control target key end

     0   :  { %s585_s18 = smov 0   ;;  %s985_s0 = inlined_call_operand.vmem [shape: f32[2,256,4], index: 0, kind: input, shape index: {}]   ;;  %s986_s1 = inlined_call_operand.vmem [shape: f32[2,1,4], index: 1, kind: input, shape index: {}]   ;;  %s987_s2 = inlined_call_operand.vmem [shape: f32[2,1,4], index: 2, kind: input, shape index: {}]   ;;  %s988_s3 = inlined_call_operand.vmem [shape: f32[1,4], index: 3, kind: input, shape index: {}]   ;;  %s989_s4 = inlined_call_operand.vmem [shape: f32[1,4], index: 4, kind: input, shape index: {}]   ;;  %s990_s5 = inlined_call_operand.vmem [shape: f32[2,256,4], index: 5, kind: output, shape index: {}]  }
   0x1 LB: > { %s521_s19 = sadd.s32 4294967295, %s552_s18   ;;  %p525_p0 = scmp.ge.s32.totalorder %s552_s18, 1  ;;  %s552_s18 = sphi %s585_s18, %s15_s18  }
   0x2   : > { %p187_p1 = scmp.lt.s32.totalorder %s552_s18, 3 }
   0x4   : > { %p188_p2 = pnand %p525_p0, %p187_p1 }
   0x5   : > { %p215_p3 = scmp.lt.s32.totalorder (!%p188_p2), %s521_s19, 1 }
   0x6   : > { %191 = sbr.rel (%p188_p2) target bundleno = 83 (0x53), region = 40 }
   0xb   : > { %v225_v0 = vld [vmem:[%s986_s1] sm:$0x1]  ;;  %v226_v1 = vld [vmem:[%s986_s1 + $0x1] sm:$0x1]  ;;  %v233_v2 = vlaneseq  ;;  %v554_v5 = vmov 1966171168  }
   0xc   : > { %v254_v3 = vld [vmem:[%s987_s2] sm:$0x1]  ;;  %v255_v4 = vld [vmem:[%s987_s2 + $0x1] sm:$0x1]  ;;  %v231_v6 = vunpack.c.l.s4 %v554_v5  ;;  %v229_v8 = vcombine.low %v225_v0, %v226_v1  ;;  %vm245_vm0 = vcmask 25600   ;;  %s992_s19 = smov (!%p215_p3, %s521_s19), 1 }
   0xd   : > { %v605_v7 = vshrl.u32 %v233_v2, 7  ;;  %v258_v10 = vcombine.low %v254_v3, %v255_v4  ;;  %s533_s28 = sshll.u32 %s992_s19, 8  ;;  %v284_v51 = vld [vmem:[%s988_s3] sm:$0x1]  ;;  %vm433_vm1 = vcmask 31744  }
   0xe   : > { %v232_v9 = vunpack.c.0.s8 %v231_v6  ;;  %s620_s6 = scalar_lea.vmem %s985_s0, %s533_s28  ;;  %s808_s13 = scalar_lea.vmem %s990_s5, %s533_s28 }
   0xf   : > { %v322_v35 = vsub.s32 0, %v605_v7  ;;  %v624_v36 = vld [vmem:[%s620_s6] sm:$0xff]  ;;  %v627_v37 = vld [vmem:[%s620_s6 + $0x8] sm:$0xff]  ;;  %v634_v39 = vld [vmem:[%s620_s6 + $0x10] sm:$0xff] }
  0x10   : > { %v235_v11 = vsub.s32 %v232_v9, %v605_v7  ;;  %v637_v40 = vld [vmem:[%s620_s6 + $0x18] sm:$0xff]  ;;  %v640_v41 = vld [vmem:[%s620_s6 + $0x20] sm:$0xff]  ;;  %v643_v42 = vld [vmem:[%s620_s6 + $0x28] sm:$0xff] }
  0x11   : > { %v646_v43 = vld [vmem:[%s620_s6 + $0x30] sm:$0xff]  ;;  %v649_v44 = vld [vmem:[%s620_s6 + $0x38] sm:$0xff]  ;;  %v652_v45 = vld [vmem:[%s620_s6 + $0x40] sm:$0xff] }
  0x12   : > { %v236_v12 = vrot.slane %v229_v8, %v235_v11  ;;  %v265_v13 = vrot.slane %v258_v10, %v235_v11  ;;  %v655_v46 = vld [vmem:[%s620_s6 + $0x48] sm:$0xff]  ;;  %v658_v47 = vld [vmem:[%s620_s6 + $0x50] sm:$0xff]  ;;  %v661_v48 = vld [vmem:[%s620_s6 + $0x58] sm:$0xff] }
  0x13   : > { %v664_v49 = vld [vmem:[%s620_s6 + $0x60] sm:$0xff]  ;;  %v667_v50 = vld [vmem:[%s620_s6 + $0x68] sm:$0xff]  ;;  %v677_v54 = vld [vmem:[%s620_s6 + $0x70] sm:$0xff] }
  0x14   : > { %v243_v14 = vrot.slane %v236_v12, %v235_v11  ;;  %v272_v15 = vrot.slane %v265_v13, %v235_v11  ;;  %v680_v55 = vld [vmem:[%s620_s6 + $0x78] sm:$0xff]  ;;  %v683_v56 = vld [vmem:[%s620_s6 + $0x80] sm:$0xff]  ;;  %v694_v61 = vld [vmem:[%s620_s6 + $0x88] sm:$0xff] }
  0x15   : > { %v697_v62 = vld [vmem:[%s620_s6 + $0x90] sm:$0xff]  ;;  %v700_v63 = vld [vmem:[%s620_s6 + $0x98] sm:$0xff]  ;;  %v711_v4 = vld [vmem:[%s620_s6 + $0xa0] sm:$0xff] }
  0x16   : > { %v246_v16 = vsel %vm245_vm0, %v243_v14, 0.0  ;;  %v274_v17 = vsel %vm245_vm0, %v272_v15, 0.0  ;;  %v714_v5 = vld [vmem:[%s620_s6 + $0xa8] sm:$0xff]  ;;  %v717_v6 = vld [vmem:[%s620_s6 + $0xb0] sm:$0xff]  ;;  %v728_v12 = vld [vmem:[%s620_s6 + $0xb8] sm:$0xff] }
  0x17   : > { %v247_v18 = vrot.slane %v246_v16, 4  ;;  %v275_v19 = vrot.slane %v274_v17, 4  ;;  %v731_v13 = vld [vmem:[%s620_s6 + $0xc0] sm:$0xff]  ;;  %v734_v14 = vld [vmem:[%s620_s6 + $0xc8] sm:$0xff] }
  0x19   : > { %v248_v20 = vadd.f32 %v247_v18, %v246_v16  ;;  %v276_v21 = vadd.f32 %v275_v19, %v274_v17 }
  0x1b   : > { %v249_v22 = vrot.slane %v248_v20, 2  ;;  %v277_v23 = vrot.slane %v276_v21, 2 }
  0x1d   : > { %v250_v24 = vadd.f32 %v249_v22, %v248_v20  ;;  %v278_v25 = vadd.f32 %v277_v23, %v276_v21  ;;  %v745_v20 = vld [vmem:[%s620_s6 + $0xd0] sm:$0xff]  ;;  %v748_v21 = vld [vmem:[%s620_s6 + $0xd8] sm:$0xff]  ;;  %v751_v22 = vld [vmem:[%s620_s6 + $0xe0] sm:$0xff] }
  0x1f   : > { %v251_v26 = vrot.slane %v250_v24, 1  ;;  %v279_v27 = vrot.slane %v278_v25, 1 }
  0x21   : > { %v252_v28 = vadd.f32 %v251_v26, %v250_v24  ;;  %v280_v29 = vadd.f32 %v279_v27, %v278_v25  ;;  %v760_v27 = vld [vmem:[%s620_s6 + $0xe8] sm:$0xff] }
  0x23   : > { %v253_v30 = vmul.f32 0.001953125, %v252_v28  ;;  %v281_v31 = vmul.f32 0.001953125, %v280_v29  ;;  %v763_v28 = vld [vmem:[%s620_s6 + $0xf0] sm:$0xff]  ;;  %v766_v29 = vld [vmem:[%s620_s6 + $0xf8] sm:$0xff] }
  0x25   : > { %v282_v32 = vmul.f32 %v253_v30, %v253_v30  ;;  %v631_v38 = vrot.slane %v253_v30, %v322_v35 }
  0x27   : > { %v283_v33 = vsub.f32 %v281_v31, %v282_v32  ;;  %v324_v52 = vsub.f32 %v624_v36, %v631_v38  ;;  %v325_v53 = vsub.f32 %v627_v37, %v631_v38  ;;  %v326_v57 = vsub.f32 %v634_v39, %v631_v38 }
  0x28   : > { %v327_v58 = vsub.f32 %v637_v40, %v631_v38  ;;  %v328_v59 = vsub.f32 %v640_v41, %v631_v38  ;;  %v329_v60 = vsub.f32 %v643_v42, %v631_v38  ;;  %v330_v0 = vsub.f32 %v646_v43, %v631_v38  ;;  %v789_v40 = vld [vmem:[%s989_s4] ss:$0 sm:$0xff] }
  0x29   : > { %v285_v34 = vadd.f32 1e-05, %v283_v33  ;;  %v331_v1 = vsub.f32 %v649_v44, %v631_v38  ;;  %v332_v2 = vsub.f32 %v652_v45, %v631_v38  ;;  %v333_v3 = vsub.f32 %v655_v46, %v631_v38 }
  0x2a   : > { %v334_v8 = vsub.f32 %v658_v47, %v631_v38  ;;  %v335_v9 = vsub.f32 %v661_v48, %v631_v38  ;;  %v336_v10 = vsub.f32 %v664_v49, %v631_v38  ;;  %v337_v11 = vsub.f32 %v667_v50, %v631_v38 }
  0x2b   : > { %544 = vrsqrt.f32 %v285_v34  ;;  %v338_v16 = vsub.f32 %v677_v54, %v631_v38  ;;  %v339_v17 = vsub.f32 %v680_v55, %v631_v38  ;;  %v340_v18 = vsub.f32 %v683_v56, %v631_v38 }
  0x2c   : > { %v341_v19 = vsub.f32 %v694_v61, %v631_v38  ;;  %v342_v24 = vsub.f32 %v697_v62, %v631_v38  ;;  %v343_v25 = vsub.f32 %v700_v63, %v631_v38  ;;  %v344_v26 = vsub.f32 %v711_v4, %v631_v38 }
  0x2d   : > { %v345_v30 = vsub.f32 %v714_v5, %v631_v38  ;;  %v346_v31 = vsub.f32 %v717_v6, %v631_v38  ;;  %v347_v32 = vsub.f32 %v728_v12, %v631_v38  ;;  %v348_v33 = vsub.f32 %v731_v13, %v631_v38 }
  0x2e   : > { %v349_v36 = vsub.f32 %v734_v14, %v631_v38  ;;  %v350_v37 = vsub.f32 %v745_v20, %v631_v38  ;;  %v351_v39 = vsub.f32 %v748_v21, %v631_v38  ;;  %v352_v41 = vsub.f32 %v751_v22, %v631_v38 }
  0x2f   : > { %v353_v7 = vsub.f32 %v760_v27, %v631_v38  ;;  %v355_v42 = vsub.f32 %v766_v29, %v631_v38 }
  0x38   : > { %v545_v15 = vpop.eup %544 }
  0x39   : > { %v287_v23 = vmul.f32 %v545_v15, %v284_v51 }
  0x3b   : > { %v778_v34 = vrot.slane %v287_v23, %v322_v35  ;;  %v354_v35 = vsub.f32 %v763_v28, %v631_v38 }
  0x3d   : > { %v362_v43 = vmul.f32 %v778_v34, %v324_v52  ;;  %v363_v44 = vmul.f32 %v778_v34, %v325_v53  ;;  %v364_v45 = vmul.f32 %v778_v34, %v326_v57  ;;  %v365_v46 = vmul.f32 %v778_v34, %v327_v58 }
  0x3e   : > { %v366_v47 = vmul.f32 %v778_v34, %v328_v59  ;;  %v367_v48 = vmul.f32 %v778_v34, %v329_v60  ;;  %v368_v49 = vmul.f32 %v778_v34, %v330_v0  ;;  %v369_v50 = vmul.f32 %v778_v34, %v331_v1 }
  0x3f   : > { %v401_v51 = vadd.f32 %v789_v40, %v362_v43  ;;  %v402_v52 = vadd.f32 %v789_v40, %v363_v44  ;;  %v403_v53 = vadd.f32 %v789_v40, %v364_v45  ;;  %v404_v54 = vadd.f32 %v789_v40, %v365_v46 }
  0x40   : > { %v405_v55 = vadd.f32 %v789_v40, %v366_v47  ;;  %v406_v57 = vadd.f32 %v789_v40, %v367_v48  ;;  %v407_v58 = vadd.f32 %v789_v40, %v368_v49  ;;  %v408_v59 = vadd.f32 %v789_v40, %v369_v50 }
  0x41   : > { %434 = vst.msk [vmem:[%s808_s13] sm:$0xff] %vm433_vm1, %v401_v51  ;;  %435 = vst.msk [vmem:[%s808_s13 + $0x8] sm:$0xff] %vm433_vm1, %v402_v52  ;;  %v370_v60 = vmul.f32 %v778_v34, %v332_v2  ;;  %v371_v0 = vmul.f32 %v778_v34, %v333_v3  ;;  %v372_v1 = vmul.f32 %v778_v34, %v334_v8 }
  0x42   : > { %436 = vst.msk [vmem:[%s808_s13 + $0x10] sm:$0xff] %vm433_vm1, %v403_v53  ;;  %437 = vst.msk [vmem:[%s808_s13 + $0x18] sm:$0xff] %vm433_vm1, %v404_v54  ;;  %v373_v15 = vmul.f32 %v778_v34, %v335_v9  ;;  %v374_v2 = vmul.f32 %v778_v34, %v336_v10  ;;  %v375_v3 = vmul.f32 %v778_v34, %v337_v11 }
  0x43   : > { %438 = vst.msk [vmem:[%s808_s13 + $0x20] sm:$0xff] %vm433_vm1, %v405_v55  ;;  %439 = vst.msk [vmem:[%s808_s13 + $0x28] sm:$0xff] %vm433_vm1, %v406_v57  ;;  %v376_v8 = vmul.f32 %v778_v34, %v338_v16  ;;  %v377_v9 = vmul.f32 %v778_v34, %v339_v17  ;;  %v409_v23 = vadd.f32 %v789_v40, %v370_v60 }
  0x44   : > { %440 = vst.msk [vmem:[%s808_s13 + $0x30] sm:$0xff] %vm433_vm1, %v407_v58  ;;  %441 = vst.msk [vmem:[%s808_s13 + $0x38] sm:$0xff] %vm433_vm1, %v408_v59  ;;  %v410_v43 = vadd.f32 %v789_v40, %v371_v0  ;;  %v411_v44 = vadd.f32 %v789_v40, %v372_v1  ;;  %v412_v45 = vadd.f32 %v789_v40, %v373_v15 }
  0x45   : > { %v413_v10 = vadd.f32 %v789_v40, %v374_v2  ;;  %v414_v11 = vadd.f32 %v789_v40, %v375_v3  ;;  %v415_v16 = vadd.f32 %v789_v40, %v376_v8  ;;  %v416_v17 = vadd.f32 %v789_v40, %v377_v9  ;;  %442 = vst.msk [vmem:[%s808_s13 + $0x40] sm:$0xff] %vm433_vm1, %v409_v23 }
  0x46   : > { %443 = vst.msk [vmem:[%s808_s13 + $0x48] sm:$0xff] %vm433_vm1, %v410_v43  ;;  %444 = vst.msk [vmem:[%s808_s13 + $0x50] sm:$0xff] %vm433_vm1, %v411_v44  ;;  %v378_v46 = vmul.f32 %v778_v34, %v340_v18  ;;  %v379_v47 = vmul.f32 %v778_v34, %v341_v19  ;;  %v380_v48 = vmul.f32 %v778_v34, %v342_v24 }
  0x47   : > { %445 = vst.msk [vmem:[%s808_s13 + $0x58] sm:$0xff] %vm433_vm1, %v412_v45  ;;  %v381_v49 = vmul.f32 %v778_v34, %v343_v25  ;;  %446 = vst.msk [vmem:[%s808_s13 + $0x60] sm:$0xff] %vm433_vm1, %v413_v10  ;;  %v382_v56 = vmul.f32 %v778_v34, %v344_v26  ;;  %v383_v61 = vmul.f32 %v778_v34, %v345_v30 }
  0x48   : > { %447 = vst.msk [vmem:[%s808_s13 + $0x68] sm:$0xff] %vm433_vm1, %v414_v11  ;;  %448 = vst.msk [vmem:[%s808_s13 + $0x70] sm:$0xff] %vm433_vm1, %v415_v16  ;;  %v384_v62 = vmul.f32 %v778_v34, %v346_v31  ;;  %v385_v63 = vmul.f32 %v778_v34, %v347_v32  ;;  %v417_v4 = vadd.f32 %v789_v40, %v378_v46 }
  0x49   : > { %449 = vst.msk [vmem:[%s808_s13 + $0x78] sm:$0xff] %vm433_vm1, %v416_v17  ;;  %v418_v18 = vadd.f32 %v789_v40, %v379_v47  ;;  %v419_v5 = vadd.f32 %v789_v40, %v380_v48  ;;  %v420_v19 = vadd.f32 %v789_v40, %v381_v49  ;;  %v421_v6 = vadd.f32 %v789_v40, %v382_v56 }
  0x4a   : > { %v422_v24 = vadd.f32 %v789_v40, %v383_v61  ;;  %v423_v12 = vadd.f32 %v789_v40, %v384_v62  ;;  %v424_v25 = vadd.f32 %v789_v40, %v385_v63  ;;  %450 = vst.msk [vmem:[%s808_s13 + $0x80] sm:$0xff] %vm433_vm1, %v417_v4  ;;  %v386_v26 = vmul.f32 %v778_v34, %v348_v33 }
  0x4b   : > { %451 = vst.msk [vmem:[%s808_s13 + $0x88] sm:$0xff] %vm433_vm1, %v418_v18  ;;  %452 = vst.msk [vmem:[%s808_s13 + $0x90] sm:$0xff] %vm433_vm1, %v419_v5  ;;  %v387_v30 = vmul.f32 %v778_v34, %v349_v36  ;;  %v388_v31 = vmul.f32 %v778_v34, %v350_v37  ;;  %v389_v32 = vmul.f32 %v778_v34, %v351_v39 }
  0x4c   : > { %453 = vst.msk [vmem:[%s808_s13 + $0x98] sm:$0xff] %vm433_vm1, %v420_v19  ;;  %454 = vst.msk [vmem:[%s808_s13 + $0xa0] sm:$0xff] %vm433_vm1, %v421_v6  ;;  %v390_v13 = vmul.f32 %v778_v34, %v352_v41  ;;  %v391_v14 = vmul.f32 %v778_v34, %v353_v7  ;;  %v392_v20 = vmul.f32 %v778_v34, %v354_v35 }
  0x4d   : > { %455 = vst.msk [vmem:[%s808_s13 + $0xa8] sm:$0xff] %vm433_vm1, %v422_v24  ;;  %456 = vst.msk [vmem:[%s808_s13 + $0xb0] sm:$0xff] %vm433_vm1, %v423_v12  ;;  %v393_v21 = vmul.f32 %v778_v34, %v355_v42  ;;  %v425_v22 = vadd.f32 %v789_v40, %v386_v26  ;;  %v426_v27 = vadd.f32 %v789_v40, %v387_v30 }
  0x4e   : > { %457 = vst.msk [vmem:[%s808_s13 + $0xb8] sm:$0xff] %vm433_vm1, %v424_v25  ;;  %v427_v33 = vadd.f32 %v789_v40, %v388_v31  ;;  %v428_v36 = vadd.f32 %v789_v40, %v389_v32  ;;  %v429_v28 = vadd.f32 %v789_v40, %v390_v13  ;;  %v430_v37 = vadd.f32 %v789_v40, %v391_v14 }
  0x4f   : > { %v431_v39 = vadd.f32 %v789_v40, %v392_v20  ;;  %v432_v38 = vadd.f32 %v789_v40, %v393_v21  ;;  %458 = vst.msk [vmem:[%s808_s13 + $0xc0] sm:$0xff] %vm433_vm1, %v425_v22  ;;  %459 = vst.msk [vmem:[%s808_s13 + $0xc8] sm:$0xff] %vm433_vm1, %v426_v27 }
  0x50   : > { %460 = vst.msk [vmem:[%s808_s13 + $0xd0] sm:$0xff] %vm433_vm1, %v427_v33  ;;  %461 = vst.msk [vmem:[%s808_s13 + $0xd8] sm:$0xff] %vm433_vm1, %v428_v36 }
  0x51   : > { %462 = vst.msk [vmem:[%s808_s13 + $0xe0] sm:$0xff] %vm433_vm1, %v429_v28  ;;  %463 = vst.msk [vmem:[%s808_s13 + $0xe8] sm:$0xff] %vm433_vm1, %v430_v37 }
  0x52   : > { %464 = vst.msk [vmem:[%s808_s13 + $0xf0] sm:$0xff] %vm433_vm1, %v431_v39  ;;  %465 = vst.msk [vmem:[%s808_s13 + $0xf8] sm:$0xff] %vm433_vm1, %v432_v38 }
  0x53 PF: > { %s15_s18 = sadd.s32 1, %s552_s18  }
  0x54   : > { %p12_p4 = scmp.ge.s32.totalorder %s15_s18, 4  }
  0x56   :  { %14 = sbr.rel (!%p12_p4) target bundleno = 1 (0x1), region = 70 }

// kernel: _lambda_.2
= control target key start
LH: loop header
LB: loop body
LE: loop exit
PB: predicated region body
PF: predicated region fallthrough
CT: control target
= control target key end

     0   :  { %s17618_s30 = smov 0   ;;  %s22327_s0 = inlined_call_operand.vmem [shape: f32[2,6,160,5], index: 0, kind: input, shape index: {}]   ;;  %s22328_s1 = inlined_call_operand.vmem [shape: f32[2,256,4], index: 1, kind: input, shape index: {}]   ;;  %s22329_s2 = inlined_call_operand.vmem [shape: f32[5,32], index: 2, kind: input, shape index: {}]   ;;  %s22330_s3 = inlined_call_operand.vmem [shape: f32[27,32,32], index: 3, kind: input, shape index: {}]   ;;  %s22331_s4 = inlined_call_operand.vmem [shape: f32[1,32], index: 4, kind: input, shape index: {}]   ;;  %s22332_s5 = inlined_call_operand.vmem [shape: f32[32,4], index: 5, kind: input, shape index: {}]   ;;  %s22333_s6 = inlined_call_operand.vmem [shape: f32[1,4], index: 6, kind: input, shape index: {}]   ;;  %s22334_s7 = inlined_call_operand.vmem [shape: f32[2,256,4], index: 7, kind: output, shape index: {0}]   ;;  %s22335_s8 = inlined_call_operand.vmem [shape: f32[2,1,4], index: 8, kind: output, shape index: {1}]   ;;  %s22336_s9 = inlined_call_operand.vmem [shape: f32[2,1,4], index: 9, kind: output, shape index: {2}]  }
   0x1 LB: > { %s13410_s10 = sadd.s32 4294967295, %s17566_s30   ;;  %p13414_p0 = scmp.ge.s32.totalorder %s17566_s30, 1  ;;  %s17566_s30 = sphi %s17618_s30, %s20_s30  }
   0x2   : > { %p302_p1 = scmp.lt.s32.totalorder %s17566_s30, 3 }
   0x4   : > { %p303_p2 = pnand %p13414_p0, %p302_p1 }
   0x6   : > { %306 = sbr.rel (%p303_p2) target bundleno = 1564 (0x61c), region = 48 }
   0xb   : > { %v390_v0 = vld [vmem:[%s22329_s2] sm:$0x1f]  ;;  %vm452_vm0 = vcmask 1044480   ;;  %p349_p3 = scmp.lt.s32.totalorder %s13410_s10, 1  ;;  %vm391_vm1 = vcmask 39936   ;;  %v17756_v50 = vld [vmem:[%s22330_s3 + $0x38] sm:$0xff] }
   0xc   : > { %15786 = vmatprep.subr.msk.mxu0 %vm452_vm0, %v390_v0  ;;  %v974_v1 = vld [vmem:[%s22329_s2] sm:$0x1f]  ;;  %vm641_vm2 = vcmask 261120   ;;  %vm13087_vm3 = vcmask 31744   ;;  %vm13189_vm4 = vcmask 24576  }
   0xd   : > { %v683_v2 = vld [vmem:[%s22329_s2] sm:$0x1f]  ;;  %15787 = vmatpush3.msk.msra.mxu0 %vm452_vm0, %v390_v0  ;;  %s22675_s10 = smov (!%p349_p3, %s13410_s10), 1 }
   0xe   : > { %v1265_v3 = vld [vmem:[%s22329_s2] sm:$0x1f]  ;;  %15818 = vmatprep.subr.msk.mxu1 %vm452_vm0, %v683_v2  ;;  %15850 = vmatprep.subr.msk.mxu0 %vm452_vm0, %v974_v1  ;;  %s17546_s19 = smul.u32 960, %s22675_s10  ;;  %s14650_s26 = sshll.u32 %s22675_s10, 8 }
   0xf   : > { %15819 = vmatpush3.msk.msra.mxu1 %vm452_vm0, %v683_v2  ;;  %v17659_v7 = vld [vmem:[%s22329_s2] sm:$0x1f]  ;;  %s22117_s11 = scalar_lea.vmem %s22328_s1, %s14650_s26  ;;  %s22125_s14 = scalar_lea.vmem %s22334_s7, %s14650_s26 }
  0x10   : > { %15882 = vmatprep.subr.msk.mxu1 %vm452_vm0, %v1265_v3  ;;  %s17650_s22 = scalar_lea.vmem %s22327_s0, %s17546_s19  ;;  %v17676_v13 = vld [vmem:[%s22329_s2] sm:$0x1f]  ;;  %s366_s17 = scalar_lea.vmem %s22335_s8, %s22675_s10 }
  0x11   : > { %v370_v4 = vld [vmem:[%s17650_s22] sm:$0xff]  ;;  %v371_v5 = vld [vmem:[%s17650_s22 + $0x8] sm:$0xff]  ;;  %v372_v6 = vld [vmem:[%s17650_s22 + $0x10] sm:$0xff]  ;;  %s369_s20 = scalar_lea.vmem %s22336_s9, %s22675_s10 }
  0x12   : > { %15788 = vmatprep.mubr.msk.f32.mxu0 %vm391_vm1, %v370_v4  ;;  %v13441_v8 = vld [vmem:[%s17650_s22 + $0xa0] sm:$0xff]  ;;  %v373_v9 = vld [vmem:[%s17650_s22 + $0x18] sm:$0xff]  ;;  %v13442_v10 = vld [vmem:[%s17650_s22 + $0xa8] sm:$0xff] }
  0x13   : > { %15789 = vmatmul.mubr.msk.f32.vlgmr.msra.gmra.mxu0 %vm391_vm1, %v371_v5  ;;  %v374_v11 = vld [vmem:[%s17650_s22 + $0x20] sm:$0xff]  ;;  %15820 = vmatprep.mubr.msk.f32.mxu1 %vm391_vm1, %v13441_v8  ;;  %v13443_v12 = vld [vmem:[%s17650_s22 + $0xb0] sm:$0xff]  ;;  %v13444_v14 = vld [vmem:[%s17650_s22 + $0xb8] sm:$0xff] }
  0x14   : > { %15851 = vmatpush3.msk.msra.mxu0 %vm452_vm0, %v974_v1  ;;  %15791 = vmatprep.mubr.msk.f32.mxu0 %vm391_vm1, %v372_v6  ;;  %v375_v15 = vld [vmem:[%s17650_s22 + $0x28] sm:$0xff]  ;;  %v13445_v16 = vld [vmem:[%s17650_s22 + $0xc0] sm:$0xff]  ;;  %v376_v17 = vld [vmem:[%s17650_s22 + $0x30] sm:$0xff] }
  0x15   : > { %15914 = vmatprep.subr.msk.mxu0 %vm452_vm0, %v17659_v7  ;;  %15821 = vmatmul.mubr.msk.f32.vlgmr.msra.gmra.mxu1 %vm391_vm1, %v13442_v10  ;;  %v13446_v18 = vld [vmem:[%s17650_s22 + $0xc8] sm:$0xff]  ;;  %v377_v19 = vld [vmem:[%s17650_s22 + $0x38] sm:$0xff]  ;;  %v13447_v20 = vld [vmem:[%s17650_s22 + $0xd0] sm:$0xff] }
  0x16   : > { %15883 = vmatpush3.msk.msra.mxu1 %vm452_vm0, %v1265_v3  ;;  %15823 = vmatprep.mubr.msk.f32.mxu1 %vm391_vm1, %v13443_v12  ;;  %v378_v21 = vld [vmem:[%s17650_s22 + $0x40] sm:$0xff]  ;;  %v13448_v22 = vld [vmem:[%s17650_s22 + $0xd8] sm:$0xff]  ;;  %v379_v23 = vld [vmem:[%s17650_s22 + $0x48] sm:$0xff] }
  0x17   : > { %15792 = vmatmul.mubr.msk.f32.gmra.mxu0 %vm391_vm1, %v373_v9  ;;  %15946 = vmatprep.subr.msk.mxu1 %vm452_vm0, %v17676_v13  ;;  %v13449_v24 = vld [vmem:[%s17650_s22 + $0xe0] sm:$0xff]  ;;  %v380_v25 = vld [vmem:[%s17650_s22 + $0x50] sm:$0xff]  ;;  %v13450_v26 = vld [vmem:[%s17650_s22 + $0xe8] sm:$0xff] }
  0x18   : > { %15794 = vmatprep.mubr.msk.f32.mxu0 %vm391_vm1, %v374_v11  ;;  %v381_v27 = vld [vmem:[%s17650_s22 + $0x58] sm:$0xff]  ;;  %v13451_v28 = vld [vmem:[%s17650_s22 + $0xf0] sm:$0xff]  ;;  %v382_v29 = vld [vmem:[%s17650_s22 + $0x60] sm:$0xff] }
  0x19   : > { %15824 = vmatmul.mubr.msk.f32.gmra.mxu1 %vm391_vm1, %v13444_v14  ;;  %v13452_v30 = vld [vmem:[%s17650_s22 + $0xf8] sm:$0xff]  ;;  %v383_v31 = vld [vmem:[%s17650_s22 + $0x68] sm:$0xff]  ;;  %v13453_v32 = vld [vmem:[%s17650_s22 + $0x100] sm:$0xff] }
  0x1a   : > { %15826 = vmatprep.mubr.msk.f32.mxu1 %vm391_vm1, %v13445_v16  ;;  %v384_v33 = vld [vmem:[%s17650_s22 + $0x70] sm:$0xff]  ;;  %v13454_v34 = vld [vmem:[%s17650_s22 + $0x108] sm:$0xff]  ;;  %v385_v35 = vld [vmem:[%s17650_s22 + $0x78] sm:$0xff] }
  0x1b   : > { %15795 = vmatmul.mubr.msk.f32.gmra.mxu0 %vm391_vm1, %v375_v15  ;;  %v13455_v36 = vld [vmem:[%s17650_s22 + $0x110] sm:$0xff]  ;;  %v386_v37 = vld [vmem:[%s17650_s22 + $0x80] sm:$0xff]  ;;  %v13456_v38 = vld [vmem:[%s17650_s22 + $0x118] sm:$0xff] }
  0x1c   : > { %15797 = vmatprep.mubr.msk.f32.mxu0 %vm391_vm1, %v376_v17  ;;  %v387_v39 = vld [vmem:[%s17650_s22 + $0x88] sm:$0xff]  ;;  %v13457_v40 = vld [vmem:[%s17650_s22 + $0x120] sm:$0xff]  ;;  %v388_v41 = vld [vmem:[%s17650_s22 + $0x90] sm:$0xff] }
  0x1d   : > { %15827 = vmatmul.mubr.msk.f32.gmra.mxu1 %vm391_vm1, %v13446_v18  ;;  %v13458_v42 = vld [vmem:[%s17650_s22 + $0x128] sm:$0xff]  ;;  %v389_v43 = vld [vmem:[%s17650_s22 + $0x98] sm:$0xff]  ;;  %v13459_v44 = vld [vmem:[%s17650_s22 + $0x130] sm:$0xff] }
  0x1e   : > { %15829 = vmatprep.mubr.msk.f32.mxu1 %vm391_vm1, %v13447_v20  ;;  %v13482_v45 = vld [vmem:[%s17650_s22 + $0x140] sm:$0xff]  ;;  %v13460_v46 = vld [vmem:[%s17650_s22 + $0x138] sm:$0xff]  ;;  %v13483_v47 = vld [vmem:[%s17650_s22 + $0x148] sm:$0xff] }
  0x1f   : > { %15798 = vmatmul.mubr.msk.f32.gmra.mxu0 %vm391_vm1, %v377_v19  ;;  %v13523_v48 = vld [vmem:[%s17650_s22 + $0x1e0] sm:$0xff]  ;;  %v13484_v49 = vld [vmem:[%s17650_s22 + $0x150] sm:$0xff]  ;;  %v13524_v51 = vld [vmem:[%s17650_s22 + $0x1e8] sm:$0xff] }
  0x20   : > { %15800 = vmatprep.mubr.msk.f32.mxu0 %vm391_vm1, %v378_v21  ;;  %v13485_v52 = vld [vmem:[%s17650_s22 + $0x158] sm:$0xff]  ;;  %v13525_v53 = vld [vmem:[%s17650_s22 + $0x1f0] sm:$0xff]  ;;  %v13486_v54 = vld [vmem:[%s17650_s22 + $0x160] sm:$0xff] }
  0x21   : > { %15830 = vmatmul.mubr.msk.f32.gmra.mxu1 %vm391_vm1, %v13448_v22  ;;  %v13526_v55 = vld [vmem:[%s17650_s22 + $0x1f8] sm:$0xff]  ;;  %v13487_v56 = vld [vmem:[%s17650_s22 + $0x168] sm:$0xff]  ;;  %v13527_v57 = vld [vmem:[%s17650_s22 + $0x200] sm:$0xff] }
  0x22   : > { %15832 = vmatprep.mubr.msk.f32.mxu1 %vm391_vm1, %v13449_v24  ;;  %v13488_v58 = vld [vmem:[%s17650_s22 + $0x170] sm:$0xff]  ;;  %v13528_v59 = vld [vmem:[%s17650_s22 + $0x208] sm:$0xff]  ;;  %v13489_v60 = vld [vmem:[%s17650_s22 + $0x178] sm:$0xff] }
  0x23   : > { %15801 = vmatmul.mubr.msk.f32.gmra.mxu0 %vm391_vm1, %v379_v23  ;;  %v13529_v61 = vld [vmem:[%s17650_s22 + $0x210] sm:$0xff]  ;;  %v13490_v62 = vld [vmem:[%s17650_s22 + $0x180] sm:$0xff]  ;;  %v13530_v63 = vld [vmem:[%s17650_s22 + $0x218] sm:$0xff] }
  0x24   : > { %15803 = vmatprep.mubr.msk.f32.mxu0 %vm391_vm1, %v380_v25  ;;  %v13491_v0 = vld [vmem:[%s17650_s22 + $0x188] sm:$0xff]  ;;  %v13531_v1 = vld [vmem:[%s17650_s22 + $0x220] sm:$0xff]  ;;  %v13492_v2 = vld [vmem:[%s17650_s22 + $0x190] sm:$0xff] }
  0x25   : > { %15833 = vmatmul.mubr.msk.f32.gmra.mxu1 %vm391_vm1, %v13450_v26  ;;  %v13532_v3 = vld [vmem:[%s17650_s22 + $0x228] sm:$0xff]  ;;  %v13493_v4 = vld [vmem:[%s17650_s22 + $0x198] sm:$0xff]  ;;  %v13533_v5 = vld [vmem:[%s17650_s22 + $0x230] sm:$0xff] }
  0x26   : > { %15835 = vmatprep.mubr.msk.f32.mxu1 %vm391_vm1, %v13451_v28  ;;  %v13494_v6 = vld [vmem:[%s17650_s22 + $0x1a0] sm:$0xff]  ;;  %v13495_v8 = vld [vmem:[%s17650_s22 + $0x1a8] sm:$0xff]  ;;  %v13496_v10 = vld [vmem:[%s17650_s22 + $0x1b0] sm:$0xff] }
  0x27   : > { %15804 = vmatmul.mubr.msk.f32.gmra.mxu0 %vm391_vm1, %v381_v27  ;;  %v13535_v9 = vld [vmem:[%s17650_s22 + $0x240] sm:$0xff]  ;;  %v13536_v11 = vld [vmem:[%s17650_s22 + $0x248] sm:$0xff]  ;;  %v13497_v12 = vld [vmem:[%s17650_s22 + $0x1b8] sm:$0xff] }
  0x28   : > { %15806 = vmatprep.mubr.msk.f32.mxu0 %vm391_vm1, %v382_v29  ;;  %v13498_v14 = vld [vmem:[%s17650_s22 + $0x1c0] sm:$0xff]  ;;  %v13538_v15 = vld [vmem:[%s17650_s22 + $0x258] sm:$0xff]  ;;  %v13499_v16 = vld [vmem:[%s17650_s22 + $0x1c8] sm:$0xff] }
  0x29   : > { %15836 = vmatmul.mubr.msk.f32.gmra.mxu1 %vm391_vm1, %v13452_v30  ;;  %v13539_v17 = vld [vmem:[%s17650_s22 + $0x260] sm:$0xff]  ;;  %v13500_v18 = vld [vmem:[%s17650_s22 + $0x1d0] sm:$0xff]  ;;  %v13540_v19 = vld [vmem:[%s17650_s22 + $0x268] sm:$0xff] }
  0x2a   : > { %15838 = vmatprep.mubr.msk.f32.mxu1 %vm391_vm1, %v13453_v32  ;;  %v2152_v20 = vld [vmem:[%s22330_s3 + $0x18] sm:$0xff]  ;;  %v13541_v21 = vld [vmem:[%s17650_s22 + $0x270] sm:$0xff]  ;;  %v13564_v23 = vld [vmem:[%s17650_s22 + $0x280] sm:$0xff] }
  0x2b   : > { %15807 = vmatmul.mubr.msk.f32.gmra.mxu0 %vm391_vm1, %v383_v31  ;;  %v13501_v22 = vld [vmem:[%s17650_s22 + $0x1d8] sm:$0xff]  ;;  %v13605_v25 = vld [vmem:[%s17650_s22 + $0x320] sm:$0xff]  ;;  %v13565_v26 = vld [vmem:[%s17650_s22 + $0x288] sm:$0xff] }
  0x2c   : > { %15809 = vmatprep.mubr.msk.f32.mxu0 %vm391_vm1, %v384_v33  ;;  %v13542_v24 = vld [vmem:[%s17650_s22 + $0x278] sm:$0xff]  ;;  %v13566_v27 = vld [vmem:[%s17650_s22 + $0x290] sm:$0xff]  ;;  %v13606_v29 = vld [vmem:[%s17650_s22 + $0x328] sm:$0xff] }
  0x2d   : > { %15839 = vmatmul.mubr.msk.f32.gmra.mxu1 %vm391_vm1, %v13454_v34  ;;  %v13648_v28 = vld [vmem:[%s22330_s3 + $0x30] sm:$0xff]  ;;  %v13567_v31 = vld [vmem:[%s17650_s22 + $0x298] sm:$0xff]  ;;  %v13568_v32 = vld [vmem:[%s17650_s22 + $0x2a0] sm:$0xff] }
  0x2e   : > { %15841 = vmatprep.mubr.msk.f32.mxu1 %vm391_vm1, %v13455_v36  ;;  %v13607_v30 = vld [vmem:[%s17650_s22 + $0x330] sm:$0xff]  ;;  %v13647_v34 = vld [vmem:[%s22330_s3 + $0x28] sm:$0xff]  ;;  %v13609_v36 = vld [vmem:[%s17650_s22 + $0x340] sm:$0xff] }
  0x2f   : > { %15810 = vmatmul.mubr.msk.f32.gmra.mxu0 %vm391_vm1, %v385_v35  ;;  %v2151_v33 = vld [vmem:[%s22330_s3 + $0x10] sm:$0xff]  ;;  %v13608_v35 = vld [vmem:[%s17650_s22 + $0x338] sm:$0xff] }
  0x30   : > { %15812 = vmatprep.mubr.msk.f32.mxu0 %vm391_vm1, %v386_v37  ;;  %v13569_v37 = vld [vmem:[%s17650_s22 + $0x2a8] sm:$0xff] }
  0x31   : > { %15842 = vmatmul.mubr.msk.f32.gmra.mxu1 %vm391_vm1, %v13456_v38  ;;  %v13570_v38 = vld [vmem:[%s17650_s22 + $0x2b0] sm:$0xff] }
  0x32   : > { %15844 = vmatprep.mubr.msk.f32.mxu1 %vm391_vm1, %v13457_v40  ;;  %v13646_v40 = vld [vmem:[%s22330_s3 + $0x20] sm:$0xff] }
  0x33   : > { %15813 = vmatmul.mubr.msk.f32.gmra.mxu0 %vm391_vm1, %v387_v39  ;;  %v2150_v39 = vld [vmem:[%s22330_s3 + $0x8] sm:$0xff] }
  0x34   : > { %15815 = vmatprep.mubr.msk.f32.mxu0 %vm391_vm1, %v388_v41  ;;  %v13610_v41 = vld [vmem:[%s17650_s22 + $0x348] sm:$0xff] }
  0x35   : > { %15845 = vmatmul.mubr.msk.f32.gmra.mxu1 %vm391_vm1, %v13458_v42  ;;  %v13611_v42 = vld [vmem:[%s17650_s22 + $0x350] sm:$0xff] }
  0x36   : > { %15847 = vmatprep.mubr.msk.f32.mxu1 %vm391_vm1, %v13459_v44  ;;  %v13572_v44 = vld [vmem:[%s17650_s22 + $0x2c0] sm:$0xff] }
  0x37   : > { %15816 = vmatmul.mubr.msk.f32.gmra.mxu0 %vm391_vm1, %v389_v43  ;;  %v13571_v43 = vld [vmem:[%s17650_s22 + $0x2b8] sm:$0xff] }
  0x38   : > { %15852 = vmatprep.mubr.msk.f32.mxu0 %vm391_vm1, %v13482_v45  ;;  %v2149_v45 = vld [vmem:[%s22330_s3] sm:$0xff] }
  0x39   : > { %15848 = vmatmul.mubr.msk.f32.gmra.mxu1 %vm391_vm1, %v13460_v46  ;;  %v13612_v46 = vld [vmem:[%s17650_s22 + $0x358] sm:$0xff] }
  0x3a   : > { %15884 = vmatprep.mubr.msk.f32.mxu1 %vm391_vm1, %v13523_v48  ;;  %v13573_v48 = vld [vmem:[%s17650_s22 + $0x2c8] sm:$0xff] }
  0x3b   : > { %15853 = vmatmul.mubr.msk.f32.vlgmr.msra.gmra.mxu0 %vm391_vm1, %v13483_v47  ;;  %v13613_v47 = vld [vmem:[%s17650_s22 + $0x360] sm:$0xff] }
  0x3c   : > { %15855 = vmatprep.mubr.msk.f32.mxu0 %vm391_vm1, %v13484_v49  ;;  %15915 = vmatpush3.msk.msra.mxu0 %vm452_vm0, %v17659_v7  ;;  %v13534_v7 = vld [vmem:[%s17650_s22 + $0x238] sm:$0xff]  ;;  %v13574_v49 = vld [vmem:[%s17650_s22 + $0x2d0] sm:$0xff] }
  0x3d   : > { %15978 = vmatprep.subr.mxu0 %v17756_v50  ;;  %15885 = vmatmul.mubr.msk.f32.vlgmr.msra.gmra.mxu1 %vm391_vm1, %v13524_v51  ;;  %v13615_v51 = vld [vmem:[%s17650_s22 + $0x370] sm:$0xff] }
  0x3e   : > { %15887 = vmatprep.mubr.msk.f32.mxu1 %vm391_vm1, %v13525_v53  ;;  %15947 = vmatpush3.msk.msra.mxu1 %vm452_vm0, %v17676_v13  ;;  %v13537_v13 = vld [vmem:[%s17650_s22 + $0x250] sm:$0xff]  ;;  %v13576_v53 = vld [vmem:[%s17650_s22 + $0x2e0] sm:$0xff] }
  0x3f   : > { %15856 = vmatmul.mubr.msk.f32.gmra.mxu0 %vm391_vm1, %v13485_v52  ;;  %16034 = vmatprep.subr.mxu1 %v2152_v20  ;;  %v13575_v52 = vld [vmem:[%s17650_s22 + $0x2d8] sm:$0xff] }
  0x40   : > { %15858 = vmatprep.mubr.msk.f32.mxu0 %vm391_vm1, %v13486_v54  ;;  %v13616_v54 = vld [vmem:[%s17650_s22 + $0x378] sm:$0xff] }
  0x41   : > { %15888 = vmatmul.mubr.msk.f32.gmra.mxu1 %vm391_vm1, %v13526_v55  ;;  %v13617_v55 = vld [vmem:[%s17650_s22 + $0x380] sm:$0xff] }
  0x42   : > { %15890 = vmatprep.mubr.msk.f32.mxu1 %vm391_vm1, %v13527_v57  ;;  %v13578_v57 = vld [vmem:[%s17650_s22 + $0x2f0] sm:$0xff] }
  0x43   : > { %15859 = vmatmul.mubr.msk.f32.gmra.mxu0 %vm391_vm1, %v13487_v56  ;;  %v13577_v56 = vld [vmem:[%s17650_s22 + $0x2e8] sm:$0xff] }
  0x44   : > { %15861 = vmatprep.mubr.msk.f32.mxu0 %vm391_vm1, %v13488_v58  ;;  %v17916_v58 = vld [vmem:[%s22330_s3 + $0x58] sm:$0xff] }
  0x45   : > { %15891 = vmatmul.mubr.msk.f32.gmra.mxu1 %vm391_vm1, %v13528_v59  ;;  %v13618_v59 = vld [vmem:[%s17650_s22 + $0x388] sm:$0xff] }
  0x46   : > { %15893 = vmatprep.mubr.msk.f32.mxu1 %vm391_vm1, %v13529_v61  ;;  %v13579_v61 = vld [vmem:[%s17650_s22 + $0x2f8] sm:$0xff] }
  0x47   : > { %15862 = vmatmul.mubr.msk.f32.gmra.mxu0 %vm391_vm1, %v13489_v60  ;;  %v13619_v60 = vld [vmem:[%s17650_s22 + $0x390] sm:$0xff] }
  0x48   : > { %15864 = vmatprep.mubr.msk.f32.mxu0 %vm391_vm1, %v13490_v62  ;;  %v13580_v62 = vld [vmem:[%s17650_s22 + $0x300] sm:$0xff] }
  0x49   : > { %15894 = vmatmul.mubr.msk.f32.gmra.mxu1 %vm391_vm1, %v13530_v63  ;;  %v13620_v63 = vld [vmem:[%s17650_s22 + $0x398] sm:$0xff] }
  0x4a   : > { %15896 = vmatprep.mubr.msk.f32.mxu1 %vm391_vm1, %v13531_v1  ;;  %v13581_v1 = vld [vmem:[%s17650_s22 + $0x308] sm:$0xff] }
  0x4b   : > { %15865 = vmatmul.mubr.msk.f32.gmra.mxu0 %vm391_vm1, %v13491_v0  ;;  %v13621_v0 = vld [vmem:[%s17650_s22 + $0x3a0] sm:$0xff] }
  0x4c   : > { %15867 = vmatprep.mubr.msk.f32.mxu0 %vm391_vm1, %v13492_v2  ;;  %v13582_v2 = vld [vmem:[%s17650_s22 + $0x310] sm:$0xff] }
  0x4d   : > { %15897 = vmatmul.mubr.msk.f32.gmra.mxu1 %vm391_vm1, %v13532_v3  ;;  %v13622_v3 = vld [vmem:[%s17650_s22 + $0x3a8] sm:$0xff] }
  0x4e   : > { %15899 = vmatprep.mubr.msk.f32.mxu1 %vm391_vm1, %v13533_v5  ;;  %v13583_v5 = vld [vmem:[%s17650_s22 + $0x318] sm:$0xff] }
  0x4f   : > { %15868 = vmatmul.mubr.msk.f32.gmra.mxu0 %vm391_vm1, %v13493_v4  ;;  %v13623_v4 = vld [vmem:[%s17650_s22 + $0x3b0] sm:$0xff] }
  0x50   : > { %15870 = vmatprep.mubr.msk.f32.mxu0 %vm391_vm1, %v13494_v6  ;;  %v13624_v6 = vld [vmem:[%s17650_s22 + $0x3b8] sm:$0xff] }
  0x51   : > { %15900 = vmatmul.mubr.msk.f32.gmra.mxu1 %vm391_vm1, %v13534_v7  ;;  %v17949_v7 = vld [vmem:[%s22330_s3 + $0x78] sm:$0xff] }
  0x52   : > { %15902 = vmatprep.mubr.msk.f32.mxu1 %vm391_vm1, %v13535_v9 }
  0x53   : > { %15871 = vmatmul.mubr.msk.f32.gmra.mxu0 %vm391_vm1, %v13495_v8 }
  0x54   : > { %15873 = vmatprep.mubr.msk.f32.mxu0 %vm391_vm1, %v13496_v10 }
  0x55   : > { %15903 = vmatmul.mubr.msk.f32.gmra.mxu1 %vm391_vm1, %v13536_v11 }
  0x56   : > { %15905 = vmatprep.mubr.msk.f32.mxu1 %vm391_vm1, %v13537_v13 }
  0x57   : > { %15874 = vmatmul.mubr.msk.f32.gmra.mxu0 %vm391_vm1, %v13497_v12 }
  0x58   : > { %15876 = vmatprep.mubr.msk.f32.mxu0 %vm391_vm1, %v13498_v14 }
  0x59   : > { %15906 = vmatmul.mubr.msk.f32.gmra.mxu1 %vm391_vm1, %v13538_v15 }
  0x5a   : > { %15908 = vmatprep.mubr.msk.f32.mxu1 %vm391_vm1, %v13539_v17 }
  0x5b   : > { %15877 = vmatmul.mubr.msk.f32.gmra.mxu0 %vm391_vm1, %v13499_v16 }
  0x5c   : > { %15879 = vmatprep.mubr.msk.f32.mxu0 %vm391_vm1, %v13500_v18 }
  0x5d   : > { %15909 = vmatmul.mubr.msk.f32.gmra.mxu1 %vm391_vm1, %v13540_v19 }
  0x5e   : > { %15911 = vmatprep.mubr.msk.f32.mxu1 %vm391_vm1, %v13541_v21 }
  0x5f   : > { %15880 = vmatmul.mubr.msk.f32.gmra.mxu0 %vm391_vm1, %v13501_v22 }
  0x60   : > { %15916 = vmatprep.mubr.msk.f32.mxu0 %vm391_vm1, %v13564_v23 }
  0x61   : > { %15912 = vmatmul.mubr.msk.f32.gmra.mxu1 %vm391_vm1, %v13542_v24 }
  0x62   : > { %15948 = vmatprep.mubr.msk.f32.mxu1 %vm391_vm1, %v13605_v25 }
  0x63   : > { %15917 = vmatmul.mubr.msk.f32.vlgmr.msra.gmra.mxu0 %vm391_vm1, %v13565_v26 }
  0x64   : > { %15919 = vmatprep.mubr.msk.f32.mxu0 %vm391_vm1, %v13566_v27  ;;  %15979 = vmatpush3.msra.mxu0 %v17756_v50  ;;  %v13614_v50 = vld [vmem:[%s17650_s22 + $0x368] sm:$0xff] }
  0x65   : > { %15980 = vmatprep.subr.mxu0 %v13648_v28  ;;  %15949 = vmatmul.mubr.msk.f32.vlgmr.msra.gmra.mxu1 %vm391_vm1, %v13606_v29 }
  0x66   : > { %15981 = vmatpush3.msra.mxu0 %v13648_v28  ;;  %15951 = vmatprep.mubr.msk.f32.mxu1 %vm391_vm1, %v13607_v30 }
  0x67   : > { %15920 = vmatmul.mubr.msk.f32.gmra.mxu0 %vm391_vm1, %v13567_v31  ;;  %16035 = vmatpush3.msra.mxu1 %v2152_v20 }
  0x68   : > { %15922 = vmatprep.mubr.msk.f32.mxu0 %vm391_vm1, %v13568_v32  ;;  %16036 = vmatprep.subr.mxu1 %v2151_v33 }
  0x69   : > { %15982 = vmatprep.subr.mxu0 %v13647_v34  ;;  %15952 = vmatmul.mubr.msk.f32.gmra.mxu1 %vm391_vm1, %v13608_v35 }
  0x6a   : > { %15983 = vmatpush3.msra.mxu0 %v13647_v34  ;;  %15954 = vmatprep.mubr.msk.f32.mxu1 %vm391_vm1, %v13609_v36 }
  0x6b   : > { %15923 = vmatmul.mubr.msk.f32.gmra.mxu0 %vm391_vm1, %v13569_v37  ;;  %16037 = vmatpush3.msra.mxu1 %v2151_v33 }
  0x6c   : > { %15925 = vmatprep.mubr.msk.f32.mxu0 %vm391_vm1, %v13570_v38  ;;  %16038 = vmatprep.subr.mxu1 %v2150_v39 }
  0x6d   : > { %15984 = vmatprep.subr.mxu0 %v13646_v40  ;;  %15955 = vmatmul.mubr.msk.f32.gmra.mxu1 %vm391_vm1, %v13610_v41 }
  0x6e   : > { %15985 = vmatpush3.msra.mxu0 %v13646_v40  ;;  %15957 = vmatprep.mubr.msk.f32.mxu1 %vm391_vm1, %v13611_v42 }
  0x6f   : > { %15926 = vmatmul.mubr.msk.f32.gmra.mxu0 %vm391_vm1, %v13571_v43  ;;  %16039 = vmatpush3.msra.mxu1 %v2150_v39  ;;  %v13716_v39 = vld [vmem:[%s22330_s3 + $0x50] sm:$0xff] }
  0x70   : > { %15928 = vmatprep.mubr.msk.f32.mxu0 %vm391_vm1, %v13572_v44  ;;  %16040 = vmatprep.subr.mxu1 %v2149_v45  ;;  %v13752_v44 = vld [vmem:[%s22330_s3 + $0x70] sm:$0xff] }
  0x71   : > { %15958 = vmatmul.mubr.msk.f32.gmra.mxu1 %vm391_vm1, %v13612_v46  ;;  %16090 = vmatprep.subr.mxu0 %v17916_v58 }
  0x72   : > { %15960 = vmatprep.mubr.msk.f32.mxu1 %vm391_vm1, %v13613_v47  ;;  %16041 = vmatpush3.msra.mxu1 %v2149_v45 }
  0x73   : > { %15929 = vmatmul.mubr.msk.f32.gmra.mxu0 %vm391_vm1, %v13573_v48  ;;  %16146 = vmatprep.subr.mxu1 %v17949_v7 }
  0x74   : > { %15931 = vmatprep.mubr.msk.f32.mxu0 %vm391_vm1, %v13574_v49 }
  0x75   : > { %15961 = vmatmul.mubr.msk.f32.gmra.mxu1 %vm391_vm1, %v13614_v50 }
  0x76   : > { %15963 = vmatprep.mubr.msk.f32.mxu1 %vm391_vm1, %v13615_v51  ;;  %v13715_v51 = vld [vmem:[%s22330_s3 + $0x48] sm:$0xff] }
  0x77   : > { %15932 = vmatmul.mubr.msk.f32.gmra.mxu0 %vm391_vm1, %v13575_v52  ;;  %v13751_v52 = vld [vmem:[%s22330_s3 + $0x68] sm:$0xff] }
  0x78   : > { %15934 = vmatprep.mubr.msk.f32.mxu0 %vm391_vm1, %v13576_v53 }
  0x79   : > { %15964 = vmatmul.mubr.msk.f32.gmra.mxu1 %vm391_vm1, %v13616_v54 }
  0x7a   : > { %15966 = vmatprep.mubr.msk.f32.mxu1 %vm391_vm1, %v13617_v55 }
  0x7b   : > { %15935 = vmatmul.mubr.msk.f32.gmra.mxu0 %vm391_vm1, %v13577_v56 }
  0x7c   : > { %15937 = vmatprep.mubr.msk.f32.mxu0 %vm391_vm1, %v13578_v57 }
  0x7d   : > { %15967 = vmatmul.mubr.msk.f32.gmra.mxu1 %vm391_vm1, %v13618_v59  ;;  %v13714_v59 = vld [vmem:[%s22330_s3 + $0x40] sm:$0xff] }
  0x7e   : > { %15969 = vmatprep.mubr.msk.f32.mxu1 %vm391_vm1, %v13619_v60  ;;  %v13750_v60 = vld [vmem:[%s22330_s3 + $0x60] sm:$0xff] }
  0x7f   : > { %15938 = vmatmul.mubr.msk.f32.gmra.mxu0 %vm391_vm1, %v13579_v61 }
  0x80   : > { %15940 = vmatprep.mubr.msk.f32.mxu0 %vm391_vm1, %v13580_v62 }
  0x81   : > { %15970 = vmatmul.mubr.msk.f32.gmra.mxu1 %vm391_vm1, %v13620_v63 }
  0x82   : > { %15972 = vmatprep.mubr.msk.f32.mxu1 %vm391_vm1, %v13621_v0 }
  0x83   : > { %15941 = vmatmul.mubr.msk.f32.gmra.mxu0 %vm391_vm1, %v13581_v1 }
  0x84   : > { %15943 = vmatprep.mubr.msk.f32.mxu0 %vm391_vm1, %v13582_v2 }
  0x85   : > { %15973 = vmatmul.mubr.msk.f32.gmra.mxu1 %vm391_vm1, %v13622_v3 }
  0x86   : > { %15975 = vmatprep.mubr.msk.f32.mxu1 %vm391_vm1, %v13623_v4 }
  0x87   : > { %15944 = vmatmul.mubr.msk.f32.gmra.mxu0 %vm391_vm1, %v13583_v5  ;;  %v18010_v5 = vld [vmem:[%s22330_s3 + $0x98] sm:$0xff] }
  0x89   : > { %15976 = vmatmul.mubr.msk.f32.gmra.mxu1 %vm391_vm1, %v13624_v6 }
  0xd3   : > { %v15790_v8 = vpop.f32.mrf.mxu0 }
  0xd4   : > { %v622_v9 = vmax.f32 %v15790_v8, 0.0 }
  0xd5   : > { %v522_v10 = vpop.f32.mrf.mxu0  ;;  %v15822_v12 = vpop.f32.mrf.mxu1 }
  0xd6   : > { %643 = vst.msk [vmem:[#allocation2 + $0x8] sm:$0xff] %vm641_vm2, %v622_v9  ;;  %v621_v11 = vmax.f32 %v522_v10, 0.0  ;;  %v913_v14 = vmax.f32 %v15822_v12, 0.0 }
  0xd7   : > { %v15793_v13 = vpop.f32.mrf.mxu0  ;;  %v813_v16 = vpop.f32.mrf.mxu1 }
  0xd8   : > { %642 = vst.msk [vmem:[#allocation2] sm:$0xff] %vm641_vm2, %v621_v11  ;;  %v624_v15 = vmax.f32 %v15793_v13, 0.0  ;;  %934 = vst.msk [vmem:[#allocation2 + $0xa8] sm:$0xff] %vm641_vm2, %v913_v14  ;;  %v912_v18 = vmax.f32 %v813_v16, 0.0 }
  0xd9   : > { %v532_v17 = vpop.f32.mrf.mxu0  ;;  %v15825_v20 = vpop.f32.mrf.mxu1 }
  0xda   : > { %645 = vst.msk [vmem:[#allocation2 + $0x18] sm:$0xff] %vm641_vm2, %v624_v15  ;;  %v623_v19 = vmax.f32 %v532_v17, 0.0  ;;  %933 = vst.msk [vmem:[#allocation2 + $0xa0] sm:$0xff] %vm641_vm2, %v912_v18  ;;  %v915_v22 = vmax.f32 %v15825_v20, 0.0  ;;  %v18029_v18 = vld [vmem:[%s22330_s3 + $0xb8] sm:$0xff] }
  0xdb   : > { %v15796_v21 = vpop.f32.mrf.mxu0  ;;  %v823_v24 = vpop.f32.mrf.mxu1 }
  0xdc   : > { %644 = vst.msk [vmem:[#allocation2 + $0x10] sm:$0xff] %vm641_vm2, %v623_v19  ;;  %v626_v23 = vmax.f32 %v15796_v21, 0.0  ;;  %936 = vst.msk [vmem:[#allocation2 + $0xb8] sm:$0xff] %vm641_vm2, %v915_v22  ;;  %v914_v26 = vmax.f32 %v823_v24, 0.0 }
  0xdd   : > { %v542_v25 = vpop.f32.mrf.mxu0  ;;  %v15828_v28 = vpop.f32.mrf.mxu1 }
  0xde   : > { %647 = vst.msk [vmem:[#allocation2 + $0x28] sm:$0xff] %vm641_vm2, %v626_v23  ;;  %v625_v27 = vmax.f32 %v542_v25, 0.0  ;;  %935 = vst.msk [vmem:[#allocation2 + $0xb0] sm:$0xff] %vm641_vm2, %v914_v26  ;;  %v917_v32 = vmax.f32 %v15828_v28, 0.0 }
  0xdf   : > { %v15799_v29 = vpop.f32.mrf.mxu0  ;;  %v2153_v30 = vld [vmem:[#allocation2 + $0x1] sm:$0xff]  ;;  %v833_v34 = vpop.f32.mrf.mxu1 }
  0xe0   : > { %v2117_v31 = vld [vmem:[#allocation2] sm:$0xff]  ;;  %646 = vst.msk [vmem:[#allocation2 + $0x20] sm:$0xff] %vm641_vm2, %v625_v27  ;;  %v628_v33 = vmax.f32 %v15799_v29, 0.0  ;;  %15986 = vmatprep.mubr.msk.f32.mxu0 %vm641_vm2, %v2153_v30  ;;  %938 = vst.msk [vmem:[#allocation2 + $0xc8] sm:$0xff] %vm641_vm2, %v917_v32  ;;  %v916_v36 = vmax.f32 %v833_v34, 0.0 }
  0xe1   : > { %16042 = vmatprep.mubr.msk.f32.mxu1 %vm641_vm2, %v2117_v31  ;;  %v552_v35 = vpop.f32.mrf.mxu0  ;;  %v15831_v38 = vpop.f32.mrf.mxu1 }
  0xe2   : > { %649 = vst.msk [vmem:[#allocation2 + $0x38] sm:$0xff] %vm641_vm2, %v628_v33  ;;  %v627_v37 = vmax.f32 %v552_v35, 0.0  ;;  %937 = vst.msk [vmem:[#allocation2 + $0xc0] sm:$0xff] %vm641_vm2, %v916_v36  ;;  %v919_v43 = vmax.f32 %v15831_v38, 0.0 }
  0xe3   : > { %v15802_v40 = vpop.f32.mrf.mxu0  ;;  %v2154_v41 = vld [vmem:[#allocation2 + $0x11] sm:$0xff]  ;;  %v843_v46 = vpop.f32.mrf.mxu1 }
  0xe4   : > { %v17969_v42 = vld [vmem:[#allocation2 + $0x10] sm:$0xff]  ;;  %648 = vst.msk [vmem:[#allocation2 + $0x30] sm:$0xff] %vm641_vm2, %v627_v37  ;;  %v630_v45 = vmax.f32 %v15802_v40, 0.0  ;;  %15987 = vmatmul.mubr.msk.f32.vlgmr.msra.gmra.mxu0 %vm641_vm2, %v2154_v41  ;;  %940 = vst.msk [vmem:[#allocation2 + $0xd8] sm:$0xff] %vm641_vm2, %v919_v43  ;;  %v918_v48 = vmax.f32 %v843_v46, 0.0 }
  0xe5   : > { %16043 = vmatmul.mubr.msk.f32.vlgmr.msra.gmra.mxu1 %vm641_vm2, %v17969_v42  ;;  %v562_v47 = vpop.f32.mrf.mxu0  ;;  %16091 = vmatpush3.msra.mxu0 %v17916_v58  ;;  %v15834_v50 = vpop.f32.mrf.mxu1 }
  0xe6   : > { %16147 = vmatpush3.msra.mxu1 %v17949_v7  ;;  %651 = vst.msk [vmem:[#allocation2 + $0x48] sm:$0xff] %vm641_vm2, %v630_v45  ;;  %v629_v49 = vmax.f32 %v562_v47, 0.0  ;;  %16092 = vmatprep.subr.mxu0 %v13716_v39  ;;  %939 = vst.msk [vmem:[#allocation2 + $0xd0] sm:$0xff] %vm641_vm2, %v918_v48  ;;  %v921_v56 = vmax.f32 %v15834_v50, 0.0  ;;  %v2125_v50 = vld [vmem:[#allocation2 + $0xa0] sm:$0xff] }
  0xe7   : > { %16148 = vmatprep.subr.mxu1 %v13752_v44  ;;  %v15805_v53 = vpop.f32.mrf.mxu0  ;;  %v2155_v54 = vld [vmem:[#allocation2 + $0x21] sm:$0xff]  ;;  %16093 = vmatpush3.msra.mxu0 %v13716_v39  ;;  %v853_v58 = vpop.f32.mrf.mxu1 }
  0xe8   : > { %v17989_v55 = vld [vmem:[#allocation2 + $0x20] sm:$0xff]  ;;  %16149 = vmatpush3.msra.mxu1 %v13752_v44  ;;  %650 = vst.msk [vmem:[#allocation2 + $0x40] sm:$0xff] %vm641_vm2, %v629_v49  ;;  %v632_v57 = vmax.f32 %v15805_v53, 0.0  ;;  %15989 = vmatprep.mubr.msk.f32.mxu0 %vm641_vm2, %v2155_v54  ;;  %942 = vst.msk [vmem:[#allocation2 + $0xe8] sm:$0xff] %vm641_vm2, %v921_v56  ;;  %v920_v62 = vmax.f32 %v853_v58, 0.0  ;;  %v18069_v58 = vld [vmem:[#allocation2 + $0xb1] sm:$0xff] }
  0xe9   : > { %16045 = vmatprep.mubr.msk.f32.mxu1 %vm641_vm2, %v17989_v55  ;;  %v572_v61 = vpop.f32.mrf.mxu0  ;;  %16094 = vmatprep.subr.mxu0 %v13715_v51  ;;  %v15837_v0 = vpop.f32.mrf.mxu1  ;;  %v2161_v49 = vld [vmem:[#allocation2 + $0xa1] sm:$0xff] }
  0xea   : > { %16150 = vmatprep.subr.mxu1 %v13751_v52  ;;  %653 = vst.msk [vmem:[#allocation2 + $0x58] sm:$0xff] %vm641_vm2, %v632_v57  ;;  %v631_v63 = vmax.f32 %v572_v61, 0.0  ;;  %16095 = vmatpush3.msra.mxu0 %v13715_v51  ;;  %941 = vst.msk [vmem:[#allocation2 + $0xe0] sm:$0xff] %vm641_vm2, %v920_v62  ;;  %v923_v4 = vmax.f32 %v15837_v0, 0.0  ;;  %v18079_v62 = vld [vmem:[#allocation2 + $0xc1] sm:$0xff] }
  0xeb   : > { %16151 = vmatpush3.msra.mxu1 %v13751_v52  ;;  %v15808_v1 = vpop.f32.mrf.mxu0  ;;  %v2156_v2 = vld [vmem:[#allocation2 + $0x31] sm:$0xff]  ;;  %16096 = vmatprep.subr.mxu0 %v13714_v59  ;;  %v863_v7 = vpop.f32.mrf.mxu1 }
  0xec   : > { %v18004_v3 = vld [vmem:[#allocation2 + $0x30] sm:$0xff]  ;;  %16152 = vmatprep.subr.mxu1 %v13750_v60  ;;  %652 = vst.msk [vmem:[#allocation2 + $0x50] sm:$0xff] %vm641_vm2, %v631_v63  ;;  %v634_v6 = vmax.f32 %v15808_v1, 0.0  ;;  %15990 = vmatmul.mubr.msk.f32.gmra.mxu0 %vm641_vm2, %v2156_v2  ;;  %944 = vst.msk [vmem:[#allocation2 + $0xf8] sm:$0xff] %vm641_vm2, %v923_v4  ;;  %v922_v9 = vmax.f32 %v863_v7, 0.0  ;;  %v18081_v63 = vld [vmem:[#allocation2 + $0xc0] sm:$0xff] }
  0xed   : > { %16046 = vmatmul.mubr.msk.f32.gmra.mxu1 %vm641_vm2, %v18004_v3  ;;  %v582_v8 = vpop.f32.mrf.mxu0  ;;  %16097 = vmatpush3.msra.mxu0 %v13714_v59  ;;  %v15840_v11 = vpop.f32.mrf.mxu1  ;;  %v18071_v59 = vld [vmem:[#allocation2 + $0xb0] sm:$0xff] }
  0xee   : > { %16153 = vmatpush3.msra.mxu1 %v13750_v60  ;;  %655 = vst.msk [vmem:[#allocation2 + $0x68] sm:$0xff] %vm641_vm2, %v634_v6  ;;  %v633_v10 = vmax.f32 %v582_v8, 0.0  ;;  %16202 = vmatprep.subr.mxu0 %v18010_v5  ;;  %943 = vst.msk [vmem:[#allocation2 + $0xf0] sm:$0xff] %vm641_vm2, %v922_v9  ;;  %v925_v15 = vmax.f32 %v15840_v11, 0.0  ;;  %v18089_v8 = vld [vmem:[#allocation2 + $0xd1] sm:$0xff] }
  0xef   : > { %v15811_v12 = vpop.f32.mrf.mxu0  ;;  %v2157_v13 = vld [vmem:[#allocation2 + $0x41] sm:$0xff]  ;;  %v873_v17 = vpop.f32.mrf.mxu1  ;;  %16258 = vmatprep.subr.mxu1 %v18029_v18  ;;  %v18091_v9 = vld [vmem:[#allocation2 + $0xd0] sm:$0xff] }
  0xf0   : > { %v18019_v14 = vld [vmem:[#allocation2 + $0x40] sm:$0xff]  ;;  %654 = vst.msk [vmem:[#allocation2 + $0x60] sm:$0xff] %vm641_vm2, %v633_v10  ;;  %v636_v16 = vmax.f32 %v15811_v12, 0.0  ;;  %15992 = vmatprep.mubr.msk.f32.mxu0 %vm641_vm2, %v2157_v13  ;;  %946 = vst.msk [vmem:[#allocation2 + $0x108] sm:$0xff] %vm641_vm2, %v925_v15  ;;  %v924_v20 = vmax.f32 %v873_v17, 0.0 }
  0xf1   : > { %16048 = vmatprep.mubr.msk.f32.mxu1 %vm641_vm2, %v18019_v14  ;;  %v592_v19 = vpop.f32.mrf.mxu0  ;;  %v15843_v22 = vpop.f32.mrf.mxu1  ;;  %v18099_v12 = vld [vmem:[#allocation2 + $0xe1] sm:$0xff] }
  0xf2   : > { %657 = vst.msk [vmem:[#allocation2 + $0x78] sm:$0xff] %vm641_vm2, %v636_v16  ;;  %v635_v21 = vmax.f32 %v592_v19, 0.0  ;;  %945 = vst.msk [vmem:[#allocation2 + $0x100] sm:$0xff] %vm641_vm2, %v924_v20  ;;  %v927_v26 = vmax.f32 %v15843_v22, 0.0  ;;  %v18101_v13 = vld [vmem:[#allocation2 + $0xe0] sm:$0xff] }
  0xf3   : > { %v15814_v23 = vpop.f32.mrf.mxu0  ;;  %v2158_v24 = vld [vmem:[#allocation2 + $0x51] sm:$0xff]  ;;  %v883_v28 = vpop.f32.mrf.mxu1 }
  0xf4   : > { %v18034_v25 = vld [vmem:[#allocation2 + $0x50] sm:$0xff]  ;;  %656 = vst.msk [vmem:[#allocation2 + $0x70] sm:$0xff] %vm641_vm2, %v635_v21  ;;  %v638_v27 = vmax.f32 %v15814_v23, 0.0  ;;  %15993 = vmatmul.mubr.msk.f32.gmra.mxu0 %vm641_vm2, %v2158_v24  ;;  %948 = vst.msk [vmem:[#allocation2 + $0x118] sm:$0xff] %vm641_vm2, %v927_v26  ;;  %v926_v30 = vmax.f32 %v883_v28, 0.0 }
  0xf5   : > { %16049 = vmatmul.mubr.msk.f32.gmra.mxu1 %vm641_vm2, %v18034_v25  ;;  %v602_v29 = vpop.f32.mrf.mxu0  ;;  %v15846_v32 = vpop.f32.mrf.mxu1  ;;  %v18109_v22 = vld [vmem:[#allocation2 + $0xf1] sm:$0xff] }
  0xf6   : > { %659 = vst.msk [vmem:[#allocation2 + $0x88] sm:$0xff] %vm641_vm2, %v638_v27  ;;  %v637_v31 = vmax.f32 %v602_v29, 0.0  ;;  %947 = vst.msk [vmem:[#allocation2 + $0x110] sm:$0xff] %vm641_vm2, %v926_v30  ;;  %v929_v36 = vmax.f32 %v15846_v32, 0.0  ;;  %v18111_v23 = vld [vmem:[#allocation2 + $0xf0] sm:$0xff] }
  0xf7   : > { %v15817_v33 = vpop.f32.mrf.mxu0  ;;  %v18043_v34 = vld [vmem:[#allocation2 + $0x61] sm:$0xff]  ;;  %v893_v38 = vpop.f32.mrf.mxu1 }
  0xf8   : > { %v18045_v35 = vld [vmem:[#allocation2 + $0x60] sm:$0xff]  ;;  %658 = vst.msk [vmem:[#allocation2 + $0x80] sm:$0xff] %vm641_vm2, %v637_v31  ;;  %v640_v37 = vmax.f32 %v15817_v33, 0.0  ;;  %15995 = vmatprep.mubr.msk.f32.mxu0 %vm641_vm2, %v18043_v34  ;;  %950 = vst.msk [vmem:[#allocation2 + $0x128] sm:$0xff] %vm641_vm2, %v929_v36  ;;  %v928_v40 = vmax.f32 %v893_v38, 0.0 }
  0xf9   : > { %16051 = vmatprep.mubr.msk.f32.mxu1 %vm641_vm2, %v18045_v35  ;;  %v612_v39 = vpop.f32.mrf.mxu0  ;;  %v15849_v43 = vpop.f32.mrf.mxu1  ;;  %v18119_v27 = vld [vmem:[#allocation2 + $0x101] sm:$0xff] }
  0xfa   : > { %661 = vst.msk [vmem:[#allocation2 + $0x98] sm:$0xff] %vm641_vm2, %v640_v37  ;;  %v639_v41 = vmax.f32 %v612_v39, 0.0  ;;  %949 = vst.msk [vmem:[#allocation2 + $0x120] sm:$0xff] %vm641_vm2, %v928_v40  ;;  %v931_v47 = vmax.f32 %v15849_v43, 0.0  ;;  %v18121_v28 = vld [vmem:[#allocation2 + $0x100] sm:$0xff] }
  0xfb   : > { %v15854_v44 = vpop.f32.mrf.mxu0  ;;  %v18055_v45 = vld [vmem:[#allocation2 + $0x71] sm:$0xff]  ;;  %v903_v51 = vpop.f32.mrf.mxu1 }
  0xfc   : > { %v18057_v46 = vld [vmem:[#allocation2 + $0x70] sm:$0xff]  ;;  %660 = vst.msk [vmem:[#allocation2 + $0x90] sm:$0xff] %vm641_vm2, %v639_v41  ;;  %v1204_v48 = vmax.f32 %v15854_v44, 0.0  ;;  %15996 = vmatmul.mubr.msk.f32.gmra.mxu0 %vm641_vm2, %v18055_v45  ;;  %952 = vst.msk [vmem:[#allocation2 + $0x138] sm:$0xff] %vm641_vm2, %v931_v47  ;;  %v930_v53 = vmax.f32 %v903_v51, 0.0 }
  0xfd   : > { %16052 = vmatmul.mubr.msk.f32.gmra.mxu1 %vm641_vm2, %v18057_v46  ;;  %v1104_v52 = vpop.f32.mrf.mxu0  ;;  %15998 = vmatprep.mubr.msk.f32.mxu0 %vm641_vm2, %v2161_v49  ;;  %v15886_v56 = vpop.f32.mrf.mxu1  ;;  %v18129_v37 = vld [vmem:[#allocation2 + $0x111] sm:$0xff] }
  0xfe   : > { %16054 = vmatprep.mubr.msk.f32.mxu1 %vm641_vm2, %v2125_v50  ;;  %1225 = vst.msk [vmem:[#allocation2 + $0x148] sm:$0xff] %vm641_vm2, %v1204_v48  ;;  %v1203_v54 = vmax.f32 %v1104_v52, 0.0  ;;  %951 = vst.msk [vmem:[#allocation2 + $0x130] sm:$0xff] %vm641_vm2, %v930_v53  ;;  %v1495_v60 = vmax.f32 %v15886_v56, 0.0  ;;  %v18131_v38 = vld [vmem:[#allocation2 + $0x110] sm:$0xff] }
  0xff   : > { %v15857_v57 = vpop.f32.mrf.mxu0  ;;  %v1395_v0 = vpop.f32.mrf.mxu1 }
 0x100   : > { %1224 = vst.msk [vmem:[#allocation2 + $0x140] sm:$0xff] %vm641_vm2, %v1203_v54  ;;  %v1206_v61 = vmax.f32 %v15857_v57, 0.0  ;;  %15999 = vmatmul.mubr.msk.f32.gmra.mxu0 %vm641_vm2, %v18069_v58  ;;  %1516 = vst.msk [vmem:[#allocation2 + $0x1e8] sm:$0xff] %vm641_vm2, %v1495_v60  ;;  %v1494_v2 = vmax.f32 %v1395_v0, 0.0 }
 0x101   : > { %16055 = vmatmul.mubr.msk.f32.gmra.mxu1 %vm641_vm2, %v18071_v59  ;;  %v1114_v1 = vpop.f32.mrf.mxu0  ;;  %16001 = vmatprep.mubr.msk.f32.mxu0 %vm641_vm2, %v18079_v62  ;;  %v15889_v6 = vpop.f32.mrf.mxu1 }
 0x102   : > { %16057 = vmatprep.mubr.msk.f32.mxu1 %vm641_vm2, %v18081_v63  ;;  %1227 = vst.msk [vmem:[#allocation2 + $0x158] sm:$0xff] %vm641_vm2, %v1206_v61  ;;  %v1205_v4 = vmax.f32 %v1114_v1, 0.0  ;;  %1515 = vst.msk [vmem:[#allocation2 + $0x1e0] sm:$0xff] %vm641_vm2, %v1494_v2  ;;  %v1497_v10 = vmax.f32 %v15889_v6, 0.0 }
 0x103   : > { %v15860_v7 = vpop.f32.mrf.mxu0  ;;  %v1405_v15 = vpop.f32.mrf.mxu1 }
 0x104   : > { %1226 = vst.msk [vmem:[#allocation2 + $0x150] sm:$0xff] %vm641_vm2, %v1205_v4  ;;  %v1208_v11 = vmax.f32 %v15860_v7, 0.0  ;;  %16002 = vmatmul.mubr.msk.f32.gmra.mxu0 %vm641_vm2, %v18089_v8  ;;  %1518 = vst.msk [vmem:[#allocation2 + $0x1f8] sm:$0xff] %vm641_vm2, %v1497_v10  ;;  %v1496_v17 = vmax.f32 %v1405_v15, 0.0 }
 0x105   : > { %16058 = vmatmul.mubr.msk.f32.gmra.mxu1 %vm641_vm2, %v18091_v9  ;;  %v1124_v16 = vpop.f32.mrf.mxu0  ;;  %16004 = vmatprep.mubr.msk.f32.mxu0 %vm641_vm2, %v18099_v12  ;;  %v15892_v20 = vpop.f32.mrf.mxu1 }
 0x106   : > { %16060 = vmatprep.mubr.msk.f32.mxu1 %vm641_vm2, %v18101_v13  ;;  %1229 = vst.msk [vmem:[#allocation2 + $0x168] sm:$0xff] %vm641_vm2, %v1208_v11  ;;  %v1207_v19 = vmax.f32 %v1124_v16, 0.0  ;;  %1517 = vst.msk [vmem:[#allocation2 + $0x1f0] sm:$0xff] %vm641_vm2, %v1496_v17  ;;  %v1499_v24 = vmax.f32 %v15892_v20, 0.0 }
 0x107   : > { %v15863_v21 = vpop.f32.mrf.mxu0  ;;  %v1415_v29 = vpop.f32.mrf.mxu1  ;;  %v2169_v41 = vld [vmem:[#allocation2 + $0x141] sm:$0xff] }
 0x108   : > { %1228 = vst.msk [vmem:[#allocation2 + $0x160] sm:$0xff] %vm641_vm2, %v1207_v19  ;;  %v1210_v26 = vmax.f32 %v15863_v21, 0.0  ;;  %16005 = vmatmul.mubr.msk.f32.gmra.mxu0 %vm641_vm2, %v18109_v22  ;;  %1520 = vst.msk [vmem:[#allocation2 + $0x208] sm:$0xff] %vm641_vm2, %v1499_v24  ;;  %v1498_v31 = vmax.f32 %v1415_v29, 0.0  ;;  %v2133_v43 = vld [vmem:[#allocation2 + $0x140] sm:$0xff] }
 0x109   : > { %16061 = vmatmul.mubr.msk.f32.gmra.mxu1 %vm641_vm2, %v18111_v23  ;;  %v1134_v30 = vpop.f32.mrf.mxu0  ;;  %16007 = vmatprep.mubr.msk.f32.mxu0 %vm641_vm2, %v18119_v27  ;;  %v15895_v33 = vpop.f32.mrf.mxu1 }
 0x10a   : > { %16063 = vmatprep.mubr.msk.f32.mxu1 %vm641_vm2, %v18121_v28  ;;  %1231 = vst.msk [vmem:[#allocation2 + $0x178] sm:$0xff] %vm641_vm2, %v1210_v26  ;;  %v1209_v32 = vmax.f32 %v1134_v30, 0.0  ;;  %1519 = vst.msk [vmem:[#allocation2 + $0x200] sm:$0xff] %vm641_vm2, %v1498_v31  ;;  %v1501_v39 = vmax.f32 %v15895_v33, 0.0 }
 0x10b   : > { %v15866_v36 = vpop.f32.mrf.mxu0  ;;  %v1425_v44 = vpop.f32.mrf.mxu1  ;;  %v18143_v50 = vld [vmem:[#allocation2 + $0x151] sm:$0xff] }
 0x10c   : > { %1230 = vst.msk [vmem:[#allocation2 + $0x170] sm:$0xff] %vm641_vm2, %v1209_v32  ;;  %v1212_v40 = vmax.f32 %v15866_v36, 0.0  ;;  %16008 = vmatmul.mubr.msk.f32.gmra.mxu0 %vm641_vm2, %v18129_v37  ;;  %1522 = vst.msk [vmem:[#allocation2 + $0x218] sm:$0xff] %vm641_vm2, %v1501_v39  ;;  %v1500_v48 = vmax.f32 %v1425_v44, 0.0  ;;  %v18145_v53 = vld [vmem:[#allocation2 + $0x150] sm:$0xff] }
 0x10d   : > { %16064 = vmatmul.mubr.msk.f32.gmra.mxu1 %vm641_vm2, %v18131_v38  ;;  %v1144_v47 = vpop.f32.mrf.mxu0  ;;  %16010 = vmatprep.mubr.msk.f32.mxu0 %vm641_vm2, %v2169_v41  ;;  %v15898_v51 = vpop.f32.mrf.mxu1 }
 0x10e   : > { %16066 = vmatprep.mubr.msk.f32.mxu1 %vm641_vm2, %v2133_v43  ;;  %1233 = vst.msk [vmem:[#allocation2 + $0x188] sm:$0xff] %vm641_vm2, %v1212_v40  ;;  %v1211_v49 = vmax.f32 %v1144_v47, 0.0  ;;  %1521 = vst.msk [vmem:[#allocation2 + $0x210] sm:$0xff] %vm641_vm2, %v1500_v48  ;;  %v1503_v57 = vmax.f32 %v15898_v51, 0.0 }
 0x10f   : > { %v15869_v52 = vpop.f32.mrf.mxu0  ;;  %v18147_v54 = vld [vmem:[#allocation2 + $0x161] sm:$0xff]  ;;  %v1435_v61 = vpop.f32.mrf.mxu1 }
 0x110   : > { %v18149_v56 = vld [vmem:[#allocation2 + $0x160] sm:$0xff]  ;;  %1232 = vst.msk [vmem:[#allocation2 + $0x180] sm:$0xff] %vm641_vm2, %v1211_v49  ;;  %v1214_v60 = vmax.f32 %v15869_v52, 0.0  ;;  %16011 = vmatmul.mubr.msk.f32.gmra.mxu0 %vm641_vm2, %v18143_v50  ;;  %1524 = vst.msk [vmem:[#allocation2 + $0x228] sm:$0xff] %vm641_vm2, %v1503_v57  ;;  %v1502_v1 = vmax.f32 %v1435_v61, 0.0 }
 0x111   : > { %16067 = vmatmul.mubr.msk.f32.gmra.mxu1 %vm641_vm2, %v18145_v53  ;;  %v1154_v0 = vpop.f32.mrf.mxu0  ;;  %16013 = vmatprep.mubr.msk.f32.mxu0 %vm641_vm2, %v18147_v54  ;;  %v15901_v4 = vpop.f32.mrf.mxu1 }
 0x112   : > { %16069 = vmatprep.mubr.msk.f32.mxu1 %vm641_vm2, %v18149_v56  ;;  %1235 = vst.msk [vmem:[#allocation2 + $0x198] sm:$0xff] %vm641_vm2, %v1214_v60  ;;  %v1213_v2 = vmax.f32 %v1154_v0, 0.0  ;;  %1523 = vst.msk [vmem:[#allocation2 + $0x220] sm:$0xff] %vm641_vm2, %v1502_v1  ;;  %v1505_v11 = vmax.f32 %v15901_v4, 0.0 }
 0x113   : > { %v15872_v6 = vpop.f32.mrf.mxu0  ;;  %v18163_v7 = vld [vmem:[#allocation2 + $0x171] sm:$0xff]  ;;  %v1445_v16 = vpop.f32.mrf.mxu1 }
 0x114   : > { %v18165_v10 = vld [vmem:[#allocation2 + $0x170] sm:$0xff]  ;;  %1234 = vst.msk [vmem:[#allocation2 + $0x190] sm:$0xff] %vm641_vm2, %v1213_v2  ;;  %v1216_v15 = vmax.f32 %v15872_v6, 0.0  ;;  %16014 = vmatmul.mubr.msk.f32.gmra.mxu0 %vm641_vm2, %v18163_v7  ;;  %1526 = vst.msk [vmem:[#allocation2 + $0x238] sm:$0xff] %vm641_vm2, %v1505_v11  ;;  %v1504_v19 = vmax.f32 %v1445_v16, 0.0 }
 0x115   : > { %16070 = vmatmul.mubr.msk.f32.gmra.mxu1 %vm641_vm2, %v18165_v10  ;;  %v1164_v17 = vpop.f32.mrf.mxu0  ;;  %v15904_v21 = vpop.f32.mrf.mxu1 }
 0x116   : > { %1237 = vst.msk [vmem:[#allocation2 + $0x1a8] sm:$0xff] %vm641_vm2, %v1216_v15  ;;  %v1215_v20 = vmax.f32 %v1164_v17, 0.0  ;;  %1525 = vst.msk [vmem:[#allocation2 + $0x230] sm:$0xff] %vm641_vm2, %v1504_v19  ;;  %v1507_v30 = vmax.f32 %v15904_v21, 0.0 }
 0x117   : > { %v15875_v24 = vpop.f32.mrf.mxu0  ;;  %v18175_v26 = vld [vmem:[#allocation2 + $0x181] sm:$0xff]  ;;  %v1455_v32 = vpop.f32.mrf.mxu1 }
 0x118   : > { %v18177_v29 = vld [vmem:[#allocation2 + $0x180] sm:$0xff]  ;;  %1236 = vst.msk [vmem:[#allocation2 + $0x1a0] sm:$0xff] %vm641_vm2, %v1215_v20  ;;  %v1218_v31 = vmax.f32 %v15875_v24, 0.0  ;;  %16016 = vmatprep.mubr.msk.f32.mxu0 %vm641_vm2, %v18175_v26  ;;  %1528 = vst.msk [vmem:[#allocation2 + $0x248] sm:$0xff] %vm641_vm2, %v1507_v30  ;;  %v1506_v36 = vmax.f32 %v1455_v32, 0.0 }
 0x119   : > { %16072 = vmatprep.mubr.msk.f32.mxu1 %vm641_vm2, %v18177_v29  ;;  %v1174_v33 = vpop.f32.mrf.mxu0  ;;  %v15907_v40 = vpop.f32.mrf.mxu1  ;;  %v2177_v30 = vld [vmem:[#allocation2 + $0x1e1] sm:$0xff] }
 0x11a   : > { %1239 = vst.msk [vmem:[#allocation2 + $0x1b8] sm:$0xff] %vm641_vm2, %v1218_v31  ;;  %v1217_v39 = vmax.f32 %v1174_v33, 0.0  ;;  %1527 = vst.msk [vmem:[#allocation2 + $0x240] sm:$0xff] %vm641_vm2, %v1506_v36  ;;  %v1509_v44 = vmax.f32 %v15907_v40, 0.0  ;;  %v2141_v31 = vld [vmem:[#allocation2 + $0x1e0] sm:$0xff] }
 0x11b   : > { %v18187_v41 = vld [vmem:[#allocation2 + $0x191] sm:$0xff]  ;;  %v15878_v47 = vpop.f32.mrf.mxu0  ;;  %v1465_v48 = vpop.f32.mrf.mxu1 }
 0x11c   : > { %v18189_v43 = vld [vmem:[#allocation2 + $0x190] sm:$0xff]  ;;  %1238 = vst.msk [vmem:[#allocation2 + $0x1b0] sm:$0xff] %vm641_vm2, %v1217_v39  ;;  %16017 = vmatmul.mubr.msk.f32.gmra.mxu0 %vm641_vm2, %v18187_v41  ;;  %v1220_v49 = vmax.f32 %v15878_v47, 0.0  ;;  %1530 = vst.msk [vmem:[#allocation2 + $0x258] sm:$0xff] %vm641_vm2, %v1509_v44  ;;  %v1508_v51 = vmax.f32 %v1465_v48, 0.0 }
 0x11d   : > { %16073 = vmatmul.mubr.msk.f32.gmra.mxu1 %vm641_vm2, %v18189_v43  ;;  %v1184_v52 = vpop.f32.mrf.mxu0  ;;  %v15910_v60 = vpop.f32.mrf.mxu1  ;;  %v18225_v47 = vld [vmem:[#allocation2 + $0x1f1] sm:$0xff] }
 0x11e   : > { %1241 = vst.msk [vmem:[#allocation2 + $0x1c8] sm:$0xff] %vm641_vm2, %v1220_v49  ;;  %v1219_v57 = vmax.f32 %v1184_v52, 0.0  ;;  %1529 = vst.msk [vmem:[#allocation2 + $0x250] sm:$0xff] %vm641_vm2, %v1508_v51  ;;  %v1511_v1 = vmax.f32 %v15910_v60, 0.0  ;;  %v18227_v48 = vld [vmem:[#allocation2 + $0x1f0] sm:$0xff]  ;;  %v18234_v52 = vld [vmem:[#allocation2 + $0x201] sm:$0xff] }
 0x11f   : > { %v18199_v61 = vld [vmem:[#allocation2 + $0x1a1] sm:$0xff]  ;;  %v15881_v2 = vpop.f32.mrf.mxu0  ;;  %v1475_v4 = vpop.f32.mrf.mxu1 }
 0x120   : > { %v18201_v0 = vld [vmem:[#allocation2 + $0x1a0] sm:$0xff]  ;;  %16019 = vmatprep.mubr.msk.f32.mxu0 %vm641_vm2, %v18199_v61  ;;  %1240 = vst.msk [vmem:[#allocation2 + $0x1c0] sm:$0xff] %vm641_vm2, %v1219_v57  ;;  %v1222_v6 = vmax.f32 %v15881_v2, 0.0  ;;  %1532 = vst.msk [vmem:[#allocation2 + $0x268] sm:$0xff] %vm641_vm2, %v1511_v1  ;;  %v1510_v11 = vmax.f32 %v1475_v4, 0.0 }
 0x121   : > { %16075 = vmatprep.mubr.msk.f32.mxu1 %vm641_vm2, %v18201_v0  ;;  %v1194_v15 = vpop.f32.mrf.mxu0  ;;  %v15913_v16 = vpop.f32.mrf.mxu1  ;;  %v18236_v57 = vld [vmem:[#allocation2 + $0x200] sm:$0xff] }
 0x122   : > { %1243 = vst.msk [vmem:[#allocation2 + $0x1d8] sm:$0xff] %vm641_vm2, %v1222_v6  ;;  %v1221_v17 = vmax.f32 %v1194_v15, 0.0  ;;  %1531 = vst.msk [vmem:[#allocation2 + $0x260] sm:$0xff] %vm641_vm2, %v1510_v11  ;;  %v1513_v21 = vmax.f32 %v15913_v16, 0.0  ;;  %v18245_v15 = vld [vmem:[#allocation2 + $0x211] sm:$0xff] }
 0x123   : > { %v18211_v19 = vld [vmem:[#allocation2 + $0x1b1] sm:$0xff]  ;;  %v15918_v24 = vpop.f32.mrf.mxu0  ;;  %v1485_v32 = vpop.f32.mrf.mxu1 }
 0x124   : > { %v18213_v20 = vld [vmem:[#allocation2 + $0x1b0] sm:$0xff]  ;;  %16020 = vmatmul.mubr.msk.f32.gmra.mxu0 %vm641_vm2, %v18211_v19  ;;  %1242 = vst.msk [vmem:[#allocation2 + $0x1d0] sm:$0xff] %vm641_vm2, %v1221_v17  ;;  %v1786_v33 = vmax.f32 %v15918_v24, 0.0  ;;  %1534 = vst.msk [vmem:[#allocation2 + $0x278] sm:$0xff] %vm641_vm2, %v1513_v21  ;;  %v1512_v36 = vmax.f32 %v1485_v32, 0.0  ;;  %v18254_v24 = vld [vmem:[#allocation2 + $0x221] sm:$0xff] }
 0x125   : > { %16076 = vmatmul.mubr.msk.f32.gmra.mxu1 %vm641_vm2, %v18213_v20  ;;  %16022 = vmatprep.mubr.msk.f32.mxu0 %vm641_vm2, %v2177_v30  ;;  %v1686_v39 = vpop.f32.mrf.mxu0  ;;  %v15950_v40 = vpop.f32.mrf.mxu1  ;;  %v18247_v16 = vld [vmem:[#allocation2 + $0x210] sm:$0xff]  ;;  %v18256_v30 = vld [vmem:[#allocation2 + $0x220] sm:$0xff] }
 0x126   : > { %16078 = vmatprep.mubr.msk.f32.mxu1 %vm641_vm2, %v2141_v31  ;;  %1807 = vst.msk [vmem:[#allocation2 + $0x288] sm:$0xff] %vm641_vm2, %v1786_v33  ;;  %v1785_v44 = vmax.f32 %v1686_v39, 0.0  ;;  %1533 = vst.msk [vmem:[#allocation2 + $0x270] sm:$0xff] %vm641_vm2, %v1512_v36  ;;  %v2077_v49 = vmax.f32 %v15950_v40, 0.0 }
 0x127   : > { %v15921_v51 = vpop.f32.mrf.mxu0  ;;  %v1977_v60 = vpop.f32.mrf.mxu1 }
 0x128   : > { %16023 = vmatmul.mubr.msk.f32.gmra.mxu0 %vm641_vm2, %v18225_v47  ;;  %1806 = vst.msk [vmem:[#allocation2 + $0x280] sm:$0xff] %vm641_vm2, %v1785_v44  ;;  %v1788_v1 = vmax.f32 %v15921_v51, 0.0  ;;  %2098 = vst.msk [vmem:[#allocation2 + $0x328] sm:$0xff] %vm641_vm2, %v2077_v49  ;;  %v2076_v2 = vmax.f32 %v1977_v60, 0.0  ;;  %v18265_v44 = vld [vmem:[#allocation2 + $0x231] sm:$0xff] }
 0x129   : > { %16079 = vmatmul.mubr.msk.f32.gmra.mxu1 %vm641_vm2, %v18227_v48  ;;  %16025 = vmatprep.mubr.msk.f32.mxu0 %vm641_vm2, %v18234_v52  ;;  %v1696_v4 = vpop.f32.mrf.mxu0  ;;  %v15953_v6 = vpop.f32.mrf.mxu1  ;;  %v18267_v49 = vld [vmem:[#allocation2 + $0x230] sm:$0xff] }
 0x12a   : > { %16081 = vmatprep.mubr.msk.f32.mxu1 %vm641_vm2, %v18236_v57  ;;  %1809 = vst.msk [vmem:[#allocation2 + $0x298] sm:$0xff] %vm641_vm2, %v1788_v1  ;;  %v1787_v11 = vmax.f32 %v1696_v4, 0.0  ;;  %2097 = vst.msk [vmem:[#allocation2 + $0x320] sm:$0xff] %vm641_vm2, %v2076_v2  ;;  %v2079_v17 = vmax.f32 %v15953_v6, 0.0  ;;  %v18274_v1 = vld [vmem:[#allocation2 + $0x241] sm:$0xff] }
 0x12b   : > { %v15924_v21 = vpop.f32.mrf.mxu0  ;;  %v1987_v31 = vpop.f32.mrf.mxu1  ;;  %v18276_v2 = vld [vmem:[#allocation2 + $0x240] sm:$0xff] }
 0x12c   : > { %16026 = vmatmul.mubr.msk.f32.gmra.mxu0 %vm641_vm2, %v18245_v15  ;;  %1808 = vst.msk [vmem:[#allocation2 + $0x290] sm:$0xff] %vm641_vm2, %v1787_v11  ;;  %v1790_v32 = vmax.f32 %v15924_v21, 0.0  ;;  %2100 = vst.msk [vmem:[#allocation2 + $0x338] sm:$0xff] %vm641_vm2, %v2079_v17  ;;  %v2078_v33 = vmax.f32 %v1987_v31, 0.0 }
 0x12d   : > { %16082 = vmatmul.mubr.msk.f32.gmra.mxu1 %vm641_vm2, %v18247_v16  ;;  %16028 = vmatprep.mubr.msk.f32.mxu0 %vm641_vm2, %v18254_v24  ;;  %v1706_v36 = vpop.f32.mrf.mxu0  ;;  %v15956_v39 = vpop.f32.mrf.mxu1 }
 0x12e   : > { %16084 = vmatprep.mubr.msk.f32.mxu1 %vm641_vm2, %v18256_v30  ;;  %1811 = vst.msk [vmem:[#allocation2 + $0x2a8] sm:$0xff] %vm641_vm2, %v1790_v32  ;;  %v1789_v40 = vmax.f32 %v1706_v36, 0.0  ;;  %2099 = vst.msk [vmem:[#allocation2 + $0x330] sm:$0xff] %vm641_vm2, %v2078_v33  ;;  %v2081_v51 = vmax.f32 %v15956_v39, 0.0  ;;  %v18285_v32 = vld [vmem:[#allocation2 + $0x251] sm:$0xff] }
 0x12f   : > { %v15927_v60 = vpop.f32.mrf.mxu0  ;;  %v1997_v4 = vpop.f32.mrf.mxu1  ;;  %v18287_v33 = vld [vmem:[#allocation2 + $0x250] sm:$0xff] }
 0x130   : > { %16029 = vmatmul.mubr.msk.f32.gmra.mxu0 %vm641_vm2, %v18265_v44  ;;  %1810 = vst.msk [vmem:[#allocation2 + $0x2a0] sm:$0xff] %vm641_vm2, %v1789_v40  ;;  %v1792_v6 = vmax.f32 %v15927_v60, 0.0  ;;  %2102 = vst.msk [vmem:[#allocation2 + $0x348] sm:$0xff] %vm641_vm2, %v2081_v51  ;;  %v2080_v11 = vmax.f32 %v1997_v4, 0.0  ;;  %v2832_v40 = vld [vmem:[#allocation2 + $0x2] sm:$0xff] }
 0x131   : > { %16085 = vmatmul.mubr.msk.f32.gmra.mxu1 %vm641_vm2, %v18267_v49  ;;  %16031 = vmatprep.mubr.msk.f32.mxu0 %vm641_vm2, %v18274_v1  ;;  %v1716_v17 = vpop.f32.mrf.mxu0  ;;  %v15959_v21 = vpop.f32.mrf.mxu1 }
 0x132   : > { %16087 = vmatprep.mubr.msk.f32.mxu1 %vm641_vm2, %v18276_v2  ;;  %1813 = vst.msk [vmem:[#allocation2 + $0x2b8] sm:$0xff] %vm641_vm2, %v1792_v6  ;;  %v1791_v31 = vmax.f32 %v1716_v17, 0.0  ;;  %2101 = vst.msk [vmem:[#allocation2 + $0x340] sm:$0xff] %vm641_vm2, %v2080_v11  ;;  %v2083_v36 = vmax.f32 %v15959_v21, 0.0  ;;  %v18300_v21 = vld [vmem:[#allocation2 + $0x12] sm:$0xff] }
 0x133   : > { %v15930_v39 = vpop.f32.mrf.mxu0  ;;  %v2007_v51 = vpop.f32.mrf.mxu1 }
 0x134   : > { %16032 = vmatmul.mubr.msk.f32.gmra.mxu0 %vm641_vm2, %v18285_v32  ;;  %1812 = vst.msk [vmem:[#allocation2 + $0x2b0] sm:$0xff] %vm641_vm2, %v1791_v31  ;;  %v1794_v60 = vmax.f32 %v15930_v39, 0.0  ;;  %2104 = vst.msk [vmem:[#allocation2 + $0x358] sm:$0xff] %vm641_vm2, %v2083_v36  ;;  %v2082_v4 = vmax.f32 %v2007_v51, 0.0  ;;  %v13788_v31 = vld [vmem:[%s22330_s3 + $0x90] sm:$0xff] }
 0x135   : > { %16088 = vmatmul.mubr.msk.f32.gmra.mxu1 %vm641_vm2, %v18287_v33  ;;  %16098 = vmatprep.mubr.msk.f32.mxu0 %vm641_vm2, %v2832_v40  ;;  %v1726_v6 = vpop.f32.mrf.mxu0  ;;  %v15962_v11 = vpop.f32.mrf.mxu1 }
 0x136   : > { %16154 = vmatprep.mubr.msk.f32.mxu1 %vm641_vm2, %v17969_v42  ;;  %1815 = vst.msk [vmem:[#allocation2 + $0x2c8] sm:$0xff] %vm641_vm2, %v1794_v60  ;;  %v1793_v17 = vmax.f32 %v1726_v6, 0.0  ;;  %2103 = vst.msk [vmem:[#allocation2 + $0x350] sm:$0xff] %vm641_vm2, %v2082_v4  ;;  %v2085_v39 = vmax.f32 %v15962_v11, 0.0  ;;  %v18310_v42 = vld [vmem:[#allocation2 + $0x22] sm:$0xff]  ;;  %v18320_v11 = vld [vmem:[#allocation2 + $0x32] sm:$0xff] }
 0x137   : > { %v15933_v40 = vpop.f32.mrf.mxu0  ;;  %v2017_v36 = vpop.f32.mrf.mxu1 }
 0x138   : > { %16099 = vmatmul.mubr.msk.f32.vlgmr.msra.gmra.mxu0 %vm641_vm2, %v18300_v21  ;;  %1814 = vst.msk [vmem:[#allocation2 + $0x2c0] sm:$0xff] %vm641_vm2, %v1793_v17  ;;  %v1796_v51 = vmax.f32 %v15933_v40, 0.0  ;;  %2106 = vst.msk [vmem:[#allocation2 + $0x368] sm:$0xff] %vm641_vm2, %v2085_v39  ;;  %v2084_v60 = vmax.f32 %v2017_v36, 0.0  ;;  %v13824_v17 = vld [vmem:[%s22330_s3 + $0xb0] sm:$0xff] }
 0x139   : > { %16155 = vmatmul.mubr.msk.f32.vlgmr.msra.gmra.mxu1 %vm641_vm2, %v17989_v55  ;;  %16203 = vmatpush3.msra.mxu0 %v18010_v5  ;;  %v1736_v4 = vpop.f32.mrf.mxu0  ;;  %v15965_v55 = vpop.f32.mrf.mxu1  ;;  %v13787_v5 = vld [vmem:[%s22330_s3 + $0x88] sm:$0xff] }
 0x13a   : > { %16101 = vmatprep.mubr.msk.f32.mxu0 %vm641_vm2, %v18310_v42  ;;  %16157 = vmatprep.mubr.msk.f32.mxu1 %vm641_vm2, %v18004_v3  ;;  %1817 = vst.msk [vmem:[#allocation2 + $0x2d8] sm:$0xff] %vm641_vm2, %v1796_v51  ;;  %v1795_v6 = vmax.f32 %v1736_v4, 0.0  ;;  %2105 = vst.msk [vmem:[#allocation2 + $0x360] sm:$0xff] %vm641_vm2, %v2084_v60  ;;  %v2087_v3 = vmax.f32 %v15965_v55, 0.0  ;;  %v18343_v4 = vld [vmem:[#allocation2 + $0x52] sm:$0xff]  ;;  %v13786_v55 = vld [vmem:[%s22330_s3 + $0x80] sm:$0xff] }
 0x13b   : > { %16204 = vmatprep.subr.mxu0 %v13788_v31  ;;  %16259 = vmatpush3.msra.mxu1 %v18029_v18  ;;  %v15936_v39 = vpop.f32.mrf.mxu0  ;;  %v2027_v40 = vpop.f32.mrf.mxu1 }
 0x13c   : > { %16205 = vmatpush3.msra.mxu0 %v13788_v31  ;;  %v18334_v31 = vld [vmem:[#allocation2 + $0x42] sm:$0xff]  ;;  %1816 = vst.msk [vmem:[#allocation2 + $0x2d0] sm:$0xff] %vm641_vm2, %v1795_v6  ;;  %v1798_v18 = vmax.f32 %v15936_v39, 0.0  ;;  %2108 = vst.msk [vmem:[#allocation2 + $0x378] sm:$0xff] %vm641_vm2, %v2087_v3  ;;  %v2086_v36 = vmax.f32 %v2027_v40, 0.0  ;;  %16260 = vmatprep.subr.mxu1 %v13824_v17 }
 0x13d   : > { %16102 = vmatmul.mubr.msk.f32.gmra.mxu0 %vm641_vm2, %v18320_v11  ;;  %16158 = vmatmul.mubr.msk.f32.gmra.mxu1 %vm641_vm2, %v18019_v14  ;;  %v1746_v51 = vpop.f32.mrf.mxu0  ;;  %v15968_v14 = vpop.f32.mrf.mxu1 }
 0x13e   : > { %16104 = vmatprep.mubr.msk.f32.mxu0 %vm641_vm2, %v18334_v31  ;;  %16160 = vmatprep.mubr.msk.f32.mxu1 %vm641_vm2, %v18034_v25  ;;  %1819 = vst.msk [vmem:[#allocation2 + $0x2e8] sm:$0xff] %vm641_vm2, %v1798_v18  ;;  %v1797_v60 = vmax.f32 %v1746_v51, 0.0  ;;  %v13823_v25 = vld [vmem:[%s22330_s3 + $0xa8] sm:$0xff]  ;;  %2107 = vst.msk [vmem:[#allocation2 + $0x370] sm:$0xff] %vm641_vm2, %v2086_v36  ;;  %v2089_v6 = vmax.f32 %v15968_v14, 0.0  ;;  %v18368_v14 = vld [vmem:[#allocation2 + $0x72] sm:$0xff] }
 0x13f   : > { %16206 = vmatprep.subr.mxu0 %v13787_v5  ;;  %16261 = vmatpush3.msra.mxu1 %v13824_v17  ;;  %v15939_v3 = vpop.f32.mrf.mxu0  ;;  %v2037_v39 = vpop.f32.mrf.mxu1 }
 0x140   : > { %16207 = vmatpush3.msra.mxu0 %v13787_v5  ;;  %v18356_v5 = vld [vmem:[#allocation2 + $0x62] sm:$0xff]  ;;  %1818 = vst.msk [vmem:[#allocation2 + $0x2e0] sm:$0xff] %vm641_vm2, %v1797_v60  ;;  %v1800_v17 = vmax.f32 %v15939_v3, 0.0  ;;  %2110 = vst.msk [vmem:[#allocation2 + $0x388] sm:$0xff] %vm641_vm2, %v2089_v6  ;;  %v2088_v40 = vmax.f32 %v2037_v39, 0.0  ;;  %16262 = vmatprep.subr.mxu1 %v13823_v25 }
 0x141   : > { %16105 = vmatmul.mubr.msk.f32.gmra.mxu0 %vm641_vm2, %v18343_v4  ;;  %16161 = vmatmul.mubr.msk.f32.gmra.mxu1 %vm641_vm2, %v18045_v35  ;;  %v1756_v18 = vpop.f32.mrf.mxu0  ;;  %v13822_v35 = vld [vmem:[%s22330_s3 + $0xa0] sm:$0xff]  ;;  %v15971_v36 = vpop.f32.mrf.mxu1 }
 0x142   : > { %16107 = vmatprep.mubr.msk.f32.mxu0 %vm641_vm2, %v18356_v5  ;;  %16163 = vmatprep.mubr.msk.f32.mxu1 %vm641_vm2, %v18057_v46  ;;  %1821 = vst.msk [vmem:[#allocation2 + $0x2f8] sm:$0xff] %vm641_vm2, %v1800_v17  ;;  %v1799_v51 = vmax.f32 %v1756_v18, 0.0  ;;  %v18370_v60 = vld [vmem:[#allocation2 + $0x80] sm:$0xff]  ;;  %v18375_v46 = vld [vmem:[%s22330_s3 + $0xd8] sm:$0xff]  ;;  %2109 = vst.msk [vmem:[#allocation2 + $0x380] sm:$0xff] %vm641_vm2, %v2088_v40  ;;  %v2091_v6 = vmax.f32 %v15971_v36, 0.0 }
 0x143   : > { %16208 = vmatprep.subr.mxu0 %v13786_v55  ;;  %22394 = vst [vmem:[#allocation3_spill] sm:$0xff] %v18370_v60  ;;  %16263 = vmatpush3.msra.mxu1 %v13823_v25  ;;  %v15942_v3 = vpop.f32.mrf.mxu0  ;;  %v2840_v39 = vld [vmem:[#allocation2 + $0xa2] sm:$0xff] }
 0x144   : > { %16209 = vmatpush3.msra.mxu0 %v13786_v55  ;;  %1820 = vst.msk [vmem:[#allocation2 + $0x2f0] sm:$0xff] %vm641_vm2, %v1799_v51  ;;  %v2047_v55 = vpop.f32.mrf.mxu1  ;;  %v1802_v25 = vmax.f32 %v15942_v3, 0.0  ;;  %2112 = vst.msk [vmem:[#allocation2 + $0x398] sm:$0xff] %vm641_vm2, %v2091_v6  ;;  %16264 = vmatprep.subr.mxu1 %v13822_v35  ;;  %v18401_v6 = vld [vmem:[#allocation2 + $0xc2] sm:$0xff] }
 0x145   : > { %16108 = vmatmul.mubr.msk.f32.gmra.mxu0 %vm641_vm2, %v18368_v14  ;;  %16164 = vmatmul.mubr.msk.f32.gmra.mxu1 %vm641_vm2, %v18370_v60  ;;  %v2090_v17 = vmax.f32 %v2047_v55, 0.0  ;;  %v1766_v40 = vpop.f32.mrf.mxu0  ;;  %v18389_v60 = vld [vmem:[#allocation2 + $0xb2] sm:$0xff] }
 0x146   : > { %16110 = vmatprep.mubr.msk.f32.mxu0 %vm641_vm2, %v2840_v39  ;;  %16166 = vmatprep.mubr.msk.f32.mxu1 %vm641_vm2, %v18071_v59  ;;  %1823 = vst.msk [vmem:[#allocation2 + $0x308] sm:$0xff] %vm641_vm2, %v1802_v25  ;;  %v15974_v18 = vpop.f32.mrf.mxu1  ;;  %v1801_v36 = vmax.f32 %v1766_v40, 0.0  ;;  %v18395_v59 = vld [vmem:[%s22330_s3 + $0xf8] sm:$0xff] }
 0x147   : > { %16314 = vmatprep.subr.mxu0 %v18375_v46  ;;  %16265 = vmatpush3.msra.mxu1 %v13822_v35  ;;  %2111 = vst.msk [vmem:[#allocation2 + $0x390] sm:$0xff] %vm641_vm2, %v2090_v17  ;;  %v2093_v51 = vmax.f32 %v15974_v18, 0.0  ;;  %v15945_v3 = vpop.f32.mrf.mxu0  ;;  %v18411_v40 = vld [vmem:[#allocation2 + $0xd2] sm:$0xff] }
 0x148   : > { %1822 = vst.msk [vmem:[#allocation2 + $0x300] sm:$0xff] %vm641_vm2, %v1801_v36  ;;  %v2057_v35 = vpop.f32.mrf.mxu1  ;;  %v1804_v39 = vmax.f32 %v15945_v3, 0.0  ;;  %16370 = vmatprep.subr.mxu1 %v18395_v59  ;;  %v18426_v3 = vld [vmem:[#allocation2 + $0xf2] sm:$0xff] }
 0x149   : > { %16111 = vmatmul.mubr.msk.f32.gmra.mxu0 %vm641_vm2, %v18389_v60  ;;  %16167 = vmatmul.mubr.msk.f32.gmra.mxu1 %vm641_vm2, %v18081_v63  ;;  %2114 = vst.msk [vmem:[#allocation2 + $0x3a8] sm:$0xff] %vm641_vm2, %v2093_v51  ;;  %v2092_v55 = vmax.f32 %v2057_v35, 0.0  ;;  %v1776_v25 = vpop.f32.mrf.mxu0  ;;  %v18441_v35 = vld [vmem:[#allocation2 + $0x120] sm:$0xff] }
 0x14a   : > { %16113 = vmatprep.mubr.msk.f32.mxu0 %vm641_vm2, %v18401_v6  ;;  %16169 = vmatprep.mubr.msk.f32.mxu1 %vm641_vm2, %v18091_v9  ;;  %1825 = vst.msk [vmem:[#allocation2 + $0x318] sm:$0xff] %vm641_vm2, %v1804_v39  ;;  %v15977_v17 = vpop.f32.mrf.mxu1  ;;  %v1803_v63 = vmax.f32 %v1776_v25, 0.0  ;;  %v18418_v9 = vld [vmem:[#allocation2 + $0xe2] sm:$0xff]  ;;  %v18488_v25 = vld [vmem:[#allocation2 + $0x1b2] sm:$0xff] }
 0x14b   : > { %2113 = vst.msk [vmem:[#allocation2 + $0x3a0] sm:$0xff] %vm641_vm2, %v2092_v55  ;;  %v2095_v18 = vmax.f32 %v15977_v17, 0.0  ;;  %v2848_v39 = vld [vmem:[#allocation2 + $0x142] sm:$0xff]  ;;  %v18462_v55 = vld [vmem:[#allocation2 + $0x172] sm:$0xff] }
 0x14c   : > { %1824 = vst.msk [vmem:[#allocation2 + $0x310] sm:$0xff] %vm641_vm2, %v1803_v63  ;;  %v2067_v36 = vpop.f32.mrf.mxu1  ;;  %v18509_v17 = vld [vmem:[#allocation2 + $0x212] sm:$0xff] }
 0x14d   : > { %16114 = vmatmul.mubr.msk.f32.gmra.mxu0 %vm641_vm2, %v18411_v40  ;;  %16170 = vmatmul.mubr.msk.f32.gmra.mxu1 %vm641_vm2, %v18101_v13  ;;  %2116 = vst.msk [vmem:[#allocation2 + $0x3b8] sm:$0xff] %vm641_vm2, %v2095_v18  ;;  %v2094_v51 = vmax.f32 %v2067_v36, 0.0  ;;  %v18433_v13 = vld [vmem:[#allocation2 + $0x102] sm:$0xff]  ;;  %v18533_v63 = vld [vmem:[#allocation2 + $0x252] sm:$0xff] }
 0x14e   : > { %16116 = vmatprep.mubr.msk.f32.mxu0 %vm641_vm2, %v18418_v9  ;;  %16172 = vmatprep.mubr.msk.f32.mxu1 %vm641_vm2, %v18111_v23  ;;  %v18439_v23 = vld [vmem:[#allocation2 + $0x112] sm:$0xff]  ;;  %v17556_v18 = vld [vmem:[#allocation2 + $0x21] sm:$0xff] }
 0x14f   : > { %2115 = vst.msk [vmem:[#allocation2 + $0x3b0] sm:$0xff] %vm641_vm2, %v2094_v51  ;;  %v17558_v36 = vld [vmem:[#allocation2 + $0x41] sm:$0xff]  ;;  %v4395_v51 = vld [vmem:[#allocation2 + $0x30] sm:$0xff] }
 0x151   : > { %16117 = vmatmul.mubr.msk.f32.gmra.mxu0 %vm641_vm2, %v18426_v3  ;;  %16173 = vmatmul.mubr.msk.f32.gmra.mxu1 %vm641_vm2, %v18121_v28  ;;  %v18450_v28 = vld [vmem:[#allocation2 + $0x152] sm:$0xff] }
 0x152   : > { %16119 = vmatprep.mubr.msk.f32.mxu0 %vm641_vm2, %v18433_v13  ;;  %16175 = vmatprep.mubr.msk.f32.mxu1 %vm641_vm2, %v18131_v38  ;;  %v18456_v38 = vld [vmem:[#allocation2 + $0x162] sm:$0xff] }
 0x155   : > { %16120 = vmatmul.mubr.msk.f32.gmra.mxu0 %vm641_vm2, %v18439_v23  ;;  %16176 = vmatmul.mubr.msk.f32.gmra.mxu1 %vm641_vm2, %v18441_v35 }
 0x156   : > { %16122 = vmatprep.mubr.msk.f32.mxu0 %vm641_vm2, %v2848_v39  ;;  %16178 = vmatprep.mubr.msk.f32.mxu1 %vm641_vm2, %v18145_v53  ;;  %v18468_v53 = vld [vmem:[#allocation2 + $0x182] sm:$0xff] }
 0x157   : > { %v4786_v39 = vld [vmem:[#allocation2 + $0x41] sm:$0xff] }
 0x159   : > { %16123 = vmatmul.mubr.msk.f32.gmra.mxu0 %vm641_vm2, %v18450_v28  ;;  %16179 = vmatmul.mubr.msk.f32.gmra.mxu1 %vm641_vm2, %v18149_v56  ;;  %v18474_v56 = vld [vmem:[#allocation2 + $0x192] sm:$0xff] }
 0x15a   : > { %16125 = vmatprep.mubr.msk.f32.mxu0 %vm641_vm2, %v18456_v38  ;;  %16181 = vmatprep.mubr.msk.f32.mxu1 %vm641_vm2, %v18165_v10  ;;  %v18480_v10 = vld [vmem:[#allocation2 + $0x1a2] sm:$0xff] }
 0x15d   : > { %16126 = vmatmul.mubr.msk.f32.gmra.mxu0 %vm641_vm2, %v18462_v55  ;;  %16182 = vmatmul.mubr.msk.f32.gmra.mxu1 %vm641_vm2, %v18177_v29  ;;  %v18486_v29 = vld [vmem:[#allocation2 + $0x1c0] sm:$0xff] }
 0x15e   : > { %16128 = vmatprep.mubr.msk.f32.mxu0 %vm641_vm2, %v18468_v53  ;;  %16184 = vmatprep.mubr.msk.f32.mxu1 %vm641_vm2, %v18189_v43  ;;  %v2856_v43 = vld [vmem:[#allocation2 + $0x1e2] sm:$0xff] }
 0x161   : > { %16129 = vmatmul.mubr.msk.f32.gmra.mxu0 %vm641_vm2, %v18474_v56  ;;  %16185 = vmatmul.mubr.msk.f32.gmra.mxu1 %vm641_vm2, %v18201_v0  ;;  %v18497_v0 = vld [vmem:[#allocation2 + $0x1f2] sm:$0xff] }
 0x162   : > { %16131 = vmatprep.mubr.msk.f32.mxu0 %vm641_vm2, %v18480_v10  ;;  %16187 = vmatprep.mubr.msk.f32.mxu1 %vm641_vm2, %v18213_v20  ;;  %v18503_v20 = vld [vmem:[#allocation2 + $0x202] sm:$0xff] }
 0x165   : > { %16132 = vmatmul.mubr.msk.f32.gmra.mxu0 %vm641_vm2, %v18488_v25  ;;  %16188 = vmatmul.mubr.msk.f32.gmra.mxu1 %vm641_vm2, %v18486_v29 }
 0x166   : > { %16134 = vmatprep.mubr.msk.f32.mxu0 %vm641_vm2, %v2856_v43  ;;  %16190 = vmatprep.mubr.msk.f32.mxu1 %vm641_vm2, %v18227_v48  ;;  %v18515_v48 = vld [vmem:[#allocation2 + $0x222] sm:$0xff] }
 0x167   : > { %v4788_v43 = vld [vmem:[#allocation2 + $0x61] sm:$0xff] }
 0x169   : > { %16135 = vmatmul.mubr.msk.f32.gmra.mxu0 %vm641_vm2, %v18497_v0  ;;  %16191 = vmatmul.mubr.msk.f32.gmra.mxu1 %vm641_vm2, %v18236_v57  ;;  %v18521_v57 = vld [vmem:[#allocation2 + $0x232] sm:$0xff] }
 0x16a   : > { %16137 = vmatprep.mubr.msk.f32.mxu0 %vm641_vm2, %v18503_v20  ;;  %16193 = vmatprep.mubr.msk.f32.mxu1 %vm641_vm2, %v18247_v16  ;;  %v18527_v16 = vld [vmem:[#allocation2 + $0x242] sm:$0xff] }
 0x16d   : > { %16138 = vmatmul.mubr.msk.f32.gmra.mxu0 %vm641_vm2, %v18509_v17  ;;  %16194 = vmatmul.mubr.msk.f32.gmra.mxu1 %vm641_vm2, %v18256_v30  ;;  %v3254_v30 = vld [vmem:[#allocation2 + $0x260] sm:$0xff] }
 0x16e   : > { %16140 = vmatprep.mubr.msk.f32.mxu0 %vm641_vm2, %v18515_v48  ;;  %16196 = vmatprep.mubr.msk.f32.mxu1 %vm641_vm2, %v18267_v49  ;;  %v17555_v49 = vld [vmem:[#allocation2 + $0x11] sm:$0xff] }
 0x171   : > { %16141 = vmatmul.mubr.msk.f32.gmra.mxu0 %vm641_vm2, %v18521_v57  ;;  %16197 = vmatmul.mubr.msk.f32.gmra.mxu1 %vm641_vm2, %v18276_v2  ;;  %v13860_v2 = vld [vmem:[%s22330_s3 + $0xd0] sm:$0xff] }
 0x172   : > { %16143 = vmatprep.mubr.msk.f32.mxu0 %vm641_vm2, %v18527_v16  ;;  %16199 = vmatprep.mubr.msk.f32.mxu1 %vm641_vm2, %v18287_v33  ;;  %v17557_v33 = vld [vmem:[#allocation2 + $0x31] sm:$0xff] }
 0x175   : > { %16144 = vmatmul.mubr.msk.f32.gmra.mxu0 %vm641_vm2, %v18533_v63  ;;  %16200 = vmatmul.mubr.msk.f32.gmra.mxu1 %vm641_vm2, %v3254_v30  ;;  %v13930_v30 = vld [vmem:[%s22330_s3 + $0x100] sm:$0xff] }
 0x176   : > { %16210 = vmatprep.mubr.msk.f32.mxu0 %vm641_vm2, %v17555_v49  ;;  %16266 = vmatprep.mubr.msk.f32.mxu1 %vm641_vm2, %v18300_v21  ;;  %v13859_v21 = vld [vmem:[%s22330_s3 + $0xc8] sm:$0xff] }
 0x179   : > { %16211 = vmatmul.mubr.msk.f32.vlgmr.msra.gmra.mxu0 %vm641_vm2, %v17556_v18  ;;  %16267 = vmatmul.mubr.msk.f32.vlgmr.msra.gmra.mxu1 %vm641_vm2, %v18310_v42  ;;  %v13896_v42 = vld [vmem:[%s22330_s3 + $0xf0] sm:$0xff] }
 0x17a   : > { %16315 = vmatpush3.msra.mxu0 %v18375_v46  ;;  %16213 = vmatprep.mubr.msk.f32.mxu0 %vm641_vm2, %v17557_v33  ;;  %v17559_v46 = vld [vmem:[#allocation2 + $0x51] sm:$0xff]  ;;  %v22396_v33 = vld [vmem:[#allocation3_spill] sm:$0xff] }
 0x17b   : > { %16269 = vmatprep.mubr.msk.f32.mxu1 %vm641_vm2, %v18320_v11  ;;  %16316 = vmatprep.subr.mxu0 %v13860_v2  ;;  %v13858_v11 = vld [vmem:[%s22330_s3 + $0xc0] sm:$0xff] }
 0x17c   : > { %16317 = vmatpush3.msra.mxu0 %v13860_v2  ;;  %16371 = vmatpush3.msra.mxu1 %v18395_v59  ;;  %v13895_v59 = vld [vmem:[%s22330_s3 + $0xe8] sm:$0xff] }
 0x17d   : > { %16214 = vmatmul.mubr.msk.f32.gmra.mxu0 %vm641_vm2, %v17558_v36  ;;  %16270 = vmatmul.mubr.msk.f32.gmra.mxu1 %vm641_vm2, %v18334_v31  ;;  %v18578_v31 = vld [vmem:[#allocation2 + $0x81] sm:$0xff]  ;;  %v4401_v36 = vld [vmem:[#allocation2 + $0x90] sm:$0xff] }
 0x17e   : > { %16216 = vmatprep.mubr.msk.f32.mxu0 %vm641_vm2, %v17559_v46  ;;  %16272 = vmatprep.mubr.msk.f32.mxu1 %vm641_vm2, %v18343_v4  ;;  %v18580_v4 = vld [vmem:[#allocation2 + $0x82] sm:$0xff] }
 0x17f   : > { %16318 = vmatprep.subr.mxu0 %v13859_v21  ;;  %16372 = vmatprep.subr.mxu1 %v13896_v42 }
 0x180   : > { %16319 = vmatpush3.msra.mxu0 %v13859_v21  ;;  %16373 = vmatpush3.msra.mxu1 %v13896_v42 }
 0x181   : > { %16217 = vmatmul.mubr.msk.f32.gmra.mxu0 %vm641_vm2, %v18043_v34  ;;  %16273 = vmatmul.mubr.msk.f32.gmra.mxu1 %vm641_vm2, %v18356_v5  ;;  %v13894_v34 = vld [vmem:[%s22330_s3 + $0xe0] sm:$0xff]  ;;  %v18588_v5 = vld [vmem:[%s22330_s3 + $0x118] sm:$0xff] }
 0x182   : > { %16219 = vmatprep.mubr.msk.f32.mxu0 %vm641_vm2, %v18055_v45  ;;  %16275 = vmatprep.mubr.msk.f32.mxu1 %vm641_vm2, %v18368_v14  ;;  %v18602_v45 = vld [vmem:[%s22330_s3 + $0x138] sm:$0xff] }
 0x183   : > { %16320 = vmatprep.subr.mxu0 %v13858_v11  ;;  %16374 = vmatprep.subr.mxu1 %v13895_v59 }
 0x184   : > { %16321 = vmatpush3.msra.mxu0 %v13858_v11  ;;  %16375 = vmatpush3.msra.mxu1 %v13895_v59  ;;  %v4791_v11 = vld [vmem:[#allocation2 + $0x91] sm:$0xff]  ;;  %v13966_v59 = vld [vmem:[%s22330_s3 + $0x120] sm:$0xff] }
 0x185   : > { %16220 = vmatmul.mubr.msk.f32.gmra.mxu0 %vm641_vm2, %v18578_v31  ;;  %16276 = vmatmul.mubr.msk.f32.gmra.mxu1 %vm641_vm2, %v18580_v4 }
 0x186   : > { %16222 = vmatprep.mubr.msk.f32.mxu0 %vm641_vm2, %v18069_v58  ;;  %16278 = vmatprep.mubr.msk.f32.mxu1 %vm641_vm2, %v18389_v60  ;;  %v18629_v58 = vld [vmem:[#allocation2 + $0x121] sm:$0xff] }
 0x187   : > { %16376 = vmatprep.subr.mxu1 %v13894_v34  ;;  %16426 = vmatprep.subr.mxu0 %v18588_v5  ;;  %v4784_v60 = vld [vmem:[#allocation2 + $0x21] sm:$0xff] }
 0x188   : > { %16377 = vmatpush3.msra.mxu1 %v13894_v34  ;;  %v18768_v34 = vld [vmem:[%s22330_s3 + $0x158] sm:$0xff] }
 0x189   : > { %16223 = vmatmul.mubr.msk.f32.gmra.mxu0 %vm641_vm2, %v18079_v62  ;;  %16279 = vmatmul.mubr.msk.f32.gmra.mxu1 %vm641_vm2, %v18401_v6  ;;  %v18631_v62 = vld [vmem:[#allocation2 + $0x122] sm:$0xff] }
 0x18a   : > { %16225 = vmatprep.mubr.msk.f32.mxu0 %vm641_vm2, %v18089_v8  ;;  %16281 = vmatprep.mubr.msk.f32.mxu1 %vm641_vm2, %v18411_v40  ;;  %v18665_v8 = vld [vmem:[#allocation2 + $0x1c1] sm:$0xff] }
 0x18b   : > { %16482 = vmatprep.subr.mxu1 %v18602_v45 }
 0x18d   : > { %16226 = vmatmul.mubr.msk.f32.gmra.mxu0 %vm641_vm2, %v18099_v12  ;;  %16282 = vmatmul.mubr.msk.f32.gmra.mxu1 %vm641_vm2, %v18418_v9  ;;  %v18667_v12 = vld [vmem:[#allocation2 + $0x1c2] sm:$0xff] }
 0x18e   : > { %16228 = vmatprep.mubr.msk.f32.mxu0 %vm641_vm2, %v18109_v22  ;;  %16284 = vmatprep.mubr.msk.f32.mxu1 %vm641_vm2, %v18426_v3  ;;  %v4785_v3 = vld [vmem:[#allocation2 + $0x31] sm:$0xff] }
 0x191   : > { %16229 = vmatmul.mubr.msk.f32.gmra.mxu0 %vm641_vm2, %v18119_v27  ;;  %16285 = vmatmul.mubr.msk.f32.gmra.mxu1 %vm641_vm2, %v18433_v13  ;;  %v13932_v13 = vld [vmem:[%s22330_s3 + $0x110] sm:$0xff] }
 0x192   : > { %16231 = vmatprep.mubr.msk.f32.mxu0 %vm641_vm2, %v18129_v37  ;;  %16287 = vmatprep.mubr.msk.f32.mxu1 %vm641_vm2, %v18439_v23  ;;  %v4396_v23 = vld [vmem:[#allocation2 + $0x40] sm:$0xff] }
 0x195   : > { %16232 = vmatmul.mubr.msk.f32.gmra.mxu0 %vm641_vm2, %v18629_v58  ;;  %16288 = vmatmul.mubr.msk.f32.gmra.mxu1 %vm641_vm2, %v18631_v62 }
 0x196   : > { %16234 = vmatprep.mubr.msk.f32.mxu0 %vm641_vm2, %v18143_v50  ;;  %16290 = vmatprep.mubr.msk.f32.mxu1 %vm641_vm2, %v18450_v28  ;;  %v4397_v28 = vld [vmem:[#allocation2 + $0x50] sm:$0xff] }
 0x199   : > { %16235 = vmatmul.mubr.msk.f32.gmra.mxu0 %vm641_vm2, %v18147_v54  ;;  %16291 = vmatmul.mubr.msk.f32.gmra.mxu1 %vm641_vm2, %v18456_v38  ;;  %v4787_v38 = vld [vmem:[#allocation2 + $0x51] sm:$0xff] }
 0x19a   : > { %16237 = vmatprep.mubr.msk.f32.mxu0 %vm641_vm2, %v18163_v7  ;;  %16293 = vmatprep.mubr.msk.f32.mxu1 %vm641_vm2, %v18462_v55  ;;  %v13931_v55 = vld [vmem:[%s22330_s3 + $0x108] sm:$0xff] }
 0x19d   : > { %16238 = vmatmul.mubr.msk.f32.gmra.mxu0 %vm641_vm2, %v18175_v26  ;;  %16294 = vmatmul.mubr.msk.f32.gmra.mxu1 %vm641_vm2, %v18468_v53  ;;  %v13968_v53 = vld [vmem:[%s22330_s3 + $0x130] sm:$0xff] }
 0x19e   : > { %16240 = vmatprep.mubr.msk.f32.mxu0 %vm641_vm2, %v18187_v41  ;;  %16296 = vmatprep.mubr.msk.f32.mxu1 %vm641_vm2, %v18474_v56 }
 0x1a1   : > { %16241 = vmatmul.mubr.msk.f32.gmra.mxu0 %vm641_vm2, %v18199_v61  ;;  %16297 = vmatmul.mubr.msk.f32.gmra.mxu1 %vm641_vm2, %v18480_v10 }
 0x1a2   : > { %16243 = vmatprep.mubr.msk.f32.mxu0 %vm641_vm2, %v18211_v19  ;;  %16299 = vmatprep.mubr.msk.f32.mxu1 %vm641_vm2, %v18488_v25  ;;  %v4398_v25 = vld [vmem:[#allocation2 + $0x60] sm:$0xff] }
 0x1a4   : > { %v15988_v22 = vpop.f32.mrf.mxu0 }
 0x1a5   : > { %v16044_v27 = vpop.f32.mrf.mxu1  ;;  %16244 = vmatmul.mubr.msk.f32.gmra.mxu0 %vm641_vm2, %v18665_v8  ;;  %16300 = vmatmul.mubr.msk.f32.gmra.mxu1 %vm641_vm2, %v18667_v12 }
 0x1a6   : > { %v18673_v37 = vadd.f32 %v16044_v27, %v15988_v22  ;;  %16246 = vmatprep.mubr.msk.f32.mxu0 %vm641_vm2, %v18225_v47  ;;  %16302 = vmatprep.mubr.msk.f32.mxu1 %vm641_vm2, %v18497_v0  ;;  %v2352_v50 = vpop.f32.mrf.mxu0  ;;  %v18774_v22 = vld [vmem:[#allocation2 + $0xc1] sm:$0xff] }
 0x1a7   : > { %v2673_v54 = vpop.f32.mrf.mxu1  ;;  %22397 = vst [vmem:[#allocation3_spill] sm:$0xff] %v18774_v22 }
 0x1a8   : > { %v18679_v7 = vadd.f32 %v2673_v54, %v2352_v50 }
 0x1a9   : > { %16247 = vmatmul.mubr.msk.f32.gmra.mxu0 %vm641_vm2, %v18234_v52  ;;  %16303 = vmatmul.mubr.msk.f32.gmra.mxu1 %vm641_vm2, %v18503_v20 }
 0x1aa   : > { %16249 = vmatprep.mubr.msk.f32.mxu0 %vm641_vm2, %v18245_v15  ;;  %16305 = vmatprep.mubr.msk.f32.mxu1 %vm641_vm2, %v18509_v17  ;;  %v18709_v15 = vld [vmem:[#allocation2 + $0x261] sm:$0xff] }
 0x1ac   : > { %v15991_v26 = vpop.f32.mrf.mxu0 }
 0x1ad   : > { %v16047_v41 = vpop.f32.mrf.mxu1  ;;  %16250 = vmatmul.mubr.msk.f32.gmra.mxu0 %vm641_vm2, %v18254_v24  ;;  %16306 = vmatmul.mubr.msk.f32.gmra.mxu1 %vm641_vm2, %v18515_v48  ;;  %v18711_v24 = vld [vmem:[#allocation2 + $0x262] sm:$0xff]  ;;  %v4399_v48 = vld [vmem:[#allocation2 + $0x70] sm:$0xff] }
 0x1ae   : > { %v18693_v61 = vadd.f32 %v16047_v41, %v15991_v26  ;;  %16252 = vmatprep.mubr.msk.f32.mxu0 %vm641_vm2, %v18265_v44  ;;  %16308 = vmatprep.mubr.msk.f32.mxu1 %vm641_vm2, %v18521_v57  ;;  %v2362_v19 = vpop.f32.mrf.mxu0  ;;  %22395 = vst [vmem:[#allocation4_spill] sm:$0xff] %v18711_v24  ;;  %v18785_v41 = vld [vmem:[#allocation2 + $0xd0] sm:$0xff] }
 0x1af   : > { %v2683_v47 = vpop.f32.mrf.mxu1 }
 0x1b0   : > { %v18699_v52 = vadd.f32 %v2683_v47, %v2362_v19  ;;  %v18787_v19 = vld [vmem:[#allocation2 + $0xd1] sm:$0xff] }
 0x1b1   : > { %16253 = vmatmul.mubr.msk.f32.gmra.mxu0 %vm641_vm2, %v18274_v1  ;;  %16309 = vmatmul.mubr.msk.f32.gmra.mxu1 %vm641_vm2, %v18527_v16  ;;  %v4394_v1 = vld [vmem:[#allocation2 + $0x20] sm:$0xff]  ;;  %v4789_v16 = vld [vmem:[#allocation2 + $0x71] sm:$0xff]  ;;  %22398 = vst [vmem:[#allocation5_spill] sm:$0xff] %v18787_v19 }
 0x1b2   : > { %16255 = vmatprep.mubr.msk.f32.mxu0 %vm641_vm2, %v18285_v32  ;;  %16311 = vmatprep.mubr.msk.f32.mxu1 %vm641_vm2, %v18533_v63  ;;  %v13967_v63 = vld [vmem:[%s22330_s3 + $0x128] sm:$0xff]  ;;  %v18792_v47 = vld [vmem:[%s22330_s3 + $0x178] sm:$0xff] }
 0x1b4   : > { %v15994_v44 = vpop.f32.mrf.mxu0 }
 0x1b5   : > { %v16050_v14 = vpop.f32.mrf.mxu1  ;;  %16256 = vmatmul.mubr.msk.f32.gmra.mxu0 %vm641_vm2, %v18709_v15  ;;  %16312 = vmatmul.mubr.msk.f32.gmra.mxu1 %vm641_vm2, %v18711_v24 }
 0x1b6   : > { %v18717_v6 = vadd.f32 %v16050_v14, %v15994_v44  ;;  %16322 = vmatprep.mubr.msk.f32.mxu0 %vm641_vm2, %v4394_v1  ;;  %16378 = vmatprep.mubr.msk.f32.mxu1 %vm641_vm2, %v4784_v60  ;;  %v2372_v32 = vpop.f32.mrf.mxu0  ;;  %v18798_v1 = vld [vmem:[#allocation2 + $0xe0] sm:$0xff] }
 0x1b7   : > { %v2693_v40 = vpop.f32.mrf.mxu1  ;;  %v18800_v60 = vld [vmem:[#allocation2 + $0xe1] sm:$0xff] }
 0x1b8   : > { %v18721_v9 = vadd.f32 %v2693_v40, %v2372_v32  ;;  %22399 = vst [vmem:[#allocation6_spill] sm:$0xff] %v18800_v60 }
 0x1b9   : > { %16323 = vmatmul.mubr.msk.f32.vlgmr.msra.gmra.mxu0 %vm641_vm2, %v4395_v51  ;;  %16379 = vmatmul.mubr.msk.f32.vlgmr.msra.gmra.mxu1 %vm641_vm2, %v4785_v3 }
 0x1ba   : > { %16427 = vmatpush3.msra.mxu0 %v18588_v5  ;;  %16325 = vmatprep.mubr.msk.f32.mxu0 %vm641_vm2, %v4396_v23  ;;  %v18813_v23 = vld [vmem:[#allocation2 + $0xf1] sm:$0xff] }
 0x1bb   : > { %16381 = vmatprep.mubr.msk.f32.mxu1 %vm641_vm2, %v4786_v39  ;;  %16428 = vmatprep.subr.mxu0 %v13932_v13  ;;  %22400 = vst [vmem:[#allocation7_spill] sm:$0xff] %v18813_v23 }
 0x1bc   : > { %16429 = vmatpush3.msra.mxu0 %v13932_v13  ;;  %16483 = vmatpush3.msra.mxu1 %v18602_v45  ;;  %v15997_v56 = vpop.f32.mrf.mxu0  ;;  %v18772_v45 = vld [vmem:[#allocation2 + $0xc0] sm:$0xff]  ;;  %v18811_v13 = vld [vmem:[#allocation2 + $0xf0] sm:$0xff] }
 0x1bd   : > { %v16053_v10 = vpop.f32.mrf.mxu1  ;;  %16326 = vmatmul.mubr.msk.f32.gmra.mxu0 %vm641_vm2, %v4397_v28  ;;  %16382 = vmatmul.mubr.msk.f32.gmra.mxu1 %vm641_vm2, %v4787_v38  ;;  %v18819_v38 = vld [vmem:[#allocation2 + $0x100] sm:$0xff] }
 0x1be   : > { %v18740_v0 = vadd.f32 %v16053_v10, %v15997_v56  ;;  %16328 = vmatprep.mubr.msk.f32.mxu0 %vm641_vm2, %v4398_v25  ;;  %16384 = vmatprep.mubr.msk.f32.mxu1 %vm641_vm2, %v4788_v43  ;;  %v2382_v20 = vpop.f32.mrf.mxu0  ;;  %v18831_v43 = vld [vmem:[#allocation2 + $0x110] sm:$0xff] }
 0x1bf   : > { %v2703_v17 = vpop.f32.mrf.mxu1  ;;  %16430 = vmatprep.subr.mxu0 %v13931_v55  ;;  %16484 = vmatprep.subr.mxu1 %v13968_v53 }
 0x1c0   : > { %v18744_v57 = vadd.f32 %v2703_v17, %v2382_v20  ;;  %16431 = vmatpush3.msra.mxu0 %v13931_v55  ;;  %16485 = vmatpush3.msra.mxu1 %v13968_v53  ;;  %v16000_v49 = vpop.f32.mrf.mxu0  ;;  %v18821_v55 = vld [vmem:[#allocation2 + $0x101] sm:$0xff]  ;;  %v18833_v20 = vld [vmem:[#allocation2 + $0x111] sm:$0xff] }
 0x1c1   : > { %v16056_v2 = vpop.f32.mrf.mxu1  ;;  %16329 = vmatmul.mubr.msk.f32.gmra.mxu0 %vm641_vm2, %v4399_v48  ;;  %16385 = vmatmul.mubr.msk.f32.gmra.mxu1 %vm641_vm2, %v4789_v16  ;;  %22401 = vst [vmem:[#allocation8_spill] sm:$0xff] %v18821_v55  ;;  %22402 = vst [vmem:[#allocation9_spill] sm:$0xff] %v18833_v20 }
 0x1c2   : > { %v18754_v18 = vadd.f32 %v16056_v2, %v16000_v49  ;;  %16331 = vmatprep.mubr.msk.f32.mxu0 %vm641_vm2, %v22396_v33  ;;  %16387 = vmatprep.mubr.msk.f32.mxu1 %vm641_vm2, %v18578_v31  ;;  %v2392_v21 = vpop.f32.mrf.mxu0  ;;  %v4409_v2 = vld [vmem:[#allocation2 + $0x130] sm:$0xff] }
 0x1c3   : > { %v2713_v42 = vpop.f32.mrf.mxu1  ;;  %16432 = vmatprep.subr.mxu0 %v13930_v30  ;;  %16486 = vmatprep.subr.mxu1 %v13967_v63  ;;  %v4799_v33 = vld [vmem:[#allocation2 + $0x131] sm:$0xff] }
 0x1c4   : > { %v18760_v46 = vadd.f32 %v2713_v42, %v2392_v21  ;;  %16433 = vmatpush3.msra.mxu0 %v13930_v30  ;;  %16487 = vmatpush3.msra.mxu1 %v13967_v63  ;;  %v16003_v31 = vpop.f32.mrf.mxu0 }
 0x1c5   : > { %v16059_v5 = vpop.f32.mrf.mxu1  ;;  %16332 = vmatmul.mubr.msk.f32.gmra.mxu0 %vm641_vm2, %v4401_v36  ;;  %16388 = vmatmul.mubr.msk.f32.gmra.mxu1 %vm641_vm2, %v4791_v11  ;;  %v18849_v36 = vld [vmem:[#allocation2 + $0x160] sm:$0xff] }
 0x1c6   : > { %v18776_v27 = vadd.f32 %v16059_v5, %v16003_v31  ;;  %16334 = vmatprep.mubr.msk.f32.mxu0 %vm641_vm2, %v18772_v45  ;;  %16390 = vmatprep.mubr.msk.f32.mxu1 %vm641_vm2, %v18774_v22  ;;  %v2402_v50 = vpop.f32.mrf.mxu0  ;;  %v18851_v11 = vld [vmem:[#allocation2 + $0x161] sm:$0xff]  ;;  %v18861_v5 = vld [vmem:[#allocation2 + $0x170] sm:$0xff] }
 0x1c7   : > { %v2723_v54 = vpop.f32.mrf.mxu1  ;;  %16488 = vmatprep.subr.mxu1 %v13966_v59  ;;  %16538 = vmatprep.subr.mxu0 %v18768_v34  ;;  %22403 = vst [vmem:[#allocation10_spill] sm:$0xff] %v18851_v11 }
 0x1c8   : > { %v18783_v26 = vadd.f32 %v2723_v54, %v2402_v50  ;;  %16489 = vmatpush3.msra.mxu1 %v13966_v59  ;;  %v16006_v44 = vpop.f32.mrf.mxu0  ;;  %v18863_v50 = vld [vmem:[#allocation2 + $0x171] sm:$0xff]  ;;  %v18869_v54 = vld [vmem:[#allocation2 + $0x180] sm:$0xff] }
 0x1c9   : > { %v16062_v14 = vpop.f32.mrf.mxu1  ;;  %16335 = vmatmul.mubr.msk.f32.gmra.mxu0 %vm641_vm2, %v18785_v41  ;;  %16391 = vmatmul.mubr.msk.f32.gmra.mxu1 %vm641_vm2, %v18787_v19  ;;  %22404 = vst [vmem:[#allocation11_spill] sm:$0xff] %v18863_v50  ;;  %v4815_v19 = vld [vmem:[#allocation2 + $0x271] sm:$0xff] }
 0x1ca   : > { %v18802_v32 = vadd.f32 %v16062_v14, %v16006_v44  ;;  %16337 = vmatprep.mubr.msk.f32.mxu0 %vm641_vm2, %v18798_v1  ;;  %16393 = vmatprep.mubr.msk.f32.mxu1 %vm641_vm2, %v18800_v60  ;;  %v2412_v40 = vpop.f32.mrf.mxu0  ;;  %v18871_v44 = vld [vmem:[#allocation2 + $0x181] sm:$0xff]  ;;  %v18877_v14 = vld [vmem:[#allocation2 + $0x190] sm:$0xff] }
 0x1cb   : > { %v2733_v51 = vpop.f32.mrf.mxu1  ;;  %16594 = vmatprep.subr.mxu1 %v18792_v47  ;;  %22405 = vst [vmem:[#allocation12_spill] sm:$0xff] %v18871_v44  ;;  %v4425_v60 = vld [vmem:[#allocation2 + $0x270] sm:$0xff] }
 0x1cc   : > { %v18809_v3 = vadd.f32 %v2733_v51, %v2412_v40  ;;  %v16009_v39 = vpop.f32.mrf.mxu0  ;;  %v18879_v40 = vld [vmem:[#allocation2 + $0x191] sm:$0xff] }
 0x1cd   : > { %v16065_v28 = vpop.f32.mrf.mxu1  ;;  %16338 = vmatmul.mubr.msk.f32.gmra.mxu0 %vm641_vm2, %v18811_v13  ;;  %16394 = vmatmul.mubr.msk.f32.gmra.mxu1 %vm641_vm2, %v18813_v23  ;;  %22406 = vst [vmem:[#allocation13_spill] sm:$0xff] %v18879_v40 }
 0x1ce   : > { %v18823_v53 = vadd.f32 %v16065_v28, %v16009_v39  ;;  %16340 = vmatprep.mubr.msk.f32.mxu0 %vm641_vm2, %v18819_v38  ;;  %16396 = vmatprep.mubr.msk.f32.mxu1 %vm641_vm2, %v18821_v55  ;;  %v2422_v56 = vpop.f32.mrf.mxu0  ;;  %v18885_v28 = vld [vmem:[#allocation2 + $0x1a0] sm:$0xff]  ;;  %v18965_v55 = vld [vmem:[#allocation2 + $0x251] sm:$0xff] }
 0x1cf   : > { %v2743_v10 = vpop.f32.mrf.mxu1  ;;  %22414 = vst [vmem:[#allocation21_spill] sm:$0xff] %v18965_v55 }
 0x1d0   : > { %v18829_v25 = vadd.f32 %v2743_v10, %v2422_v56  ;;  %v16012_v17 = vpop.f32.mrf.mxu0  ;;  %v18887_v56 = vld [vmem:[#allocation2 + $0x1a1] sm:$0xff] }
 0x1d1   : > { %v16068_v48 = vpop.f32.mrf.mxu1  ;;  %16341 = vmatmul.mubr.msk.f32.gmra.mxu0 %vm641_vm2, %v18831_v43  ;;  %16397 = vmatmul.mubr.msk.f32.gmra.mxu1 %vm641_vm2, %v18833_v20  ;;  %22407 = vst [vmem:[#allocation14_spill] sm:$0xff] %v18887_v56  ;;  %v18963_v20 = vld [vmem:[#allocation2 + $0x250] sm:$0xff] }
 0x1d2   : > { %v18839_v16 = vadd.f32 %v16068_v48, %v16012_v17  ;;  %16343 = vmatprep.mubr.msk.f32.mxu0 %vm641_vm2, %v18441_v35  ;;  %16399 = vmatprep.mubr.msk.f32.mxu1 %vm641_vm2, %v18629_v58  ;;  %v2432_v30 = vpop.f32.mrf.mxu0 }
 0x1d3   : > { %v2753_v63 = vpop.f32.mrf.mxu1 }
 0x1d4   : > { %v18845_v49 = vadd.f32 %v2753_v63, %v2432_v30  ;;  %v16015_v21 = vpop.f32.mrf.mxu0  ;;  %v18897_v63 = vld [vmem:[#allocation2 + $0x1b0] sm:$0xff] }
 0x1d5   : > { %v16071_v42 = vpop.f32.mrf.mxu1  ;;  %16344 = vmatmul.mubr.msk.f32.gmra.mxu0 %vm641_vm2, %v4409_v2  ;;  %16400 = vmatmul.mubr.msk.f32.gmra.mxu1 %vm641_vm2, %v4799_v33  ;;  %v18899_v2 = vld [vmem:[#allocation2 + $0x1b1] sm:$0xff] }
 0x1d6   : > { %v18853_v35 = vadd.f32 %v16071_v42, %v16015_v21  ;;  %16346 = vmatprep.mubr.msk.f32.mxu0 %vm641_vm2, %v18849_v36  ;;  %16402 = vmatprep.mubr.msk.f32.mxu1 %vm641_vm2, %v18851_v11  ;;  %v2442_v58 = vpop.f32.mrf.mxu0  ;;  %22408 = vst [vmem:[#allocation15_spill] sm:$0xff] %v18899_v2  ;;  %v4417_v33 = vld [vmem:[#allocation2 + $0x1d0] sm:$0xff] }
 0x1d7   : > { %v2763_v59 = vpop.f32.mrf.mxu1  ;;  %v4807_v21 = vld [vmem:[#allocation2 + $0x1d1] sm:$0xff] }
 0x1d8   : > { %v18859_v31 = vadd.f32 %v2763_v59, %v2442_v58  ;;  %v18911_v59 = vld [vmem:[#allocation2 + $0x200] sm:$0xff] }
 0x1d9   : > { %16347 = vmatmul.mubr.msk.f32.gmra.mxu0 %vm641_vm2, %v18861_v5  ;;  %16403 = vmatmul.mubr.msk.f32.gmra.mxu1 %vm641_vm2, %v18863_v50 }
 0x1da   : > { %16349 = vmatprep.mubr.msk.f32.mxu0 %vm641_vm2, %v18869_v54  ;;  %16405 = vmatprep.mubr.msk.f32.mxu1 %vm641_vm2, %v18871_v44  ;;  %v18945_v44 = vld [vmem:[#allocation2 + $0x231] sm:$0xff] }
 0x1db   : > { %22412 = vst [vmem:[#allocation19_spill] sm:$0xff] %v18945_v44 }
 0x1dc   : > { %v16018_v51 = vpop.f32.mrf.mxu0 }
 0x1dd   : > { %v16074_v39 = vpop.f32.mrf.mxu1  ;;  %16350 = vmatmul.mubr.msk.f32.gmra.mxu0 %vm641_vm2, %v18877_v14  ;;  %16406 = vmatmul.mubr.msk.f32.gmra.mxu1 %vm641_vm2, %v18879_v40  ;;  %v18943_v40 = vld [vmem:[#allocation2 + $0x230] sm:$0xff] }
 0x1de   : > { %v18889_v10 = vadd.f32 %v16074_v39, %v16018_v51  ;;  %16352 = vmatprep.mubr.msk.f32.mxu0 %vm641_vm2, %v18885_v28  ;;  %16408 = vmatprep.mubr.msk.f32.mxu1 %vm641_vm2, %v18887_v56  ;;  %v2452_v17 = vpop.f32.mrf.mxu0  ;;  %v18913_v51 = vld [vmem:[#allocation2 + $0x201] sm:$0xff] }
 0x1df   : > { %v2773_v48 = vpop.f32.mrf.mxu1  ;;  %22409 = vst [vmem:[#allocation16_spill] sm:$0xff] %v18913_v51 }
 0x1e0   : > { %v18895_v30 = vadd.f32 %v2773_v48, %v2452_v17  ;;  %v18923_v48 = vld [vmem:[#allocation2 + $0x210] sm:$0xff] }
 0x1e1   : > { %16353 = vmatmul.mubr.msk.f32.gmra.mxu0 %vm641_vm2, %v18897_v63  ;;  %16409 = vmatmul.mubr.msk.f32.gmra.mxu1 %vm641_vm2, %v18899_v2 }
 0x1e2   : > { %16355 = vmatprep.mubr.msk.f32.mxu0 %vm641_vm2, %v18486_v29  ;;  %16411 = vmatprep.mubr.msk.f32.mxu1 %vm641_vm2, %v18665_v8 }
 0x1e4   : > { %v16021_v42 = vpop.f32.mrf.mxu0 }
 0x1e5   : > { %v16077_v58 = vpop.f32.mrf.mxu1  ;;  %16356 = vmatmul.mubr.msk.f32.gmra.mxu0 %vm641_vm2, %v4417_v33  ;;  %16412 = vmatmul.mubr.msk.f32.gmra.mxu1 %vm641_vm2, %v4807_v21  ;;  %v18925_v33 = vld [vmem:[#allocation2 + $0x211] sm:$0xff] }
 0x1e6   : > { %v18915_v39 = vadd.f32 %v16077_v58, %v16021_v42  ;;  %16358 = vmatprep.mubr.msk.f32.mxu0 %vm641_vm2, %v18911_v59  ;;  %16414 = vmatprep.mubr.msk.f32.mxu1 %vm641_vm2, %v18913_v51  ;;  %v2462_v29 = vpop.f32.mrf.mxu0  ;;  %22410 = vst [vmem:[#allocation17_spill] sm:$0xff] %v18925_v33  ;;  %v18931_v42 = vld [vmem:[#allocation2 + $0x220] sm:$0xff] }
 0x1e7   : > { %v2783_v8 = vpop.f32.mrf.mxu1  ;;  %v18933_v58 = vld [vmem:[#allocation2 + $0x221] sm:$0xff] }
 0x1e8   : > { %v18921_v17 = vadd.f32 %v2783_v8, %v2462_v29  ;;  %v16024_v21 = vpop.f32.mrf.mxu0  ;;  %22411 = vst [vmem:[#allocation18_spill] sm:$0xff] %v18933_v58 }
 0x1e9   : > { %v16080_v2 = vpop.f32.mrf.mxu1  ;;  %16359 = vmatmul.mubr.msk.f32.gmra.mxu0 %vm641_vm2, %v18923_v48  ;;  %16415 = vmatmul.mubr.msk.f32.gmra.mxu1 %vm641_vm2, %v18925_v33 }
 0x1ea   : > { %v18935_v51 = vadd.f32 %v16080_v2, %v16024_v21  ;;  %16361 = vmatprep.mubr.msk.f32.mxu0 %vm641_vm2, %v18931_v42  ;;  %16417 = vmatprep.mubr.msk.f32.mxu1 %vm641_vm2, %v18933_v58  ;;  %v2472_v29 = vpop.f32.mrf.mxu0  ;;  %v18951_v2 = vld [vmem:[#allocation2 + $0x240] sm:$0xff] }
 0x1eb   : > { %v2793_v8 = vpop.f32.mrf.mxu1  ;;  %v18953_v21 = vld [vmem:[#allocation2 + $0x241] sm:$0xff] }
 0x1ec   : > { %v18941_v56 = vadd.f32 %v2793_v8, %v2472_v29  ;;  %v16027_v33 = vpop.f32.mrf.mxu0  ;;  %22413 = vst [vmem:[#allocation20_spill] sm:$0xff] %v18953_v21 }
 0x1ed   : > { %v16083_v50 = vpop.f32.mrf.mxu1  ;;  %16362 = vmatmul.mubr.msk.f32.gmra.mxu0 %vm641_vm2, %v18943_v40  ;;  %16418 = vmatmul.mubr.msk.f32.gmra.mxu1 %vm641_vm2, %v18945_v44 }
 0x1ee   : > { %v18955_v58 = vadd.f32 %v16083_v50, %v16027_v33  ;;  %16364 = vmatprep.mubr.msk.f32.mxu0 %vm641_vm2, %v18951_v2  ;;  %16420 = vmatprep.mubr.msk.f32.mxu1 %vm641_vm2, %v18953_v21  ;;  %v2482_v29 = vpop.f32.mrf.mxu0  ;;  %v4424_v50 = vld [vmem:[#allocation2 + $0x260] sm:$0xff] }
 0x1ef   : > { %v2803_v8 = vpop.f32.mrf.mxu1 }
 0x1f0   : > { %v18961_v11 = vadd.f32 %v2803_v8, %v2482_v29  ;;  %v16030_v44 = vpop.f32.mrf.mxu0 }
 0x1f1   : > { %v16086_v23 = vpop.f32.mrf.mxu1  ;;  %16365 = vmatmul.mubr.msk.f32.gmra.mxu0 %vm641_vm2, %v18963_v20  ;;  %16421 = vmatmul.mubr.msk.f32.gmra.mxu1 %vm641_vm2, %v18965_v55  ;;  %v5174_v55 = vld [vmem:[#allocation2 + $0x22] sm:$0xff] }
 0x1f2   : > { %v18971_v33 = vadd.f32 %v16086_v23, %v16030_v44  ;;  %16367 = vmatprep.mubr.msk.f32.mxu0 %vm641_vm2, %v4424_v50  ;;  %16423 = vmatprep.mubr.msk.f32.mxu1 %vm641_vm2, %v18709_v15  ;;  %v2492_v29 = vpop.f32.mrf.mxu0  ;;  %v5564_v23 = vld [vmem:[#allocation2 + $0xa0] sm:$0xff] }
 0x1f3   : > { %v2813_v8 = vpop.f32.mrf.mxu1 }
 0x1f4   : > { %22415 = vst [vmem:[#allocation22_spill] sm:$0xff] %v18971_v33  ;;  %v18976_v21 = vadd.f32 %v2813_v8, %v2492_v29  ;;  %v16033_v22 = vpop.f32.mrf.mxu0  ;;  %v5175_v8 = vld [vmem:[#allocation2 + $0x32] sm:$0xff] }
 0x1f5   : > { %v16089_v24 = vpop.f32.mrf.mxu1  ;;  %16368 = vmatmul.mubr.msk.f32.gmra.mxu0 %vm641_vm2, %v4425_v60  ;;  %16424 = vmatmul.mubr.msk.f32.gmra.mxu1 %vm641_vm2, %v4815_v19  ;;  %v14004_v60 = vld [vmem:[%s22330_s3 + $0x150] sm:$0xff] }
 0x1f6   : > { %22416 = vst [vmem:[#allocation23_spill] sm:$0xff] %v18976_v21  ;;  %v18980_v44 = vadd.f32 %v16089_v24, %v16033_v22  ;;  %16434 = vmatprep.mubr.msk.f32.mxu0 %vm641_vm2, %v5174_v55  ;;  %16490 = vmatprep.mubr.msk.f32.mxu1 %vm641_vm2, %v5564_v23  ;;  %v2502_v15 = vpop.f32.mrf.mxu0  ;;  %v5565_v21 = vld [vmem:[#allocation2 + $0xb0] sm:$0xff]  ;;  %v5176_v24 = vld [vmem:[#allocation2 + $0x42] sm:$0xff] }
 0x1f7   : > { %v2823_v50 = vpop.f32.mrf.mxu1 }
 0x1f8   : > { %v18984_v29 = vadd.f32 %v2823_v50, %v2502_v15  ;;  %v16100_v33 = vpop.f32.mrf.mxu0 }
 0x1f9   : > { %v16156_v19 = vpop.f32.mrf.mxu1  ;;  %16435 = vmatmul.mubr.msk.f32.vlgmr.msra.gmra.mxu0 %vm641_vm2, %v5175_v8  ;;  %16491 = vmatmul.mubr.msk.f32.vlgmr.msra.gmra.mxu1 %vm641_vm2, %v5565_v21  ;;  %v3191_v22 = vadd.f32 %v16100_v33, %v18673_v37  ;;  %v5177_v8 = vld [vmem:[#allocation2 + $0x52] sm:$0xff]  ;;  %v14003_v37 = vld [vmem:[%s22330_s3 + $0x148] sm:$0xff] }
 0x1fa   : > { %16539 = vmatpush3.msra.mxu0 %v18768_v34  ;;  %16437 = vmatprep.mubr.msk.f32.mxu0 %vm641_vm2, %v5176_v24  ;;  %v3031_v55 = vpop.f32.mrf.mxu0  ;;  %v14040_v34 = vld [vmem:[%s22330_s3 + $0x170] sm:$0xff] }
 0x1fb   : > { %16493 = vmatprep.mubr.msk.f32.mxu1 %vm641_vm2, %v18772_v45  ;;  %v3422_v23 = vpop.f32.mrf.mxu1  ;;  %16540 = vmatprep.subr.mxu0 %v14004_v60  ;;  %v18996_v15 = vadd.f32 %v16156_v19, %v3191_v22  ;;  %v3190_v50 = vadd.f32 %v3031_v55, %v18679_v7  ;;  %v5178_v7 = vld [vmem:[#allocation2 + $0x62] sm:$0xff]  ;;  %v5179_v55 = vld [vmem:[#allocation2 + $0x72] sm:$0xff] }
 0x1fc   : > { %16541 = vmatpush3.msra.mxu0 %v14004_v60  ;;  %16595 = vmatpush3.msra.mxu1 %v18792_v47 }
 0x1fd   : > { %v16103_v45 = vpop.f32.mrf.mxu0  ;;  %v16159_v21 = vpop.f32.mrf.mxu1  ;;  %16438 = vmatmul.mubr.msk.f32.gmra.mxu0 %vm641_vm2, %v5177_v8  ;;  %16494 = vmatmul.mubr.msk.f32.gmra.mxu1 %vm641_vm2, %v18785_v41  ;;  %v19009_v33 = vadd.f32 %v3422_v23, %v3190_v50  ;;  %v14002_v41 = vld [vmem:[%s22330_s3 + $0x140] sm:$0xff] }
 0x1fe   : > { %v3193_v60 = vadd.f32 %v16103_v45, %v18693_v61  ;;  %16440 = vmatprep.mubr.msk.f32.mxu0 %vm641_vm2, %v5178_v7  ;;  %16496 = vmatprep.mubr.msk.f32.mxu1 %vm641_vm2, %v18798_v1  ;;  %v14039_v61 = vld [vmem:[%s22330_s3 + $0x168] sm:$0xff]  ;;  %v5572_v7 = vld [vmem:[#allocation2 + $0x140] sm:$0xff] }
 0x1ff   : > { %v3041_v47 = vpop.f32.mrf.mxu0  ;;  %v3432_v19 = vpop.f32.mrf.mxu1  ;;  %16542 = vmatprep.subr.mxu0 %v14003_v37  ;;  %16596 = vmatprep.subr.mxu1 %v14040_v34 }
 0x200   : > { %v19015_v24 = vadd.f32 %v16159_v21, %v3193_v60  ;;  %v3192_v22 = vadd.f32 %v3041_v47, %v18699_v52  ;;  %16543 = vmatpush3.msra.mxu0 %v14003_v37  ;;  %16597 = vmatpush3.msra.mxu1 %v14040_v34  ;;  %v5181_v21 = vld [vmem:[#allocation2 + $0x92] sm:$0xff] }
 0x201   : > { %v16106_v1 = vpop.f32.mrf.mxu0  ;;  %v16162_v23 = vpop.f32.mrf.mxu1  ;;  %16441 = vmatmul.mubr.msk.f32.gmra.mxu0 %vm641_vm2, %v5179_v55  ;;  %16497 = vmatmul.mubr.msk.f32.gmra.mxu1 %vm641_vm2, %v18811_v13 }
 0x202   : > { %v19027_v50 = vadd.f32 %v3432_v19, %v3192_v22  ;;  %v3195_v52 = vadd.f32 %v16106_v1, %v18717_v6  ;;  %16443 = vmatprep.mubr.msk.f32.mxu0 %vm641_vm2, %v18580_v4  ;;  %16499 = vmatprep.mubr.msk.f32.mxu1 %vm641_vm2, %v18819_v38  ;;  %v14038_v6 = vld [vmem:[%s22330_s3 + $0x160] sm:$0xff]  ;;  %v19043_v4 = vld [vmem:[%s22330_s3 + $0x198] sm:$0xff] }
 0x203   : > { %v3051_v8 = vpop.f32.mrf.mxu0  ;;  %v3442_v37 = vpop.f32.mrf.mxu1  ;;  %16544 = vmatprep.subr.mxu0 %v14002_v41  ;;  %16598 = vmatprep.subr.mxu1 %v14039_v61 }
 0x204   : > { %v19034_v34 = vadd.f32 %v16162_v23, %v3195_v52  ;;  %v3194_v45 = vadd.f32 %v3051_v8, %v18721_v9  ;;  %16545 = vmatpush3.msra.mxu0 %v14002_v41  ;;  %16599 = vmatpush3.msra.mxu1 %v14039_v61  ;;  %v19048_v9 = vld [vmem:[#allocation2 + $0xc2] sm:$0xff]  ;;  %v19060_v41 = vld [vmem:[#allocation2 + $0xd2] sm:$0xff] }
 0x205   : > { %v16109_v13 = vpop.f32.mrf.mxu0  ;;  %v16165_v38 = vpop.f32.mrf.mxu1  ;;  %16444 = vmatmul.mubr.msk.f32.gmra.mxu0 %vm641_vm2, %v5181_v21  ;;  %16500 = vmatmul.mubr.msk.f32.gmra.mxu1 %vm641_vm2, %v18831_v43  ;;  %v5573_v61 = vld [vmem:[#allocation2 + $0x150] sm:$0xff]  ;;  %v19070_v52 = vld [vmem:[#allocation2 + $0xe2] sm:$0xff] }
 0x206   : > { %v19050_v60 = vadd.f32 %v3442_v37, %v3194_v45  ;;  %v3197_v47 = vadd.f32 %v16109_v13, %v18740_v0  ;;  %16446 = vmatprep.mubr.msk.f32.mxu0 %vm641_vm2, %v19048_v9  ;;  %16502 = vmatprep.mubr.msk.f32.mxu1 %vm641_vm2, %v5572_v7  ;;  %v19065_v0 = vld [vmem:[%s22330_s3 + $0x1b8] sm:$0xff] }
 0x207   : > { %v3061_v19 = vpop.f32.mrf.mxu0  ;;  %v3452_v22 = vpop.f32.mrf.mxu1  ;;  %16600 = vmatprep.subr.mxu1 %v14038_v6  ;;  %16650 = vmatprep.subr.mxu0 %v19043_v4  ;;  %v19083_v13 = vld [vmem:[#allocation2 + $0xf2] sm:$0xff] }
 0x208   : > { %v19057_v55 = vadd.f32 %v16165_v38, %v3197_v47  ;;  %v3196_v43 = vadd.f32 %v3061_v19, %v18744_v57  ;;  %16601 = vmatpush3.msra.mxu1 %v14038_v6 }
 0x209   : > { %v16112_v1 = vpop.f32.mrf.mxu0  ;;  %v16168_v23 = vpop.f32.mrf.mxu1  ;;  %16447 = vmatmul.mubr.msk.f32.gmra.mxu0 %vm641_vm2, %v19060_v41  ;;  %16503 = vmatmul.mubr.msk.f32.gmra.mxu1 %vm641_vm2, %v5573_v61  ;;  %v19101_v61 = vld [vmem:[#allocation2 + $0x112] sm:$0xff] }
 0x20a   : > { %v19072_v8 = vadd.f32 %v3452_v22, %v3196_v43  ;;  %v3199_v57 = vadd.f32 %v16112_v1, %v18754_v18  ;;  %16449 = vmatprep.mubr.msk.f32.mxu0 %vm641_vm2, %v19070_v52  ;;  %16505 = vmatprep.mubr.msk.f32.mxu1 %vm641_vm2, %v18849_v36  ;;  %v19089_v18 = vld [vmem:[#allocation2 + $0x102] sm:$0xff] }
 0x20b   : > { %v3071_v37 = vpop.f32.mrf.mxu0  ;;  %v3462_v45 = vpop.f32.mrf.mxu1  ;;  %16706 = vmatprep.subr.mxu1 %v19065_v0 }
 0x20c   : > { %v19080_v21 = vadd.f32 %v16168_v23, %v3199_v57  ;;  %v3198_v6 = vadd.f32 %v3071_v37, %v18760_v46 }
 0x20d   : > { %v16115_v38 = vpop.f32.mrf.mxu0  ;;  %v16171_v7 = vpop.f32.mrf.mxu1  ;;  %16450 = vmatmul.mubr.msk.f32.gmra.mxu0 %vm641_vm2, %v19083_v13  ;;  %16506 = vmatmul.mubr.msk.f32.gmra.mxu1 %vm641_vm2, %v18861_v5 }
 0x20e   : > { %v19091_v36 = vadd.f32 %v3462_v45, %v3198_v6  ;;  %v3201_v47 = vadd.f32 %v16115_v38, %v18776_v27  ;;  %16452 = vmatprep.mubr.msk.f32.mxu0 %vm641_vm2, %v19089_v18  ;;  %16508 = vmatprep.mubr.msk.f32.mxu1 %vm641_vm2, %v18869_v54  ;;  %v5189_v45 = vld [vmem:[#allocation2 + $0x132] sm:$0xff] }
 0x20f   : > { %v3081_v46 = vpop.f32.mrf.mxu0  ;;  %v3472_v19 = vpop.f32.mrf.mxu1 }
 0x210   : > { %v19098_v22 = vadd.f32 %v16171_v7, %v3201_v47  ;;  %v3200_v43 = vadd.f32 %v3081_v46, %v18783_v26 }
 0x211   : > { %v16118_v5 = vpop.f32.mrf.mxu0  ;;  %v16174_v1 = vpop.f32.mrf.mxu1  ;;  %16453 = vmatmul.mubr.msk.f32.gmra.mxu0 %vm641_vm2, %v19101_v61  ;;  %16509 = vmatmul.mubr.msk.f32.gmra.mxu1 %vm641_vm2, %v18877_v14 }
 0x212   : > { %v19107_v27 = vadd.f32 %v3472_v19, %v3200_v43  ;;  %v3203_v54 = vadd.f32 %v16118_v5, %v18802_v32  ;;  %16455 = vmatprep.mubr.msk.f32.mxu0 %vm641_vm2, %v18631_v62  ;;  %16511 = vmatprep.mubr.msk.f32.mxu1 %vm641_vm2, %v18885_v28  ;;  %v19120_v32 = vld [vmem:[#allocation2 + $0x162] sm:$0xff]  ;;  %v19131_v19 = vld [vmem:[#allocation2 + $0x172] sm:$0xff] }
 0x213   : > { %v3091_v26 = vpop.f32.mrf.mxu0  ;;  %v3482_v23 = vpop.f32.mrf.mxu1  ;;  %v5580_v62 = vld [vmem:[#allocation2 + $0x1e0] sm:$0xff] }
 0x214   : > { %v19114_v57 = vadd.f32 %v16174_v1, %v3203_v54  ;;  %v3202_v37 = vadd.f32 %v3091_v26, %v18809_v3 }
 0x215   : > { %v16121_v6 = vpop.f32.mrf.mxu0  ;;  %v16177_v38 = vpop.f32.mrf.mxu1  ;;  %16456 = vmatmul.mubr.msk.f32.gmra.mxu0 %vm641_vm2, %v5189_v45  ;;  %16512 = vmatmul.mubr.msk.f32.gmra.mxu1 %vm641_vm2, %v18897_v63  ;;  %v5581_v63 = vld [vmem:[#allocation2 + $0x1f0] sm:$0xff] }
 0x216   : > { %v19122_v14 = vadd.f32 %v3482_v23, %v3202_v37  ;;  %v3205_v28 = vadd.f32 %v16121_v6, %v18823_v53  ;;  %16458 = vmatprep.mubr.msk.f32.mxu0 %vm641_vm2, %v19120_v32  ;;  %16514 = vmatprep.mubr.msk.f32.mxu1 %vm641_vm2, %v5580_v62  ;;  %v19136_v53 = vld [vmem:[#allocation2 + $0x182] sm:$0xff]  ;;  %v19148_v45 = vld [vmem:[#allocation2 + $0x192] sm:$0xff] }
 0x217   : > { %v3101_v3 = vpop.f32.mrf.mxu0  ;;  %v3492_v7 = vpop.f32.mrf.mxu1 }
 0x218   : > { %v19128_v47 = vadd.f32 %v16177_v38, %v3205_v28  ;;  %v3204_v46 = vadd.f32 %v3101_v3, %v18829_v25 }
 0x219   : > { %v16124_v43 = vpop.f32.mrf.mxu0  ;;  %v16180_v5 = vpop.f32.mrf.mxu1  ;;  %16459 = vmatmul.mubr.msk.f32.gmra.mxu0 %vm641_vm2, %v19131_v19  ;;  %16515 = vmatmul.mubr.msk.f32.gmra.mxu1 %vm641_vm2, %v5581_v63 }
 0x21a   : > { %v19138_v1 = vadd.f32 %v3492_v7, %v3204_v46  ;;  %v3207_v54 = vadd.f32 %v16124_v43, %v18839_v16  ;;  %16461 = vmatprep.mubr.msk.f32.mxu0 %vm641_vm2, %v19136_v53  ;;  %16517 = vmatprep.mubr.msk.f32.mxu1 %vm641_vm2, %v18911_v59  ;;  %v19154_v16 = vld [vmem:[#allocation2 + $0x1a2] sm:$0xff]  ;;  %v19166_v46 = vld [vmem:[#allocation2 + $0x1b2] sm:$0xff] }
 0x21b   : > { %v3111_v25 = vpop.f32.mrf.mxu0  ;;  %v3502_v26 = vpop.f32.mrf.mxu1 }
 0x21c   : > { %v19145_v23 = vadd.f32 %v16180_v5, %v3207_v54  ;;  %v3206_v37 = vadd.f32 %v3111_v25, %v18845_v49  ;;  %v5197_v25 = vld [vmem:[#allocation2 + $0x1d2] sm:$0xff] }
 0x21d   : > { %v16127_v6 = vpop.f32.mrf.mxu0  ;;  %v16183_v38 = vpop.f32.mrf.mxu1  ;;  %16462 = vmatmul.mubr.msk.f32.gmra.mxu0 %vm641_vm2, %v19148_v45  ;;  %16518 = vmatmul.mubr.msk.f32.gmra.mxu1 %vm641_vm2, %v18923_v48 }
 0x21e   : > { %v19156_v62 = vadd.f32 %v3502_v26, %v3206_v37  ;;  %v3209_v59 = vadd.f32 %v16127_v6, %v18853_v35  ;;  %16464 = vmatprep.mubr.msk.f32.mxu0 %vm641_vm2, %v19154_v16  ;;  %16520 = vmatprep.mubr.msk.f32.mxu1 %vm641_vm2, %v18931_v42 }
 0x21f   : > { %v3121_v49 = vpop.f32.mrf.mxu0  ;;  %v3512_v28 = vpop.f32.mrf.mxu1 }
 0x220   : > { %v19163_v3 = vadd.f32 %v16183_v38, %v3209_v59  ;;  %v3208_v7 = vadd.f32 %v3121_v49, %v18859_v31  ;;  %v19196_v49 = vld [vmem:[#allocation2 + $0x212] sm:$0xff] }
 0x221   : > { %v16130_v48 = vpop.f32.mrf.mxu0  ;;  %v16186_v63 = vpop.f32.mrf.mxu1  ;;  %16465 = vmatmul.mubr.msk.f32.gmra.mxu0 %vm641_vm2, %v19166_v46  ;;  %16521 = vmatmul.mubr.msk.f32.gmra.mxu1 %vm641_vm2, %v18943_v40  ;;  %v19185_v40 = vld [vmem:[#allocation2 + $0x202] sm:$0xff] }
 0x222   : > { %v19172_v35 = vadd.f32 %v3512_v28, %v3208_v7  ;;  %v3211_v42 = vadd.f32 %v16130_v48, %v18889_v10  ;;  %16467 = vmatprep.mubr.msk.f32.mxu0 %vm641_vm2, %v18667_v12  ;;  %16523 = vmatprep.mubr.msk.f32.mxu1 %vm641_vm2, %v18951_v2  ;;  %v5588_v12 = vld [vmem:[#allocation2 + $0x280] sm:$0xff] }
 0x223   : > { %v3131_v31 = vpop.f32.mrf.mxu0  ;;  %v3522_v43 = vpop.f32.mrf.mxu1  ;;  %v5590_v48 = vld [vmem:[#allocation2 + $0x2a0] sm:$0xff] }
 0x224   : > { %v19179_v5 = vadd.f32 %v16186_v63, %v3211_v42  ;;  %v3210_v54 = vadd.f32 %v3131_v31, %v18895_v30 }
 0x225   : > { %v16133_v26 = vpop.f32.mrf.mxu0  ;;  %v16189_v37 = vpop.f32.mrf.mxu1  ;;  %16468 = vmatmul.mubr.msk.f32.gmra.mxu0 %vm641_vm2, %v5197_v25  ;;  %16524 = vmatmul.mubr.msk.f32.gmra.mxu1 %vm641_vm2, %v18963_v20  ;;  %v5589_v20 = vld [vmem:[#allocation2 + $0x290] sm:$0xff] }
 0x226   : > { %v19187_v10 = vadd.f32 %v3522_v43, %v3210_v54  ;;  %v3213_v2 = vadd.f32 %v16133_v26, %v18915_v39  ;;  %16470 = vmatprep.mubr.msk.f32.mxu0 %vm641_vm2, %v19185_v40  ;;  %16526 = vmatprep.mubr.msk.f32.mxu1 %vm641_vm2, %v5588_v12  ;;  %v19201_v39 = vld [vmem:[#allocation2 + $0x222] sm:$0xff]  ;;  %v19212_v25 = vld [vmem:[#allocation2 + $0x232] sm:$0xff] }
 0x227   : > { %v3141_v30 = vpop.f32.mrf.mxu0  ;;  %v3532_v6 = vpop.f32.mrf.mxu1  ;;  %v5591_v26 = vld [vmem:[#allocation2 + $0x2b0] sm:$0xff] }
 0x228   : > { %v19193_v38 = vadd.f32 %v16189_v37, %v3213_v2  ;;  %v3212_v59 = vadd.f32 %v3141_v30, %v18921_v17  ;;  %v5592_v2 = vld [vmem:[#allocation2 + $0x2c0] sm:$0xff] }
 0x229   : > { %v16136_v28 = vpop.f32.mrf.mxu0  ;;  %v16192_v7 = vpop.f32.mrf.mxu1  ;;  %16471 = vmatmul.mubr.msk.f32.gmra.mxu0 %vm641_vm2, %v19196_v49  ;;  %16527 = vmatmul.mubr.msk.f32.gmra.mxu1 %vm641_vm2, %v5589_v20 }
 0x22a   : > { %v19203_v63 = vadd.f32 %v3532_v6, %v3212_v59  ;;  %v3215_v42 = vadd.f32 %v16136_v28, %v18935_v51  ;;  %16473 = vmatprep.mubr.msk.f32.mxu0 %vm641_vm2, %v19201_v39  ;;  %16529 = vmatprep.mubr.msk.f32.mxu1 %vm641_vm2, %v5590_v48  ;;  %v19217_v51 = vld [vmem:[#allocation2 + $0x242] sm:$0xff]  ;;  %v5593_v48 = vld [vmem:[#allocation2 + $0x2d0] sm:$0xff] }
 0x22b   : > { %v3151_v17 = vpop.f32.mrf.mxu0  ;;  %v3542_v31 = vpop.f32.mrf.mxu1 }
 0x22c   : > { %v19209_v43 = vadd.f32 %v16192_v7, %v3215_v42  ;;  %v3214_v54 = vadd.f32 %v3151_v17, %v18941_v56  ;;  %v19228_v7 = vld [vmem:[#allocation2 + $0x252] sm:$0xff] }
 0x22d   : > { %v16139_v37 = vpop.f32.mrf.mxu0  ;;  %v16195_v12 = vpop.f32.mrf.mxu1  ;;  %16474 = vmatmul.mubr.msk.f32.gmra.mxu0 %vm641_vm2, %v19212_v25  ;;  %16530 = vmatmul.mubr.msk.f32.gmra.mxu1 %vm641_vm2, %v5591_v26 }
 0x22e   : > { %22417 = vst [vmem:[#allocation24_spill] sm:$0xff] %v19209_v43  ;;  %v19219_v30 = vadd.f32 %v3542_v31, %v3214_v54  ;;  %v3217_v6 = vadd.f32 %v16139_v37, %v18955_v58  ;;  %16476 = vmatprep.mubr.msk.f32.mxu0 %vm641_vm2, %v19217_v51  ;;  %16532 = vmatprep.mubr.msk.f32.mxu1 %vm641_vm2, %v5592_v2  ;;  %v5594_v58 = vld [vmem:[#allocation2 + $0x2e0] sm:$0xff]  ;;  %v22420_v54 = vld [vmem:[#allocation22_spill] sm:$0xff]  ;;  %v22421_v37 = vld [vmem:[#allocation4_spill] sm:$0xff] }
 0x22f   : > { %v3161_v56 = vpop.f32.mrf.mxu0  ;;  %v3552_v59 = vpop.f32.mrf.mxu1 }
 0x230   : > { %22418 = vst [vmem:[#allocation25_spill] sm:$0xff] %v19219_v30  ;;  %v19225_v20 = vadd.f32 %v16195_v12, %v3217_v6  ;;  %v3216_v28 = vadd.f32 %v3161_v56, %v18961_v11  ;;  %v22422_v6 = vld [vmem:[#allocation23_spill] sm:$0xff]  ;;  %v5595_v30 = vld [vmem:[#allocation2 + $0x2f0] sm:$0xff] }
 0x231   : > { %v16142_v42 = vpop.f32.mrf.mxu0  ;;  %v16198_v17 = vpop.f32.mrf.mxu1  ;;  %16477 = vmatmul.mubr.msk.f32.gmra.mxu0 %vm641_vm2, %v19228_v7  ;;  %16533 = vmatmul.mubr.msk.f32.gmra.mxu1 %vm641_vm2, %v5593_v48 }
 0x232   : > { %22419 = vst [vmem:[#allocation26_spill] sm:$0xff] %v19225_v20  ;;  %v19233_v31 = vadd.f32 %v3552_v59, %v3216_v28  ;;  %v3219_v26 = vadd.f32 %v16142_v42, %v22420_v54  ;;  %16479 = vmatprep.mubr.msk.f32.mxu0 %vm641_vm2, %v22421_v37  ;;  %16535 = vmatprep.mubr.msk.f32.mxu1 %vm641_vm2, %v5594_v58  ;;  %v5205_v20 = vld [vmem:[#allocation2 + $0x272] sm:$0xff]  ;;  %v5954_v59 = vld [vmem:[#allocation2 + $0xa1] sm:$0xff] }
 0x233   : > { %v3171_v11 = vpop.f32.mrf.mxu0  ;;  %v3562_v12 = vpop.f32.mrf.mxu1  ;;  %v6344_v28 = vld [vmem:[#allocation2 + $0xa2] sm:$0xff] }
 0x234   : > { %v19239_v2 = vadd.f32 %v16198_v17, %v3219_v26  ;;  %v3218_v56 = vadd.f32 %v3171_v11, %v22422_v6  ;;  %v19252_v11 = vld [vmem:[#allocation2 + $0xb1] sm:$0xff] }
 0x235   : > { %v16145_v43 = vpop.f32.mrf.mxu0  ;;  %v16201_v48 = vpop.f32.mrf.mxu1  ;;  %16480 = vmatmul.mubr.msk.f32.gmra.mxu0 %vm641_vm2, %v5205_v20  ;;  %16536 = vmatmul.mubr.msk.f32.gmra.mxu1 %vm641_vm2, %v5595_v30  ;;  %v6345_v20 = vld [vmem:[#allocation2 + $0xb2] sm:$0xff] }
 0x236   : > { %v19244_v42 = vadd.f32 %v3562_v12, %v3218_v56  ;;  %v3221_v58 = vadd.f32 %v16145_v43, %v18980_v44  ;;  %16546 = vmatprep.mubr.msk.f32.mxu0 %vm641_vm2, %v5954_v59  ;;  %16602 = vmatprep.mubr.msk.f32.mxu1 %vm641_vm2, %v6344_v28  ;;  %v14076_v30 = vld [vmem:[%s22330_s3 + $0x190] sm:$0xff] }
 0x237   : > { %v3181_v17 = vpop.f32.mrf.mxu0  ;;  %v3572_v54 = vpop.f32.mrf.mxu1 }
 0x238   : > { %v19249_v26 = vadd.f32 %v16201_v48, %v3221_v58  ;;  %v3220_v37 = vadd.f32 %v3181_v17, %v18984_v29  ;;  %v22423_v29 = vld [vmem:[#allocation3_spill] sm:$0xff]  ;;  %v22424_v17 = vld [vmem:[#allocation5_spill] sm:$0xff] }
 0x239   : > { %v16212_v12 = vpop.f32.mrf.mxu0  ;;  %v16268_v6 = vpop.f32.mrf.mxu1  ;;  %16547 = vmatmul.mubr.msk.f32.vlgmr.msra.gmra.mxu0 %vm641_vm2, %v19252_v11  ;;  %16603 = vmatmul.mubr.msk.f32.vlgmr.msra.gmra.mxu1 %vm641_vm2, %v6345_v20 }
 0x23a   : > { %v19260_v44 = vadd.f32 %v3572_v54, %v3220_v37  ;;  %v3972_v43 = vadd.f32 %v16212_v12, %v18996_v15  ;;  %16651 = vmatpush3.msra.mxu0 %v19043_v4  ;;  %16549 = vmatprep.mubr.msk.f32.mxu0 %vm641_vm2, %v22423_v29  ;;  %v14075_v15 = vld [vmem:[%s22330_s3 + $0x188] sm:$0xff]  ;;  %v14112_v4 = vld [vmem:[%s22330_s3 + $0x1b0] sm:$0xff]  ;;  %v22425_v37 = vld [vmem:[#allocation6_spill] sm:$0xff] }
 0x23b   : > { %16605 = vmatprep.mubr.msk.f32.mxu1 %vm641_vm2, %v19048_v9  ;;  %v3812_v56 = vpop.f32.mrf.mxu0  ;;  %v4202_v48 = vpop.f32.mrf.mxu1  ;;  %16652 = vmatprep.subr.mxu0 %v14076_v30 }
 0x23c   : > { %v19268_v59 = vadd.f32 %v16268_v6, %v3972_v43  ;;  %v3971_v28 = vadd.f32 %v3812_v56, %v19009_v33  ;;  %16653 = vmatpush3.msra.mxu0 %v14076_v30  ;;  %16707 = vmatpush3.msra.mxu1 %v19065_v0  ;;  %v22426_v43 = vld [vmem:[#allocation7_spill] sm:$0xff]  ;;  %v22427_v56 = vld [vmem:[#allocation8_spill] sm:$0xff] }
 0x23d   : > { %v16215_v58 = vpop.f32.mrf.mxu0  ;;  %v16271_v9 = vpop.f32.mrf.mxu1  ;;  %16550 = vmatmul.mubr.msk.f32.gmra.mxu0 %vm641_vm2, %v22424_v17  ;;  %16606 = vmatmul.mubr.msk.f32.gmra.mxu1 %vm641_vm2, %v19060_v41  ;;  %v14074_v41 = vld [vmem:[%s22330_s3 + $0x180] sm:$0xff] }
 0x23e   : > { %v19282_v33 = vadd.f32 %v4202_v48, %v3971_v28  ;;  %v3974_v54 = vadd.f32 %v16215_v58, %v19015_v24  ;;  %16552 = vmatprep.mubr.msk.f32.mxu0 %vm641_vm2, %v22425_v37  ;;  %16608 = vmatprep.mubr.msk.f32.mxu1 %vm641_vm2, %v19070_v52  ;;  %v14111_v24 = vld [vmem:[%s22330_s3 + $0x1a8] sm:$0xff] }
 0x23f   : > { %v3822_v0 = vpop.f32.mrf.mxu0  ;;  %v4212_v20 = vpop.f32.mrf.mxu1  ;;  %16654 = vmatprep.subr.mxu0 %v14075_v15  ;;  %16708 = vmatprep.subr.mxu1 %v14112_v4  ;;  %v6352_v17 = vld [vmem:[#allocation2 + $0x142] sm:$0xff] }
 0x240   : > { %v19289_v30 = vadd.f32 %v16271_v9, %v3974_v54  ;;  %v3973_v12 = vadd.f32 %v3822_v0, %v19027_v50  ;;  %16655 = vmatpush3.msra.mxu0 %v14075_v15  ;;  %16709 = vmatpush3.msra.mxu1 %v14112_v4  ;;  %v22428_v9 = vld [vmem:[#allocation9_spill] sm:$0xff] }
 0x241   : > { %v16218_v6 = vpop.f32.mrf.mxu0  ;;  %v16274_v52 = vpop.f32.mrf.mxu1  ;;  %16553 = vmatmul.mubr.msk.f32.gmra.mxu0 %vm641_vm2, %v22426_v43  ;;  %16609 = vmatmul.mubr.msk.f32.gmra.mxu1 %vm641_vm2, %v19083_v13  ;;  %v19318_v13 = vld [vmem:[%s22330_s3 + $0x1d8] sm:$0xff] }
 0x242   : > { %v19302_v29 = vadd.f32 %v4212_v20, %v3973_v12  ;;  %v3976_v50 = vadd.f32 %v16218_v6, %v19034_v34  ;;  %16555 = vmatprep.mubr.msk.f32.mxu0 %vm641_vm2, %v22427_v56  ;;  %16611 = vmatprep.mubr.msk.f32.mxu1 %vm641_vm2, %v19089_v18  ;;  %v14110_v34 = vld [vmem:[%s22330_s3 + $0x1a0] sm:$0xff] }
 0x243   : > { %v3832_v48 = vpop.f32.mrf.mxu0  ;;  %v4222_v28 = vpop.f32.mrf.mxu1  ;;  %16656 = vmatprep.subr.mxu0 %v14074_v41  ;;  %16710 = vmatprep.subr.mxu1 %v14111_v24 }
 0x244   : > { %v19309_v15 = vadd.f32 %v16274_v52, %v3976_v50  ;;  %v3975_v4 = vadd.f32 %v3832_v48, %v19050_v60  ;;  %16657 = vmatpush3.msra.mxu0 %v14074_v41  ;;  %16711 = vmatpush3.msra.mxu1 %v14111_v24  ;;  %v5962_v60 = vld [vmem:[#allocation2 + $0x141] sm:$0xff]  ;;  %v6353_v24 = vld [vmem:[#allocation2 + $0x152] sm:$0xff] }
 0x245   : > { %v16221_v18 = vpop.f32.mrf.mxu0  ;;  %v16277_v58 = vpop.f32.mrf.mxu1  ;;  %16556 = vmatmul.mubr.msk.f32.gmra.mxu0 %vm641_vm2, %v22428_v9  ;;  %16612 = vmatmul.mubr.msk.f32.gmra.mxu1 %vm641_vm2, %v19101_v61  ;;  %v19333_v61 = vld [vmem:[#allocation2 + $0x151] sm:$0xff]  ;;  %v22431_v9 = vld [vmem:[#allocation12_spill] sm:$0xff] }
 0x246   : > { %v19324_v54 = vadd.f32 %v4222_v28, %v3975_v4  ;;  %v3978_v37 = vadd.f32 %v16221_v18, %v19057_v55  ;;  %16558 = vmatprep.mubr.msk.f32.mxu0 %vm641_vm2, %v5962_v60  ;;  %16614 = vmatprep.mubr.msk.f32.mxu1 %vm641_vm2, %v6352_v17  ;;  %v19338_v55 = vld [vmem:[%s22330_s3 + $0x1f8] sm:$0xff] }
 0x247   : > { %v3842_v0 = vpop.f32.mrf.mxu0  ;;  %v4232_v20 = vpop.f32.mrf.mxu1  ;;  %16712 = vmatprep.subr.mxu1 %v14110_v34  ;;  %16762 = vmatprep.subr.mxu0 %v19318_v13  ;;  %v22429_v50 = vld [vmem:[#allocation10_spill] sm:$0xff] }
 0x248   : > { %v19330_v12 = vadd.f32 %v16277_v58, %v3978_v37  ;;  %v3977_v41 = vadd.f32 %v3842_v0, %v19072_v8  ;;  %16713 = vmatpush3.msra.mxu1 %v14110_v34  ;;  %v22430_v58 = vld [vmem:[#allocation11_spill] sm:$0xff] }
 0x249   : > { %v16224_v6 = vpop.f32.mrf.mxu0  ;;  %v16280_v52 = vpop.f32.mrf.mxu1  ;;  %16559 = vmatmul.mubr.msk.f32.gmra.mxu0 %vm641_vm2, %v19333_v61  ;;  %16615 = vmatmul.mubr.msk.f32.gmra.mxu1 %vm641_vm2, %v6353_v24  ;;  %v22433_v24 = vld [vmem:[#allocation14_spill] sm:$0xff] }
 0x24a   : > { %v19343_v43 = vadd.f32 %v4232_v20, %v3977_v41  ;;  %v3980_v8 = vadd.f32 %v16224_v6, %v19080_v21  ;;  %16561 = vmatprep.mubr.msk.f32.mxu0 %vm641_vm2, %v22429_v50  ;;  %16617 = vmatprep.mubr.msk.f32.mxu1 %vm641_vm2, %v19120_v32  ;;  %v22432_v41 = vld [vmem:[#allocation13_spill] sm:$0xff] }
 0x24b   : > { %v3852_v56 = vpop.f32.mrf.mxu0  ;;  %v4242_v48 = vpop.f32.mrf.mxu1  ;;  %16818 = vmatprep.subr.mxu1 %v19338_v55 }
 0x24c   : > { %v19351_v28 = vadd.f32 %v16280_v52, %v3980_v8  ;;  %v3979_v4 = vadd.f32 %v3852_v56, %v19091_v36  ;;  %v22434_v56 = vld [vmem:[#allocation15_spill] sm:$0xff] }
 0x24d   : > { %v16227_v34 = vpop.f32.mrf.mxu0  ;;  %v16283_v18 = vpop.f32.mrf.mxu1  ;;  %16562 = vmatmul.mubr.msk.f32.gmra.mxu0 %vm641_vm2, %v22430_v58  ;;  %16618 = vmatmul.mubr.msk.f32.gmra.mxu1 %vm641_vm2, %v19131_v19  ;;  %v19394_v58 = vld [vmem:[#allocation2 + $0x1f1] sm:$0xff] }
 0x24e   : > { %v19358_v21 = vadd.f32 %v4242_v48, %v3979_v4  ;;  %v3982_v32 = vadd.f32 %v16227_v34, %v19098_v22  ;;  %16564 = vmatprep.mubr.msk.f32.mxu0 %vm641_vm2, %v22431_v9  ;;  %16620 = vmatprep.mubr.msk.f32.mxu1 %vm641_vm2, %v19136_v53 }
 0x24f   : > { %v3862_v60 = vpop.f32.mrf.mxu0  ;;  %v4252_v36 = vpop.f32.mrf.mxu1 }
 0x250   : > { %v19365_v17 = vadd.f32 %v16283_v18, %v3982_v32  ;;  %v3981_v37 = vadd.f32 %v3862_v60, %v19107_v27  ;;  %v6361_v32 = vld [vmem:[#allocation2 + $0x1f2] sm:$0xff] }
 0x251   : > { %v16230_v0 = vpop.f32.mrf.mxu0  ;;  %v16286_v20 = vpop.f32.mrf.mxu1  ;;  %16565 = vmatmul.mubr.msk.f32.gmra.mxu0 %vm641_vm2, %v22432_v41  ;;  %16621 = vmatmul.mubr.msk.f32.gmra.mxu1 %vm641_vm2, %v19148_v45  ;;  %v6360_v45 = vld [vmem:[#allocation2 + $0x1e2] sm:$0xff] }
 0x252   : > { %v19372_v22 = vadd.f32 %v4252_v36, %v3981_v37  ;;  %v3984_v19 = vadd.f32 %v16230_v0, %v19114_v57  ;;  %16567 = vmatprep.mubr.msk.f32.mxu0 %vm641_vm2, %v22433_v24  ;;  %16623 = vmatprep.mubr.msk.f32.mxu1 %vm641_vm2, %v19154_v16  ;;  %v5970_v57 = vld [vmem:[#allocation2 + $0x1e1] sm:$0xff]  ;;  %v22436_v24 = vld [vmem:[#allocation17_spill] sm:$0xff] }
 0x253   : > { %v3872_v53 = vpop.f32.mrf.mxu0  ;;  %v4262_v27 = vpop.f32.mrf.mxu1  ;;  %v22435_v36 = vld [vmem:[#allocation16_spill] sm:$0xff] }
 0x254   : > { %v19379_v6 = vadd.f32 %v16286_v20, %v3984_v19  ;;  %v3983_v52 = vadd.f32 %v3872_v53, %v19122_v14 }
 0x255   : > { %v16233_v8 = vpop.f32.mrf.mxu0  ;;  %v16289_v50 = vpop.f32.mrf.mxu1  ;;  %16568 = vmatmul.mubr.msk.f32.gmra.mxu0 %vm641_vm2, %v22434_v56  ;;  %16624 = vmatmul.mubr.msk.f32.gmra.mxu1 %vm641_vm2, %v19166_v46 }
 0x256   : > { %v19386_v48 = vadd.f32 %v4262_v27, %v3983_v52  ;;  %v3986_v16 = vadd.f32 %v16233_v8, %v19128_v47  ;;  %16570 = vmatprep.mubr.msk.f32.mxu0 %vm641_vm2, %v5970_v57  ;;  %16626 = vmatprep.mubr.msk.f32.mxu1 %vm641_vm2, %v6360_v45  ;;  %v22437_v27 = vld [vmem:[#allocation18_spill] sm:$0xff]  ;;  %v22438_v57 = vld [vmem:[#allocation19_spill] sm:$0xff]  ;;  %v22439_v45 = vld [vmem:[#allocation20_spill] sm:$0xff] }
 0x257   : > { %v3882_v4 = vpop.f32.mrf.mxu0  ;;  %v4272_v14 = vpop.f32.mrf.mxu1 }
 0x258   : > { %v19391_v34 = vadd.f32 %v16289_v50, %v3986_v16  ;;  %v3985_v18 = vadd.f32 %v3882_v4, %v19138_v1 }
 0x259   : > { %v16236_v46 = vpop.f32.mrf.mxu0  ;;  %v16292_v9 = vpop.f32.mrf.mxu1  ;;  %16571 = vmatmul.mubr.msk.f32.gmra.mxu0 %vm641_vm2, %v19394_v58  ;;  %16627 = vmatmul.mubr.msk.f32.gmra.mxu1 %vm641_vm2, %v6361_v32  ;;  %v22440_v32 = vld [vmem:[#allocation21_spill] sm:$0xff] }
 0x25a   : > { %v19399_v47 = vadd.f32 %v4272_v14, %v3985_v18  ;;  %v3988_v60 = vadd.f32 %v16236_v46, %v19145_v23  ;;  %16573 = vmatprep.mubr.msk.f32.mxu0 %vm641_vm2, %v22435_v36  ;;  %16629 = vmatprep.mubr.msk.f32.mxu1 %vm641_vm2, %v19185_v40 }
 0x25b   : > { %v3892_v1 = vpop.f32.mrf.mxu0  ;;  %v4282_v37 = vpop.f32.mrf.mxu1 }
 0x25c   : > { %v19406_v0 = vadd.f32 %v16292_v9, %v3988_v60  ;;  %v3987_v20 = vadd.f32 %v3892_v1, %v19156_v62  ;;  %v19449_v1 = vld [vmem:[#allocation2 + $0x291] sm:$0xff] }
 0x25d   : > { %v16239_v41 = vpop.f32.mrf.mxu0  ;;  %v16295_v19 = vpop.f32.mrf.mxu1  ;;  %16574 = vmatmul.mubr.msk.f32.gmra.mxu0 %vm641_vm2, %v22436_v24  ;;  %16630 = vmatmul.mubr.msk.f32.gmra.mxu1 %vm641_vm2, %v19196_v49  ;;  %v22441_v24 = vld [vmem:[#allocation24_spill] sm:$0xff] }
 0x25e   : > { %v19413_v23 = vadd.f32 %v4282_v37, %v3987_v20  ;;  %v3990_v53 = vadd.f32 %v16239_v41, %v19163_v3  ;;  %16576 = vmatprep.mubr.msk.f32.mxu0 %vm641_vm2, %v22437_v27  ;;  %16632 = vmatprep.mubr.msk.f32.mxu1 %vm641_vm2, %v19201_v39  ;;  %v6369_v37 = vld [vmem:[#allocation2 + $0x292] sm:$0xff]  ;;  %v6370_v41 = vld [vmem:[#allocation2 + $0x2a2] sm:$0xff] }
 0x25f   : > { %v3902_v40 = vpop.f32.mrf.mxu0  ;;  %v4292_v62 = vpop.f32.mrf.mxu1 }
 0x260   : > { %v19420_v52 = vadd.f32 %v16295_v19, %v3990_v53  ;;  %v3989_v8 = vadd.f32 %v3902_v40, %v19172_v35 }
 0x261   : > { %v16242_v50 = vpop.f32.mrf.mxu0  ;;  %v16298_v56 = vpop.f32.mrf.mxu1  ;;  %16577 = vmatmul.mubr.msk.f32.gmra.mxu0 %vm641_vm2, %v22438_v57  ;;  %16633 = vmatmul.mubr.msk.f32.gmra.mxu1 %vm641_vm2, %v19212_v25  ;;  %v6368_v25 = vld [vmem:[#allocation2 + $0x282] sm:$0xff] }
 0x262   : > { %v19427_v3 = vadd.f32 %v4292_v62, %v3989_v8  ;;  %v3992_v49 = vadd.f32 %v16242_v50, %v19179_v5  ;;  %16579 = vmatprep.mubr.msk.f32.mxu0 %vm641_vm2, %v22439_v45  ;;  %16635 = vmatprep.mubr.msk.f32.mxu1 %vm641_vm2, %v19217_v51  ;;  %v5978_v5 = vld [vmem:[#allocation2 + $0x281] sm:$0xff]  ;;  %v22442_v62 = vld [vmem:[#allocation25_spill] sm:$0xff] }
 0x263   : > { %v3912_v39 = vpop.f32.mrf.mxu0  ;;  %v4302_v35 = vpop.f32.mrf.mxu1  ;;  %v19465_v50 = vld [vmem:[#allocation2 + $0x2b1] sm:$0xff]  ;;  %v19470_v45 = vld [vmem:[#allocation2 + $0x2c1] sm:$0xff] }
 0x264   : > { %v19434_v16 = vadd.f32 %v16298_v56, %v3992_v49  ;;  %v3991_v4 = vadd.f32 %v3912_v39, %v19187_v10  ;;  %v6371_v56 = vld [vmem:[#allocation2 + $0x2b2] sm:$0xff]  ;;  %v6372_v39 = vld [vmem:[#allocation2 + $0x2c2] sm:$0xff] }
 0x265   : > { %v16245_v14 = vpop.f32.mrf.mxu0  ;;  %v16301_v18 = vpop.f32.mrf.mxu1  ;;  %16580 = vmatmul.mubr.msk.f32.gmra.mxu0 %vm641_vm2, %v22440_v32  ;;  %16636 = vmatmul.mubr.msk.f32.gmra.mxu1 %vm641_vm2, %v19228_v7 }
 0x266   : > { %v19441_v46 = vadd.f32 %v4302_v35, %v3991_v4  ;;  %v3994_v51 = vadd.f32 %v16245_v14, %v19193_v38  ;;  %16582 = vmatprep.mubr.msk.f32.mxu0 %vm641_vm2, %v5978_v5  ;;  %16638 = vmatprep.mubr.msk.f32.mxu1 %vm641_vm2, %v6368_v25  ;;  %v19454_v38 = vld [vmem:[#allocation2 + $0x2a1] sm:$0xff]  ;;  %v22443_v4 = vld [vmem:[#allocation26_spill] sm:$0xff] }
 0x267   : > { %v3922_v9 = vpop.f32.mrf.mxu0  ;;  %v4312_v10 = vpop.f32.mrf.mxu1 }
 0x268   : > { %v19446_v60 = vadd.f32 %v16301_v18, %v3994_v51  ;;  %v3993_v36 = vadd.f32 %v3922_v9, %v19203_v63  ;;  %v19481_v51 = vld [vmem:[#allocation2 + $0x2d1] sm:$0xff] }
 0x269   : > { %v16248_v7 = vpop.f32.mrf.mxu0  ;;  %v16304_v20 = vpop.f32.mrf.mxu1  ;;  %16583 = vmatmul.mubr.msk.f32.gmra.mxu0 %vm641_vm2, %v19449_v1  ;;  %16639 = vmatmul.mubr.msk.f32.gmra.mxu1 %vm641_vm2, %v6369_v37  ;;  %v6373_v9 = vld [vmem:[#allocation2 + $0x2d2] sm:$0xff]  ;;  %v19486_v37 = vld [vmem:[#allocation2 + $0x2e1] sm:$0xff] }
 0x26a   : > { %v19456_v19 = vadd.f32 %v4312_v10, %v3993_v36  ;;  %v3996_v53 = vadd.f32 %v16248_v7, %v22441_v24  ;;  %16585 = vmatprep.mubr.msk.f32.mxu0 %vm641_vm2, %v19454_v38  ;;  %16641 = vmatprep.mubr.msk.f32.mxu1 %vm641_vm2, %v6370_v41  ;;  %v6374_v7 = vld [vmem:[#allocation2 + $0x2e2] sm:$0xff] }
 0x26b   : > { %v3932_v63 = vpop.f32.mrf.mxu0  ;;  %v4322_v27 = vpop.f32.mrf.mxu1 }
 0x26c   : > { %v19462_v40 = vadd.f32 %v16304_v20, %v3996_v53  ;;  %v3995_v8 = vadd.f32 %v3932_v63, %v22442_v62  ;;  %v6375_v62 = vld [vmem:[#allocation2 + $0x2f2] sm:$0xff] }
 0x26d   : > { %v16251_v57 = vpop.f32.mrf.mxu0  ;;  %v16307_v49 = vpop.f32.mrf.mxu1  ;;  %16586 = vmatmul.mubr.msk.f32.gmra.mxu0 %vm641_vm2, %v19465_v50  ;;  %16642 = vmatmul.mubr.msk.f32.gmra.mxu1 %vm641_vm2, %v6371_v56 }
 0x26e   : > { %v19472_v35 = vadd.f32 %v4322_v27, %v3995_v8  ;;  %v3998_v14 = vadd.f32 %v16251_v57, %v22443_v4  ;;  %16588 = vmatprep.mubr.msk.f32.mxu0 %vm641_vm2, %v19470_v45  ;;  %16644 = vmatprep.mubr.msk.f32.mxu1 %vm641_vm2, %v6372_v39  ;;  %v19497_v27 = vld [vmem:[#allocation2 + $0x2f1] sm:$0xff] }
 0x26f   : > { %v3942_v18 = vpop.f32.mrf.mxu0  ;;  %v4332_v32 = vpop.f32.mrf.mxu1 }
 0x270   : > { %v19478_v5 = vadd.f32 %v16307_v49, %v3998_v14  ;;  %v3997_v25 = vadd.f32 %v3942_v18, %v19233_v31  ;;  %v19511_v18 = vld [vmem:[#allocation2 + $0xc0] sm:$0xff] }
 0x271   : > { %v16254_v10 = vpop.f32.mrf.mxu0  ;;  %v16310_v36 = vpop.f32.mrf.mxu1  ;;  %16589 = vmatmul.mubr.msk.f32.gmra.mxu0 %vm641_vm2, %v19481_v51  ;;  %16645 = vmatmul.mubr.msk.f32.gmra.mxu1 %vm641_vm2, %v6373_v9 }
 0x272   : > { %v19488_v20 = vadd.f32 %v4332_v32, %v3997_v25  ;;  %v4000_v41 = vadd.f32 %v16254_v10, %v19239_v2  ;;  %16591 = vmatprep.mubr.msk.f32.mxu0 %vm641_vm2, %v19486_v37  ;;  %16647 = vmatprep.mubr.msk.f32.mxu1 %vm641_vm2, %v6374_v7  ;;  %v6735_v2 = vld [vmem:[#allocation2 + $0xb0] sm:$0xff]  ;;  %v7126_v32 = vld [vmem:[#allocation2 + $0xc1] sm:$0xff] }
 0x273   : > { %v3952_v31 = vpop.f32.mrf.mxu0  ;;  %v4342_v24 = vpop.f32.mrf.mxu1  ;;  %v14148_v25 = vld [vmem:[%s22330_s3 + $0x1d0] sm:$0xff] }
 0x274   : > { %v19494_v53 = vadd.f32 %v16310_v36, %v4000_v41  ;;  %v3999_v63 = vadd.f32 %v3952_v31, %v19244_v42  ;;  %v7127_v36 = vld [vmem:[#allocation2 + $0xd1] sm:$0xff]  ;;  %v19528_v31 = vld [vmem:[#allocation2 + $0xe0] sm:$0xff] }
 0x275   : > { %v16257_v8 = vpop.f32.mrf.mxu0  ;;  %v16313_v56 = vpop.f32.mrf.mxu1  ;;  %16592 = vmatmul.mubr.msk.f32.gmra.mxu0 %vm641_vm2, %v19497_v27  ;;  %16648 = vmatmul.mubr.msk.f32.gmra.mxu1 %vm641_vm2, %v6375_v62  ;;  %v7128_v62 = vld [vmem:[#allocation2 + $0xe1] sm:$0xff] }
 0x276   : > { %v19502_v57 = vadd.f32 %v4342_v24, %v3999_v63  ;;  %v4002_v49 = vadd.f32 %v16257_v8, %v19249_v26  ;;  %16658 = vmatprep.mubr.msk.f32.mxu0 %vm641_vm2, %v6735_v2  ;;  %16714 = vmatprep.mubr.msk.f32.mxu1 %vm641_vm2, %v19252_v11  ;;  %v19519_v11 = vld [vmem:[#allocation2 + $0xd0] sm:$0xff] }
 0x277   : > { %v3962_v42 = vpop.f32.mrf.mxu0  ;;  %v4352_v39 = vpop.f32.mrf.mxu1  ;;  %v7129_v2 = vld [vmem:[#allocation2 + $0xf1] sm:$0xff] }
 0x278   : > { %v19508_v4 = vadd.f32 %v16313_v56, %v4002_v49  ;;  %v4001_v14 = vadd.f32 %v3962_v42, %v19260_v44 }
 0x279   : > { %v16324_v9 = vpop.f32.mrf.mxu0  ;;  %v16380_v26 = vpop.f32.mrf.mxu1  ;;  %16659 = vmatmul.mubr.msk.f32.vlgmr.msra.gmra.mxu0 %vm641_vm2, %v19511_v18  ;;  %16715 = vmatmul.mubr.msk.f32.vlgmr.msra.gmra.mxu1 %vm641_vm2, %v7126_v32 }
 0x27a   : > { %v19521_v10 = vadd.f32 %v4352_v39, %v4001_v14  ;;  %v4753_v44 = vadd.f32 %v16324_v9, %v19268_v59  ;;  %16763 = vmatpush3.msra.mxu0 %v19318_v13  ;;  %16661 = vmatprep.mubr.msk.f32.mxu0 %vm641_vm2, %v19519_v11  ;;  %v14147_v59 = vld [vmem:[%s22330_s3 + $0x1c8] sm:$0xff]  ;;  %v14184_v13 = vld [vmem:[%s22330_s3 + $0x1f0] sm:$0xff]  ;;  %v19551_v14 = vld [vmem:[#allocation2 + $0x100] sm:$0xff] }
 0x27b   : > { %16717 = vmatprep.mubr.msk.f32.mxu1 %vm641_vm2, %v7127_v36  ;;  %v4593_v7 = vpop.f32.mrf.mxu0  ;;  %v4983_v41 = vpop.f32.mrf.mxu1  ;;  %16764 = vmatprep.subr.mxu0 %v14148_v25  ;;  %v7130_v9 = vld [vmem:[#allocation2 + $0x101] sm:$0xff] }
 0x27c   : > { %v19530_v24 = vadd.f32 %v16380_v26, %v4753_v44  ;;  %v4752_v63 = vadd.f32 %v4593_v7, %v19282_v33  ;;  %16765 = vmatpush3.msra.mxu0 %v14148_v25  ;;  %16819 = vmatpush3.msra.mxu1 %v19338_v55  ;;  %v19543_v33 = vld [vmem:[#allocation2 + $0xf0] sm:$0xff]  ;;  %v14183_v26 = vld [vmem:[%s22330_s3 + $0x1e8] sm:$0xff] }
 0x27d   : > { %v16327_v8 = vpop.f32.mrf.mxu0  ;;  %v16383_v56 = vpop.f32.mrf.mxu1  ;;  %16662 = vmatmul.mubr.msk.f32.gmra.mxu0 %vm641_vm2, %v19528_v31  ;;  %16718 = vmatmul.mubr.msk.f32.gmra.mxu1 %vm641_vm2, %v7128_v62  ;;  %v19565_v7 = vld [vmem:[#allocation2 + $0x110] sm:$0xff] }
 0x27e   : > { %v19545_v49 = vadd.f32 %v4983_v41, %v4752_v63  ;;  %v4755_v42 = vadd.f32 %v16327_v8, %v19289_v30  ;;  %16664 = vmatprep.mubr.msk.f32.mxu0 %vm641_vm2, %v19543_v33  ;;  %16720 = vmatprep.mubr.msk.f32.mxu1 %vm641_vm2, %v7129_v2  ;;  %v14146_v30 = vld [vmem:[%s22330_s3 + $0x1c0] sm:$0xff] }
 0x27f   : > { %v4603_v55 = vpop.f32.mrf.mxu0  ;;  %v4993_v39 = vpop.f32.mrf.mxu1  ;;  %16766 = vmatprep.subr.mxu0 %v14147_v59  ;;  %16820 = vmatprep.subr.mxu1 %v14184_v13  ;;  %v7132_v2 = vld [vmem:[#allocation2 + $0x121] sm:$0xff] }
 0x280   : > { %v19553_v32 = vadd.f32 %v16383_v56, %v4755_v42  ;;  %v4754_v25 = vadd.f32 %v4603_v55, %v19302_v29  ;;  %16767 = vmatpush3.msra.mxu0 %v14147_v59  ;;  %16821 = vmatpush3.msra.mxu1 %v14184_v13  ;;  %v7131_v29 = vld [vmem:[#allocation2 + $0x111] sm:$0xff]  ;;  %v19573_v13 = vld [vmem:[#allocation2 + $0x120] sm:$0xff] }
 0x281   : > { %v16330_v44 = vpop.f32.mrf.mxu0  ;;  %v16386_v36 = vpop.f32.mrf.mxu1  ;;  %16665 = vmatmul.mubr.msk.f32.gmra.mxu0 %vm641_vm2, %v19551_v14  ;;  %16721 = vmatmul.mubr.msk.f32.gmra.mxu1 %vm641_vm2, %v7130_v9  ;;  %v19584_v42 = vld [vmem:[%s22330_s3 + $0x218] sm:$0xff] }
 0x282   : > { %v19567_v41 = vadd.f32 %v4993_v39, %v4754_v25  ;;  %v4757_v63 = vadd.f32 %v16330_v44, %v19309_v15  ;;  %16667 = vmatprep.mubr.msk.f32.mxu0 %vm641_vm2, %v19565_v7  ;;  %16723 = vmatprep.mubr.msk.f32.mxu1 %vm641_vm2, %v7131_v29  ;;  %v14182_v15 = vld [vmem:[%s22330_s3 + $0x1e0] sm:$0xff] }
 0x283   : > { %v4613_v62 = vpop.f32.mrf.mxu0  ;;  %v5003_v59 = vpop.f32.mrf.mxu1  ;;  %16768 = vmatprep.subr.mxu0 %v14146_v30  ;;  %16822 = vmatprep.subr.mxu1 %v14183_v26  ;;  %v19599_v29 = vld [vmem:[#allocation2 + $0x160] sm:$0xff] }
 0x284   : > { %v19575_v8 = vadd.f32 %v16386_v36, %v4757_v63  ;;  %v4756_v56 = vadd.f32 %v4613_v62, %v19324_v54  ;;  %16769 = vmatpush3.msra.mxu0 %v14146_v30  ;;  %16823 = vmatpush3.msra.mxu1 %v14183_v26  ;;  %v6743_v54 = vld [vmem:[#allocation2 + $0x150] sm:$0xff]  ;;  %v7134_v63 = vld [vmem:[#allocation2 + $0x161] sm:$0xff] }
 0x285   : > { %v16333_v55 = vpop.f32.mrf.mxu0  ;;  %v16389_v39 = vpop.f32.mrf.mxu1  ;;  %16668 = vmatmul.mubr.msk.f32.gmra.mxu0 %vm641_vm2, %v19573_v13  ;;  %16724 = vmatmul.mubr.msk.f32.gmra.mxu1 %vm641_vm2, %v7132_v2 }
 0x286   : > { %v19589_v25 = vadd.f32 %v5003_v59, %v4756_v56  ;;  %v4759_v9 = vadd.f32 %v16333_v55, %v19330_v12  ;;  %16670 = vmatprep.mubr.msk.f32.mxu0 %vm641_vm2, %v6743_v54  ;;  %16726 = vmatprep.mubr.msk.f32.mxu1 %vm641_vm2, %v19333_v61  ;;  %v19604_v12 = vld [vmem:[%s22330_s3 + $0x238] sm:$0xff]  ;;  %v19609_v59 = vld [vmem:[#allocation2 + $0x170] sm:$0xff] }
 0x287   : > { %v4623_v30 = vpop.f32.mrf.mxu0  ;;  %v5013_v26 = vpop.f32.mrf.mxu1  ;;  %16824 = vmatprep.subr.mxu1 %v14182_v15  ;;  %16874 = vmatprep.subr.mxu0 %v19584_v42  ;;  %22444 = vst [vmem:[#allocation22_spill] sm:$0xff] %v19609_v59  ;;  %v7135_v56 = vld [vmem:[#allocation2 + $0x171] sm:$0xff] }
 0x288   : > { %v19596_v44 = vadd.f32 %v16389_v39, %v4759_v9  ;;  %v4758_v36 = vadd.f32 %v4623_v30, %v19343_v43  ;;  %16825 = vmatpush3.msra.mxu1 %v14182_v15  ;;  %v19621_v9 = vld [vmem:[#allocation2 + $0x180] sm:$0xff] }
 0x289   : > { %v16336_v62 = vpop.f32.mrf.mxu0  ;;  %v16392_v61 = vpop.f32.mrf.mxu1  ;;  %16671 = vmatmul.mubr.msk.f32.gmra.mxu0 %vm641_vm2, %v19599_v29  ;;  %16727 = vmatmul.mubr.msk.f32.gmra.mxu1 %vm641_vm2, %v7134_v63  ;;  %22446 = vst [vmem:[#allocation23_spill] sm:$0xff] %v19621_v9  ;;  %v7136_v30 = vld [vmem:[#allocation2 + $0x181] sm:$0xff]  ;;  %v7137_v63 = vld [vmem:[#allocation2 + $0x191] sm:$0xff] }
 0x28a   : > { %v19611_v43 = vadd.f32 %v5013_v26, %v4758_v36  ;;  %v4761_v2 = vadd.f32 %v16336_v62, %v19351_v28  ;;  %16673 = vmatprep.mubr.msk.f32.mxu0 %vm641_vm2, %v19609_v59  ;;  %16729 = vmatprep.mubr.msk.f32.mxu1 %vm641_vm2, %v7135_v56  ;;  %v19626_v28 = vld [vmem:[#allocation2 + $0x190] sm:$0xff] }
 0x28b   : > { %v4633_v15 = vpop.f32.mrf.mxu0  ;;  %v5023_v55 = vpop.f32.mrf.mxu1  ;;  %16930 = vmatprep.subr.mxu1 %v19604_v12 }
 0x28c   : > { %v19618_v39 = vadd.f32 %v16392_v61, %v4761_v2  ;;  %v4760_v54 = vadd.f32 %v4633_v15, %v19358_v21 }
 0x28d   : > { %v16339_v26 = vpop.f32.mrf.mxu0  ;;  %v16395_v36 = vpop.f32.mrf.mxu1  ;;  %16674 = vmatmul.mubr.msk.f32.gmra.mxu0 %vm641_vm2, %v19621_v9  ;;  %16730 = vmatmul.mubr.msk.f32.gmra.mxu1 %vm641_vm2, %v7136_v30  ;;  %v19637_v9 = vld [vmem:[#allocation2 + $0x1a0] sm:$0xff] }
 0x28e   : > { %22445 = vst [vmem:[#allocation4_spill] sm:$0xff] %v19618_v39  ;;  %v19628_v62 = vadd.f32 %v5023_v55, %v4760_v54  ;;  %v4763_v61 = vadd.f32 %v16339_v26, %v19365_v17  ;;  %16676 = vmatprep.mubr.msk.f32.mxu0 %vm641_vm2, %v19626_v28  ;;  %16732 = vmatprep.mubr.msk.f32.mxu1 %vm641_vm2, %v7137_v63  ;;  %22448 = vst [vmem:[#allocation5_spill] sm:$0xff] %v19637_v9  ;;  %v7138_v30 = vld [vmem:[#allocation2 + $0x1a1] sm:$0xff]  ;;  %v19642_v17 = vld [vmem:[#allocation2 + $0x1b0] sm:$0xff] }
 0x28f   : > { %v4643_v21 = vpop.f32.mrf.mxu0  ;;  %v5033_v56 = vpop.f32.mrf.mxu1  ;;  %v7139_v55 = vld [vmem:[#allocation2 + $0x1b1] sm:$0xff] }
 0x290   : > { %v19634_v2 = vadd.f32 %v16395_v36, %v4763_v61  ;;  %v4762_v15 = vadd.f32 %v4643_v21, %v19372_v22  ;;  %v19653_v21 = vld [vmem:[#allocation2 + $0x1c0] sm:$0xff] }
 0x291   : > { %v16342_v39 = vpop.f32.mrf.mxu0  ;;  %v16398_v59 = vpop.f32.mrf.mxu1  ;;  %16677 = vmatmul.mubr.msk.f32.gmra.mxu0 %vm641_vm2, %v19637_v9  ;;  %16733 = vmatmul.mubr.msk.f32.gmra.mxu1 %vm641_vm2, %v7138_v30  ;;  %22449 = vst [vmem:[#allocation6_spill] sm:$0xff] %v19653_v21  ;;  %v7140_v30 = vld [vmem:[#allocation2 + $0x1c1] sm:$0xff] }
 0x292   : > { %22447 = vst [vmem:[#allocation3_spill] sm:$0xff] %v19634_v2  ;;  %v19644_v54 = vadd.f32 %v5033_v56, %v4762_v15  ;;  %v4765_v26 = vadd.f32 %v16342_v39, %v19379_v6  ;;  %16679 = vmatprep.mubr.msk.f32.mxu0 %vm641_vm2, %v19642_v17  ;;  %16735 = vmatprep.mubr.msk.f32.mxu1 %vm641_vm2, %v7139_v55  ;;  %v6751_v6 = vld [vmem:[#allocation2 + $0x1f0] sm:$0xff] }
 0x293   : > { %v4653_v22 = vpop.f32.mrf.mxu0  ;;  %v5043_v36 = vpop.f32.mrf.mxu1 }
 0x294   : > { %v19650_v63 = vadd.f32 %v16398_v59, %v4765_v26  ;;  %v4764_v61 = vadd.f32 %v4653_v22, %v19386_v48  ;;  %v19667_v26 = vld [vmem:[#allocation2 + $0x200] sm:$0xff] }
 0x295   : > { %v16345_v9 = vpop.f32.mrf.mxu0  ;;  %v16401_v2 = vpop.f32.mrf.mxu1  ;;  %16680 = vmatmul.mubr.msk.f32.gmra.mxu0 %vm641_vm2, %v19653_v21  ;;  %16736 = vmatmul.mubr.msk.f32.gmra.mxu1 %vm641_vm2, %v7140_v30  ;;  %22450 = vst [vmem:[#allocation7_spill] sm:$0xff] %v19667_v26  ;;  %v7142_v22 = vld [vmem:[#allocation2 + $0x201] sm:$0xff] }
 0x296   : > { %v19658_v39 = vadd.f32 %v5043_v36, %v4764_v61  ;;  %v4767_v56 = vadd.f32 %v16345_v9, %v19391_v34  ;;  %16682 = vmatprep.mubr.msk.f32.mxu0 %vm641_vm2, %v6751_v6  ;;  %16738 = vmatprep.mubr.msk.f32.mxu1 %vm641_vm2, %v19394_v58  ;;  %v19672_v34 = vld [vmem:[#allocation2 + $0x210] sm:$0xff] }
 0x297   : > { %v4663_v48 = vpop.f32.mrf.mxu0  ;;  %v5053_v59 = vpop.f32.mrf.mxu1  ;;  %v7143_v9 = vld [vmem:[#allocation2 + $0x211] sm:$0xff] }
 0x298   : > { %v19664_v15 = vadd.f32 %v16401_v2, %v4767_v56  ;;  %v4766_v55 = vadd.f32 %v4663_v48, %v19399_v47  ;;  %v19683_v56 = vld [vmem:[#allocation2 + $0x220] sm:$0xff] }
 0x299   : > { %v16348_v30 = vpop.f32.mrf.mxu0  ;;  %v16404_v21 = vpop.f32.mrf.mxu1  ;;  %16683 = vmatmul.mubr.msk.f32.gmra.mxu0 %vm641_vm2, %v19667_v26  ;;  %16739 = vmatmul.mubr.msk.f32.gmra.mxu1 %vm641_vm2, %v7142_v22  ;;  %22452 = vst [vmem:[#allocation9_spill] sm:$0xff] %v19683_v56  ;;  %v7144_v48 = vld [vmem:[#allocation2 + $0x221] sm:$0xff] }
 0x29a   : > { %v19674_v58 = vadd.f32 %v5053_v59, %v4766_v55  ;;  %v4769_v2 = vadd.f32 %v16348_v30, %v19406_v0  ;;  %16685 = vmatprep.mubr.msk.f32.mxu0 %vm641_vm2, %v19672_v34  ;;  %16741 = vmatprep.mubr.msk.f32.mxu1 %vm641_vm2, %v7143_v9  ;;  %v19688_v0 = vld [vmem:[#allocation2 + $0x230] sm:$0xff] }
 0x29b   : > { %v4673_v47 = vpop.f32.mrf.mxu0  ;;  %v5063_v36 = vpop.f32.mrf.mxu1  ;;  %v7145_v59 = vld [vmem:[#allocation2 + $0x231] sm:$0xff] }
 0x29c   : > { %v19680_v61 = vadd.f32 %v16404_v21, %v4769_v2  ;;  %v4768_v6 = vadd.f32 %v4673_v47, %v19413_v23  ;;  %v19699_v47 = vld [vmem:[#allocation2 + $0x240] sm:$0xff] }
 0x29d   : > { %v16351_v22 = vpop.f32.mrf.mxu0  ;;  %v16407_v26 = vpop.f32.mrf.mxu1  ;;  %16686 = vmatmul.mubr.msk.f32.gmra.mxu0 %vm641_vm2, %v19683_v56  ;;  %16742 = vmatmul.mubr.msk.f32.gmra.mxu1 %vm641_vm2, %v7144_v48  ;;  %22454 = vst [vmem:[#allocation11_spill] sm:$0xff] %v19699_v47  ;;  %v7146_v48 = vld [vmem:[#allocation2 + $0x241] sm:$0xff] }
 0x29e   : > { %22451 = vst [vmem:[#allocation8_spill] sm:$0xff] %v19680_v61  ;;  %v19690_v55 = vadd.f32 %v5063_v36, %v4768_v6  ;;  %v4771_v21 = vadd.f32 %v16351_v22, %v19420_v52  ;;  %16688 = vmatprep.mubr.msk.f32.mxu0 %vm641_vm2, %v19688_v0  ;;  %16744 = vmatprep.mubr.msk.f32.mxu1 %vm641_vm2, %v7145_v59  ;;  %v19704_v52 = vld [vmem:[#allocation2 + $0x250] sm:$0xff] }
 0x29f   : > { %v4683_v23 = vpop.f32.mrf.mxu0  ;;  %v5073_v30 = vpop.f32.mrf.mxu1  ;;  %v7147_v36 = vld [vmem:[#allocation2 + $0x251] sm:$0xff] }
 0x2a0   : > { %v19696_v9 = vadd.f32 %v16407_v26, %v4771_v21  ;;  %v4770_v2 = vadd.f32 %v4683_v23, %v19427_v3  ;;  %v19715_v23 = vld [vmem:[#allocation2 + $0x260] sm:$0xff] }
 0x2a1   : > { %v16354_v56 = vpop.f32.mrf.mxu0  ;;  %v16410_v61 = vpop.f32.mrf.mxu1  ;;  %16689 = vmatmul.mubr.msk.f32.gmra.mxu0 %vm641_vm2, %v19699_v47  ;;  %16745 = vmatmul.mubr.msk.f32.gmra.mxu1 %vm641_vm2, %v7146_v48  ;;  %v7148_v48 = vld [vmem:[#allocation2 + $0x261] sm:$0xff] }
 0x2a2   : > { %22453 = vst [vmem:[#allocation10_spill] sm:$0xff] %v19696_v9  ;;  %v19706_v6 = vadd.f32 %v5073_v30, %v4770_v2  ;;  %v4773_v26 = vadd.f32 %v16354_v56, %v19434_v16  ;;  %16691 = vmatprep.mubr.msk.f32.mxu0 %vm641_vm2, %v19704_v52  ;;  %16747 = vmatprep.mubr.msk.f32.mxu1 %vm641_vm2, %v7147_v36  ;;  %v6759_v16 = vld [vmem:[#allocation2 + $0x290] sm:$0xff] }
 0x2a3   : > { %v4693_v3 = vpop.f32.mrf.mxu0  ;;  %v5083_v22 = vpop.f32.mrf.mxu1 }
 0x2a4   : > { %v19712_v59 = vadd.f32 %v16410_v61, %v4773_v26  ;;  %v4772_v21 = vadd.f32 %v4693_v3, %v19441_v46  ;;  %v19729_v26 = vld [vmem:[#allocation2 + $0x2a0] sm:$0xff] }
 0x2a5   : > { %v16357_v47 = vpop.f32.mrf.mxu0  ;;  %v16413_v9 = vpop.f32.mrf.mxu1  ;;  %16692 = vmatmul.mubr.msk.f32.gmra.mxu0 %vm641_vm2, %v19715_v23  ;;  %16748 = vmatmul.mubr.msk.f32.gmra.mxu1 %vm641_vm2, %v7148_v48 }
 0x2a6   : > { %v19720_v56 = vadd.f32 %v5083_v22, %v4772_v21  ;;  %v4775_v30 = vadd.f32 %v16357_v47, %v19446_v60  ;;  %16694 = vmatprep.mubr.msk.f32.mxu0 %vm641_vm2, %v6759_v16  ;;  %16750 = vmatprep.mubr.msk.f32.mxu1 %vm641_vm2, %v19449_v1  ;;  %v19735_v60 = vld [vmem:[#allocation2 + $0x2b0] sm:$0xff]  ;;  %v19747_v16 = vld [vmem:[#allocation2 + $0x2c0] sm:$0xff] }
 0x2a7   : > { %v4703_v46 = vpop.f32.mrf.mxu0  ;;  %v5093_v61 = vpop.f32.mrf.mxu1 }
 0x2a8   : > { %v19726_v2 = vadd.f32 %v16413_v9, %v4775_v30  ;;  %v4774_v36 = vadd.f32 %v4703_v46, %v19456_v19 }
 0x2a9   : > { %v16360_v3 = vpop.f32.mrf.mxu0  ;;  %v16416_v48 = vpop.f32.mrf.mxu1  ;;  %16695 = vmatmul.mubr.msk.f32.gmra.mxu0 %vm641_vm2, %v19729_v26  ;;  %16751 = vmatmul.mubr.msk.f32.gmra.mxu1 %vm641_vm2, %v19454_v38 }
 0x2aa   : > { %v19737_v47 = vadd.f32 %v5093_v61, %v4774_v36  ;;  %v4777_v1 = vadd.f32 %v16360_v3, %v19462_v40  ;;  %16697 = vmatprep.mubr.msk.f32.mxu0 %vm641_vm2, %v19735_v60  ;;  %16753 = vmatprep.mubr.msk.f32.mxu1 %vm641_vm2, %v19465_v50  ;;  %v19753_v40 = vld [vmem:[#allocation2 + $0x2d0] sm:$0xff] }
 0x2ab   : > { %v4713_v19 = vpop.f32.mrf.mxu0  ;;  %v5103_v9 = vpop.f32.mrf.mxu1 }
 0x2ac   : > { %v19744_v22 = vadd.f32 %v16416_v48, %v4777_v1  ;;  %v4776_v21 = vadd.f32 %v4713_v19, %v19472_v35  ;;  %v19765_v48 = vld [vmem:[#allocation2 + $0x2e0] sm:$0xff] }
 0x2ad   : > { %v16363_v38 = vpop.f32.mrf.mxu0  ;;  %v16419_v30 = vpop.f32.mrf.mxu1  ;;  %16698 = vmatmul.mubr.msk.f32.gmra.mxu0 %vm641_vm2, %v19747_v16  ;;  %16754 = vmatmul.mubr.msk.f32.gmra.mxu1 %vm641_vm2, %v19470_v45 }
 0x2ae   : > { %v19755_v46 = vadd.f32 %v5103_v9, %v4776_v21  ;;  %v4779_v50 = vadd.f32 %v16363_v38, %v19478_v5  ;;  %16700 = vmatprep.mubr.msk.f32.mxu0 %vm641_vm2, %v19753_v40  ;;  %16756 = vmatprep.mubr.msk.f32.mxu1 %vm641_vm2, %v19481_v51  ;;  %v19771_v5 = vld [vmem:[#allocation2 + $0x2f0] sm:$0xff] }
 0x2af   : > { %v4723_v35 = vpop.f32.mrf.mxu0  ;;  %v5113_v61 = vpop.f32.mrf.mxu1 }
 0x2b0   : > { %v19762_v36 = vadd.f32 %v16419_v30, %v4779_v50  ;;  %v4778_v3 = vadd.f32 %v4723_v35, %v19488_v20  ;;  %v19783_v30 = vld [vmem:[#allocation2 + $0x300] sm:$0xff] }
 0x2b1   : > { %v16366_v45 = vpop.f32.mrf.mxu0  ;;  %v16422_v1 = vpop.f32.mrf.mxu1  ;;  %16701 = vmatmul.mubr.msk.f32.gmra.mxu0 %vm641_vm2, %v19765_v48  ;;  %16757 = vmatmul.mubr.msk.f32.gmra.mxu1 %vm641_vm2, %v19486_v37  ;;  %v7156_v37 = vld [vmem:[#allocation2 + $0x301] sm:$0xff] }
 0x2b2   : > { %v19773_v19 = vadd.f32 %v5113_v61, %v4778_v3  ;;  %v4781_v51 = vadd.f32 %v16366_v45, %v19494_v53  ;;  %16703 = vmatprep.mubr.msk.f32.mxu0 %vm641_vm2, %v19771_v5  ;;  %16759 = vmatprep.mubr.msk.f32.mxu1 %vm641_vm2, %v19497_v27  ;;  %v7515_v53 = vld [vmem:[#allocation2 + $0xb2] sm:$0xff] }
 0x2b3   : > { %v4733_v20 = vpop.f32.mrf.mxu0  ;;  %v5123_v9 = vpop.f32.mrf.mxu1 }
 0x2b4   : > { %v19780_v21 = vadd.f32 %v16422_v1, %v4781_v51  ;;  %v4780_v38 = vadd.f32 %v4733_v20, %v19502_v57  ;;  %v19797_v51 = vld [vmem:[#allocation2 + $0xc2] sm:$0xff]  ;;  %v14220_v20 = vld [vmem:[%s22330_s3 + $0x210] sm:$0xff] }
 0x2b5   : > { %v16369_v50 = vpop.f32.mrf.mxu0  ;;  %v16425_v35 = vpop.f32.mrf.mxu1  ;;  %16704 = vmatmul.mubr.msk.f32.gmra.mxu0 %vm641_vm2, %v19783_v30  ;;  %16760 = vmatmul.mubr.msk.f32.gmra.mxu1 %vm641_vm2, %v7156_v37 }
 0x2b6   : > { %v19788_v61 = vadd.f32 %v5123_v9, %v4780_v38  ;;  %v4783_v27 = vadd.f32 %v16369_v50, %v19508_v4  ;;  %16770 = vmatprep.mubr.msk.f32.mxu0 %vm641_vm2, %v7515_v53  ;;  %16826 = vmatprep.mubr.msk.f32.mxu1 %vm641_vm2, %v19511_v18  ;;  %v19806_v4 = vld [vmem:[#allocation2 + $0xd2] sm:$0xff]  ;;  %v19819_v53 = vld [vmem:[#allocation2 + $0xe2] sm:$0xff] }
 0x2b7   : > { %v4743_v57 = vpop.f32.mrf.mxu0  ;;  %v5133_v3 = vpop.f32.mrf.mxu1 }
 0x2b8   : > { %v19794_v45 = vadd.f32 %v16425_v35, %v4783_v27  ;;  %v4782_v1 = vadd.f32 %v4743_v57, %v19521_v10 }
 0x2b9   : > { %v16436_v9 = vpop.f32.mrf.mxu0  ;;  %v16492_v38 = vpop.f32.mrf.mxu1  ;;  %16771 = vmatmul.mubr.msk.f32.vlgmr.msra.gmra.mxu0 %vm641_vm2, %v19797_v51  ;;  %16827 = vmatmul.mubr.msk.f32.vlgmr.msra.gmra.mxu1 %vm641_vm2, %v19519_v11 }
 0x2ba   : > { %v19808_v18 = vadd.f32 %v5133_v3, %v4782_v1  ;;  %v5533_v10 = vadd.f32 %v16436_v9, %v19530_v24  ;;  %16875 = vmatpush3.msra.mxu0 %v19584_v42  ;;  %16773 = vmatprep.mubr.msk.f32.mxu0 %vm641_vm2, %v19806_v4  ;;  %v14219_v24 = vld [vmem:[%s22330_s3 + $0x208] sm:$0xff] }
 0x2bb   : > { %16829 = vmatprep.mubr.msk.f32.mxu1 %vm641_vm2, %v19528_v31  ;;  %v5373_v37 = vpop.f32.mrf.mxu0  ;;  %v5763_v50 = vpop.f32.mrf.mxu1  ;;  %16876 = vmatprep.subr.mxu0 %v14220_v20  ;;  %v14256_v31 = vld [vmem:[%s22330_s3 + $0x230] sm:$0xff]  ;;  %v19844_v9 = vld [vmem:[#allocation2 + $0x102] sm:$0xff] }
 0x2bc   : > { %v19816_v35 = vadd.f32 %v16492_v38, %v5533_v10  ;;  %v5532_v11 = vadd.f32 %v5373_v37, %v19545_v49  ;;  %16877 = vmatpush3.msra.mxu0 %v14220_v20  ;;  %16931 = vmatpush3.msra.mxu1 %v19604_v12  ;;  %v19832_v49 = vld [vmem:[#allocation2 + $0xf2] sm:$0xff] }
 0x2bd   : > { %v16439_v42 = vpop.f32.mrf.mxu0  ;;  %v16495_v27 = vpop.f32.mrf.mxu1  ;;  %16774 = vmatmul.mubr.msk.f32.gmra.mxu0 %vm641_vm2, %v19819_v53  ;;  %16830 = vmatmul.mubr.msk.f32.gmra.mxu1 %vm641_vm2, %v19543_v33 }
 0x2be   : > { %v19834_v57 = vadd.f32 %v5763_v50, %v5532_v11  ;;  %v5535_v3 = vadd.f32 %v16439_v42, %v19553_v32  ;;  %16776 = vmatprep.mubr.msk.f32.mxu0 %vm641_vm2, %v19832_v49  ;;  %16832 = vmatprep.mubr.msk.f32.mxu1 %vm641_vm2, %v19551_v14  ;;  %v14218_v32 = vld [vmem:[%s22330_s3 + $0x200] sm:$0xff]  ;;  %v14255_v14 = vld [vmem:[%s22330_s3 + $0x228] sm:$0xff] }
 0x2bf   : > { %v5383_v12 = vpop.f32.mrf.mxu0  ;;  %v5773_v1 = vpop.f32.mrf.mxu1  ;;  %16878 = vmatprep.subr.mxu0 %v14219_v24  ;;  %16932 = vmatprep.subr.mxu1 %v14256_v31 }
 0x2c0   : > { %v19841_v20 = vadd.f32 %v16495_v27, %v5535_v3  ;;  %v5534_v33 = vadd.f32 %v5383_v12, %v19567_v41  ;;  %16879 = vmatpush3.msra.mxu0 %v14219_v24  ;;  %16933 = vmatpush3.msra.mxu1 %v14256_v31  ;;  %v19856_v41 = vld [vmem:[#allocation2 + $0x112] sm:$0xff]  ;;  %v19865_v31 = vld [vmem:[#allocation2 + $0x122] sm:$0xff] }
 0x2c1   : > { %v16442_v38 = vpop.f32.mrf.mxu0  ;;  %v16498_v10 = vpop.f32.mrf.mxu1  ;;  %16777 = vmatmul.mubr.msk.f32.gmra.mxu0 %vm641_vm2, %v19844_v9  ;;  %16833 = vmatmul.mubr.msk.f32.gmra.mxu1 %vm641_vm2, %v19565_v7  ;;  %v7913_v27 = vld [vmem:[#allocation2 + $0x130] sm:$0xff] }
 0x2c2   : > { %v19858_v37 = vadd.f32 %v5773_v1, %v5534_v33  ;;  %v5537_v50 = vadd.f32 %v16442_v38, %v19575_v8  ;;  %16779 = vmatprep.mubr.msk.f32.mxu0 %vm641_vm2, %v19856_v41  ;;  %16835 = vmatprep.mubr.msk.f32.mxu1 %vm641_vm2, %v19573_v13  ;;  %v14254_v8 = vld [vmem:[%s22330_s3 + $0x220] sm:$0xff]  ;;  %v19876_v13 = vld [vmem:[%s22330_s3 + $0x258] sm:$0xff] }
 0x2c3   : > { %v5393_v11 = vpop.f32.mrf.mxu0  ;;  %v5783_v24 = vpop.f32.mrf.mxu1  ;;  %16880 = vmatprep.subr.mxu0 %v14218_v32  ;;  %16934 = vmatprep.subr.mxu1 %v14255_v14 }
 0x2c4   : > { %v19867_v42 = vadd.f32 %v16498_v10, %v5537_v50  ;;  %v5536_v7 = vadd.f32 %v5393_v11, %v19589_v25  ;;  %16881 = vmatpush3.msra.mxu0 %v14218_v32  ;;  %16935 = vmatpush3.msra.mxu1 %v14255_v14  ;;  %v7523_v25 = vld [vmem:[#allocation2 + $0x152] sm:$0xff]  ;;  %v19891_v50 = vld [vmem:[#allocation2 + $0x162] sm:$0xff] }
 0x2c5   : > { %v16445_v3 = vpop.f32.mrf.mxu0  ;;  %v16501_v12 = vpop.f32.mrf.mxu1  ;;  %16780 = vmatmul.mubr.msk.f32.gmra.mxu0 %vm641_vm2, %v19865_v31  ;;  %16836 = vmatmul.mubr.msk.f32.gmra.mxu1 %vm641_vm2, %v7913_v27 }
 0x2c6   : > { %v19881_v1 = vadd.f32 %v5783_v24, %v5536_v7  ;;  %v5539_v33 = vadd.f32 %v16445_v3, %v19596_v44  ;;  %16782 = vmatprep.mubr.msk.f32.mxu0 %vm641_vm2, %v7523_v25  ;;  %16838 = vmatprep.mubr.msk.f32.mxu1 %vm641_vm2, %v19599_v29  ;;  %v19896_v44 = vld [vmem:[%s22330_s3 + $0x278] sm:$0xff] }
 0x2c7   : > { %v5403_v32 = vpop.f32.mrf.mxu0  ;;  %v5793_v14 = vpop.f32.mrf.mxu1  ;;  %16936 = vmatprep.subr.mxu1 %v14254_v8  ;;  %16986 = vmatprep.subr.mxu0 %v19876_v13  ;;  %v22455_v29 = vld [vmem:[#allocation22_spill] sm:$0xff] }
 0x2c8   : > { %v19888_v38 = vadd.f32 %v16501_v12, %v5539_v33  ;;  %v5538_v10 = vadd.f32 %v5403_v32, %v19611_v43  ;;  %16937 = vmatpush3.msra.mxu1 %v14254_v8  ;;  %v19902_v7 = vld [vmem:[#allocation2 + $0x172] sm:$0xff]  ;;  %v22458_v43 = vld [vmem:[#allocation4_spill] sm:$0xff]  ;;  %v22459_v8 = vld [vmem:[#allocation23_spill] sm:$0xff] }
 0x2c9   : > { %v16448_v11 = vpop.f32.mrf.mxu0  ;;  %v16504_v24 = vpop.f32.mrf.mxu1  ;;  %16783 = vmatmul.mubr.msk.f32.gmra.mxu0 %vm641_vm2, %v19891_v50  ;;  %16839 = vmatmul.mubr.msk.f32.gmra.mxu1 %vm641_vm2, %v22455_v29  ;;  %22456 = vst [vmem:[#allocation12_spill] sm:$0xff] %v19902_v7  ;;  %v19915_v29 = vld [vmem:[#allocation2 + $0x182] sm:$0xff] }
 0x2ca   : > { %v19904_v27 = vadd.f32 %v5793_v14, %v5538_v10  ;;  %v5541_v3 = vadd.f32 %v16448_v11, %v22458_v43  ;;  %16785 = vmatprep.mubr.msk.f32.mxu0 %vm641_vm2, %v19902_v7  ;;  %16841 = vmatprep.mubr.msk.f32.mxu1 %vm641_vm2, %v22459_v8  ;;  %22461 = vst [vmem:[#allocation15_spill] sm:$0xff] %v19915_v29  ;;  %v19921_v11 = vld [vmem:[#allocation2 + $0x192] sm:$0xff]  ;;  %v22462_v8 = vld [vmem:[#allocation3_spill] sm:$0xff] }
 0x2cb   : > { %v5413_v12 = vpop.f32.mrf.mxu0  ;;  %v5803_v25 = vpop.f32.mrf.mxu1  ;;  %17042 = vmatprep.subr.mxu1 %v19896_v44 }
 0x2cc   : > { %22457 = vst [vmem:[#allocation13_spill] sm:$0xff] %v19904_v27  ;;  %v19912_v33 = vadd.f32 %v16504_v24, %v5541_v3  ;;  %v5540_v32 = vadd.f32 %v5413_v12, %v19628_v62  ;;  %v22463_v62 = vld [vmem:[#allocation5_spill] sm:$0xff] }
 0x2cd   : > { %v16451_v14 = vpop.f32.mrf.mxu0  ;;  %v16507_v10 = vpop.f32.mrf.mxu1  ;;  %16786 = vmatmul.mubr.msk.f32.gmra.mxu0 %vm641_vm2, %v19915_v29  ;;  %16842 = vmatmul.mubr.msk.f32.gmra.mxu1 %vm641_vm2, %v19626_v28 }
 0x2ce   : > { %22460 = vst [vmem:[#allocation14_spill] sm:$0xff] %v19912_v33  ;;  %v19923_v43 = vadd.f32 %v5803_v25, %v5540_v32  ;;  %v5543_v7 = vadd.f32 %v16451_v14, %v22462_v8  ;;  %16788 = vmatprep.mubr.msk.f32.mxu0 %vm641_vm2, %v19921_v11  ;;  %16844 = vmatprep.mubr.msk.f32.mxu1 %vm641_vm2, %v22463_v62  ;;  %v19933_v33 = vld [vmem:[#allocation2 + $0x1a2] sm:$0xff]  ;;  %v19939_v25 = vld [vmem:[#allocation2 + $0x1b2] sm:$0xff] }
 0x2cf   : > { %v5423_v24 = vpop.f32.mrf.mxu0  ;;  %v5813_v3 = vpop.f32.mrf.mxu1  ;;  %22464 = vst [vmem:[#allocation16_spill] sm:$0xff] %v19933_v33 }
 0x2d0   : > { %v19930_v12 = vadd.f32 %v16507_v10, %v5543_v7  ;;  %v5542_v29 = vadd.f32 %v5423_v24, %v19644_v54  ;;  %v22465_v54 = vld [vmem:[#allocation6_spill] sm:$0xff]  ;;  %v19951_v24 = vld [vmem:[#allocation2 + $0x1c2] sm:$0xff] }
 0x2d1   : > { %v16454_v28 = vpop.f32.mrf.mxu0  ;;  %v16510_v27 = vpop.f32.mrf.mxu1  ;;  %16789 = vmatmul.mubr.msk.f32.gmra.mxu0 %vm641_vm2, %v19933_v33  ;;  %16845 = vmatmul.mubr.msk.f32.gmra.mxu1 %vm641_vm2, %v19642_v17  ;;  %22467 = vst [vmem:[#allocation18_spill] sm:$0xff] %v19951_v24  ;;  %v7921_v17 = vld [vmem:[#allocation2 + $0x1d0] sm:$0xff] }
 0x2d2   : > { %v19941_v32 = vadd.f32 %v5813_v3, %v5542_v29  ;;  %v5545_v14 = vadd.f32 %v16454_v28, %v19650_v63  ;;  %16791 = vmatprep.mubr.msk.f32.mxu0 %vm641_vm2, %v19939_v25  ;;  %16847 = vmatprep.mubr.msk.f32.mxu1 %vm641_vm2, %v22465_v54  ;;  %v7531_v63 = vld [vmem:[#allocation2 + $0x1f2] sm:$0xff] }
 0x2d3   : > { %v5433_v7 = vpop.f32.mrf.mxu0  ;;  %v5823_v10 = vpop.f32.mrf.mxu1 }
 0x2d4   : > { %v19948_v8 = vadd.f32 %v16510_v27, %v5545_v14  ;;  %v5544_v62 = vadd.f32 %v5433_v7, %v19658_v39  ;;  %v22468_v27 = vld [vmem:[#allocation7_spill] sm:$0xff] }
 0x2d5   : > { %v16457_v33 = vpop.f32.mrf.mxu0  ;;  %v16513_v29 = vpop.f32.mrf.mxu1  ;;  %16792 = vmatmul.mubr.msk.f32.gmra.mxu0 %vm641_vm2, %v19951_v24  ;;  %16848 = vmatmul.mubr.msk.f32.gmra.mxu1 %vm641_vm2, %v7921_v17 }
 0x2d6   : > { %22466 = vst [vmem:[#allocation17_spill] sm:$0xff] %v19948_v8  ;;  %v19956_v3 = vadd.f32 %v5823_v10, %v5544_v62  ;;  %v5547_v28 = vadd.f32 %v16457_v33, %v19664_v15  ;;  %16794 = vmatprep.mubr.msk.f32.mxu0 %vm641_vm2, %v7531_v63  ;;  %16850 = vmatprep.mubr.msk.f32.mxu1 %vm641_vm2, %v22468_v27  ;;  %v19965_v8 = vld [vmem:[#allocation2 + $0x202] sm:$0xff]  ;;  %v19971_v15 = vld [vmem:[#allocation2 + $0x212] sm:$0xff] }
 0x2d7   : > { %v5443_v39 = vpop.f32.mrf.mxu0  ;;  %v5833_v14 = vpop.f32.mrf.mxu1  ;;  %22469 = vst [vmem:[#allocation19_spill] sm:$0xff] %v19965_v8  ;;  %v22470_v10 = vld [vmem:[#allocation8_spill] sm:$0xff] }
 0x2d8   : > { %v19962_v54 = vadd.f32 %v16513_v29, %v5547_v28  ;;  %v5546_v7 = vadd.f32 %v5443_v39, %v19674_v58  ;;  %v22471_v58 = vld [vmem:[#allocation9_spill] sm:$0xff]  ;;  %v19983_v39 = vld [vmem:[#allocation2 + $0x222] sm:$0xff] }
 0x2d9   : > { %v16460_v24 = vpop.f32.mrf.mxu0  ;;  %v16516_v17 = vpop.f32.mrf.mxu1  ;;  %16795 = vmatmul.mubr.msk.f32.gmra.mxu0 %vm641_vm2, %v19965_v8  ;;  %16851 = vmatmul.mubr.msk.f32.gmra.mxu1 %vm641_vm2, %v19672_v34  ;;  %22473 = vst [vmem:[#allocation21_spill] sm:$0xff] %v19983_v39 }
 0x2da   : > { %v19973_v33 = vadd.f32 %v5833_v14, %v5546_v7  ;;  %v5549_v62 = vadd.f32 %v16460_v24, %v22470_v10  ;;  %16797 = vmatprep.mubr.msk.f32.mxu0 %vm641_vm2, %v19971_v15  ;;  %16853 = vmatprep.mubr.msk.f32.mxu1 %vm641_vm2, %v22471_v58  ;;  %v19989_v24 = vld [vmem:[#allocation2 + $0x232] sm:$0xff] }
 0x2db   : > { %v5453_v29 = vpop.f32.mrf.mxu0  ;;  %v5843_v63 = vpop.f32.mrf.mxu1  ;;  %v22474_v7 = vld [vmem:[#allocation10_spill] sm:$0xff] }
 0x2dc   : > { %v19980_v28 = vadd.f32 %v16516_v17, %v5549_v62  ;;  %v5548_v27 = vadd.f32 %v5453_v29, %v19690_v55  ;;  %v22475_v55 = vld [vmem:[#allocation11_spill] sm:$0xff] }
 0x2dd   : > { %v16463_v34 = vpop.f32.mrf.mxu0  ;;  %v16519_v8 = vpop.f32.mrf.mxu1  ;;  %16798 = vmatmul.mubr.msk.f32.gmra.mxu0 %vm641_vm2, %v19983_v39  ;;  %16854 = vmatmul.mubr.msk.f32.gmra.mxu1 %vm641_vm2, %v19688_v0  ;;  %v20001_v39 = vld [vmem:[#allocation2 + $0x242] sm:$0xff] }
 0x2de   : > { %22472 = vst [vmem:[#allocation20_spill] sm:$0xff] %v19980_v28  ;;  %v19991_v14 = vadd.f32 %v5843_v63, %v5548_v27  ;;  %v5551_v10 = vadd.f32 %v16463_v34, %v22474_v7  ;;  %16800 = vmatprep.mubr.msk.f32.mxu0 %vm641_vm2, %v19989_v24  ;;  %16856 = vmatprep.mubr.msk.f32.mxu1 %vm641_vm2, %v22475_v55  ;;  %v20007_v63 = vld [vmem:[#allocation2 + $0x252] sm:$0xff]  ;;  %v20019_v55 = vld [vmem:[#allocation2 + $0x262] sm:$0xff] }
 0x2df   : > { %v5463_v17 = vpop.f32.mrf.mxu0  ;;  %v5853_v62 = vpop.f32.mrf.mxu1  ;;  %22476 = vst [vmem:[#allocation24_spill] sm:$0xff] %v20019_v55 }
 0x2e0   : > { %v19998_v58 = vadd.f32 %v16519_v8, %v5551_v10  ;;  %v5550_v29 = vadd.f32 %v5463_v17, %v19706_v6 }
 0x2e1   : > { %v16466_v0 = vpop.f32.mrf.mxu0  ;;  %v16522_v28 = vpop.f32.mrf.mxu1  ;;  %16801 = vmatmul.mubr.msk.f32.gmra.mxu0 %vm641_vm2, %v20001_v39  ;;  %16857 = vmatmul.mubr.msk.f32.gmra.mxu1 %vm641_vm2, %v19704_v52  ;;  %v7929_v52 = vld [vmem:[#allocation2 + $0x270] sm:$0xff] }
 0x2e2   : > { %v20009_v27 = vadd.f32 %v5853_v62, %v5550_v29  ;;  %v5553_v34 = vadd.f32 %v16466_v0, %v19712_v59  ;;  %16803 = vmatprep.mubr.msk.f32.mxu0 %vm641_vm2, %v20007_v63  ;;  %16859 = vmatprep.mubr.msk.f32.mxu1 %vm641_vm2, %v19715_v23  ;;  %v7539_v59 = vld [vmem:[#allocation2 + $0x292] sm:$0xff] }
 0x2e3   : > { %v5473_v6 = vpop.f32.mrf.mxu0  ;;  %v5863_v8 = vpop.f32.mrf.mxu1 }
 0x2e4   : > { %v20016_v7 = vadd.f32 %v16522_v28, %v5553_v34  ;;  %v5552_v10 = vadd.f32 %v5473_v6, %v19720_v56  ;;  %v20033_v6 = vld [vmem:[#allocation2 + $0x2a2] sm:$0xff] }
 0x2e5   : > { %v16469_v17 = vpop.f32.mrf.mxu0  ;;  %v16525_v62 = vpop.f32.mrf.mxu1  ;;  %16804 = vmatmul.mubr.msk.f32.gmra.mxu0 %vm641_vm2, %v20019_v55  ;;  %16860 = vmatmul.mubr.msk.f32.gmra.mxu1 %vm641_vm2, %v7929_v52 }
 0x2e6   : > { %v20024_v29 = vadd.f32 %v5863_v8, %v5552_v10  ;;  %v5555_v23 = vadd.f32 %v16469_v17, %v19726_v2  ;;  %16806 = vmatprep.mubr.msk.f32.mxu0 %vm641_vm2, %v7539_v59  ;;  %16862 = vmatprep.mubr.msk.f32.mxu1 %vm641_vm2, %v19729_v26  ;;  %v20039_v2 = vld [vmem:[#allocation2 + $0x2b2] sm:$0xff]  ;;  %v20051_v59 = vld [vmem:[#allocation2 + $0x2c2] sm:$0xff] }
 0x2e7   : > { %v5483_v56 = vpop.f32.mrf.mxu0  ;;  %v5873_v28 = vpop.f32.mrf.mxu1 }
 0x2e8   : > { %v20030_v0 = vadd.f32 %v16525_v62, %v5555_v23  ;;  %v5554_v34 = vadd.f32 %v5483_v56, %v19737_v47 }
 0x2e9   : > { %v16472_v55 = vpop.f32.mrf.mxu0  ;;  %v16528_v52 = vpop.f32.mrf.mxu1  ;;  %16807 = vmatmul.mubr.msk.f32.gmra.mxu0 %vm641_vm2, %v20033_v6  ;;  %16863 = vmatmul.mubr.msk.f32.gmra.mxu1 %vm641_vm2, %v19735_v60 }
 0x2ea   : > { %v20041_v8 = vadd.f32 %v5873_v28, %v5554_v34  ;;  %v5557_v26 = vadd.f32 %v16472_v55, %v19744_v22  ;;  %16809 = vmatprep.mubr.msk.f32.mxu0 %vm641_vm2, %v20039_v2  ;;  %16865 = vmatprep.mubr.msk.f32.mxu1 %vm641_vm2, %v19747_v16  ;;  %v20057_v22 = vld [vmem:[#allocation2 + $0x2d2] sm:$0xff] }
 0x2eb   : > { %v5493_v47 = vpop.f32.mrf.mxu0  ;;  %v5883_v10 = vpop.f32.mrf.mxu1 }
 0x2ec   : > { %v20048_v17 = vadd.f32 %v16528_v52, %v5557_v26  ;;  %v5556_v62 = vadd.f32 %v5493_v47, %v19755_v46  ;;  %v20069_v52 = vld [vmem:[#allocation2 + $0x2e2] sm:$0xff] }
 0x2ed   : > { %v16475_v60 = vpop.f32.mrf.mxu0  ;;  %v16531_v23 = vpop.f32.mrf.mxu1  ;;  %16810 = vmatmul.mubr.msk.f32.gmra.mxu0 %vm641_vm2, %v20051_v59  ;;  %16866 = vmatmul.mubr.msk.f32.gmra.mxu1 %vm641_vm2, %v19753_v40 }
 0x2ee   : > { %v20059_v55 = vadd.f32 %v5883_v10, %v5556_v62  ;;  %v5559_v16 = vadd.f32 %v16475_v60, %v19762_v36  ;;  %16812 = vmatprep.mubr.msk.f32.mxu0 %vm641_vm2, %v20057_v22  ;;  %16868 = vmatprep.mubr.msk.f32.mxu1 %vm641_vm2, %v19765_v48  ;;  %v20075_v36 = vld [vmem:[#allocation2 + $0x2f2] sm:$0xff] }
 0x2ef   : > { %v5503_v46 = vpop.f32.mrf.mxu0  ;;  %v5893_v56 = vpop.f32.mrf.mxu1 }
 0x2f0   : > { %v20066_v28 = vadd.f32 %v16531_v23, %v5559_v16  ;;  %v5558_v34 = vadd.f32 %v5503_v46, %v19773_v19  ;;  %v20087_v23 = vld [vmem:[#allocation2 + $0x302] sm:$0xff] }
 0x2f1   : > { %v16478_v40 = vpop.f32.mrf.mxu0  ;;  %v16534_v26 = vpop.f32.mrf.mxu1  ;;  %16813 = vmatmul.mubr.msk.f32.gmra.mxu0 %vm641_vm2, %v20069_v52  ;;  %16869 = vmatmul.mubr.msk.f32.gmra.mxu1 %vm641_vm2, %v19771_v5  ;;  %v7937_v5 = vld [vmem:[#allocation2 + $0x310] sm:$0xff] }
 0x2f2   : > { %v20077_v47 = vadd.f32 %v5893_v56, %v5558_v34  ;;  %v5561_v48 = vadd.f32 %v16478_v40, %v19780_v21  ;;  %16815 = vmatprep.mubr.msk.f32.mxu0 %vm641_vm2, %v20075_v36  ;;  %16871 = vmatprep.mubr.msk.f32.mxu1 %vm641_vm2, %v19783_v30  ;;  %v8296_v21 = vld [vmem:[#allocation2 + $0xc1] sm:$0xff] }
 0x2f3   : > { %v5513_v19 = vpop.f32.mrf.mxu0  ;;  %v5903_v10 = vpop.f32.mrf.mxu1 }
 0x2f4   : > { %v20084_v62 = vadd.f32 %v16534_v26, %v5561_v48  ;;  %v5560_v60 = vadd.f32 %v5513_v19, %v19788_v61  ;;  %v8297_v48 = vld [vmem:[#allocation2 + $0xd1] sm:$0xff] }
 0x2f5   : > { %v16481_v16 = vpop.f32.mrf.mxu0  ;;  %v16537_v46 = vpop.f32.mrf.mxu1  ;;  %16816 = vmatmul.mubr.msk.f32.gmra.mxu0 %vm641_vm2, %v20087_v23  ;;  %16872 = vmatmul.mubr.msk.f32.gmra.mxu1 %vm641_vm2, %v7937_v5  ;;  %v14292_v19 = vld [vmem:[%s22330_s3 + $0x250] sm:$0xff] }
 0x2f6   : > { %v20092_v56 = vadd.f32 %v5903_v10, %v5560_v60  ;;  %v5563_v30 = vadd.f32 %v16481_v16, %v19794_v45  ;;  %16882 = vmatprep.mubr.msk.f32.mxu0 %vm641_vm2, %v8296_v21  ;;  %16938 = vmatprep.mubr.msk.f32.mxu1 %vm641_vm2, %v19797_v51  ;;  %v8298_v45 = vld [vmem:[#allocation2 + $0xe1] sm:$0xff] }
 0x2f7   : > { %v5523_v61 = vpop.f32.mrf.mxu0  ;;  %v5913_v34 = vpop.f32.mrf.mxu1 }
 0x2f8   : > { %v20098_v40 = vadd.f32 %v16537_v46, %v5563_v30  ;;  %v5562_v26 = vadd.f32 %v5523_v61, %v19808_v18 }
 0x2f9   : > { %v16548_v10 = vpop.f32.mrf.mxu0  ;;  %v16604_v60 = vpop.f32.mrf.mxu1  ;;  %16883 = vmatmul.mubr.msk.f32.vlgmr.msra.gmra.mxu0 %vm641_vm2, %v8297_v48  ;;  %16939 = vmatmul.mubr.msk.f32.vlgmr.msra.gmra.mxu1 %vm641_vm2, %v19806_v4  ;;  %v8299_v4 = vld [vmem:[#allocation2 + $0xf1] sm:$0xff] }
 0x2fa   : > { %v20107_v51 = vadd.f32 %v5913_v34, %v5562_v26  ;;  %v6313_v5 = vadd.f32 %v16548_v10, %v19816_v35  ;;  %16987 = vmatpush3.msra.mxu0 %v19876_v13  ;;  %16885 = vmatprep.mubr.msk.f32.mxu0 %vm641_vm2, %v8298_v45  ;;  %v14291_v35 = vld [vmem:[%s22330_s3 + $0x248] sm:$0xff]  ;;  %v14328_v13 = vld [vmem:[%s22330_s3 + $0x270] sm:$0xff] }
 0x2fb   : > { %16941 = vmatprep.mubr.msk.f32.mxu1 %vm641_vm2, %v19819_v53  ;;  %v6153_v18 = vpop.f32.mrf.mxu0  ;;  %v6543_v16 = vpop.f32.mrf.mxu1  ;;  %16988 = vmatprep.subr.mxu0 %v14292_v19  ;;  %v8301_v10 = vld [vmem:[#allocation2 + $0x111] sm:$0xff]  ;;  %v8302_v45 = vld [vmem:[#allocation2 + $0x121] sm:$0xff] }
 0x2fc   : > { %v20114_v46 = vadd.f32 %v16604_v60, %v6313_v5  ;;  %v6312_v21 = vadd.f32 %v6153_v18, %v19834_v57  ;;  %16989 = vmatpush3.msra.mxu0 %v14292_v19  ;;  %17043 = vmatpush3.msra.mxu1 %v19896_v44  ;;  %v8300_v57 = vld [vmem:[#allocation2 + $0x101] sm:$0xff] }
 0x2fd   : > { %v16551_v53 = vpop.f32.mrf.mxu0  ;;  %v16607_v30 = vpop.f32.mrf.mxu1  ;;  %16886 = vmatmul.mubr.msk.f32.gmra.mxu0 %vm641_vm2, %v8299_v4  ;;  %16942 = vmatmul.mubr.msk.f32.gmra.mxu1 %vm641_vm2, %v19832_v49  ;;  %v14290_v49 = vld [vmem:[%s22330_s3 + $0x240] sm:$0xff] }
 0x2fe   : > { %v20127_v61 = vadd.f32 %v6543_v16, %v6312_v21  ;;  %v6315_v34 = vadd.f32 %v16551_v53, %v19841_v20  ;;  %16888 = vmatprep.mubr.msk.f32.mxu0 %vm641_vm2, %v8300_v57  ;;  %16944 = vmatprep.mubr.msk.f32.mxu1 %vm641_vm2, %v19844_v9  ;;  %v14327_v20 = vld [vmem:[%s22330_s3 + $0x268] sm:$0xff]  ;;  %v8303_v21 = vld [vmem:[#allocation2 + $0x131] sm:$0xff] }
 0x2ff   : > { %v6163_v44 = vpop.f32.mrf.mxu0  ;;  %v6553_v26 = vpop.f32.mrf.mxu1  ;;  %16990 = vmatprep.subr.mxu0 %v14291_v35  ;;  %17044 = vmatprep.subr.mxu1 %v14328_v13 }
 0x300   : > { %v20133_v48 = vadd.f32 %v16607_v30, %v6315_v34  ;;  %v6314_v19 = vadd.f32 %v6163_v44, %v19858_v37  ;;  %16991 = vmatpush3.msra.mxu0 %v14291_v35  ;;  %17045 = vmatpush3.msra.mxu1 %v14328_v13  ;;  %v20164_v30 = vld [vmem:[#allocation2 + $0x161] sm:$0xff] }
 0x301   : > { %v16554_v9 = vpop.f32.mrf.mxu0  ;;  %v16610_v60 = vpop.f32.mrf.mxu1  ;;  %16889 = vmatmul.mubr.msk.f32.gmra.mxu0 %vm641_vm2, %v8301_v10  ;;  %16945 = vmatmul.mubr.msk.f32.gmra.mxu1 %vm641_vm2, %v19856_v41  ;;  %v8693_v41 = vld [vmem:[#allocation2 + $0x132] sm:$0xff] }
 0x302   : > { %v20145_v37 = vadd.f32 %v6553_v26, %v6314_v19  ;;  %v6317_v5 = vadd.f32 %v16554_v9, %v19867_v42  ;;  %16891 = vmatprep.mubr.msk.f32.mxu0 %vm641_vm2, %v8302_v45  ;;  %16947 = vmatprep.mubr.msk.f32.mxu1 %vm641_vm2, %v19865_v31  ;;  %v14326_v42 = vld [vmem:[%s22330_s3 + $0x260] sm:$0xff]  ;;  %v20160_v31 = vld [vmem:[%s22330_s3 + $0x298] sm:$0xff]  ;;  %v22477_v19 = vld [vmem:[#allocation13_spill] sm:$0xff] }
 0x303   : > { %v6173_v18 = vpop.f32.mrf.mxu0  ;;  %v6563_v16 = vpop.f32.mrf.mxu1  ;;  %16992 = vmatprep.subr.mxu0 %v14290_v49  ;;  %17046 = vmatprep.subr.mxu1 %v14327_v20 }
 0x304   : > { %v20151_v4 = vadd.f32 %v16610_v60, %v6317_v5  ;;  %v6316_v35 = vadd.f32 %v6173_v18, %v19881_v1  ;;  %16993 = vmatpush3.msra.mxu0 %v14290_v49  ;;  %17047 = vmatpush3.msra.mxu1 %v14327_v20  ;;  %v20177_v49 = vld [vmem:[#allocation2 + $0x171] sm:$0xff]  ;;  %v20188_v60 = vld [vmem:[#allocation2 + $0x181] sm:$0xff] }
 0x305   : > { %v16557_v13 = vpop.f32.mrf.mxu0  ;;  %v16613_v53 = vpop.f32.mrf.mxu1  ;;  %16892 = vmatmul.mubr.msk.f32.gmra.mxu0 %vm641_vm2, %v8303_v21  ;;  %16948 = vmatmul.mubr.msk.f32.gmra.mxu1 %vm641_vm2, %v8693_v41  ;;  %v22479_v5 = vld [vmem:[#allocation14_spill] sm:$0xff] }
 0x306   : > { %v20166_v1 = vadd.f32 %v6563_v16, %v6316_v35  ;;  %v6319_v57 = vadd.f32 %v16557_v13, %v19888_v38  ;;  %16894 = vmatprep.mubr.msk.f32.mxu0 %vm641_vm2, %v20164_v30  ;;  %16950 = vmatprep.mubr.msk.f32.mxu1 %vm641_vm2, %v19891_v50  ;;  %v20182_v38 = vld [vmem:[%s22330_s3 + $0x2b8] sm:$0xff]  ;;  %v22478_v50 = vld [vmem:[#allocation12_spill] sm:$0xff]  ;;  %v22480_v16 = vld [vmem:[#allocation15_spill] sm:$0xff] }
 0x307   : > { %v6183_v34 = vpop.f32.mrf.mxu0  ;;  %v6573_v44 = vpop.f32.mrf.mxu1  ;;  %17048 = vmatprep.subr.mxu1 %v14326_v42  ;;  %17098 = vmatprep.subr.mxu0 %v20160_v31  ;;  %v20201_v13 = vld [vmem:[#allocation2 + $0x191] sm:$0xff] }
 0x308   : > { %v20174_v26 = vadd.f32 %v16613_v53, %v6319_v57  ;;  %v6318_v10 = vadd.f32 %v6183_v34, %v22477_v19  ;;  %17049 = vmatpush3.msra.mxu1 %v14326_v42  ;;  %v20207_v34 = vld [vmem:[#allocation2 + $0x1a1] sm:$0xff] }
 0x309   : > { %v16560_v20 = vpop.f32.mrf.mxu0  ;;  %v16616_v9 = vpop.f32.mrf.mxu1  ;;  %16895 = vmatmul.mubr.msk.f32.gmra.mxu0 %vm641_vm2, %v20177_v49  ;;  %16951 = vmatmul.mubr.msk.f32.gmra.mxu1 %vm641_vm2, %v22478_v50 }
 0x30a   : > { %v20190_v45 = vadd.f32 %v6573_v44, %v6318_v10  ;;  %v6321_v18 = vadd.f32 %v16560_v20, %v22479_v5  ;;  %16897 = vmatprep.mubr.msk.f32.mxu0 %vm641_vm2, %v20188_v60  ;;  %16953 = vmatprep.mubr.msk.f32.mxu1 %vm641_vm2, %v22480_v16  ;;  %v20219_v5 = vld [vmem:[#allocation2 + $0x1b1] sm:$0xff] }
 0x30b   : > { %v6193_v21 = vpop.f32.mrf.mxu0  ;;  %v6583_v35 = vpop.f32.mrf.mxu1  ;;  %17154 = vmatprep.subr.mxu1 %v20182_v38 }
 0x30c   : > { %v20198_v41 = vadd.f32 %v16616_v9, %v6321_v18  ;;  %v6320_v42 = vadd.f32 %v6193_v21, %v19923_v43  ;;  %v22481_v43 = vld [vmem:[#allocation16_spill] sm:$0xff]  ;;  %v22483_v21 = vld [vmem:[#allocation17_spill] sm:$0xff] }
 0x30d   : > { %v16563_v53 = vpop.f32.mrf.mxu0  ;;  %v16619_v57 = vpop.f32.mrf.mxu1  ;;  %16898 = vmatmul.mubr.msk.f32.gmra.mxu0 %vm641_vm2, %v20201_v13  ;;  %16954 = vmatmul.mubr.msk.f32.gmra.mxu1 %vm641_vm2, %v19921_v11 }
 0x30e   : > { %v20209_v44 = vadd.f32 %v6583_v35, %v6320_v42  ;;  %v6323_v19 = vadd.f32 %v16563_v53, %v19930_v12  ;;  %16900 = vmatprep.mubr.msk.f32.mxu0 %vm641_vm2, %v20207_v34  ;;  %16956 = vmatprep.mubr.msk.f32.mxu1 %vm641_vm2, %v22481_v43  ;;  %v8310_v12 = vld [vmem:[#allocation2 + $0x1c1] sm:$0xff]  ;;  %v22484_v42 = vld [vmem:[#allocation18_spill] sm:$0xff] }
 0x30f   : > { %v6203_v10 = vpop.f32.mrf.mxu0  ;;  %v6593_v20 = vpop.f32.mrf.mxu1  ;;  %v8311_v43 = vld [vmem:[#allocation2 + $0x1d1] sm:$0xff] }
 0x310   : > { %v20216_v9 = vadd.f32 %v16619_v57, %v6323_v19  ;;  %v6322_v50 = vadd.f32 %v6203_v10, %v19941_v32  ;;  %v8701_v10 = vld [vmem:[#allocation2 + $0x1d2] sm:$0xff] }
 0x311   : > { %v16566_v11 = vpop.f32.mrf.mxu0  ;;  %v16622_v18 = vpop.f32.mrf.mxu1  ;;  %16901 = vmatmul.mubr.msk.f32.gmra.mxu0 %vm641_vm2, %v20219_v5  ;;  %16957 = vmatmul.mubr.msk.f32.gmra.mxu1 %vm641_vm2, %v19939_v25 }
 0x312   : > { %22482 = vst [vmem:[#allocation25_spill] sm:$0xff] %v20216_v9  ;;  %v20225_v16 = vadd.f32 %v6593_v20, %v6322_v50  ;;  %v6325_v35 = vadd.f32 %v16566_v11, %v22483_v21  ;;  %16903 = vmatprep.mubr.msk.f32.mxu0 %vm641_vm2, %v8310_v12  ;;  %16959 = vmatprep.mubr.msk.f32.mxu1 %vm641_vm2, %v22484_v42  ;;  %v20236_v20 = vld [vmem:[#allocation2 + $0x201] sm:$0xff]  ;;  %v20248_v42 = vld [vmem:[#allocation2 + $0x211] sm:$0xff] }
 0x313   : > { %v6213_v32 = vpop.f32.mrf.mxu0  ;;  %v6603_v53 = vpop.f32.mrf.mxu1 }
 0x314   : > { %v20231_v57 = vadd.f32 %v16622_v18, %v6325_v35  ;;  %v6324_v19 = vadd.f32 %v6213_v32, %v19956_v3  ;;  %v22485_v18 = vld [vmem:[#allocation19_spill] sm:$0xff] }
 0x315   : > { %v16569_v9 = vpop.f32.mrf.mxu0  ;;  %v16625_v25 = vpop.f32.mrf.mxu1  ;;  %16904 = vmatmul.mubr.msk.f32.gmra.mxu0 %vm641_vm2, %v8311_v43  ;;  %16960 = vmatmul.mubr.msk.f32.gmra.mxu1 %vm641_vm2, %v8701_v10 }
 0x316   : > { %v20238_v50 = vadd.f32 %v6603_v53, %v6324_v19  ;;  %v6327_v11 = vadd.f32 %v16569_v9, %v19962_v54  ;;  %16906 = vmatprep.mubr.msk.f32.mxu0 %vm641_vm2, %v20236_v20  ;;  %16962 = vmatprep.mubr.msk.f32.mxu1 %vm641_vm2, %v22485_v18  ;;  %v20254_v54 = vld [vmem:[#allocation2 + $0x221] sm:$0xff] }
 0x317   : > { %v6223_v3 = vpop.f32.mrf.mxu0  ;;  %v6613_v12 = vpop.f32.mrf.mxu1  ;;  %v22487_v53 = vld [vmem:[#allocation20_spill] sm:$0xff] }
 0x318   : > { %v20245_v21 = vadd.f32 %v16625_v25, %v6327_v11  ;;  %v6326_v35 = vadd.f32 %v6223_v3, %v19973_v33  ;;  %v22488_v33 = vld [vmem:[#allocation21_spill] sm:$0xff] }
 0x319   : > { %v16572_v32 = vpop.f32.mrf.mxu0  ;;  %v16628_v43 = vpop.f32.mrf.mxu1  ;;  %16907 = vmatmul.mubr.msk.f32.gmra.mxu0 %vm641_vm2, %v20248_v42  ;;  %16963 = vmatmul.mubr.msk.f32.gmra.mxu1 %vm641_vm2, %v19971_v15  ;;  %v20266_v3 = vld [vmem:[#allocation2 + $0x231] sm:$0xff] }
 0x31a   : > { %22486 = vst [vmem:[#allocation26_spill] sm:$0xff] %v20245_v21  ;;  %v20256_v9 = vadd.f32 %v6613_v12, %v6326_v35  ;;  %v6329_v19 = vadd.f32 %v16572_v32, %v22487_v53  ;;  %16909 = vmatprep.mubr.msk.f32.mxu0 %vm641_vm2, %v20254_v54  ;;  %16965 = vmatprep.mubr.msk.f32.mxu1 %vm641_vm2, %v22488_v33  ;;  %v20272_v12 = vld [vmem:[#allocation2 + $0x241] sm:$0xff]  ;;  %v20284_v33 = vld [vmem:[#allocation2 + $0x251] sm:$0xff] }
 0x31b   : > { %v6233_v10 = vpop.f32.mrf.mxu0  ;;  %v6623_v25 = vpop.f32.mrf.mxu1 }
 0x31c   : > { %v20263_v11 = vadd.f32 %v16628_v43, %v6329_v19  ;;  %v6328_v18 = vadd.f32 %v6233_v10, %v19991_v14 }
 0x31d   : > { %v16575_v15 = vpop.f32.mrf.mxu0  ;;  %v16631_v21 = vpop.f32.mrf.mxu1  ;;  %16910 = vmatmul.mubr.msk.f32.gmra.mxu0 %vm641_vm2, %v20266_v3  ;;  %16966 = vmatmul.mubr.msk.f32.gmra.mxu1 %vm641_vm2, %v19989_v24 }
 0x31e   : > { %v20274_v35 = vadd.f32 %v6623_v25, %v6328_v18  ;;  %v6331_v32 = vadd.f32 %v16575_v15, %v19998_v58  ;;  %16912 = vmatprep.mubr.msk.f32.mxu0 %vm641_vm2, %v20272_v12  ;;  %16968 = vmatprep.mubr.msk.f32.mxu1 %vm641_vm2, %v20001_v39  ;;  %v8318_v58 = vld [vmem:[#allocation2 + $0x261] sm:$0xff] }
 0x31f   : > { %v6243_v14 = vpop.f32.mrf.mxu0  ;;  %v6633_v43 = vpop.f32.mrf.mxu1 }
 0x320   : > { %22489 = vst [vmem:[#allocation22_spill] sm:$0xff] %v20274_v35  ;;  %v20281_v53 = vadd.f32 %v16631_v21, %v6331_v32  ;;  %v6330_v19 = vadd.f32 %v6243_v14, %v20009_v27  ;;  %v22491_v21 = vld [vmem:[#allocation24_spill] sm:$0xff]  ;;  %v8319_v14 = vld [vmem:[#allocation2 + $0x271] sm:$0xff] }
 0x321   : > { %v16578_v24 = vpop.f32.mrf.mxu0  ;;  %v16634_v10 = vpop.f32.mrf.mxu1  ;;  %16913 = vmatmul.mubr.msk.f32.gmra.mxu0 %vm641_vm2, %v20284_v33  ;;  %16969 = vmatmul.mubr.msk.f32.gmra.mxu1 %vm641_vm2, %v20007_v63 }
 0x322   : > { %22490 = vst [vmem:[#allocation4_spill] sm:$0xff] %v20281_v53  ;;  %v20290_v25 = vadd.f32 %v6633_v43, %v6330_v19  ;;  %v6333_v39 = vadd.f32 %v16578_v24, %v20016_v7  ;;  %16915 = vmatprep.mubr.msk.f32.mxu0 %vm641_vm2, %v8318_v58  ;;  %16971 = vmatprep.mubr.msk.f32.mxu1 %vm641_vm2, %v22491_v21  ;;  %v8709_v53 = vld [vmem:[#allocation2 + $0x272] sm:$0xff]  ;;  %v20301_v7 = vld [vmem:[#allocation2 + $0x2a1] sm:$0xff] }
 0x323   : > { %v6253_v27 = vpop.f32.mrf.mxu0  ;;  %v6643_v18 = vpop.f32.mrf.mxu1 }
 0x324   : > { %v20296_v15 = vadd.f32 %v16634_v10, %v6333_v39  ;;  %v6332_v32 = vadd.f32 %v6253_v27, %v20024_v29  ;;  %v20313_v39 = vld [vmem:[#allocation2 + $0x2b1] sm:$0xff] }
 0x325   : > { %v16581_v35 = vpop.f32.mrf.mxu0  ;;  %v16637_v63 = vpop.f32.mrf.mxu1  ;;  %16916 = vmatmul.mubr.msk.f32.gmra.mxu0 %vm641_vm2, %v8319_v14  ;;  %16972 = vmatmul.mubr.msk.f32.gmra.mxu1 %vm641_vm2, %v8709_v53  ;;  %v20331_v14 = vld [vmem:[#allocation2 + $0x2d1] sm:$0xff] }
 0x326   : > { %v20303_v43 = vadd.f32 %v6643_v18, %v6332_v32  ;;  %v6335_v19 = vadd.f32 %v16581_v35, %v20030_v0  ;;  %16918 = vmatprep.mubr.msk.f32.mxu0 %vm641_vm2, %v20301_v7  ;;  %16974 = vmatprep.mubr.msk.f32.mxu1 %vm641_vm2, %v20033_v6  ;;  %v20319_v0 = vld [vmem:[#allocation2 + $0x2c1] sm:$0xff] }
 0x327   : > { %v6263_v29 = vpop.f32.mrf.mxu0  ;;  %v6653_v24 = vpop.f32.mrf.mxu1 }
 0x328   : > { %v20310_v10 = vadd.f32 %v16637_v63, %v6335_v19  ;;  %v6334_v58 = vadd.f32 %v6263_v29, %v20041_v8 }
 0x329   : > { %v16584_v53 = vpop.f32.mrf.mxu0  ;;  %v16640_v21 = vpop.f32.mrf.mxu1  ;;  %16919 = vmatmul.mubr.msk.f32.gmra.mxu0 %vm641_vm2, %v20313_v39  ;;  %16975 = vmatmul.mubr.msk.f32.gmra.mxu1 %vm641_vm2, %v20039_v2 }
 0x32a   : > { %v20321_v35 = vadd.f32 %v6653_v24, %v6334_v58  ;;  %v6337_v6 = vadd.f32 %v16584_v53, %v20048_v17  ;;  %16921 = vmatprep.mubr.msk.f32.mxu0 %vm641_vm2, %v20319_v0  ;;  %16977 = vmatprep.mubr.msk.f32.mxu1 %vm641_vm2, %v20051_v59  ;;  %v20337_v17 = vld [vmem:[#allocation2 + $0x2e1] sm:$0xff]  ;;  %v20349_v53 = vld [vmem:[#allocation2 + $0x2f1] sm:$0xff] }
 0x32b   : > { %v6273_v8 = vpop.f32.mrf.mxu0  ;;  %v6663_v27 = vpop.f32.mrf.mxu1 }
 0x32c   : > { %v20328_v18 = vadd.f32 %v16640_v21, %v6337_v6  ;;  %v6336_v32 = vadd.f32 %v6273_v8, %v20059_v55 }
 0x32d   : > { %v16587_v2 = vpop.f32.mrf.mxu0  ;;  %v16643_v63 = vpop.f32.mrf.mxu1  ;;  %16922 = vmatmul.mubr.msk.f32.gmra.mxu0 %vm641_vm2, %v20331_v14  ;;  %16978 = vmatmul.mubr.msk.f32.gmra.mxu1 %vm641_vm2, %v20057_v22 }
 0x32e   : > { %v20339_v19 = vadd.f32 %v6663_v27, %v6336_v32  ;;  %v6339_v59 = vadd.f32 %v16587_v2, %v20066_v28  ;;  %16924 = vmatprep.mubr.msk.f32.mxu0 %vm641_vm2, %v20337_v17  ;;  %16980 = vmatprep.mubr.msk.f32.mxu1 %vm641_vm2, %v20069_v52  ;;  %v8326_v28 = vld [vmem:[#allocation2 + $0x301] sm:$0xff]  ;;  %v8327_v2 = vld [vmem:[#allocation2 + $0x311] sm:$0xff] }
 0x32f   : > { %v6283_v55 = vpop.f32.mrf.mxu0  ;;  %v6673_v29 = vpop.f32.mrf.mxu1 }
 0x330   : > { %v20346_v24 = vadd.f32 %v16643_v63, %v6339_v59  ;;  %v6338_v58 = vadd.f32 %v6283_v55, %v20077_v47  ;;  %v8717_v63 = vld [vmem:[#allocation2 + $0x312] sm:$0xff]  ;;  %v9466_v55 = vld [vmem:[#allocation2 + $0x141] sm:$0xff] }
 0x331   : > { %v16590_v22 = vpop.f32.mrf.mxu0  ;;  %v16646_v21 = vpop.f32.mrf.mxu1  ;;  %16925 = vmatmul.mubr.msk.f32.gmra.mxu0 %vm641_vm2, %v20349_v53  ;;  %16981 = vmatmul.mubr.msk.f32.gmra.mxu1 %vm641_vm2, %v20075_v36 }
 0x332   : > { %v20355_v6 = vadd.f32 %v6673_v29, %v6338_v58  ;;  %v6341_v52 = vadd.f32 %v16590_v22, %v20084_v62  ;;  %16927 = vmatprep.mubr.msk.f32.mxu0 %vm641_vm2, %v8326_v28  ;;  %16983 = vmatprep.mubr.msk.f32.mxu1 %vm641_vm2, %v20087_v23  ;;  %v9076_v62 = vld [vmem:[#allocation2 + $0x140] sm:$0xff]  ;;  %v20374_v28 = vld [vmem:[#allocation2 + $0x150] sm:$0xff] }
 0x333   : > { %v6293_v47 = vpop.f32.mrf.mxu0  ;;  %v6683_v8 = vpop.f32.mrf.mxu1 }
 0x334   : > { %v20361_v27 = vadd.f32 %v16646_v21, %v6341_v52  ;;  %v6340_v32 = vadd.f32 %v6293_v47, %v20092_v56  ;;  %v9467_v52 = vld [vmem:[#allocation2 + $0x151] sm:$0xff] }
 0x335   : > { %v16593_v59 = vpop.f32.mrf.mxu0  ;;  %v16649_v36 = vpop.f32.mrf.mxu1  ;;  %16928 = vmatmul.mubr.msk.f32.gmra.mxu0 %vm641_vm2, %v8327_v2  ;;  %16984 = vmatmul.mubr.msk.f32.gmra.mxu1 %vm641_vm2, %v8717_v63  ;;  %v14364_v47 = vld [vmem:[%s22330_s3 + $0x290] sm:$0xff] }
 0x336   : > { %v20366_v29 = vadd.f32 %v6683_v8, %v6340_v32  ;;  %v6343_v23 = vadd.f32 %v16593_v59, %v20098_v40  ;;  %16994 = vmatprep.mubr.msk.f32.mxu0 %vm641_vm2, %v9076_v62  ;;  %17050 = vmatprep.mubr.msk.f32.mxu1 %vm641_vm2, %v9466_v55  ;;  %v20382_v40 = vld [vmem:[#allocation2 + $0x160] sm:$0xff]  ;;  %v20395_v55 = vld [vmem:[#allocation2 + $0x170] sm:$0xff] }
 0x337   : > { %v6303_v58 = vpop.f32.mrf.mxu0  ;;  %v6693_v56 = vpop.f32.mrf.mxu1 }
 0x338   : > { %v20371_v22 = vadd.f32 %v16649_v36, %v6343_v23  ;;  %v6342_v21 = vadd.f32 %v6303_v58, %v20107_v51 }
 0x339   : > { %v16660_v8 = vpop.f32.mrf.mxu0  ;;  %v16716_v32 = vpop.f32.mrf.mxu1  ;;  %16995 = vmatmul.mubr.msk.f32.vlgmr.msra.gmra.mxu0 %vm641_vm2, %v20374_v28  ;;  %17051 = vmatmul.mubr.msk.f32.vlgmr.msra.gmra.mxu1 %vm641_vm2, %v9467_v52 }
 0x33a   : > { %v20384_v2 = vadd.f32 %v6693_v56, %v6342_v21  ;;  %v7094_v51 = vadd.f32 %v16660_v8, %v20114_v46  ;;  %17099 = vmatpush3.msra.mxu0 %v20160_v31  ;;  %16997 = vmatprep.mubr.msk.f32.mxu0 %vm641_vm2, %v20382_v40  ;;  %v14363_v46 = vld [vmem:[%s22330_s3 + $0x288] sm:$0xff]  ;;  %v14400_v31 = vld [vmem:[%s22330_s3 + $0x2b0] sm:$0xff] }
 0x33b   : > { %17053 = vmatprep.mubr.msk.f32.mxu1 %vm641_vm2, %v20164_v30  ;;  %v6934_v63 = vpop.f32.mrf.mxu0  ;;  %v7324_v59 = vpop.f32.mrf.mxu1  ;;  %17100 = vmatprep.subr.mxu0 %v14364_v47 }
 0x33c   : > { %v20392_v36 = vadd.f32 %v16716_v32, %v7094_v51  ;;  %v7093_v62 = vadd.f32 %v6934_v63, %v20127_v61  ;;  %17101 = vmatpush3.msra.mxu0 %v14364_v47  ;;  %17155 = vmatpush3.msra.mxu1 %v20182_v38  ;;  %v20408_v61 = vld [vmem:[#allocation2 + $0x180] sm:$0xff]  ;;  %v20420_v47 = vld [vmem:[#allocation2 + $0x190] sm:$0xff] }
 0x33d   : > { %v16663_v30 = vpop.f32.mrf.mxu0  ;;  %v16719_v23 = vpop.f32.mrf.mxu1  ;;  %16998 = vmatmul.mubr.msk.f32.gmra.mxu0 %vm641_vm2, %v20395_v55  ;;  %17054 = vmatmul.mubr.msk.f32.gmra.mxu1 %vm641_vm2, %v20177_v49 }
 0x33e   : > { %v20410_v58 = vadd.f32 %v7324_v59, %v7093_v62  ;;  %v7096_v56 = vadd.f32 %v16663_v30, %v20133_v48  ;;  %17000 = vmatprep.mubr.msk.f32.mxu0 %vm641_vm2, %v20408_v61  ;;  %17056 = vmatprep.mubr.msk.f32.mxu1 %vm641_vm2, %v20188_v60  ;;  %v14362_v48 = vld [vmem:[%s22330_s3 + $0x280] sm:$0xff]  ;;  %v14399_v60 = vld [vmem:[%s22330_s3 + $0x2a8] sm:$0xff] }
 0x33f   : > { %v6944_v38 = vpop.f32.mrf.mxu0  ;;  %v7334_v21 = vpop.f32.mrf.mxu1  ;;  %17102 = vmatprep.subr.mxu0 %v14363_v46  ;;  %17156 = vmatprep.subr.mxu1 %v14400_v31 }
 0x340   : > { %v20417_v52 = vadd.f32 %v16719_v23, %v7096_v56  ;;  %v7095_v49 = vadd.f32 %v6944_v38, %v20145_v37  ;;  %17103 = vmatpush3.msra.mxu0 %v14363_v46  ;;  %17157 = vmatpush3.msra.mxu1 %v14400_v31  ;;  %v20432_v37 = vld [vmem:[#allocation2 + $0x1a0] sm:$0xff]  ;;  %v20444_v31 = vld [vmem:[#allocation2 + $0x1b0] sm:$0xff] }
 0x341   : > { %v16666_v8 = vpop.f32.mrf.mxu0  ;;  %v16722_v32 = vpop.f32.mrf.mxu1  ;;  %17001 = vmatmul.mubr.msk.f32.gmra.mxu0 %vm641_vm2, %v20420_v47  ;;  %17057 = vmatmul.mubr.msk.f32.gmra.mxu1 %vm641_vm2, %v20201_v13  ;;  %v9474_v56 = vld [vmem:[#allocation2 + $0x1e1] sm:$0xff] }
 0x342   : > { %v20434_v51 = vadd.f32 %v7334_v21, %v7095_v49  ;;  %v7098_v63 = vadd.f32 %v16666_v8, %v20151_v4  ;;  %17003 = vmatprep.mubr.msk.f32.mxu0 %vm641_vm2, %v20432_v37  ;;  %17059 = vmatprep.mubr.msk.f32.mxu1 %vm641_vm2, %v20207_v34  ;;  %v14398_v4 = vld [vmem:[%s22330_s3 + $0x2a0] sm:$0xff]  ;;  %v20452_v34 = vld [vmem:[%s22330_s3 + $0x2d8] sm:$0xff] }
 0x343   : > { %v6954_v59 = vpop.f32.mrf.mxu0  ;;  %v7344_v62 = vpop.f32.mrf.mxu1  ;;  %17104 = vmatprep.subr.mxu0 %v14362_v48  ;;  %17158 = vmatprep.subr.mxu1 %v14399_v60 }
 0x344   : > { %v20441_v46 = vadd.f32 %v16722_v32, %v7098_v63  ;;  %v7097_v13 = vadd.f32 %v6954_v59, %v20166_v1  ;;  %17105 = vmatpush3.msra.mxu0 %v14362_v48  ;;  %17159 = vmatpush3.msra.mxu1 %v14399_v60  ;;  %v9084_v1 = vld [vmem:[#allocation2 + $0x1e0] sm:$0xff]  ;;  %v9475_v32 = vld [vmem:[#allocation2 + $0x1f1] sm:$0xff] }
 0x345   : > { %v16669_v30 = vpop.f32.mrf.mxu0  ;;  %v16725_v23 = vpop.f32.mrf.mxu1  ;;  %17004 = vmatmul.mubr.msk.f32.gmra.mxu0 %vm641_vm2, %v20444_v31  ;;  %17060 = vmatmul.mubr.msk.f32.gmra.mxu1 %vm641_vm2, %v20219_v5  ;;  %v20467_v5 = vld [vmem:[#allocation2 + $0x1f0] sm:$0xff] }
 0x346   : > { %v20458_v38 = vadd.f32 %v7344_v62, %v7097_v13  ;;  %v7100_v21 = vadd.f32 %v16669_v30, %v20174_v26  ;;  %17006 = vmatprep.mubr.msk.f32.mxu0 %vm641_vm2, %v9084_v1  ;;  %17062 = vmatprep.mubr.msk.f32.mxu1 %vm641_vm2, %v9474_v56  ;;  %v20472_v26 = vld [vmem:[%s22330_s3 + $0x2f8] sm:$0xff]  ;;  %v20477_v62 = vld [vmem:[#allocation2 + $0x200] sm:$0xff]  ;;  %v20490_v56 = vld [vmem:[#allocation2 + $0x210] sm:$0xff] }
 0x347   : > { %v6964_v49 = vpop.f32.mrf.mxu0  ;;  %v7354_v48 = vpop.f32.mrf.mxu1  ;;  %17160 = vmatprep.subr.mxu1 %v14398_v4  ;;  %17210 = vmatprep.subr.mxu0 %v20452_v34 }
 0x348   : > { %v20464_v60 = vadd.f32 %v16725_v23, %v7100_v21  ;;  %v7099_v8 = vadd.f32 %v6964_v49, %v20190_v45  ;;  %17161 = vmatpush3.msra.mxu1 %v14398_v4 }
 0x349   : > { %v16672_v63 = vpop.f32.mrf.mxu0  ;;  %v16728_v59 = vpop.f32.mrf.mxu1  ;;  %17007 = vmatmul.mubr.msk.f32.gmra.mxu0 %vm641_vm2, %v20467_v5  ;;  %17063 = vmatmul.mubr.msk.f32.gmra.mxu1 %vm641_vm2, %v9475_v32 }
 0x34a   : > { %v20479_v13 = vadd.f32 %v7354_v48, %v7099_v8  ;;  %v7102_v45 = vadd.f32 %v16672_v63, %v20198_v41  ;;  %17009 = vmatprep.mubr.msk.f32.mxu0 %vm641_vm2, %v20477_v62  ;;  %17065 = vmatprep.mubr.msk.f32.mxu1 %vm641_vm2, %v20236_v20  ;;  %v20496_v41 = vld [vmem:[#allocation2 + $0x220] sm:$0xff]  ;;  %v22492_v48 = vld [vmem:[#allocation25_spill] sm:$0xff] }
 0x34b   : > { %v6974_v4 = vpop.f32.mrf.mxu0  ;;  %v7364_v30 = vpop.f32.mrf.mxu1  ;;  %17266 = vmatprep.subr.mxu1 %v20472_v26 }
 0x34c   : > { %v20487_v23 = vadd.f32 %v16728_v59, %v7102_v45  ;;  %v7101_v1 = vadd.f32 %v6974_v4, %v20209_v44  ;;  %v20508_v45 = vld [vmem:[#allocation2 + $0x230] sm:$0xff] }
 0x34d   : > { %v16675_v21 = vpop.f32.mrf.mxu0  ;;  %v16731_v49 = vpop.f32.mrf.mxu1  ;;  %17010 = vmatmul.mubr.msk.f32.gmra.mxu0 %vm641_vm2, %v20490_v56  ;;  %17066 = vmatmul.mubr.msk.f32.gmra.mxu1 %vm641_vm2, %v20248_v42 }
 0x34e   : > { %v20498_v20 = vadd.f32 %v7364_v30, %v7101_v1  ;;  %v7104_v8 = vadd.f32 %v16675_v21, %v22492_v48  ;;  %17012 = vmatprep.mubr.msk.f32.mxu0 %vm641_vm2, %v20496_v41  ;;  %17068 = vmatprep.mubr.msk.f32.mxu1 %vm641_vm2, %v20254_v54  ;;  %v20514_v30 = vld [vmem:[#allocation2 + $0x240] sm:$0xff] }
 0x34f   : > { %v6984_v44 = vpop.f32.mrf.mxu0  ;;  %v7374_v32 = vpop.f32.mrf.mxu1  ;;  %22493 = vst [vmem:[#allocation23_spill] sm:$0xff] %v20514_v30 }
 0x350   : > { %v20505_v63 = vadd.f32 %v16731_v49, %v7104_v8  ;;  %v7103_v59 = vadd.f32 %v6984_v44, %v20225_v16  ;;  %v20526_v8 = vld [vmem:[#allocation2 + $0x250] sm:$0xff] }
 0x351   : > { %v16678_v42 = vpop.f32.mrf.mxu0  ;;  %v16734_v4 = vpop.f32.mrf.mxu1  ;;  %17013 = vmatmul.mubr.msk.f32.gmra.mxu0 %vm641_vm2, %v20508_v45  ;;  %17069 = vmatmul.mubr.msk.f32.gmra.mxu1 %vm641_vm2, %v20266_v3  ;;  %22495 = vst [vmem:[#allocation5_spill] sm:$0xff] %v20526_v8 }
 0x352   : > { %v20516_v1 = vadd.f32 %v7374_v32, %v7103_v59  ;;  %v7106_v54 = vadd.f32 %v16678_v42, %v20231_v57  ;;  %17015 = vmatprep.mubr.msk.f32.mxu0 %vm641_vm2, %v20514_v30  ;;  %17071 = vmatprep.mubr.msk.f32.mxu1 %vm641_vm2, %v20272_v12  ;;  %v9092_v57 = vld [vmem:[#allocation2 + $0x280] sm:$0xff]  ;;  %v22496_v12 = vld [vmem:[#allocation26_spill] sm:$0xff] }
 0x353   : > { %v6994_v16 = vpop.f32.mrf.mxu0  ;;  %v7384_v21 = vpop.f32.mrf.mxu1  ;;  %v9482_v32 = vld [vmem:[#allocation2 + $0x281] sm:$0xff] }
 0x354   : > { %v20523_v49 = vadd.f32 %v16734_v4, %v7106_v54  ;;  %v7105_v48 = vadd.f32 %v6994_v16, %v20238_v50 }
 0x355   : > { %v16681_v3 = vpop.f32.mrf.mxu0  ;;  %v16737_v44 = vpop.f32.mrf.mxu1  ;;  %17016 = vmatmul.mubr.msk.f32.gmra.mxu0 %vm641_vm2, %v20526_v8  ;;  %17072 = vmatmul.mubr.msk.f32.gmra.mxu1 %vm641_vm2, %v20284_v33  ;;  %v20540_v8 = vld [vmem:[#allocation2 + $0x290] sm:$0xff] }
 0x356   : > { %22494 = vst [vmem:[#allocation3_spill] sm:$0xff] %v20523_v49  ;;  %v20532_v59 = vadd.f32 %v7384_v21, %v7105_v48  ;;  %v7108_v42 = vadd.f32 %v16681_v3, %v22496_v12  ;;  %17018 = vmatprep.mubr.msk.f32.mxu0 %vm641_vm2, %v9092_v57  ;;  %17074 = vmatprep.mubr.msk.f32.mxu1 %vm641_vm2, %v9482_v32  ;;  %v9483_v49 = vld [vmem:[#allocation2 + $0x291] sm:$0xff]  ;;  %v20545_v21 = vld [vmem:[#allocation2 + $0x2a0] sm:$0xff] }
 0x357   : > { %v7004_v50 = vpop.f32.mrf.mxu0  ;;  %v7394_v4 = vpop.f32.mrf.mxu1  ;;  %v22497_v32 = vld [vmem:[#allocation22_spill] sm:$0xff] }
 0x358   : > { %v20537_v54 = vadd.f32 %v16737_v44, %v7108_v42  ;;  %v7107_v16 = vadd.f32 %v7004_v50, %v20256_v9  ;;  %v20557_v42 = vld [vmem:[#allocation2 + $0x2b0] sm:$0xff] }
 0x359   : > { %v16684_v33 = vpop.f32.mrf.mxu0  ;;  %v16740_v30 = vpop.f32.mrf.mxu1  ;;  %17019 = vmatmul.mubr.msk.f32.gmra.mxu0 %vm641_vm2, %v20540_v8  ;;  %17075 = vmatmul.mubr.msk.f32.gmra.mxu1 %vm641_vm2, %v9483_v49  ;;  %22498 = vst [vmem:[#allocation6_spill] sm:$0xff] %v20557_v42 }
 0x35a   : > { %v20547_v48 = vadd.f32 %v7394_v4, %v7107_v16  ;;  %v7110_v3 = vadd.f32 %v16684_v33, %v20263_v11  ;;  %17021 = vmatprep.mubr.msk.f32.mxu0 %vm641_vm2, %v20545_v21  ;;  %17077 = vmatprep.mubr.msk.f32.mxu1 %vm641_vm2, %v20301_v7  ;;  %v20563_v11 = vld [vmem:[#allocation2 + $0x2c0] sm:$0xff]  ;;  %v22499_v7 = vld [vmem:[#allocation4_spill] sm:$0xff] }
 0x35b   : > { %v7014_v9 = vpop.f32.mrf.mxu0  ;;  %v7404_v44 = vpop.f32.mrf.mxu1 }
 0x35c   : > { %v20554_v57 = vadd.f32 %v16740_v30, %v7110_v3  ;;  %v7109_v12 = vadd.f32 %v7014_v9, %v22497_v32  ;;  %v20575_v32 = vld [vmem:[#allocation2 + $0x2d0] sm:$0xff] }
 0x35d   : > { %v16687_v49 = vpop.f32.mrf.mxu0  ;;  %v16743_v50 = vpop.f32.mrf.mxu1  ;;  %17022 = vmatmul.mubr.msk.f32.gmra.mxu0 %vm641_vm2, %v20557_v42  ;;  %17078 = vmatmul.mubr.msk.f32.gmra.mxu1 %vm641_vm2, %v20313_v39 }
 0x35e   : > { %v20565_v4 = vadd.f32 %v7404_v44, %v7109_v12  ;;  %v7112_v16 = vadd.f32 %v16687_v49, %v22499_v7  ;;  %17024 = vmatprep.mubr.msk.f32.mxu0 %vm641_vm2, %v20563_v11  ;;  %17080 = vmatprep.mubr.msk.f32.mxu1 %vm641_vm2, %v20319_v0  ;;  %v20581_v44 = vld [vmem:[#allocation2 + $0x2e0] sm:$0xff] }
 0x35f   : > { %v7024_v30 = vpop.f32.mrf.mxu0  ;;  %v7414_v33 = vpop.f32.mrf.mxu1 }
 0x360   : > { %v20572_v3 = vadd.f32 %v16743_v50, %v7112_v16  ;;  %v7111_v9 = vadd.f32 %v7024_v30, %v20290_v25  ;;  %v20593_v16 = vld [vmem:[#allocation2 + $0x2f0] sm:$0xff] }
 0x361   : > { %v16690_v39 = vpop.f32.mrf.mxu0  ;;  %v16746_v42 = vpop.f32.mrf.mxu1  ;;  %17025 = vmatmul.mubr.msk.f32.gmra.mxu0 %vm641_vm2, %v20575_v32  ;;  %17081 = vmatmul.mubr.msk.f32.gmra.mxu1 %vm641_vm2, %v20331_v14  ;;  %22501 = vst [vmem:[#allocation8_spill] sm:$0xff] %v20593_v16 }
 0x362   : > { %v20583_v12 = vadd.f32 %v7414_v33, %v7111_v9  ;;  %v7114_v0 = vadd.f32 %v16690_v39, %v20296_v15  ;;  %17027 = vmatprep.mubr.msk.f32.mxu0 %vm641_vm2, %v20581_v44  ;;  %17083 = vmatprep.mubr.msk.f32.mxu1 %vm641_vm2, %v20337_v17  ;;  %v9100_v15 = vld [vmem:[#allocation2 + $0x320] sm:$0xff] }
 0x363   : > { %v7034_v25 = vpop.f32.mrf.mxu0  ;;  %v7424_v49 = vpop.f32.mrf.mxu1  ;;  %v9490_v33 = vld [vmem:[#allocation2 + $0x321] sm:$0xff] }
 0x364   : > { %v20590_v50 = vadd.f32 %v16746_v42, %v7114_v0  ;;  %v7113_v7 = vadd.f32 %v7034_v25, %v20303_v43  ;;  %v20607_v25 = vld [vmem:[#allocation2 + $0x330] sm:$0xff] }
 0x365   : > { %v16693_v14 = vpop.f32.mrf.mxu0  ;;  %v16749_v30 = vpop.f32.mrf.mxu1  ;;  %17028 = vmatmul.mubr.msk.f32.gmra.mxu0 %vm641_vm2, %v20593_v16  ;;  %17084 = vmatmul.mubr.msk.f32.gmra.mxu1 %vm641_vm2, %v20349_v53  ;;  %22502 = vst [vmem:[#allocation9_spill] sm:$0xff] %v20607_v25  ;;  %v9491_v16 = vld [vmem:[#allocation2 + $0x331] sm:$0xff] }
 0x366   : > { %22500 = vst [vmem:[#allocation7_spill] sm:$0xff] %v20590_v50  ;;  %v20599_v9 = vadd.f32 %v7424_v49, %v7113_v7  ;;  %v7116_v17 = vadd.f32 %v16693_v14, %v20310_v10  ;;  %17030 = vmatprep.mubr.msk.f32.mxu0 %vm641_vm2, %v9100_v15  ;;  %17086 = vmatprep.mubr.msk.f32.mxu1 %vm641_vm2, %v9490_v33  ;;  %v20612_v10 = vld [vmem:[#allocation2 + $0x340] sm:$0xff] }
 0x367   : > { %v7044_v43 = vpop.f32.mrf.mxu0  ;;  %v7434_v42 = vpop.f32.mrf.mxu1  ;;  %v9492_v49 = vld [vmem:[#allocation2 + $0x341] sm:$0xff] }
 0x368   : > { %v20604_v39 = vadd.f32 %v16749_v30, %v7116_v17  ;;  %v7115_v0 = vadd.f32 %v7044_v43, %v20321_v35  ;;  %v20623_v17 = vld [vmem:[#allocation2 + $0x350] sm:$0xff] }
 0x369   : > { %v16696_v53 = vpop.f32.mrf.mxu0  ;;  %v16752_v50 = vpop.f32.mrf.mxu1  ;;  %17031 = vmatmul.mubr.msk.f32.gmra.mxu0 %vm641_vm2, %v20607_v25  ;;  %17087 = vmatmul.mubr.msk.f32.gmra.mxu1 %vm641_vm2, %v9491_v16  ;;  %22504 = vst [vmem:[#allocation11_spill] sm:$0xff] %v20623_v17  ;;  %v9493_v16 = vld [vmem:[#allocation2 + $0x351] sm:$0xff] }
 0x36a   : > { %v20614_v7 = vadd.f32 %v7434_v42, %v7115_v0  ;;  %v7118_v14 = vadd.f32 %v16696_v53, %v20328_v18  ;;  %17033 = vmatprep.mubr.msk.f32.mxu0 %vm641_vm2, %v20612_v10  ;;  %17089 = vmatprep.mubr.msk.f32.mxu1 %vm641_vm2, %v9492_v49  ;;  %v20628_v18 = vld [vmem:[#allocation2 + $0x360] sm:$0xff] }
 0x36b   : > { %v7054_v35 = vpop.f32.mrf.mxu0  ;;  %v7444_v30 = vpop.f32.mrf.mxu1  ;;  %v9494_v42 = vld [vmem:[#allocation2 + $0x361] sm:$0xff] }
 0x36c   : > { %v20620_v15 = vadd.f32 %v16752_v50, %v7118_v14  ;;  %v7117_v33 = vadd.f32 %v7054_v35, %v20339_v19  ;;  %v20639_v35 = vld [vmem:[#allocation2 + $0x370] sm:$0xff] }
 0x36d   : > { %v16699_v43 = vpop.f32.mrf.mxu0  ;;  %v16755_v25 = vpop.f32.mrf.mxu1  ;;  %17034 = vmatmul.mubr.msk.f32.gmra.mxu0 %vm641_vm2, %v20623_v17  ;;  %17090 = vmatmul.mubr.msk.f32.gmra.mxu1 %vm641_vm2, %v9493_v16  ;;  %22506 = vst [vmem:[#allocation12_spill] sm:$0xff] %v20639_v35  ;;  %v9495_v16 = vld [vmem:[#allocation2 + $0x371] sm:$0xff] }
 0x36e   : > { %22503 = vst [vmem:[#allocation10_spill] sm:$0xff] %v20620_v15  ;;  %v20630_v0 = vadd.f32 %v7444_v30, %v7117_v33  ;;  %v7120_v50 = vadd.f32 %v16699_v43, %v20346_v24  ;;  %17036 = vmatprep.mubr.msk.f32.mxu0 %vm641_vm2, %v20628_v18  ;;  %17092 = vmatprep.mubr.msk.f32.mxu1 %vm641_vm2, %v9494_v42  ;;  %v20644_v24 = vld [vmem:[#allocation2 + $0x380] sm:$0xff] }
 0x36f   : > { %v7064_v19 = vpop.f32.mrf.mxu0  ;;  %v7454_v53 = vpop.f32.mrf.mxu1  ;;  %v9496_v30 = vld [vmem:[#allocation2 + $0x381] sm:$0xff] }
 0x370   : > { %v20636_v49 = vadd.f32 %v16755_v25, %v7120_v50  ;;  %v7119_v14 = vadd.f32 %v7064_v19, %v20355_v6  ;;  %v20655_v19 = vld [vmem:[#allocation2 + $0x390] sm:$0xff] }
 0x371   : > { %v16702_v17 = vpop.f32.mrf.mxu0  ;;  %v16758_v15 = vpop.f32.mrf.mxu1  ;;  %17037 = vmatmul.mubr.msk.f32.gmra.mxu0 %vm641_vm2, %v20639_v35  ;;  %17093 = vmatmul.mubr.msk.f32.gmra.mxu1 %vm641_vm2, %v9495_v16  ;;  %v9497_v16 = vld [vmem:[#allocation2 + $0x391] sm:$0xff] }
 0x372   : > { %22505 = vst [vmem:[#allocation13_spill] sm:$0xff] %v20636_v49  ;;  %v20646_v33 = vadd.f32 %v7454_v53, %v7119_v14  ;;  %v7122_v25 = vadd.f32 %v16702_v17, %v20361_v27  ;;  %17039 = vmatprep.mubr.msk.f32.mxu0 %vm641_vm2, %v20644_v24  ;;  %17095 = vmatprep.mubr.msk.f32.mxu1 %vm641_vm2, %v9496_v30  ;;  %v9856_v27 = vld [vmem:[#allocation2 + $0x142] sm:$0xff] }
 0x373   : > { %v7074_v6 = vpop.f32.mrf.mxu0  ;;  %v7464_v43 = vpop.f32.mrf.mxu1 }
 0x374   : > { %v20652_v42 = vadd.f32 %v16758_v15, %v7122_v25  ;;  %v7121_v50 = vadd.f32 %v7074_v6, %v20366_v29  ;;  %v20669_v25 = vld [vmem:[#allocation2 + $0x152] sm:$0xff] }
 0x375   : > { %v16705_v35 = vpop.f32.mrf.mxu0  ;;  %v16761_v49 = vpop.f32.mrf.mxu1  ;;  %17040 = vmatmul.mubr.msk.f32.gmra.mxu0 %vm641_vm2, %v20655_v19  ;;  %17096 = vmatmul.mubr.msk.f32.gmra.mxu1 %vm641_vm2, %v9497_v16  ;;  %v14436_v6 = vld [vmem:[%s22330_s3 + $0x2d0] sm:$0xff] }
 0x376   : > { %v20660_v17 = vadd.f32 %v7464_v43, %v7121_v50  ;;  %v7124_v53 = vadd.f32 %v16705_v35, %v20371_v22  ;;  %17106 = vmatprep.mubr.msk.f32.mxu0 %vm641_vm2, %v9856_v27  ;;  %17162 = vmatprep.mubr.msk.f32.mxu1 %vm641_vm2, %v20374_v28  ;;  %v20678_v22 = vld [vmem:[#allocation2 + $0x162] sm:$0xff]  ;;  %v20691_v27 = vld [vmem:[#allocation2 + $0x172] sm:$0xff] }
 0x377   : > { %v7084_v29 = vpop.f32.mrf.mxu0  ;;  %v7474_v15 = vpop.f32.mrf.mxu1 }
 0x378   : > { %v20666_v14 = vadd.f32 %v16761_v49, %v7124_v53  ;;  %v7123_v30 = vadd.f32 %v7084_v29, %v20384_v2 }
 0x379   : > { %v16772_v43 = vpop.f32.mrf.mxu0  ;;  %v16828_v50 = vpop.f32.mrf.mxu1  ;;  %17107 = vmatmul.mubr.msk.f32.vlgmr.msra.gmra.mxu0 %vm641_vm2, %v20669_v25  ;;  %17163 = vmatmul.mubr.msk.f32.vlgmr.msra.gmra.mxu1 %vm641_vm2, %v20382_v40 }
 0x37a   : > { %v20680_v28 = vadd.f32 %v7474_v15, %v7123_v30  ;;  %v7874_v2 = vadd.f32 %v16772_v43, %v20392_v36  ;;  %17211 = vmatpush3.msra.mxu0 %v20452_v34  ;;  %17109 = vmatprep.mubr.msk.f32.mxu0 %vm641_vm2, %v20678_v22  ;;  %v14435_v36 = vld [vmem:[%s22330_s3 + $0x2c8] sm:$0xff]  ;;  %v20716_v43 = vld [vmem:[#allocation2 + $0x192] sm:$0xff] }
 0x37b   : > { %17165 = vmatprep.mubr.msk.f32.mxu1 %vm641_vm2, %v20395_v55  ;;  %v7714_v49 = vpop.f32.mrf.mxu0  ;;  %v8105_v35 = vpop.f32.mrf.mxu1  ;;  %17212 = vmatprep.subr.mxu0 %v14436_v6  ;;  %v14472_v55 = vld [vmem:[%s22330_s3 + $0x2f0] sm:$0xff] }
 0x37c   : > { %v20688_v16 = vadd.f32 %v16828_v50, %v7874_v2  ;;  %v7873_v40 = vadd.f32 %v7714_v49, %v20410_v58  ;;  %17213 = vmatpush3.msra.mxu0 %v14436_v6  ;;  %17267 = vmatpush3.msra.mxu1 %v20472_v26  ;;  %v20704_v58 = vld [vmem:[#allocation2 + $0x182] sm:$0xff] }
 0x37d   : > { %v16775_v34 = vpop.f32.mrf.mxu0  ;;  %v16831_v53 = vpop.f32.mrf.mxu1  ;;  %17110 = vmatmul.mubr.msk.f32.gmra.mxu0 %vm641_vm2, %v20691_v27  ;;  %17166 = vmatmul.mubr.msk.f32.gmra.mxu1 %vm641_vm2, %v20408_v61 }
 0x37e   : > { %v20706_v29 = vadd.f32 %v8105_v35, %v7873_v40  ;;  %v7876_v15 = vadd.f32 %v16775_v34, %v20417_v52  ;;  %17112 = vmatprep.mubr.msk.f32.mxu0 %vm641_vm2, %v20704_v58  ;;  %17168 = vmatprep.mubr.msk.f32.mxu1 %vm641_vm2, %v20420_v47  ;;  %v14434_v52 = vld [vmem:[%s22330_s3 + $0x2c0] sm:$0xff]  ;;  %v14471_v47 = vld [vmem:[%s22330_s3 + $0x2e8] sm:$0xff] }
 0x37f   : > { %v7724_v26 = vpop.f32.mrf.mxu0  ;;  %v8115_v30 = vpop.f32.mrf.mxu1  ;;  %17214 = vmatprep.subr.mxu0 %v14435_v36  ;;  %17268 = vmatprep.subr.mxu1 %v14472_v55 }
 0x380   : > { %v20713_v6 = vadd.f32 %v16831_v53, %v7876_v15  ;;  %v7875_v61 = vadd.f32 %v7724_v26, %v20434_v51  ;;  %17215 = vmatpush3.msra.mxu0 %v14435_v36  ;;  %17269 = vmatpush3.msra.mxu1 %v14472_v55  ;;  %v20728_v51 = vld [vmem:[#allocation2 + $0x1a2] sm:$0xff]  ;;  %v20737_v55 = vld [vmem:[#allocation2 + $0x1b2] sm:$0xff] }
 0x381   : > { %v16778_v50 = vpop.f32.mrf.mxu0  ;;  %v16834_v2 = vpop.f32.mrf.mxu1  ;;  %17113 = vmatmul.mubr.msk.f32.gmra.mxu0 %vm641_vm2, %v20716_v43  ;;  %17169 = vmatmul.mubr.msk.f32.gmra.mxu1 %vm641_vm2, %v20432_v37  ;;  %v10254_v53 = vld [vmem:[#allocation2 + $0x1c0] sm:$0xff] }
 0x382   : > { %v20730_v49 = vadd.f32 %v8115_v30, %v7875_v61  ;;  %v7878_v35 = vadd.f32 %v16778_v50, %v20441_v46  ;;  %17115 = vmatprep.mubr.msk.f32.mxu0 %vm641_vm2, %v20728_v51  ;;  %17171 = vmatprep.mubr.msk.f32.mxu1 %vm641_vm2, %v20444_v31  ;;  %v14470_v46 = vld [vmem:[%s22330_s3 + $0x2e0] sm:$0xff]  ;;  %v20748_v31 = vld [vmem:[%s22330_s3 + $0x318] sm:$0xff] }
 0x383   : > { %v7734_v40 = vpop.f32.mrf.mxu0  ;;  %v8125_v36 = vpop.f32.mrf.mxu1  ;;  %17216 = vmatprep.subr.mxu0 %v14434_v52  ;;  %17270 = vmatprep.subr.mxu1 %v14471_v47 }
 0x384   : > { %v20739_v34 = vadd.f32 %v16834_v2, %v7878_v35  ;;  %v7877_v37 = vadd.f32 %v7734_v40, %v20458_v38  ;;  %17217 = vmatpush3.msra.mxu0 %v14434_v52  ;;  %17271 = vmatpush3.msra.mxu1 %v14471_v47  ;;  %v9864_v38 = vld [vmem:[#allocation2 + $0x1e2] sm:$0xff]  ;;  %v20763_v35 = vld [vmem:[#allocation2 + $0x1f2] sm:$0xff] }
 0x385   : > { %v16781_v15 = vpop.f32.mrf.mxu0  ;;  %v16837_v26 = vpop.f32.mrf.mxu1  ;;  %17116 = vmatmul.mubr.msk.f32.gmra.mxu0 %vm641_vm2, %v20737_v55  ;;  %17172 = vmatmul.mubr.msk.f32.gmra.mxu1 %vm641_vm2, %v10254_v53 }
 0x386   : > { %v20753_v30 = vadd.f32 %v8125_v36, %v7877_v37  ;;  %v7880_v61 = vadd.f32 %v16781_v15, %v20464_v60  ;;  %17118 = vmatprep.mubr.msk.f32.mxu0 %vm641_vm2, %v9864_v38  ;;  %17174 = vmatprep.mubr.msk.f32.mxu1 %vm641_vm2, %v20467_v5  ;;  %v20768_v60 = vld [vmem:[%s22330_s3 + $0x338] sm:$0xff]  ;;  %v20774_v5 = vld [vmem:[#allocation2 + $0x202] sm:$0xff] }
 0x387   : > { %v7744_v52 = vpop.f32.mrf.mxu0  ;;  %v8135_v47 = vpop.f32.mrf.mxu1  ;;  %17272 = vmatprep.subr.mxu1 %v14470_v46  ;;  %17322 = vmatprep.subr.mxu0 %v20748_v31 }
 0x388   : > { %v20760_v50 = vadd.f32 %v16837_v26, %v7880_v61  ;;  %v7879_v2 = vadd.f32 %v7744_v52, %v20479_v13  ;;  %17273 = vmatpush3.msra.mxu1 %v14470_v46  ;;  %v20787_v26 = vld [vmem:[#allocation2 + $0x212] sm:$0xff] }
 0x389   : > { %v16784_v40 = vpop.f32.mrf.mxu0  ;;  %v16840_v36 = vpop.f32.mrf.mxu1  ;;  %17119 = vmatmul.mubr.msk.f32.gmra.mxu0 %vm641_vm2, %v20763_v35  ;;  %17175 = vmatmul.mubr.msk.f32.gmra.mxu1 %vm641_vm2, %v20477_v62 }
 0x38a   : > { %v20776_v37 = vadd.f32 %v8135_v47, %v7879_v2  ;;  %v7882_v13 = vadd.f32 %v16784_v40, %v20487_v23  ;;  %17121 = vmatprep.mubr.msk.f32.mxu0 %vm641_vm2, %v20774_v5  ;;  %17177 = vmatprep.mubr.msk.f32.mxu1 %vm641_vm2, %v20490_v56  ;;  %v20793_v23 = vld [vmem:[#allocation2 + $0x222] sm:$0xff] }
 0x38b   : > { %v7754_v53 = vpop.f32.mrf.mxu0  ;;  %v8145_v46 = vpop.f32.mrf.mxu1  ;;  %17378 = vmatprep.subr.mxu1 %v20768_v60 }
 0x38c   : > { %v20784_v15 = vadd.f32 %v16840_v36, %v7882_v13  ;;  %v7881_v62 = vadd.f32 %v7754_v53, %v20498_v20  ;;  %v20805_v36 = vld [vmem:[#allocation2 + $0x232] sm:$0xff]  ;;  %v20811_v53 = vld [vmem:[#allocation2 + $0x242] sm:$0xff] }
 0x38d   : > { %v16787_v38 = vpop.f32.mrf.mxu0  ;;  %v16843_v61 = vpop.f32.mrf.mxu1  ;;  %17122 = vmatmul.mubr.msk.f32.gmra.mxu0 %vm641_vm2, %v20787_v26  ;;  %17178 = vmatmul.mubr.msk.f32.gmra.mxu1 %vm641_vm2, %v20496_v41  ;;  %22508 = vst [vmem:[#allocation15_spill] sm:$0xff] %v20805_v36 }
 0x38e   : > { %v20795_v56 = vadd.f32 %v8145_v46, %v7881_v62  ;;  %v7884_v52 = vadd.f32 %v16787_v38, %v20505_v63  ;;  %17124 = vmatprep.mubr.msk.f32.mxu0 %vm641_vm2, %v20793_v23  ;;  %17180 = vmatprep.mubr.msk.f32.mxu1 %vm641_vm2, %v20508_v45  ;;  %v22509_v63 = vld [vmem:[#allocation23_spill] sm:$0xff] }
 0x38f   : > { %v7764_v20 = vpop.f32.mrf.mxu0  ;;  %v8155_v47 = vpop.f32.mrf.mxu1  ;;  %v22510_v45 = vld [vmem:[#allocation3_spill] sm:$0xff] }
 0x390   : > { %v20802_v2 = vadd.f32 %v16843_v61, %v7884_v52  ;;  %v7883_v40 = vadd.f32 %v7764_v20, %v20516_v1  ;;  %v22511_v1 = vld [vmem:[#allocation5_spill] sm:$0xff] }
 0x391   : > { %v16790_v41 = vpop.f32.mrf.mxu0  ;;  %v16846_v13 = vpop.f32.mrf.mxu1  ;;  %17125 = vmatmul.mubr.msk.f32.gmra.mxu0 %vm641_vm2, %v20805_v36  ;;  %17181 = vmatmul.mubr.msk.f32.gmra.mxu1 %vm641_vm2, %v22509_v63  ;;  %v20823_v36 = vld [vmem:[#allocation2 + $0x252] sm:$0xff]  ;;  %v10262_v63 = vld [vmem:[#allocation2 + $0x260] sm:$0xff] }
 0x392   : > { %22507 = vst [vmem:[#allocation14_spill] sm:$0xff] %v20802_v2  ;;  %v20813_v46 = vadd.f32 %v8155_v47, %v7883_v40  ;;  %v7886_v62 = vadd.f32 %v16790_v41, %v22510_v45  ;;  %17127 = vmatprep.mubr.msk.f32.mxu0 %vm641_vm2, %v20811_v53  ;;  %17183 = vmatprep.mubr.msk.f32.mxu1 %vm641_vm2, %v22511_v1  ;;  %22512 = vst [vmem:[#allocation16_spill] sm:$0xff] %v20823_v36  ;;  %v9872_v40 = vld [vmem:[#allocation2 + $0x282] sm:$0xff] }
 0x393   : > { %v7774_v38 = vpop.f32.mrf.mxu0  ;;  %v8165_v61 = vpop.f32.mrf.mxu1 }
 0x394   : > { %v20820_v52 = vadd.f32 %v16846_v13, %v7886_v62  ;;  %v7885_v20 = vadd.f32 %v7774_v38, %v20532_v59  ;;  %v20837_v38 = vld [vmem:[#allocation2 + $0x292] sm:$0xff] }
 0x395   : > { %v16793_v2 = vpop.f32.mrf.mxu0  ;;  %v16849_v47 = vpop.f32.mrf.mxu1  ;;  %17128 = vmatmul.mubr.msk.f32.gmra.mxu0 %vm641_vm2, %v20823_v36  ;;  %17184 = vmatmul.mubr.msk.f32.gmra.mxu1 %vm641_vm2, %v10262_v63 }
 0x396   : > { %v20828_v41 = vadd.f32 %v8165_v61, %v7885_v20  ;;  %v7888_v45 = vadd.f32 %v16793_v2, %v20537_v54  ;;  %17130 = vmatprep.mubr.msk.f32.mxu0 %vm641_vm2, %v9872_v40  ;;  %17186 = vmatprep.mubr.msk.f32.mxu1 %vm641_vm2, %v20540_v8  ;;  %v20843_v54 = vld [vmem:[#allocation2 + $0x2a2] sm:$0xff] }
 0x397   : > { %v7784_v59 = vpop.f32.mrf.mxu0  ;;  %v8175_v13 = vpop.f32.mrf.mxu1 }
 0x398   : > { %v20834_v62 = vadd.f32 %v16849_v47, %v7888_v45  ;;  %v7887_v1 = vadd.f32 %v7784_v59, %v20547_v48  ;;  %v22513_v48 = vld [vmem:[#allocation6_spill] sm:$0xff] }
 0x399   : > { %v16796_v36 = vpop.f32.mrf.mxu0  ;;  %v16852_v63 = vpop.f32.mrf.mxu1  ;;  %17131 = vmatmul.mubr.msk.f32.gmra.mxu0 %vm641_vm2, %v20837_v38  ;;  %17187 = vmatmul.mubr.msk.f32.gmra.mxu1 %vm641_vm2, %v20545_v21  ;;  %v20855_v45 = vld [vmem:[#allocation2 + $0x2b2] sm:$0xff] }
 0x39a   : > { %v20845_v2 = vadd.f32 %v8175_v13, %v7887_v1  ;;  %v7890_v8 = vadd.f32 %v16796_v36, %v20554_v57  ;;  %17133 = vmatprep.mubr.msk.f32.mxu0 %vm641_vm2, %v20843_v54  ;;  %17189 = vmatprep.mubr.msk.f32.mxu1 %vm641_vm2, %v22513_v48  ;;  %v20861_v57 = vld [vmem:[#allocation2 + $0x2c2] sm:$0xff]  ;;  %v20873_v48 = vld [vmem:[#allocation2 + $0x2d2] sm:$0xff] }
 0x39b   : > { %v7794_v61 = vpop.f32.mrf.mxu0  ;;  %v8185_v20 = vpop.f32.mrf.mxu1  ;;  %22515 = vst [vmem:[#allocation18_spill] sm:$0xff] %v20873_v48 }
 0x39c   : > { %v20852_v47 = vadd.f32 %v16852_v63, %v7890_v8  ;;  %v7889_v40 = vadd.f32 %v7794_v61, %v20565_v4 }
 0x39d   : > { %v16799_v21 = vpop.f32.mrf.mxu0  ;;  %v16855_v59 = vpop.f32.mrf.mxu1  ;;  %17134 = vmatmul.mubr.msk.f32.gmra.mxu0 %vm641_vm2, %v20855_v45  ;;  %17190 = vmatmul.mubr.msk.f32.gmra.mxu1 %vm641_vm2, %v20563_v11 }
 0x39e   : > { %v20863_v36 = vadd.f32 %v8185_v20, %v7889_v40  ;;  %v7892_v13 = vadd.f32 %v16799_v21, %v20572_v3  ;;  %17136 = vmatprep.mubr.msk.f32.mxu0 %vm641_vm2, %v20861_v57  ;;  %17192 = vmatprep.mubr.msk.f32.mxu1 %vm641_vm2, %v20575_v32  ;;  %v20879_v3 = vld [vmem:[#allocation2 + $0x2e2] sm:$0xff] }
 0x39f   : > { %v7804_v4 = vpop.f32.mrf.mxu0  ;;  %v8195_v1 = vpop.f32.mrf.mxu1  ;;  %v22516_v32 = vld [vmem:[#allocation7_spill] sm:$0xff] }
 0x3a0   : > { %v20870_v63 = vadd.f32 %v16855_v59, %v7892_v13  ;;  %v7891_v8 = vadd.f32 %v7804_v4, %v20583_v12  ;;  %v22517_v12 = vld [vmem:[#allocation8_spill] sm:$0xff] }
 0x3a1   : > { %v16802_v11 = vpop.f32.mrf.mxu0  ;;  %v16858_v61 = vpop.f32.mrf.mxu1  ;;  %17137 = vmatmul.mubr.msk.f32.gmra.mxu0 %vm641_vm2, %v20873_v48  ;;  %17193 = vmatmul.mubr.msk.f32.gmra.mxu1 %vm641_vm2, %v20581_v44  ;;  %v20891_v48 = vld [vmem:[#allocation2 + $0x2f2] sm:$0xff]  ;;  %v10270_v44 = vld [vmem:[#allocation2 + $0x300] sm:$0xff] }
 0x3a2   : > { %22514 = vst [vmem:[#allocation17_spill] sm:$0xff] %v20870_v63  ;;  %v20881_v20 = vadd.f32 %v8195_v1, %v7891_v8  ;;  %v7894_v40 = vadd.f32 %v16802_v11, %v22516_v32  ;;  %17139 = vmatprep.mubr.msk.f32.mxu0 %vm641_vm2, %v20879_v3  ;;  %17195 = vmatprep.mubr.msk.f32.mxu1 %vm641_vm2, %v22517_v12  ;;  %22519 = vst [vmem:[#allocation20_spill] sm:$0xff] %v20891_v48  ;;  %v9880_v8 = vld [vmem:[#allocation2 + $0x322] sm:$0xff] }
 0x3a3   : > { %v7814_v21 = vpop.f32.mrf.mxu0  ;;  %v8205_v59 = vpop.f32.mrf.mxu1 }
 0x3a4   : > { %v20888_v13 = vadd.f32 %v16858_v61, %v7894_v40  ;;  %v7893_v4 = vadd.f32 %v7814_v21, %v20599_v9  ;;  %v22520_v61 = vld [vmem:[#allocation9_spill] sm:$0xff] }
 0x3a5   : > { %v16805_v63 = vpop.f32.mrf.mxu0  ;;  %v16861_v1 = vpop.f32.mrf.mxu1  ;;  %17140 = vmatmul.mubr.msk.f32.gmra.mxu0 %vm641_vm2, %v20891_v48  ;;  %17196 = vmatmul.mubr.msk.f32.gmra.mxu1 %vm641_vm2, %v10270_v44 }
 0x3a6   : > { %22518 = vst [vmem:[#allocation19_spill] sm:$0xff] %v20888_v13  ;;  %v20896_v11 = vadd.f32 %v8205_v59, %v7893_v4  ;;  %v7896_v32 = vadd.f32 %v16805_v63, %v20604_v39  ;;  %17142 = vmatprep.mubr.msk.f32.mxu0 %vm641_vm2, %v9880_v8  ;;  %17198 = vmatprep.mubr.msk.f32.mxu1 %vm641_vm2, %v22520_v61  ;;  %v20905_v13 = vld [vmem:[#allocation2 + $0x332] sm:$0xff]  ;;  %v20911_v39 = vld [vmem:[#allocation2 + $0x342] sm:$0xff] }
 0x3a7   : > { %v7824_v9 = vpop.f32.mrf.mxu0  ;;  %v8215_v40 = vpop.f32.mrf.mxu1  ;;  %22521 = vst [vmem:[#allocation21_spill] sm:$0xff] %v20905_v13  ;;  %v22522_v59 = vld [vmem:[#allocation10_spill] sm:$0xff] }
 0x3a8   : > { %v20902_v12 = vadd.f32 %v16861_v1, %v7896_v32  ;;  %v7895_v21 = vadd.f32 %v7824_v9, %v20614_v7  ;;  %v22523_v7 = vld [vmem:[#allocation11_spill] sm:$0xff]  ;;  %v20923_v9 = vld [vmem:[#allocation2 + $0x352] sm:$0xff] }
 0x3a9   : > { %v16808_v48 = vpop.f32.mrf.mxu0  ;;  %v16864_v44 = vpop.f32.mrf.mxu1  ;;  %17143 = vmatmul.mubr.msk.f32.gmra.mxu0 %vm641_vm2, %v20905_v13  ;;  %17199 = vmatmul.mubr.msk.f32.gmra.mxu1 %vm641_vm2, %v20612_v10  ;;  %22525 = vst [vmem:[#allocation25_spill] sm:$0xff] %v20923_v9 }
 0x3aa   : > { %v20913_v63 = vadd.f32 %v8215_v40, %v7895_v21  ;;  %v7898_v4 = vadd.f32 %v16808_v48, %v22522_v59  ;;  %17145 = vmatprep.mubr.msk.f32.mxu0 %vm641_vm2, %v20911_v39  ;;  %17201 = vmatprep.mubr.msk.f32.mxu1 %vm641_vm2, %v22523_v7  ;;  %v20929_v48 = vld [vmem:[#allocation2 + $0x362] sm:$0xff]  ;;  %v22526_v21 = vld [vmem:[#allocation13_spill] sm:$0xff] }
 0x3ab   : > { %v7834_v1 = vpop.f32.mrf.mxu0  ;;  %v8225_v8 = vpop.f32.mrf.mxu1 }
 0x3ac   : > { %v20920_v32 = vadd.f32 %v16864_v44, %v7898_v4  ;;  %v7897_v61 = vadd.f32 %v7834_v1, %v20630_v0  ;;  %v22527_v0 = vld [vmem:[#allocation12_spill] sm:$0xff] }
 0x3ad   : > { %v16811_v10 = vpop.f32.mrf.mxu0  ;;  %v16867_v13 = vpop.f32.mrf.mxu1  ;;  %17146 = vmatmul.mubr.msk.f32.gmra.mxu0 %vm641_vm2, %v20923_v9  ;;  %17202 = vmatmul.mubr.msk.f32.gmra.mxu1 %vm641_vm2, %v20628_v18  ;;  %v20941_v9 = vld [vmem:[#allocation2 + $0x372] sm:$0xff] }
 0x3ae   : > { %22524 = vst [vmem:[#allocation24_spill] sm:$0xff] %v20920_v32  ;;  %v20931_v40 = vadd.f32 %v8225_v8, %v7897_v61  ;;  %v7900_v59 = vadd.f32 %v16811_v10, %v22526_v21  ;;  %17148 = vmatprep.mubr.msk.f32.mxu0 %vm641_vm2, %v20929_v48  ;;  %17204 = vmatprep.mubr.msk.f32.mxu1 %vm641_vm2, %v22527_v0  ;;  %v20947_v8 = vld [vmem:[#allocation2 + $0x382] sm:$0xff]  ;;  %v20959_v0 = vld [vmem:[#allocation2 + $0x392] sm:$0xff] }
 0x3af   : > { %v7844_v44 = vpop.f32.mrf.mxu0  ;;  %v8235_v4 = vpop.f32.mrf.mxu1 }
 0x3b0   : > { %v20938_v7 = vadd.f32 %v16867_v13, %v7900_v59  ;;  %v7899_v1 = vadd.f32 %v7844_v44, %v20646_v33 }
 0x3b1   : > { %v16814_v18 = vpop.f32.mrf.mxu0  ;;  %v16870_v32 = vpop.f32.mrf.mxu1  ;;  %17149 = vmatmul.mubr.msk.f32.gmra.mxu0 %vm641_vm2, %v20941_v9  ;;  %17205 = vmatmul.mubr.msk.f32.gmra.mxu1 %vm641_vm2, %v20644_v24  ;;  %v10278_v24 = vld [vmem:[#allocation2 + $0x3a0] sm:$0xff] }
 0x3b2   : > { %v20949_v61 = vadd.f32 %v8235_v4, %v7899_v1  ;;  %v7902_v10 = vadd.f32 %v16814_v18, %v20652_v42  ;;  %17151 = vmatprep.mubr.msk.f32.mxu0 %vm641_vm2, %v20947_v8  ;;  %17207 = vmatprep.mubr.msk.f32.mxu1 %vm641_vm2, %v20655_v19  ;;  %v10637_v42 = vld [vmem:[#allocation2 + $0x151] sm:$0xff] }
 0x3b3   : > { %v7854_v33 = vpop.f32.mrf.mxu0  ;;  %v8245_v13 = vpop.f32.mrf.mxu1 }
 0x3b4   : > { %v20956_v21 = vadd.f32 %v16870_v32, %v7902_v10  ;;  %v7901_v59 = vadd.f32 %v7854_v33, %v20660_v17  ;;  %v20973_v33 = vld [vmem:[#allocation2 + $0x161] sm:$0xff] }
 0x3b5   : > { %v16817_v44 = vpop.f32.mrf.mxu0  ;;  %v16873_v4 = vpop.f32.mrf.mxu1  ;;  %17152 = vmatmul.mubr.msk.f32.gmra.mxu0 %vm641_vm2, %v20959_v0  ;;  %17208 = vmatmul.mubr.msk.f32.gmra.mxu1 %vm641_vm2, %v10278_v24 }
 0x3b6   : > { %v20964_v1 = vadd.f32 %v8245_v13, %v7901_v59  ;;  %v7904_v19 = vadd.f32 %v16817_v44, %v20666_v14  ;;  %17218 = vmatprep.mubr.msk.f32.mxu0 %vm641_vm2, %v10637_v42  ;;  %17274 = vmatprep.mubr.msk.f32.mxu1 %vm641_vm2, %v20669_v25  ;;  %v14508_v13 = vld [vmem:[%s22330_s3 + $0x310] sm:$0xff] }
 0x3b7   : > { %v7864_v17 = vpop.f32.mrf.mxu0  ;;  %v8255_v32 = vpop.f32.mrf.mxu1  ;;  %v20982_v14 = vld [vmem:[#allocation2 + $0x171] sm:$0xff] }
 0x3b8   : > { %v20970_v18 = vadd.f32 %v16873_v4, %v7904_v19  ;;  %v7903_v10 = vadd.f32 %v7864_v17, %v20680_v28  ;;  %v20995_v19 = vld [vmem:[#allocation2 + $0x181] sm:$0xff] }
 0x3b9   : > { %v16884_v59 = vpop.f32.mrf.mxu0  ;;  %v16940_v24 = vpop.f32.mrf.mxu1  ;;  %17219 = vmatmul.mubr.msk.f32.vlgmr.msra.gmra.mxu0 %vm641_vm2, %v20973_v33  ;;  %17275 = vmatmul.mubr.msk.f32.vlgmr.msra.gmra.mxu1 %vm641_vm2, %v20678_v22 }
 0x3ba   : > { %v20984_v25 = vadd.f32 %v8255_v32, %v7903_v10  ;;  %v8655_v28 = vadd.f32 %v16884_v59, %v20688_v16  ;;  %17323 = vmatpush3.msra.mxu0 %v20748_v31  ;;  %17221 = vmatprep.mubr.msk.f32.mxu0 %vm641_vm2, %v20982_v14  ;;  %v14507_v16 = vld [vmem:[%s22330_s3 + $0x308] sm:$0xff] }
 0x3bb   : > { %17277 = vmatprep.mubr.msk.f32.mxu1 %vm641_vm2, %v20691_v27  ;;  %v8495_v44 = vpop.f32.mrf.mxu0  ;;  %v8885_v4 = vpop.f32.mrf.mxu1  ;;  %17324 = vmatprep.subr.mxu0 %v14508_v13  ;;  %v14544_v27 = vld [vmem:[%s22330_s3 + $0x330] sm:$0xff] }
 0x3bc   : > { %v20992_v42 = vadd.f32 %v16940_v24, %v8655_v28  ;;  %v8654_v22 = vadd.f32 %v8495_v44, %v20706_v29  ;;  %17325 = vmatpush3.msra.mxu0 %v14508_v13  ;;  %17379 = vmatpush3.msra.mxu1 %v20768_v60  ;;  %v21008_v29 = vld [vmem:[#allocation2 + $0x191] sm:$0xff]  ;;  %v21020_v24 = vld [vmem:[#allocation2 + $0x1a1] sm:$0xff] }
 0x3bd   : > { %v16887_v31 = vpop.f32.mrf.mxu0  ;;  %v16943_v17 = vpop.f32.mrf.mxu1  ;;  %17222 = vmatmul.mubr.msk.f32.gmra.mxu0 %vm641_vm2, %v20995_v19  ;;  %17278 = vmatmul.mubr.msk.f32.gmra.mxu1 %vm641_vm2, %v20704_v58 }
 0x3be   : > { %v21010_v32 = vadd.f32 %v8885_v4, %v8654_v22  ;;  %v8657_v10 = vadd.f32 %v16887_v31, %v20713_v6  ;;  %17224 = vmatprep.mubr.msk.f32.mxu0 %vm641_vm2, %v21008_v29  ;;  %17280 = vmatprep.mubr.msk.f32.mxu1 %vm641_vm2, %v20716_v43  ;;  %v14506_v6 = vld [vmem:[%s22330_s3 + $0x300] sm:$0xff]  ;;  %v14543_v43 = vld [vmem:[%s22330_s3 + $0x328] sm:$0xff] }
 0x3bf   : > { %v8505_v60 = vpop.f32.mrf.mxu0  ;;  %v8895_v13 = vpop.f32.mrf.mxu1  ;;  %17326 = vmatprep.subr.mxu0 %v14507_v16  ;;  %17380 = vmatprep.subr.mxu1 %v14544_v27  ;;  %v21041_v31 = vld [vmem:[#allocation2 + $0x1c1] sm:$0xff] }
 0x3c0   : > { %v21017_v59 = vadd.f32 %v16943_v17, %v8657_v10  ;;  %v8656_v58 = vadd.f32 %v8505_v60, %v20730_v49  ;;  %17327 = vmatpush3.msra.mxu0 %v14507_v16  ;;  %17381 = vmatpush3.msra.mxu1 %v14544_v27  ;;  %v21032_v49 = vld [vmem:[#allocation2 + $0x1b1] sm:$0xff]  ;;  %v11034_v10 = vld [vmem:[#allocation2 + $0x1c2] sm:$0xff] }
 0x3c1   : > { %v16890_v28 = vpop.f32.mrf.mxu0  ;;  %v16946_v44 = vpop.f32.mrf.mxu1  ;;  %17225 = vmatmul.mubr.msk.f32.gmra.mxu0 %vm641_vm2, %v21020_v24  ;;  %17281 = vmatmul.mubr.msk.f32.gmra.mxu1 %vm641_vm2, %v20728_v51 }
 0x3c2   : > { %v21034_v4 = vadd.f32 %v8895_v13, %v8656_v58  ;;  %v8659_v22 = vadd.f32 %v16890_v28, %v20739_v34  ;;  %17227 = vmatprep.mubr.msk.f32.mxu0 %vm641_vm2, %v21032_v49  ;;  %17283 = vmatprep.mubr.msk.f32.mxu1 %vm641_vm2, %v20737_v55  ;;  %v14542_v34 = vld [vmem:[%s22330_s3 + $0x320] sm:$0xff]  ;;  %v21052_v55 = vld [vmem:[%s22330_s3 + $0x358] sm:$0xff] }
 0x3c3   : > { %v8515_v16 = vpop.f32.mrf.mxu0  ;;  %v8905_v27 = vpop.f32.mrf.mxu1  ;;  %17328 = vmatprep.subr.mxu0 %v14506_v6  ;;  %17382 = vmatprep.subr.mxu1 %v14543_v43 }
 0x3c4   : > { %v21043_v17 = vadd.f32 %v16946_v44, %v8659_v22  ;;  %v8658_v51 = vadd.f32 %v8515_v16, %v20753_v30  ;;  %17329 = vmatpush3.msra.mxu0 %v14506_v6  ;;  %17383 = vmatpush3.msra.mxu1 %v14543_v43  ;;  %v10645_v30 = vld [vmem:[#allocation2 + $0x1f1] sm:$0xff]  ;;  %v21067_v16 = vld [vmem:[#allocation2 + $0x201] sm:$0xff] }
 0x3c5   : > { %v16893_v60 = vpop.f32.mrf.mxu0  ;;  %v16949_v13 = vpop.f32.mrf.mxu1  ;;  %17228 = vmatmul.mubr.msk.f32.gmra.mxu0 %vm641_vm2, %v21041_v31  ;;  %17284 = vmatmul.mubr.msk.f32.gmra.mxu1 %vm641_vm2, %v11034_v10 }
 0x3c6   : > { %v21057_v58 = vadd.f32 %v8905_v27, %v8658_v51  ;;  %v8661_v6 = vadd.f32 %v16893_v60, %v20760_v50  ;;  %17230 = vmatprep.mubr.msk.f32.mxu0 %vm641_vm2, %v10645_v30  ;;  %17286 = vmatprep.mubr.msk.f32.mxu1 %vm641_vm2, %v20763_v35  ;;  %v21073_v50 = vld [vmem:[#allocation2 + $0x211] sm:$0xff]  ;;  %v21085_v30 = vld [vmem:[#allocation2 + $0x221] sm:$0xff] }
 0x3c7   : > { %v8525_v43 = vpop.f32.mrf.mxu0  ;;  %v8915_v28 = vpop.f32.mrf.mxu1  ;;  %17384 = vmatprep.subr.mxu1 %v14542_v34  ;;  %17434 = vmatprep.subr.mxu0 %v21052_v55  ;;  %22528 = vst [vmem:[#allocation26_spill] sm:$0xff] %v21085_v30 }
 0x3c8   : > { %v21064_v44 = vadd.f32 %v16949_v13, %v8661_v6  ;;  %v8660_v22 = vadd.f32 %v8525_v43, %v20776_v37  ;;  %17385 = vmatpush3.msra.mxu1 %v14542_v34 }
 0x3c9   : > { %v16896_v27 = vpop.f32.mrf.mxu0  ;;  %v16952_v51 = vpop.f32.mrf.mxu1  ;;  %17231 = vmatmul.mubr.msk.f32.gmra.mxu0 %vm641_vm2, %v21067_v16  ;;  %17287 = vmatmul.mubr.msk.f32.gmra.mxu1 %vm641_vm2, %v20774_v5 }
 0x3ca   : > { %v21075_v35 = vadd.f32 %v8915_v28, %v8660_v22  ;;  %v8663_v10 = vadd.f32 %v16896_v27, %v20784_v15  ;;  %17233 = vmatprep.mubr.msk.f32.mxu0 %vm641_vm2, %v21073_v50  ;;  %17289 = vmatprep.mubr.msk.f32.mxu1 %vm641_vm2, %v20787_v26  ;;  %v21091_v15 = vld [vmem:[#allocation2 + $0x231] sm:$0xff] }
 0x3cb   : > { %v8535_v37 = vpop.f32.mrf.mxu0  ;;  %v8925_v34 = vpop.f32.mrf.mxu1  ;;  %v22529_v26 = vld [vmem:[#allocation14_spill] sm:$0xff] }
 0x3cc   : > { %v21082_v60 = vadd.f32 %v16952_v51, %v8663_v10  ;;  %v8662_v13 = vadd.f32 %v8535_v37, %v20795_v56  ;;  %v22530_v56 = vld [vmem:[#allocation15_spill] sm:$0xff] }
 0x3cd   : > { %v16899_v5 = vpop.f32.mrf.mxu0  ;;  %v16955_v6 = vpop.f32.mrf.mxu1  ;;  %17234 = vmatmul.mubr.msk.f32.gmra.mxu0 %vm641_vm2, %v21085_v30  ;;  %17290 = vmatmul.mubr.msk.f32.gmra.mxu1 %vm641_vm2, %v20793_v23  ;;  %v21103_v37 = vld [vmem:[#allocation2 + $0x241] sm:$0xff] }
 0x3ce   : > { %v21093_v43 = vadd.f32 %v8925_v34, %v8662_v13  ;;  %v8665_v28 = vadd.f32 %v16899_v5, %v22529_v26  ;;  %17236 = vmatprep.mubr.msk.f32.mxu0 %vm641_vm2, %v21091_v15  ;;  %17292 = vmatprep.mubr.msk.f32.mxu1 %vm641_vm2, %v22530_v56  ;;  %v21109_v34 = vld [vmem:[#allocation2 + $0x251] sm:$0xff] }
 0x3cf   : > { %v8545_v22 = vpop.f32.mrf.mxu0  ;;  %v8935_v27 = vpop.f32.mrf.mxu1 }
 0x3d0   : > { %v21100_v51 = vadd.f32 %v16955_v6, %v8665_v28  ;;  %v8664_v10 = vadd.f32 %v8545_v22, %v20813_v46  ;;  %v22531_v46 = vld [vmem:[#allocation16_spill] sm:$0xff] }
 0x3d1   : > { %v16902_v23 = vpop.f32.mrf.mxu0  ;;  %v16958_v30 = vpop.f32.mrf.mxu1  ;;  %17237 = vmatmul.mubr.msk.f32.gmra.mxu0 %vm641_vm2, %v21103_v37  ;;  %17293 = vmatmul.mubr.msk.f32.gmra.mxu1 %vm641_vm2, %v20811_v53  ;;  %v21121_v22 = vld [vmem:[#allocation2 + $0x261] sm:$0xff] }
 0x3d2   : > { %v21111_v13 = vadd.f32 %v8935_v27, %v8664_v10  ;;  %v8667_v5 = vadd.f32 %v16902_v23, %v20820_v52  ;;  %17239 = vmatprep.mubr.msk.f32.mxu0 %vm641_vm2, %v21109_v34  ;;  %17295 = vmatprep.mubr.msk.f32.mxu1 %vm641_vm2, %v22531_v46  ;;  %22533 = vst [vmem:[#allocation4_spill] sm:$0xff] %v21121_v22  ;;  %v21123_v53 = vld [vmem:[#allocation2 + $0x262] sm:$0xff]  ;;  %v10653_v52 = vld [vmem:[#allocation2 + $0x291] sm:$0xff] }
 0x3d3   : > { %v8555_v6 = vpop.f32.mrf.mxu0  ;;  %v8945_v26 = vpop.f32.mrf.mxu1  ;;  %22534 = vst [vmem:[#allocation23_spill] sm:$0xff] %v21123_v53 }
 0x3d4   : > { %v21118_v28 = vadd.f32 %v16958_v30, %v8667_v5  ;;  %v8666_v56 = vadd.f32 %v8555_v6, %v20828_v41 }
 0x3d5   : > { %v16905_v27 = vpop.f32.mrf.mxu0  ;;  %v16961_v10 = vpop.f32.mrf.mxu1  ;;  %17240 = vmatmul.mubr.msk.f32.gmra.mxu0 %vm641_vm2, %v21121_v22  ;;  %17296 = vmatmul.mubr.msk.f32.gmra.mxu1 %vm641_vm2, %v21123_v53  ;;  %v21138_v22 = vld [vmem:[#allocation2 + $0x2a1] sm:$0xff] }
 0x3d6   : > { %22532 = vst [vmem:[#allocation22_spill] sm:$0xff] %v21118_v28  ;;  %v21129_v23 = vadd.f32 %v8945_v26, %v8666_v56  ;;  %v8669_v30 = vadd.f32 %v16905_v27, %v20834_v62  ;;  %17242 = vmatprep.mubr.msk.f32.mxu0 %vm641_vm2, %v10653_v52  ;;  %17298 = vmatprep.mubr.msk.f32.mxu1 %vm641_vm2, %v20837_v38  ;;  %v21144_v62 = vld [vmem:[#allocation2 + $0x2b1] sm:$0xff]  ;;  %v21156_v52 = vld [vmem:[#allocation2 + $0x2c1] sm:$0xff] }
 0x3d7   : > { %v8565_v41 = vpop.f32.mrf.mxu0  ;;  %v8955_v5 = vpop.f32.mrf.mxu1  ;;  %22535 = vst [vmem:[#allocation3_spill] sm:$0xff] %v21156_v52 }
 0x3d8   : > { %v21135_v46 = vadd.f32 %v16961_v10, %v8669_v30  ;;  %v8668_v6 = vadd.f32 %v8565_v41, %v20845_v2 }
 0x3d9   : > { %v16908_v28 = vpop.f32.mrf.mxu0  ;;  %v16964_v53 = vpop.f32.mrf.mxu1  ;;  %17243 = vmatmul.mubr.msk.f32.gmra.mxu0 %vm641_vm2, %v21138_v22  ;;  %17299 = vmatmul.mubr.msk.f32.gmra.mxu1 %vm641_vm2, %v20843_v54 }
 0x3da   : > { %v21146_v26 = vadd.f32 %v8955_v5, %v8668_v6  ;;  %v8671_v38 = vadd.f32 %v16908_v28, %v20852_v47  ;;  %17245 = vmatprep.mubr.msk.f32.mxu0 %vm641_vm2, %v21144_v62  ;;  %17301 = vmatprep.mubr.msk.f32.mxu1 %vm641_vm2, %v20855_v45  ;;  %v21162_v47 = vld [vmem:[#allocation2 + $0x2d1] sm:$0xff] }
 0x3db   : > { %v8575_v2 = vpop.f32.mrf.mxu0  ;;  %v8965_v56 = vpop.f32.mrf.mxu1  ;;  %v22536_v45 = vld [vmem:[#allocation17_spill] sm:$0xff] }
 0x3dc   : > { %v21153_v27 = vadd.f32 %v16964_v53, %v8671_v38  ;;  %v8670_v10 = vadd.f32 %v8575_v2, %v20863_v36  ;;  %v22537_v36 = vld [vmem:[#allocation18_spill] sm:$0xff]  ;;  %v21174_v2 = vld [vmem:[#allocation2 + $0x2e1] sm:$0xff] }
 0x3dd   : > { %v16911_v54 = vpop.f32.mrf.mxu0  ;;  %v16967_v30 = vpop.f32.mrf.mxu1  ;;  %17246 = vmatmul.mubr.msk.f32.gmra.mxu0 %vm641_vm2, %v21156_v52  ;;  %17302 = vmatmul.mubr.msk.f32.gmra.mxu1 %vm641_vm2, %v20861_v57  ;;  %22538 = vst [vmem:[#allocation5_spill] sm:$0xff] %v21174_v2 }
 0x3de   : > { %v21164_v28 = vadd.f32 %v8965_v56, %v8670_v10  ;;  %v8673_v41 = vadd.f32 %v16911_v54, %v22536_v45  ;;  %17248 = vmatprep.mubr.msk.f32.mxu0 %vm641_vm2, %v21162_v47  ;;  %17304 = vmatprep.mubr.msk.f32.mxu1 %vm641_vm2, %v22537_v36  ;;  %v21180_v56 = vld [vmem:[#allocation2 + $0x2f1] sm:$0xff]  ;;  %v22540_v54 = vld [vmem:[#allocation19_spill] sm:$0xff] }
 0x3df   : > { %v8585_v53 = vpop.f32.mrf.mxu0  ;;  %v8975_v5 = vpop.f32.mrf.mxu1  ;;  %22539 = vst [vmem:[#allocation6_spill] sm:$0xff] %v21180_v56 }
 0x3e0   : > { %v21171_v6 = vadd.f32 %v16967_v30, %v8673_v41  ;;  %v8672_v38 = vadd.f32 %v8585_v53, %v20881_v20  ;;  %v22541_v20 = vld [vmem:[#allocation20_spill] sm:$0xff] }
 0x3e1   : > { %v16914_v57 = vpop.f32.mrf.mxu0  ;;  %v16970_v52 = vpop.f32.mrf.mxu1  ;;  %17249 = vmatmul.mubr.msk.f32.gmra.mxu0 %vm641_vm2, %v21174_v2  ;;  %17305 = vmatmul.mubr.msk.f32.gmra.mxu1 %vm641_vm2, %v20879_v3  ;;  %v21192_v2 = vld [vmem:[#allocation2 + $0x301] sm:$0xff] }
 0x3e2   : > { %v21182_v10 = vadd.f32 %v8975_v5, %v8672_v38  ;;  %v8675_v45 = vadd.f32 %v16914_v57, %v22540_v54  ;;  %17251 = vmatprep.mubr.msk.f32.mxu0 %vm641_vm2, %v21180_v56  ;;  %17307 = vmatprep.mubr.msk.f32.mxu1 %vm641_vm2, %v22541_v20  ;;  %22543 = vst [vmem:[#allocation8_spill] sm:$0xff] %v21192_v2  ;;  %v21194_v3 = vld [vmem:[#allocation2 + $0x302] sm:$0xff]  ;;  %v10661_v57 = vld [vmem:[#allocation2 + $0x331] sm:$0xff] }
 0x3e3   : > { %v8595_v30 = vpop.f32.mrf.mxu0  ;;  %v8985_v41 = vpop.f32.mrf.mxu1  ;;  %22544 = vst [vmem:[#allocation9_spill] sm:$0xff] %v21194_v3 }
 0x3e4   : > { %v21189_v36 = vadd.f32 %v16970_v52, %v8675_v45  ;;  %v8674_v53 = vadd.f32 %v8595_v30, %v20896_v11  ;;  %v22545_v11 = vld [vmem:[#allocation21_spill] sm:$0xff] }
 0x3e5   : > { %v16917_v5 = vpop.f32.mrf.mxu0  ;;  %v16973_v38 = vpop.f32.mrf.mxu1  ;;  %17252 = vmatmul.mubr.msk.f32.gmra.mxu0 %vm641_vm2, %v21192_v2  ;;  %17308 = vmatmul.mubr.msk.f32.gmra.mxu1 %vm641_vm2, %v21194_v3  ;;  %v21209_v2 = vld [vmem:[#allocation2 + $0x341] sm:$0xff] }
 0x3e6   : > { %22542 = vst [vmem:[#allocation7_spill] sm:$0xff] %v21189_v36  ;;  %v21200_v54 = vadd.f32 %v8985_v41, %v8674_v53  ;;  %v8677_v52 = vadd.f32 %v16917_v5, %v20902_v12  ;;  %17254 = vmatprep.mubr.msk.f32.mxu0 %vm641_vm2, %v10661_v57  ;;  %17310 = vmatprep.mubr.msk.f32.mxu1 %vm641_vm2, %v22545_v11  ;;  %22546 = vst [vmem:[#allocation10_spill] sm:$0xff] %v21209_v2  ;;  %v21215_v12 = vld [vmem:[#allocation2 + $0x351] sm:$0xff]  ;;  %v22547_v53 = vld [vmem:[#allocation24_spill] sm:$0xff] }
 0x3e7   : > { %v8605_v45 = vpop.f32.mrf.mxu0  ;;  %v8995_v20 = vpop.f32.mrf.mxu1 }
 0x3e8   : > { %v21206_v30 = vadd.f32 %v16973_v38, %v8677_v52  ;;  %v8676_v36 = vadd.f32 %v8605_v45, %v20913_v63  ;;  %v22548_v63 = vld [vmem:[#allocation25_spill] sm:$0xff]  ;;  %v21227_v45 = vld [vmem:[#allocation2 + $0x361] sm:$0xff] }
 0x3e9   : > { %v16920_v56 = vpop.f32.mrf.mxu0  ;;  %v16976_v3 = vpop.f32.mrf.mxu1  ;;  %17255 = vmatmul.mubr.msk.f32.gmra.mxu0 %vm641_vm2, %v21209_v2  ;;  %17311 = vmatmul.mubr.msk.f32.gmra.mxu1 %vm641_vm2, %v20911_v39 }
 0x3ea   : > { %v21217_v41 = vadd.f32 %v8995_v20, %v8676_v36  ;;  %v8679_v5 = vadd.f32 %v16920_v56, %v22547_v53  ;;  %17257 = vmatprep.mubr.msk.f32.mxu0 %vm641_vm2, %v21215_v12  ;;  %17313 = vmatprep.mubr.msk.f32.mxu1 %vm641_vm2, %v22548_v63  ;;  %v21233_v56 = vld [vmem:[#allocation2 + $0x371] sm:$0xff]  ;;  %v21245_v63 = vld [vmem:[#allocation2 + $0x381] sm:$0xff] }
 0x3eb   : > { %v8615_v38 = vpop.f32.mrf.mxu0  ;;  %v9005_v57 = vpop.f32.mrf.mxu1 }
 0x3ec   : > { %v21224_v52 = vadd.f32 %v16976_v3, %v8679_v5  ;;  %v8678_v11 = vadd.f32 %v8615_v38, %v20931_v40 }
 0x3ed   : > { %v16923_v39 = vpop.f32.mrf.mxu0  ;;  %v16979_v2 = vpop.f32.mrf.mxu1  ;;  %17258 = vmatmul.mubr.msk.f32.gmra.mxu0 %vm641_vm2, %v21227_v45  ;;  %17314 = vmatmul.mubr.msk.f32.gmra.mxu1 %vm641_vm2, %v20929_v48 }
 0x3ee   : > { %v21235_v36 = vadd.f32 %v9005_v57, %v8678_v11  ;;  %v8681_v20 = vadd.f32 %v16923_v39, %v20938_v7  ;;  %17260 = vmatprep.mubr.msk.f32.mxu0 %vm641_vm2, %v21233_v56  ;;  %17316 = vmatprep.mubr.msk.f32.mxu1 %vm641_vm2, %v20941_v9  ;;  %v21251_v7 = vld [vmem:[#allocation2 + $0x391] sm:$0xff] }
 0x3ef   : > { %v8625_v40 = vpop.f32.mrf.mxu0  ;;  %v9015_v3 = vpop.f32.mrf.mxu1 }
 0x3f0   : > { %v21242_v53 = vadd.f32 %v16979_v2, %v8681_v20  ;;  %v8680_v5 = vadd.f32 %v8625_v40, %v20949_v61  ;;  %v21263_v20 = vld [vmem:[#allocation2 + $0x3a1] sm:$0xff] }
 0x3f1   : > { %v16926_v48 = vpop.f32.mrf.mxu0  ;;  %v16982_v38 = vpop.f32.mrf.mxu1  ;;  %17261 = vmatmul.mubr.msk.f32.gmra.mxu0 %vm641_vm2, %v21245_v63  ;;  %17317 = vmatmul.mubr.msk.f32.gmra.mxu1 %vm641_vm2, %v20947_v8  ;;  %v21265_v8 = vld [vmem:[#allocation2 + $0x3a2] sm:$0xff] }
 0x3f2   : > { %v21253_v57 = vadd.f32 %v9015_v3, %v8680_v5  ;;  %v8683_v9 = vadd.f32 %v16926_v48, %v20956_v21  ;;  %17263 = vmatprep.mubr.msk.f32.mxu0 %vm641_vm2, %v21251_v7  ;;  %17319 = vmatprep.mubr.msk.f32.mxu1 %vm641_vm2, %v20959_v0  ;;  %22549 = vst [vmem:[#allocation11_spill] sm:$0xff] %v21265_v8  ;;  %v11418_v21 = vld [vmem:[#allocation2 + $0x160] sm:$0xff] }
 0x3f3   : > { %v8635_v61 = vpop.f32.mrf.mxu0  ;;  %v9025_v2 = vpop.f32.mrf.mxu1 }
 0x3f4   : > { %v21260_v11 = vadd.f32 %v16982_v38, %v8683_v9  ;;  %v8682_v39 = vadd.f32 %v8635_v61, %v20964_v1  ;;  %v11419_v61 = vld [vmem:[#allocation2 + $0x170] sm:$0xff] }
 0x3f5   : > { %v16929_v40 = vpop.f32.mrf.mxu0  ;;  %v16985_v3 = vpop.f32.mrf.mxu1  ;;  %17264 = vmatmul.mubr.msk.f32.gmra.mxu0 %vm641_vm2, %v21263_v20  ;;  %17320 = vmatmul.mubr.msk.f32.gmra.mxu1 %vm641_vm2, %v21265_v8  ;;  %v14580_v8 = vld [vmem:[%s22330_s3 + $0x350] sm:$0xff] }
 0x3f6   : > { %v21271_v0 = vadd.f32 %v9025_v2, %v8682_v39  ;;  %v8685_v5 = vadd.f32 %v16929_v40, %v20970_v18  ;;  %17330 = vmatprep.mubr.msk.f32.mxu0 %vm641_vm2, %v11418_v21  ;;  %17386 = vmatprep.mubr.msk.f32.mxu1 %vm641_vm2, %v20973_v33  ;;  %v11420_v18 = vld [vmem:[#allocation2 + $0x180] sm:$0xff] }
 0x3f7   : > { %v8645_v1 = vpop.f32.mrf.mxu0  ;;  %v9035_v48 = vpop.f32.mrf.mxu1 }
 0x3f8   : > { %v21277_v38 = vadd.f32 %v16985_v3, %v8685_v5  ;;  %v8684_v9 = vadd.f32 %v8645_v1, %v20984_v25 }
 0x3f9   : > { %v16996_v2 = vpop.f32.mrf.mxu0  ;;  %v17052_v39 = vpop.f32.mrf.mxu1  ;;  %17331 = vmatmul.mubr.msk.f32.vlgmr.msra.gmra.mxu0 %vm641_vm2, %v11419_v61  ;;  %17387 = vmatmul.mubr.msk.f32.vlgmr.msra.gmra.mxu1 %vm641_vm2, %v20982_v14  ;;  %v11421_v14 = vld [vmem:[#allocation2 + $0x190] sm:$0xff] }
 0x3fa   : > { %v21286_v33 = vadd.f32 %v9035_v48, %v8684_v9  ;;  %v9435_v40 = vadd.f32 %v16996_v2, %v20992_v42  ;;  %17435 = vmatpush3.msra.mxu0 %v21052_v55  ;;  %17333 = vmatprep.mubr.msk.f32.mxu0 %vm641_vm2, %v11420_v18  ;;  %v14579_v42 = vld [vmem:[%s22330_s3 + $0x348] sm:$0xff] }
 0x3fb   : > { %17389 = vmatprep.mubr.msk.f32.mxu1 %vm641_vm2, %v20995_v19  ;;  %v9275_v25 = vpop.f32.mrf.mxu0  ;;  %v9665_v3 = vpop.f32.mrf.mxu1  ;;  %17436 = vmatprep.subr.mxu0 %v14580_v8  ;;  %v11422_v19 = vld [vmem:[#allocation2 + $0x1a0] sm:$0xff] }
 0x3fc   : > { %v21293_v21 = vadd.f32 %v17052_v39, %v9435_v40  ;;  %v9434_v5 = vadd.f32 %v9275_v25, %v21010_v32  ;;  %17437 = vmatpush3.msra.mxu0 %v14580_v8  ;;  %v11423_v39 = vld [vmem:[#allocation2 + $0x1b0] sm:$0xff] }
 0x3fd   : > { %v16999_v1 = vpop.f32.mrf.mxu0  ;;  %v17055_v55 = vpop.f32.mrf.mxu1  ;;  %17334 = vmatmul.mubr.msk.f32.gmra.mxu0 %vm641_vm2, %v11421_v14  ;;  %17390 = vmatmul.mubr.msk.f32.gmra.mxu1 %vm641_vm2, %v21008_v29  ;;  %v14578_v29 = vld [vmem:[%s22330_s3 + $0x340] sm:$0xff] }
 0x3fe   : > { %v21302_v48 = vadd.f32 %v9665_v3, %v9434_v5  ;;  %v9437_v9 = vadd.f32 %v16999_v1, %v21017_v59  ;;  %17336 = vmatprep.mubr.msk.f32.mxu0 %vm641_vm2, %v11422_v19  ;;  %17392 = vmatprep.mubr.msk.f32.mxu1 %vm641_vm2, %v21020_v24  ;;  %v11424_v24 = vld [vmem:[#allocation2 + $0x1c0] sm:$0xff]  ;;  %v11815_v1 = vld [vmem:[#allocation2 + $0x1d1] sm:$0xff] }
 0x3ff   : > { %v9285_v32 = vpop.f32.mrf.mxu0  ;;  %v9675_v8 = vpop.f32.mrf.mxu1  ;;  %17438 = vmatprep.subr.mxu0 %v14579_v42 }
 0x400   : > { %v21308_v61 = vadd.f32 %v17055_v55, %v9437_v9  ;;  %v9436_v2 = vadd.f32 %v9285_v32, %v21034_v4  ;;  %17439 = vmatpush3.msra.mxu0 %v14579_v42  ;;  %v11425_v42 = vld [vmem:[#allocation2 + $0x1d0] sm:$0xff] }
 0x401   : > { %v17002_v18 = vpop.f32.mrf.mxu0  ;;  %v17058_v59 = vpop.f32.mrf.mxu1  ;;  %17337 = vmatmul.mubr.msk.f32.gmra.mxu0 %vm641_vm2, %v11423_v39  ;;  %17393 = vmatmul.mubr.msk.f32.gmra.mxu1 %vm641_vm2, %v21032_v49 }
 0x402   : > { %v21317_v40 = vadd.f32 %v9675_v8, %v9436_v2  ;;  %v9439_v25 = vadd.f32 %v17002_v18, %v21043_v17  ;;  %17339 = vmatprep.mubr.msk.f32.mxu0 %vm641_vm2, %v11424_v24  ;;  %17395 = vmatprep.mubr.msk.f32.mxu1 %vm641_vm2, %v21041_v31  ;;  %v11426_v17 = vld [vmem:[#allocation2 + $0x200] sm:$0xff]  ;;  %v11427_v2 = vld [vmem:[#allocation2 + $0x210] sm:$0xff] }
 0x403   : > { %v9295_v4 = vpop.f32.mrf.mxu0  ;;  %v9685_v3 = vpop.f32.mrf.mxu1  ;;  %17440 = vmatprep.subr.mxu0 %v14578_v29 }
 0x404   : > { %v21323_v5 = vadd.f32 %v17058_v59, %v9439_v25  ;;  %v9438_v14 = vadd.f32 %v9295_v4, %v21057_v58  ;;  %17441 = vmatpush3.msra.mxu0 %v14578_v29 }
 0x405   : > { %v17005_v49 = vpop.f32.mrf.mxu0  ;;  %v17061_v55 = vpop.f32.mrf.mxu1  ;;  %17340 = vmatmul.mubr.msk.f32.gmra.mxu0 %vm641_vm2, %v11425_v42  ;;  %17396 = vmatmul.mubr.msk.f32.gmra.mxu1 %vm641_vm2, %v11815_v1 }
 0x406   : > { %v21328_v19 = vadd.f32 %v9685_v3, %v9438_v14  ;;  %v9441_v31 = vadd.f32 %v17005_v49, %v21064_v44  ;;  %17342 = vmatprep.mubr.msk.f32.mxu0 %vm641_vm2, %v11426_v17  ;;  %17398 = vmatprep.mubr.msk.f32.mxu1 %vm641_vm2, %v21067_v16  ;;  %v11428_v44 = vld [vmem:[#allocation2 + $0x220] sm:$0xff]  ;;  %v22550_v16 = vld [vmem:[#allocation26_spill] sm:$0xff]  ;;  %v11429_v3 = vld [vmem:[#allocation2 + $0x230] sm:$0xff] }
 0x407   : > { %v9305_v58 = vpop.f32.mrf.mxu0  ;;  %v9695_v9 = vpop.f32.mrf.mxu1 }
 0x408   : > { %v21334_v32 = vadd.f32 %v17061_v55, %v9441_v31  ;;  %v9440_v8 = vadd.f32 %v9305_v58, %v21075_v35  ;;  %v11431_v31 = vld [vmem:[#allocation2 + $0x250] sm:$0xff] }
 0x409   : > { %v17008_v39 = vpop.f32.mrf.mxu0  ;;  %v17064_v29 = vpop.f32.mrf.mxu1  ;;  %17343 = vmatmul.mubr.msk.f32.gmra.mxu0 %vm641_vm2, %v11427_v2  ;;  %17399 = vmatmul.mubr.msk.f32.gmra.mxu1 %vm641_vm2, %v21073_v50  ;;  %v11430_v50 = vld [vmem:[#allocation2 + $0x240] sm:$0xff] }
 0x40a   : > { %v21340_v18 = vadd.f32 %v9695_v9, %v9440_v8  ;;  %v9443_v59 = vadd.f32 %v17008_v39, %v21082_v60  ;;  %17345 = vmatprep.mubr.msk.f32.mxu0 %vm641_vm2, %v11428_v44  ;;  %17401 = vmatprep.mubr.msk.f32.mxu1 %vm641_vm2, %v22550_v16  ;;  %v22551_v8 = vld [vmem:[#allocation22_spill] sm:$0xff] }
 0x40b   : > { %v9315_v24 = vpop.f32.mrf.mxu0  ;;  %v9705_v35 = vpop.f32.mrf.mxu1  ;;  %v11823_v16 = vld [vmem:[#allocation2 + $0x271] sm:$0xff] }
 0x40c   : > { %v21346_v25 = vadd.f32 %v17064_v29, %v9443_v59  ;;  %v9442_v4 = vadd.f32 %v9315_v24, %v21093_v43  ;;  %v11433_v59 = vld [vmem:[#allocation2 + $0x270] sm:$0xff] }
 0x40d   : > { %v17011_v14 = vpop.f32.mrf.mxu0  ;;  %v17067_v42 = vpop.f32.mrf.mxu1  ;;  %17346 = vmatmul.mubr.msk.f32.gmra.mxu0 %vm641_vm2, %v11429_v3  ;;  %17402 = vmatmul.mubr.msk.f32.gmra.mxu1 %vm641_vm2, %v21091_v15  ;;  %v11432_v15 = vld [vmem:[#allocation2 + $0x260] sm:$0xff] }
 0x40e   : > { %v21352_v60 = vadd.f32 %v9705_v35, %v9442_v4  ;;  %v9445_v1 = vadd.f32 %v17011_v14, %v21100_v51  ;;  %17348 = vmatprep.mubr.msk.f32.mxu0 %vm641_vm2, %v11430_v50  ;;  %17404 = vmatprep.mubr.msk.f32.mxu1 %vm641_vm2, %v21103_v37  ;;  %v22552_v37 = vld [vmem:[#allocation4_spill] sm:$0xff]  ;;  %v11434_v35 = vld [vmem:[#allocation2 + $0x2a0] sm:$0xff] }
 0x40f   : > { %v9325_v49 = vpop.f32.mrf.mxu0  ;;  %v9715_v43 = vpop.f32.mrf.mxu1 }
 0x410   : > { %v21358_v55 = vadd.f32 %v17067_v42, %v9445_v1  ;;  %v9444_v17 = vadd.f32 %v9325_v49, %v21111_v13  ;;  %v11435_v1 = vld [vmem:[#allocation2 + $0x2b0] sm:$0xff] }
 0x411   : > { %v17014_v58 = vpop.f32.mrf.mxu0  ;;  %v17070_v9 = vpop.f32.mrf.mxu1  ;;  %17349 = vmatmul.mubr.msk.f32.gmra.mxu0 %vm641_vm2, %v11431_v31  ;;  %17405 = vmatmul.mubr.msk.f32.gmra.mxu1 %vm641_vm2, %v21109_v34 }
 0x412   : > { %v21364_v51 = vadd.f32 %v9715_v43, %v9444_v17  ;;  %v9447_v2 = vadd.f32 %v17014_v58, %v22551_v8  ;;  %17351 = vmatprep.mubr.msk.f32.mxu0 %vm641_vm2, %v11432_v15  ;;  %17407 = vmatprep.mubr.msk.f32.mxu1 %vm641_vm2, %v22552_v37  ;;  %v11437_v8 = vld [vmem:[#allocation2 + $0x2d0] sm:$0xff] }
 0x413   : > { %v9335_v39 = vpop.f32.mrf.mxu0  ;;  %v9725_v13 = vpop.f32.mrf.mxu1 }
 0x414   : > { %v21370_v29 = vadd.f32 %v17070_v9, %v9447_v2  ;;  %v9446_v44 = vadd.f32 %v9335_v39, %v21129_v23  ;;  %v22554_v39 = vld [vmem:[#allocation5_spill] sm:$0xff] }
 0x415   : > { %v17017_v24 = vpop.f32.mrf.mxu0  ;;  %v17073_v34 = vpop.f32.mrf.mxu1  ;;  %17352 = vmatmul.mubr.msk.f32.gmra.mxu0 %vm641_vm2, %v11433_v59  ;;  %17408 = vmatmul.mubr.msk.f32.gmra.mxu1 %vm641_vm2, %v11823_v16  ;;  %v11439_v16 = vld [vmem:[#allocation2 + $0x2f0] sm:$0xff] }
 0x416   : > { %v21375_v4 = vadd.f32 %v9725_v13, %v9446_v44  ;;  %v9449_v3 = vadd.f32 %v17017_v24, %v21135_v46  ;;  %17354 = vmatprep.mubr.msk.f32.mxu0 %vm641_vm2, %v11434_v35  ;;  %17410 = vmatprep.mubr.msk.f32.mxu1 %vm641_vm2, %v21138_v22  ;;  %v11436_v46 = vld [vmem:[#allocation2 + $0x2c0] sm:$0xff] }
 0x417   : > { %v9345_v14 = vpop.f32.mrf.mxu0  ;;  %v9735_v23 = vpop.f32.mrf.mxu1  ;;  %v22553_v22 = vld [vmem:[#allocation3_spill] sm:$0xff] }
 0x418   : > { %v21381_v42 = vadd.f32 %v17073_v34, %v9449_v3  ;;  %v9448_v50 = vadd.f32 %v9345_v14, %v21146_v26  ;;  %v22556_v35 = vld [vmem:[#allocation7_spill] sm:$0xff]  ;;  %v22557_v14 = vld [vmem:[#allocation8_spill] sm:$0xff] }
 0x419   : > { %v17020_v49 = vpop.f32.mrf.mxu0  ;;  %v17076_v43 = vpop.f32.mrf.mxu1  ;;  %17355 = vmatmul.mubr.msk.f32.gmra.mxu0 %vm641_vm2, %v11435_v1  ;;  %17411 = vmatmul.mubr.msk.f32.gmra.mxu1 %vm641_vm2, %v21144_v62 }
 0x41a   : > { %v21387_v17 = vadd.f32 %v9735_v23, %v9448_v50  ;;  %v9451_v31 = vadd.f32 %v17020_v49, %v21153_v27  ;;  %17357 = vmatprep.mubr.msk.f32.mxu0 %vm641_vm2, %v11436_v46  ;;  %17413 = vmatprep.mubr.msk.f32.mxu1 %vm641_vm2, %v22553_v22  ;;  %v11438_v27 = vld [vmem:[#allocation2 + $0x2e0] sm:$0xff]  ;;  %v11441_v49 = vld [vmem:[#allocation2 + $0x310] sm:$0xff] }
 0x41b   : > { %v9355_v58 = vpop.f32.mrf.mxu0  ;;  %v21393_v26 = vpop.f32.mrf.mxu1  ;;  %v11442_v22 = vld [vmem:[#allocation2 + $0x340] sm:$0xff] }
 0x41c   : > { %v21395_v9 = vadd.f32 %v17076_v43, %v9451_v31  ;;  %v21398_v15 = vadd.f32 %v9355_v58, %v21164_v28  ;;  %v11831_v43 = vld [vmem:[#allocation2 + $0x311] sm:$0xff] }
 0x41d   : > { %v17023_v62 = vpop.f32.mrf.mxu0  ;;  %v17079_v2 = vpop.f32.mrf.mxu1  ;;  %17358 = vmatmul.mubr.msk.f32.gmra.mxu0 %vm641_vm2, %v11437_v8  ;;  %17414 = vmatmul.mubr.msk.f32.gmra.mxu1 %vm641_vm2, %v21162_v47  ;;  %v22555_v47 = vld [vmem:[#allocation6_spill] sm:$0xff] }
 0x41e   : > { %v9453_v37 = vadd.f32 %v17023_v62, %v21171_v6  ;;  %17360 = vmatprep.mubr.msk.f32.mxu0 %vm641_vm2, %v11438_v27  ;;  %17416 = vmatprep.mubr.msk.f32.mxu1 %vm641_vm2, %v22554_v39  ;;  %v11440_v6 = vld [vmem:[#allocation2 + $0x300] sm:$0xff]  ;;  %v22558_v8 = vld [vmem:[#allocation10_spill] sm:$0xff] }
 0x41f   : > { %v9365_v13 = vpop.f32.mrf.mxu0  ;;  %v21407_v44 = vpop.f32.mrf.mxu1 }
 0x420   : > { %v21409_v28 = vadd.f32 %v17079_v2, %v9453_v37  ;;  %v21412_v59 = vadd.f32 %v9365_v13, %v21182_v10  ;;  %v11443_v37 = vld [vmem:[#allocation2 + $0x350] sm:$0xff] }
 0x421   : > { %v17026_v24 = vpop.f32.mrf.mxu0  ;;  %v17082_v34 = vpop.f32.mrf.mxu1  ;;  %17361 = vmatmul.mubr.msk.f32.gmra.mxu0 %vm641_vm2, %v11439_v16  ;;  %17417 = vmatmul.mubr.msk.f32.gmra.mxu1 %vm641_vm2, %v22555_v47 }
 0x422   : > { %v9455_v3 = vadd.f32 %v17026_v24, %v22556_v35  ;;  %17363 = vmatprep.mubr.msk.f32.mxu0 %vm641_vm2, %v11440_v6  ;;  %17419 = vmatprep.mubr.msk.f32.mxu1 %vm641_vm2, %v22557_v14  ;;  %v11445_v6 = vld [vmem:[#allocation2 + $0x370] sm:$0xff] }
 0x423   : > { %v9375_v23 = vpop.f32.mrf.mxu0  ;;  %v21421_v50 = vpop.f32.mrf.mxu1 }
 0x424   : > { %v21423_v10 = vadd.f32 %v17082_v34, %v9455_v3  ;;  %v21426_v1 = vadd.f32 %v9375_v23, %v21200_v54 }
 0x425   : > { %v17029_v46 = vpop.f32.mrf.mxu0  ;;  %v17085_v31 = vpop.f32.mrf.mxu1  ;;  %17364 = vmatmul.mubr.msk.f32.gmra.mxu0 %vm641_vm2, %v11441_v49  ;;  %17420 = vmatmul.mubr.msk.f32.gmra.mxu1 %vm641_vm2, %v11831_v43  ;;  %v11447_v49 = vld [vmem:[#allocation2 + $0x390] sm:$0xff] }
 0x426   : > { %v9457_v58 = vadd.f32 %v17029_v46, %v21206_v30  ;;  %17366 = vmatprep.mubr.msk.f32.mxu0 %vm641_vm2, %v11442_v22  ;;  %17422 = vmatprep.mubr.msk.f32.mxu1 %vm641_vm2, %v22558_v8  ;;  %v11444_v30 = vld [vmem:[#allocation2 + $0x360] sm:$0xff]  ;;  %v11839_v8 = vld [vmem:[#allocation2 + $0x3b1] sm:$0xff] }
 0x427   : > { %v9385_v62 = vpop.f32.mrf.mxu0  ;;  %v21434_v2 = vpop.f32.mrf.mxu1 }
 0x428   : > { %v21436_v54 = vadd.f32 %v17085_v31, %v9457_v58  ;;  %v21439_v27 = vadd.f32 %v9385_v62, %v21217_v41  ;;  %v11449_v58 = vld [vmem:[#allocation2 + $0x3b0] sm:$0xff] }
 0x429   : > { %v17032_v39 = vpop.f32.mrf.mxu0  ;;  %v17088_v13 = vpop.f32.mrf.mxu1  ;;  %17367 = vmatmul.mubr.msk.f32.gmra.mxu0 %vm641_vm2, %v11443_v37  ;;  %17423 = vmatmul.mubr.msk.f32.gmra.mxu1 %vm641_vm2, %v21215_v12  ;;  %v11446_v12 = vld [vmem:[#allocation2 + $0x380] sm:$0xff] }
 0x42a   : > { %v9459_v16 = vadd.f32 %v17032_v39, %v21224_v52  ;;  %17369 = vmatprep.mubr.msk.f32.mxu0 %vm641_vm2, %v11444_v30  ;;  %17425 = vmatprep.mubr.msk.f32.mxu1 %vm641_vm2, %v21227_v45  ;;  %v12199_v30 = vld [vmem:[#allocation2 + $0x172] sm:$0xff] }
 0x42b   : > { %v9395_v24 = vpop.f32.mrf.mxu0  ;;  %v21448_v34 = vpop.f32.mrf.mxu1 }
 0x42c   : > { %v21450_v41 = vadd.f32 %v17088_v13, %v9459_v16  ;;  %v21453_v47 = vadd.f32 %v9395_v24, %v21235_v36 }
 0x42d   : > { %v17035_v35 = vpop.f32.mrf.mxu0  ;;  %v17091_v3 = vpop.f32.mrf.mxu1  ;;  %17370 = vmatmul.mubr.msk.f32.gmra.mxu0 %vm641_vm2, %v11445_v6  ;;  %17426 = vmatmul.mubr.msk.f32.gmra.mxu1 %vm641_vm2, %v21233_v56  ;;  %v11448_v56 = vld [vmem:[#allocation2 + $0x3a0] sm:$0xff] }
 0x42e   : > { %v9461_v52 = vadd.f32 %v17035_v35, %v21242_v53  ;;  %17372 = vmatprep.mubr.msk.f32.mxu0 %vm641_vm2, %v11446_v12  ;;  %17428 = vmatprep.mubr.msk.f32.mxu1 %vm641_vm2, %v21245_v63  ;;  %v12200_v6 = vld [vmem:[#allocation2 + $0x182] sm:$0xff] }
 0x42f   : > { %v9405_v45 = vpop.f32.mrf.mxu0  ;;  %v21462_v14 = vpop.f32.mrf.mxu1 }
 0x430   : > { %v21464_v36 = vadd.f32 %v17091_v3, %v9461_v52  ;;  %v21467_v23 = vadd.f32 %v9405_v45, %v21253_v57 }
 0x431   : > { %v17038_v43 = vpop.f32.mrf.mxu0  ;;  %v17094_v46 = vpop.f32.mrf.mxu1  ;;  %17373 = vmatmul.mubr.msk.f32.gmra.mxu0 %vm641_vm2, %v11447_v49  ;;  %17429 = vmatmul.mubr.msk.f32.gmra.mxu1 %vm641_vm2, %v21251_v7 }
 0x432   : > { %v9463_v53 = vadd.f32 %v17038_v43, %v21260_v11  ;;  %17375 = vmatprep.mubr.msk.f32.mxu0 %vm641_vm2, %v11448_v56  ;;  %17431 = vmatprep.mubr.msk.f32.mxu1 %vm641_vm2, %v21263_v20  ;;  %v12198_v11 = vld [vmem:[#allocation2 + $0x162] sm:$0xff] }
 0x433   : > { %v9415_v63 = vpop.f32.mrf.mxu0  ;;  %v21476_v31 = vpop.f32.mrf.mxu1  ;;  %v12202_v43 = vld [vmem:[#allocation2 + $0x1a2] sm:$0xff] }
 0x434   : > { %v21478_v57 = vadd.f32 %v17094_v46, %v9463_v53  ;;  %v21481_v22 = vadd.f32 %v9415_v63, %v21271_v0 }
 0x435   : > { %v17041_v62 = vpop.f32.mrf.mxu0  ;;  %v17097_v7 = vpop.f32.mrf.mxu1  ;;  %17376 = vmatmul.mubr.msk.f32.gmra.mxu0 %vm641_vm2, %v11449_v58  ;;  %17432 = vmatmul.mubr.msk.f32.gmra.mxu1 %vm641_vm2, %v11839_v8 }
 0x436   : > { %v9465_v37 = vadd.f32 %v17041_v62, %v21277_v38  ;;  %17442 = vmatprep.mubr.msk.f32.mxu0 %vm641_vm2, %v12198_v11  ;;  %v12204_v62 = vld [vmem:[#allocation2 + $0x1c2] sm:$0xff] }
 0x437   : > { %v9425_v20 = vpop.f32.mrf.mxu0  ;;  %v21487_v39 = vpop.f32.mrf.mxu1 }
 0x438   : > { %v21489_v13 = vadd.f32 %v17097_v7, %v9465_v37  ;;  %v21492_v0 = vadd.f32 %v9425_v20, %v21286_v33  ;;  %v12201_v33 = vld [vmem:[#allocation2 + $0x192] sm:$0xff] }
 0x439   : > { %v17108_v16 = vpop.f32.mrf.mxu0  ;;  %v17164_v24 = vpop.f32.mrf.mxu1  ;;  %17443 = vmatmul.mubr.msk.f32.vlgmr.msra.gmra.mxu0 %vm641_vm2, %v12199_v30  ;;  %v12662_v30 = vld [vmem:[%s22332_s5 + $0x18] sm:$0xff] }
 0x43a   : > { %v10215_v35 = vadd.f32 %v17108_v16, %v21293_v21  ;;  %17445 = vmatprep.mubr.msk.f32.mxu0 %vm641_vm2, %v12200_v6  ;;  %17490 = vmatprep.subr.mxu1 %v12662_v30 }
 0x43b   : > { %v10055_v38 = vpop.f32.mrf.mxu0  ;;  %v21497_v3 = vpop.f32.mrf.mxu1  ;;  %17491 = vmatpush3.msra.mxu1 %v12662_v30 }
 0x43c   : > { %v21499_v12 = vadd.f32 %v17164_v24, %v10215_v35  ;;  %v21502_v52 = vadd.f32 %v10055_v38, %v21302_v48  ;;  %v12203_v48 = vld [vmem:[#allocation2 + $0x1b2] sm:$0xff] }
 0x43d   : > { %v17111_v45 = vpop.f32.mrf.mxu0  ;;  %v17167_v49 = vpop.f32.mrf.mxu1  ;;  %17446 = vmatmul.mubr.msk.f32.gmra.mxu0 %vm641_vm2, %v12201_v33 }
 0x43e   : > { %v10217_v46 = vadd.f32 %v17111_v45, %v21308_v61  ;;  %17448 = vmatprep.mubr.msk.f32.mxu0 %vm641_vm2, %v12202_v43  ;;  %v12207_v45 = vld [vmem:[#allocation2 + $0x212] sm:$0xff] }
 0x43f   : > { %v10065_v21 = vpop.f32.mrf.mxu0  ;;  %v21507_v56 = vpop.f32.mrf.mxu1 }
 0x440   : > { %v21509_v53 = vadd.f32 %v17167_v49, %v10217_v46  ;;  %v21512_v63 = vadd.f32 %v10065_v21, %v21317_v40  ;;  %v12205_v40 = vld [vmem:[#allocation2 + $0x1d2] sm:$0xff]  ;;  %v12208_v46 = vld [vmem:[#allocation2 + $0x222] sm:$0xff] }
 0x441   : > { %v17114_v58 = vpop.f32.mrf.mxu0  ;;  %v17170_v8 = vpop.f32.mrf.mxu1  ;;  %17449 = vmatmul.mubr.msk.f32.gmra.mxu0 %vm641_vm2, %v12203_v48 }
 0x442   : > { %v10219_v7 = vadd.f32 %v17114_v58, %v21323_v5  ;;  %17451 = vmatprep.mubr.msk.f32.mxu0 %vm641_vm2, %v12204_v62  ;;  %v12206_v5 = vld [vmem:[#allocation2 + $0x202] sm:$0xff] }
 0x443   : > { %v10075_v61 = vpop.f32.mrf.mxu0  ;;  %v21517_v11 = vpop.f32.mrf.mxu1 }
 0x444   : > { %v21519_v37 = vadd.f32 %v17170_v8, %v10219_v7  ;;  %v21522_v20 = vadd.f32 %v10075_v61, %v21328_v19  ;;  %v12210_v61 = vld [vmem:[#allocation2 + $0x242] sm:$0xff] }
 0x445   : > { %v17117_v16 = vpop.f32.mrf.mxu0  ;;  %v17173_v24 = vpop.f32.mrf.mxu1  ;;  %17452 = vmatmul.mubr.msk.f32.gmra.mxu0 %vm641_vm2, %v12205_v40 }
 0x446   : > { %v10221_v6 = vadd.f32 %v17117_v16, %v21334_v32  ;;  %17454 = vmatprep.mubr.msk.f32.mxu0 %vm641_vm2, %v12206_v5 }
 0x447   : > { %v10085_v35 = vpop.f32.mrf.mxu0  ;;  %v21530_v38 = vpop.f32.mrf.mxu1 }
 0x448   : > { %v21532_v19 = vadd.f32 %v17173_v24, %v10221_v6  ;;  %v21535_v33 = vadd.f32 %v10085_v35, %v21340_v18  ;;  %v12209_v18 = vld [vmem:[#allocation2 + $0x232] sm:$0xff] }
 0x449   : > { %v17120_v49 = vpop.f32.mrf.mxu0  ;;  %v17176_v43 = vpop.f32.mrf.mxu1  ;;  %17455 = vmatmul.mubr.msk.f32.gmra.mxu0 %vm641_vm2, %v12207_v45  ;;  %v22559_v45 = vld [vmem:[#allocation23_spill] sm:$0xff] }
 0x44a   : > { %v10223_v21 = vadd.f32 %v17120_v49, %v21346_v25  ;;  %17457 = vmatprep.mubr.msk.f32.mxu0 %vm641_vm2, %v12208_v46 }
 0x44b   : > { %v10095_v32 = vpop.f32.mrf.mxu0  ;;  %v21540_v48 = vpop.f32.mrf.mxu1 }
 0x44c   : > { %v21542_v58 = vadd.f32 %v17176_v43, %v10223_v21  ;;  %v21545_v8 = vadd.f32 %v10095_v32, %v21352_v60  ;;  %v12211_v60 = vld [vmem:[#allocation2 + $0x252] sm:$0xff] }
 0x44d   : > { %v17123_v62 = vpop.f32.mrf.mxu0  ;;  %v17179_v7 = vpop.f32.mrf.mxu1  ;;  %17458 = vmatmul.mubr.msk.f32.gmra.mxu0 %vm641_vm2, %v12209_v18  ;;  %v12661_v21 = vld [vmem:[%s22332_s5 + $0x10] sm:$0xff] }
 0x44e   : > { %v10225_v40 = vadd.f32 %v17123_v62, %v21358_v55  ;;  %17460 = vmatprep.mubr.msk.f32.mxu0 %vm641_vm2, %v12210_v61  ;;  %17492 = vmatprep.subr.mxu1 %v12661_v21 }
 0x44f   : > { %v10105_v25 = vpop.f32.mrf.mxu0  ;;  %v21550_v30 = vpop.f32.mrf.mxu1  ;;  %17493 = vmatpush3.msra.mxu1 %v12661_v21 }
 0x450   : > { %v21552_v16 = vadd.f32 %v17179_v7, %v10225_v40  ;;  %v21555_v24 = vadd.f32 %v10105_v25, %v21364_v51  ;;  %v12213_v51 = vld [vmem:[#allocation2 + $0x272] sm:$0xff] }
 0x451   : > { %v17126_v5 = vpop.f32.mrf.mxu0  ;;  %v17182_v6 = vpop.f32.mrf.mxu1  ;;  %17461 = vmatmul.mubr.msk.f32.gmra.mxu0 %vm641_vm2, %v12211_v60  ;;  %v12215_v25 = vld [vmem:[#allocation2 + $0x2b2] sm:$0xff] }
 0x452   : > { %v10227_v35 = vadd.f32 %v17126_v5, %v21370_v29  ;;  %17463 = vmatprep.mubr.msk.f32.mxu0 %vm641_vm2, %v22559_v45  ;;  %v12214_v29 = vld [vmem:[#allocation2 + $0x2a2] sm:$0xff] }
 0x453   : > { %v10115_v55 = vpop.f32.mrf.mxu0  ;;  %v21561_v49 = vpop.f32.mrf.mxu1 }
 0x454   : > { %v21563_v43 = vadd.f32 %v17182_v6, %v10227_v35  ;;  %v21566_v46 = vadd.f32 %v10115_v55, %v21375_v4  ;;  %v12216_v6 = vld [vmem:[#allocation2 + $0x2c2] sm:$0xff] }
 0x455   : > { %v17129_v32 = vpop.f32.mrf.mxu0  ;;  %v17185_v18 = vpop.f32.mrf.mxu1  ;;  %17464 = vmatmul.mubr.msk.f32.gmra.mxu0 %vm641_vm2, %v12213_v51 }
 0x456   : > { %v10229_v62 = vadd.f32 %v17129_v32, %v21381_v42  ;;  %17466 = vmatprep.mubr.msk.f32.mxu0 %vm641_vm2, %v12214_v29  ;;  %v9840_v42 = vadd.f32 %v21393_v26, %v21398_v15  ;;  %v12218_v29 = vld [vmem:[#allocation2 + $0x2e2] sm:$0xff] }
 0x457   : > { %v10125_v7 = vpop.f32.mrf.mxu0  ;;  %v21574_v61 = vpop.f32.mrf.mxu1 }
 0x458   : > { %v21576_v4 = vadd.f32 %v17185_v18, %v10229_v62  ;;  %v21579_v40 = vadd.f32 %v10125_v7, %v21387_v17  ;;  %v12217_v17 = vld [vmem:[#allocation2 + $0x2d2] sm:$0xff]  ;;  %v9842_v62 = vadd.f32 %v21407_v44, %v21412_v59 }
 0x459   : > { %v17132_v60 = vpop.f32.mrf.mxu0  ;;  %v17188_v5 = vpop.f32.mrf.mxu1  ;;  %17467 = vmatmul.mubr.msk.f32.gmra.mxu0 %vm641_vm2, %v12215_v25 }
 0x45a   : > { %v10231_v35 = vadd.f32 %v17132_v60, %v21395_v9  ;;  %17469 = vmatprep.mubr.msk.f32.mxu0 %vm641_vm2, %v12216_v6 }
 0x45b   : > { %v10135_v45 = vpop.f32.mrf.mxu0  ;;  %v10526_v55 = vpop.f32.mrf.mxu1 }
 0x45c   : > { %v21586_v51 = vadd.f32 %v17188_v5, %v10231_v35  ;;  %v10230_v21 = vadd.f32 %v10135_v45, %v9840_v42  ;;  %v12219_v5 = vld [vmem:[#allocation2 + $0x2f2] sm:$0xff]  ;;  %v9844_v35 = vadd.f32 %v21421_v50, %v21426_v1  ;;  %v12222_v50 = vld [vmem:[#allocation2 + $0x342] sm:$0xff] }
 0x45d   : > { %v17135_v32 = vpop.f32.mrf.mxu0  ;;  %v17191_v18 = vpop.f32.mrf.mxu1  ;;  %17470 = vmatmul.mubr.msk.f32.gmra.mxu0 %vm641_vm2, %v12217_v17 }
 0x45e   : > { %v21591_v7 = vadd.f32 %v10526_v55, %v10230_v21  ;;  %v10233_v26 = vadd.f32 %v17135_v32, %v21409_v28  ;;  %17472 = vmatprep.mubr.msk.f32.mxu0 %vm641_vm2, %v12218_v29  ;;  %v22560_v28 = vld [vmem:[#allocation9_spill] sm:$0xff] }
 0x45f   : > { %v10145_v9 = vpop.f32.mrf.mxu0  ;;  %v10536_v15 = vpop.f32.mrf.mxu1  ;;  %v12221_v32 = vld [vmem:[#allocation2 + $0x312] sm:$0xff] }
 0x460   : > { %v21595_v25 = vadd.f32 %v17191_v18, %v10233_v26  ;;  %v10232_v60 = vadd.f32 %v10145_v9, %v9842_v62  ;;  %v12660_v18 = vld [vmem:[%s22332_s5 + $0x8] sm:$0xff] }
 0x461   : > { %v17138_v6 = vpop.f32.mrf.mxu0  ;;  %v17194_v42 = vpop.f32.mrf.mxu1  ;;  %17473 = vmatmul.mubr.msk.f32.gmra.mxu0 %vm641_vm2, %v12219_v5  ;;  %17494 = vmatprep.subr.mxu1 %v12660_v18 }
 0x462   : > { %v21600_v44 = vadd.f32 %v10536_v15, %v10232_v60  ;;  %v10235_v59 = vadd.f32 %v17138_v6, %v21423_v10  ;;  %17475 = vmatprep.mubr.msk.f32.mxu0 %vm641_vm2, %v22560_v28  ;;  %v9846_v10 = vadd.f32 %v21434_v2, %v21439_v27  ;;  %17495 = vmatpush3.msra.mxu1 %v12660_v18  ;;  %v12223_v6 = vld [vmem:[#allocation2 + $0x352] sm:$0xff] }
 0x463   : > { %v10155_v45 = vpop.f32.mrf.mxu0  ;;  %v10546_v55 = vpop.f32.mrf.mxu1  ;;  %v9848_v2 = vadd.f32 %v21448_v34, %v21453_v47  ;;  %v9850_v34 = vadd.f32 %v21462_v14, %v21467_v23 }
 0x464   : > { %v21605_v21 = vadd.f32 %v17194_v42, %v10235_v59  ;;  %v10234_v17 = vadd.f32 %v10155_v45, %v9844_v35  ;;  %v12224_v59 = vld [vmem:[#allocation2 + $0x362] sm:$0xff] }
 0x465   : > { %v17141_v29 = vpop.f32.mrf.mxu0  ;;  %v17197_v62 = vpop.f32.mrf.mxu1  ;;  %17476 = vmatmul.mubr.msk.f32.gmra.mxu0 %vm641_vm2, %v12221_v32  ;;  %v12225_v32 = vld [vmem:[#allocation2 + $0x372] sm:$0xff] }
 0x466   : > { %v21613_v1 = vadd.f32 %v10546_v55, %v10234_v17  ;;  %v10237_v26 = vadd.f32 %v17141_v29, %v21436_v54  ;;  %17478 = vmatprep.mubr.msk.f32.mxu0 %vm641_vm2, %v12222_v50 }
 0x467   : > { %v10165_v9 = vpop.f32.mrf.mxu0  ;;  %v10556_v15 = vpop.f32.mrf.mxu1 }
 0x468   : > { %v21617_v60 = vadd.f32 %v17197_v62, %v10237_v26  ;;  %v10236_v5 = vadd.f32 %v10165_v9, %v9846_v10  ;;  %v12226_v62 = vld [vmem:[#allocation2 + $0x382] sm:$0xff] }
 0x469   : > { %v17144_v42 = vpop.f32.mrf.mxu0  ;;  %v17200_v35 = vpop.f32.mrf.mxu1  ;;  %17479 = vmatmul.mubr.msk.f32.gmra.mxu0 %vm641_vm2, %v12223_v6 }
 0x46a   : > { %v21622_v27 = vadd.f32 %v10556_v15, %v10236_v5  ;;  %v10239_v54 = vadd.f32 %v17144_v42, %v21450_v41  ;;  %17481 = vmatprep.mubr.msk.f32.mxu0 %vm641_vm2, %v12224_v59  ;;  %v12227_v15 = vld [vmem:[#allocation2 + $0x392] sm:$0xff]  ;;  %v9852_v42 = vadd.f32 %v21476_v31, %v21481_v22  ;;  %v9854_v31 = vadd.f32 %v21487_v39, %v21492_v0 }
 0x46b   : > { %v10175_v28 = vpop.f32.mrf.mxu0  ;;  %v10566_v45 = vpop.f32.mrf.mxu1 }
 0x46c   : > { %v21626_v55 = vadd.f32 %v17200_v35, %v10239_v54  ;;  %v10238_v17 = vadd.f32 %v10175_v28, %v9848_v2  ;;  %v12229_v28 = vld [vmem:[#allocation2 + $0x3b2] sm:$0xff] }
 0x46d   : > { %v17147_v18 = vpop.f32.mrf.mxu0  ;;  %v17203_v29 = vpop.f32.mrf.mxu1  ;;  %17482 = vmatmul.mubr.msk.f32.gmra.mxu0 %vm641_vm2, %v12225_v32 }
 0x46e   : > { %v21631_v47 = vadd.f32 %v10566_v45, %v10238_v17  ;;  %v10241_v41 = vadd.f32 %v17147_v18, %v21464_v36  ;;  %17484 = vmatprep.mubr.msk.f32.mxu0 %vm641_vm2, %v12226_v62  ;;  %v22561_v36 = vld [vmem:[#allocation11_spill] sm:$0xff] }
 0x46f   : > { %v10185_v50 = vpop.f32.mrf.mxu0  ;;  %v10576_v10 = vpop.f32.mrf.mxu1  ;;  %v12659_v45 = vld [vmem:[%s22332_s5] sm:$0xff] }
 0x470   : > { %v21635_v26 = vadd.f32 %v17203_v29, %v10241_v41  ;;  %v10240_v9 = vadd.f32 %v10185_v50, %v9850_v34  ;;  %17496 = vmatprep.subr.mxu1 %v12659_v45 }
 0x471   : > { %v17150_v5 = vpop.f32.mrf.mxu0  ;;  %v17206_v6 = vpop.f32.mrf.mxu1  ;;  %17485 = vmatmul.mubr.msk.f32.gmra.mxu0 %vm641_vm2, %v12227_v15  ;;  %17497 = vmatpush3.msra.mxu1 %v12659_v45 }
 0x472   : > { %v21640_v14 = vadd.f32 %v10576_v10, %v10240_v9  ;;  %v10243_v23 = vadd.f32 %v17150_v5, %v21478_v57  ;;  %17487 = vmatprep.mubr.msk.f32.mxu0 %vm641_vm2, %v22561_v36  ;;  %v10605_v10 = vadd.f32 %v21497_v3, %v21502_v52 }
 0x473   : > { %v10195_v35 = vpop.f32.mrf.mxu0  ;;  %v10586_v59 = vpop.f32.mrf.mxu1 }
 0x474   : > { %v21645_v2 = vadd.f32 %v17206_v6, %v10243_v23  ;;  %v10242_v54 = vadd.f32 %v10195_v35, %v9852_v42  ;;  %v10607_v42 = vadd.f32 %v21507_v56, %v21512_v63 }
 0x475   : > { %v17153_v17 = vpop.f32.mrf.mxu0  ;;  %v17209_v32 = vpop.f32.mrf.mxu1  ;;  %17488 = vmatmul.mubr.msk.f32.gmra.mxu0 %vm641_vm2, %v12229_v28 }
 0x476   : > { %v21653_v57 = vadd.f32 %v10586_v59, %v10242_v54  ;;  %v10245_v22 = vadd.f32 %v17153_v17, %v21489_v13  ;;  %v10609_v59 = vadd.f32 %v21517_v11, %v21522_v20  ;;  %v10611_v17 = vadd.f32 %v21530_v38, %v21535_v33 }
 0x477   : > { %v10205_v18 = vpop.f32.mrf.mxu0  ;;  %v10596_v29 = vpop.f32.mrf.mxu1 }
 0x478   : > { %v21656_v62 = vadd.f32 %v17209_v32, %v10245_v22  ;;  %v10244_v34 = vadd.f32 %v10205_v18, %v9854_v31  ;;  %v10613_v18 = vadd.f32 %v21540_v48, %v21545_v8 }
 0x479   : > { %v17220_v41 = vpop.f32.mrf.mxu0  ;;  %v21658_v50 = vpop.f32.mrf.mxu1 }
 0x47a   : > { %v21662_v9 = vadd.f32 %v10596_v29, %v10244_v34  ;;  %v21665_v39 = vadd.f32 %v17220_v41, %v21499_v12 }
 0x47b   : > { %v10836_v0 = vpop.f32.mrf.mxu0  ;;  %v21667_v15 = vpop.f32.mrf.mxu1 }
 0x47c   : > { %v21669_v13 = vadd.f32 %v10836_v0, %v10605_v10  ;;  %v10615_v10 = vadd.f32 %v21550_v30, %v21555_v24 }
 0x47d   : > { %v17223_v5 = vpop.f32.mrf.mxu0  ;;  %v21671_v6 = vpop.f32.mrf.mxu1 }
 0x47e   : > { %v21676_v23 = vadd.f32 %v17223_v5, %v21509_v53 }
 0x47f   : > { %v10846_v3 = vpop.f32.mrf.mxu0  ;;  %v21678_v52 = vpop.f32.mrf.mxu1 }
 0x480   : > { %v21680_v36 = vadd.f32 %v10846_v3, %v10607_v42  ;;  %v10617_v3 = vadd.f32 %v21561_v49, %v21566_v46 }
 0x481   : > { %v17226_v12 = vpop.f32.mrf.mxu0  ;;  %v21682_v35 = vpop.f32.mrf.mxu1 }
 0x482   : > { %v21687_v54 = vadd.f32 %v17226_v12, %v21519_v37 }
 0x483   : > { %v10856_v28 = vpop.f32.mrf.mxu0  ;;  %v21689_v45 = vpop.f32.mrf.mxu1 }
 0x484   : > { %v21691_v56 = vadd.f32 %v10856_v28, %v10609_v59 }
 0x485   : > { %v17229_v53 = vpop.f32.mrf.mxu0  ;;  %v21693_v63 = vpop.f32.mrf.mxu1 }
 0x486   : > { %v21698_v32 = vadd.f32 %v17229_v53, %v21532_v19  ;;  %v10619_v53 = vadd.f32 %v21574_v61, %v21579_v40 }
 0x487   : > { %v10866_v31 = vpop.f32.mrf.mxu0  ;;  %v21700_v22 = vpop.f32.mrf.mxu1 }
 0x488   : > { %v21702_v11 = vadd.f32 %v10866_v31, %v10611_v17 }
 0x489   : > { %v17232_v37 = vpop.f32.mrf.mxu0  ;;  %v21704_v20 = vpop.f32.mrf.mxu1 }
 0x48a   : > { %v21709_v29 = vadd.f32 %v17232_v37, %v21542_v58 }
 0x48b   : > { %v10876_v34 = vpop.f32.mrf.mxu0  ;;  %v21711_v41 = vpop.f32.mrf.mxu1 }
 0x48c   : > { %v21713_v38 = vadd.f32 %v10876_v34, %v10613_v18 }
 0x48d   : > { %v17235_v19 = vpop.f32.mrf.mxu0  ;;  %v21715_v33 = vpop.f32.mrf.mxu1 }
 0x48e   : > { %v21720_v0 = vadd.f32 %v17235_v19, %v21552_v16 }
 0x48f   : > { %v10886_v5 = vpop.f32.mrf.mxu0  ;;  %v21722_v42 = vpop.f32.mrf.mxu1 }
 0x490   : > { %v21724_v48 = vadd.f32 %v10886_v5, %v10615_v10 }
 0x491   : > { %v17238_v58 = vpop.f32.mrf.mxu0  ;;  %v21726_v8 = vpop.f32.mrf.mxu1 }
 0x492   : > { %v21731_v12 = vadd.f32 %v17238_v58, %v21563_v43 }
 0x493   : > { %v10896_v59 = vpop.f32.mrf.mxu0  ;;  %v21733_v28 = vpop.f32.mrf.mxu1 }
 0x494   : > { %v21735_v30 = vadd.f32 %v10896_v59, %v10617_v3 }
 0x495   : > { %v17241_v16 = vpop.f32.mrf.mxu0  ;;  %v21737_v24 = vpop.f32.mrf.mxu1 }
 0x496   : > { %22562 = vst [vmem:[#allocation13_spill] sm:$0xff] %v21737_v24  ;;  %v21742_v17 = vadd.f32 %v17241_v16, %v21576_v4 }
 0x497   : > { %v10906_v31 = vpop.f32.mrf.mxu0  ;;  %v21744_v37 = vpop.f32.mrf.mxu1 }
 0x498   : > { %22563 = vst [vmem:[#allocation12_spill] sm:$0xff] %v21744_v37  ;;  %v21746_v49 = vadd.f32 %v10906_v31, %v10619_v53 }
 0x499   : > { %v17244_v43 = vpop.f32.mrf.mxu0  ;;  %v21748_v46 = vpop.f32.mrf.mxu1 }
 0x49a   : > { %22564 = vst [vmem:[#allocation14_spill] sm:$0xff] %v21746_v49  ;;  %22565 = vst [vmem:[#allocation15_spill] sm:$0xff] %v21748_v46  ;;  %v21751_v18 = vadd.f32 %v17244_v43, %v21586_v51 }
 0x49b   : > { %v10916_v34 = vpop.f32.mrf.mxu0  ;;  %v21753_v19 = vpop.f32.mrf.mxu1 }
 0x49c   : > { %22566 = vst [vmem:[#allocation16_spill] sm:$0xff] %v21751_v18  ;;  %22567 = vst [vmem:[#allocation17_spill] sm:$0xff] %v21753_v19  ;;  %v21756_v10 = vadd.f32 %v10916_v34, %v21591_v7 }
 0x49d   : > { %v17247_v61 = vpop.f32.mrf.mxu0  ;;  %v21758_v4 = vpop.f32.mrf.mxu1 }
 0x49e   : > { %22568 = vst [vmem:[#allocation18_spill] sm:$0xff] %v21756_v10  ;;  %22569 = vst [vmem:[#allocation19_spill] sm:$0xff] %v21758_v4  ;;  %v21761_v40 = vadd.f32 %v17247_v61, %v21595_v25 }
 0x49f   : > { %v10926_v5 = vpop.f32.mrf.mxu0  ;;  %v21763_v58 = vpop.f32.mrf.mxu1 }
 0x4a0   : > { %22570 = vst [vmem:[#allocation20_spill] sm:$0xff] %v21761_v40  ;;  %22571 = vst [vmem:[#allocation21_spill] sm:$0xff] %v21763_v58  ;;  %v21766_v3 = vadd.f32 %v10926_v5, %v21600_v44 }
 0x4a1   : > { %v17250_v51 = vpop.f32.mrf.mxu0  ;;  %v21768_v59 = vpop.f32.mrf.mxu1 }
 0x4a2   : > { %22572 = vst [vmem:[#allocation24_spill] sm:$0xff] %v21766_v3  ;;  %22573 = vst [vmem:[#allocation25_spill] sm:$0xff] %v21768_v59  ;;  %v21771_v16 = vadd.f32 %v17250_v51, %v21605_v21 }
 0x4a3   : > { %v10936_v7 = vpop.f32.mrf.mxu0  ;;  %v21773_v53 = vpop.f32.mrf.mxu1 }
 0x4a4   : > { %22574 = vst [vmem:[#allocation26_spill] sm:$0xff] %v21771_v16  ;;  %22575 = vst [vmem:[#allocation22_spill] sm:$0xff] %v21773_v53  ;;  %v21776_v31 = vadd.f32 %v10936_v7, %v21613_v1 }
 0x4a5   : > { %v17253_v25 = vpop.f32.mrf.mxu0  ;;  %v21778_v43 = vpop.f32.mrf.mxu1 }
 0x4a6   : > { %22576 = vst [vmem:[#allocation4_spill] sm:$0xff] %v21776_v31  ;;  %22577 = vst [vmem:[#allocation3_spill] sm:$0xff] %v21778_v43  ;;  %v21781_v34 = vadd.f32 %v17253_v25, %v21617_v60 }
 0x4a7   : > { %v10946_v44 = vpop.f32.mrf.mxu0  ;;  %v21783_v61 = vpop.f32.mrf.mxu1 }
 0x4a8   : > { %22578 = vst [vmem:[#allocation5_spill] sm:$0xff] %v21781_v34  ;;  %22579 = vst [vmem:[#allocation6_spill] sm:$0xff] %v21783_v61  ;;  %v21786_v5 = vadd.f32 %v10946_v44, %v21622_v27 }
 0x4a9   : > { %v17256_v21 = vpop.f32.mrf.mxu0  ;;  %v21788_v51 = vpop.f32.mrf.mxu1 }
 0x4aa   : > { %22580 = vst [vmem:[#allocation7_spill] sm:$0xff] %v21786_v5  ;;  %22581 = vst [vmem:[#allocation8_spill] sm:$0xff] %v21788_v51  ;;  %v21791_v53 = vadd.f32 %v17256_v21, %v21626_v55 }
 0x4ab   : > { %v10956_v1 = vpop.f32.mrf.mxu0  ;;  %v21793_v7 = vpop.f32.mrf.mxu1 }
 0x4ac   : > { %22582 = vst [vmem:[#allocation10_spill] sm:$0xff] %v21791_v53  ;;  %22583 = vst [vmem:[#allocation23_spill] sm:$0xff] %v21793_v7  ;;  %v21796_v43 = vadd.f32 %v10956_v1, %v21631_v47 }
 0x4ad   : > { %v17259_v60 = vpop.f32.mrf.mxu0  ;;  %v21798_v25 = vpop.f32.mrf.mxu1 }
 0x4ae   : > { %22584 = vst [vmem:[#allocation9_spill] sm:$0xff] %v21796_v43  ;;  %22585 = vst [vmem:[#allocation11_spill] sm:$0xff] %v21798_v25  ;;  %v21801_v61 = vadd.f32 %v17259_v60, %v21635_v26 }
 0x4af   : > { %v10966_v27 = vpop.f32.mrf.mxu0  ;;  %v21803_v44 = vpop.f32.mrf.mxu1 }
 0x4b0   : > { %22586 = vst [vmem:[#allocation27_spill] sm:$0xff] %v21801_v61  ;;  %22587 = vst [vmem:[#allocation28_spill] sm:$0xff] %v21803_v44  ;;  %v21806_v51 = vadd.f32 %v10966_v27, %v21640_v14 }
 0x4b1   : > { %v17262_v55 = vpop.f32.mrf.mxu0  ;;  %v21808_v21 = vpop.f32.mrf.mxu1 }
 0x4b2   : > { %22588 = vst [vmem:[#allocation29_spill] sm:$0xff] %v21806_v51  ;;  %22589 = vst [vmem:[#allocation30_spill] sm:$0xff] %v21808_v21  ;;  %v21811_v7 = vadd.f32 %v17262_v55, %v21645_v2 }
 0x4b3   : > { %v10976_v47 = vpop.f32.mrf.mxu0  ;;  %v21813_v1 = vpop.f32.mrf.mxu1 }
 0x4b4   : > { %22590 = vst [vmem:[#allocation31_spill] sm:$0xff] %v21811_v7  ;;  %22591 = vst [vmem:[#allocation32_spill] sm:$0xff] %v21813_v1  ;;  %v21816_v25 = vadd.f32 %v10976_v47, %v21653_v57 }
 0x4b5   : > { %v17265_v26 = vpop.f32.mrf.mxu0  ;;  %v21818_v60 = vpop.f32.mrf.mxu1 }
 0x4b6   : > { %22592 = vst [vmem:[#allocation33_spill] sm:$0xff] %v21816_v25  ;;  %22593 = vst [vmem:[#allocation34_spill] sm:$0xff] %v21818_v60  ;;  %v21821_v44 = vadd.f32 %v17265_v26, %v21656_v62 }
 0x4b7   : > { %v10986_v14 = vpop.f32.mrf.mxu0  ;;  %v21823_v27 = vpop.f32.mrf.mxu1 }
 0x4b8   : > { %22594 = vst [vmem:[#allocation35_spill] sm:$0xff] %v21821_v44  ;;  %22595 = vst [vmem:[#allocation36_spill] sm:$0xff] %v21823_v27  ;;  %v21826_v21 = vadd.f32 %v10986_v14, %v21662_v9 }
 0x4b9   : > { %v17332_v2 = vpop.f32.mrf.mxu0  ;;  %v17388_v55 = vpop.f32.mrf.mxu1 }
 0x4ba   : > { %22596 = vst [vmem:[#allocation37_spill] sm:$0xff] %v21826_v21 }
 0x4bb   : > { %v11617_v7 = vpop.f32.mrf.mxu0  ;;  %v12007_v51 = vpop.f32.mrf.mxu1 }
 0x4bd   : > { %v17335_v1 = vpop.f32.mrf.mxu0  ;;  %v17391_v57 = vpop.f32.mrf.mxu1 }
 0x4bf   : > { %v11627_v61 = vpop.f32.mrf.mxu0  ;;  %v21830_v60 = vpop.f32.mrf.mxu1 }
 0x4c1   : > { %v17338_v47 = vpop.f32.mrf.mxu0  ;;  %v21836_v27 = vpop.f32.mrf.mxu1 }
 0x4c3   : > { %v21828_v25 = vpop.f32.mrf.mxu0  ;;  %v21842_v21 = vpop.f32.mrf.mxu1 }
 0x4c5   : > { %v21832_v62 = vpop.f32.mrf.mxu0  ;;  %v21848_v53 = vpop.f32.mrf.mxu1 }
 0x4c7   : > { %v21834_v26 = vpop.f32.mrf.mxu0  ;;  %v21854_v31 = vpop.f32.mrf.mxu1 }
 0x4c9   : > { %v21838_v9 = vpop.f32.mrf.mxu0  ;;  %v21860_v58 = vpop.f32.mrf.mxu1 }
 0x4cb   : > { %v21840_v14 = vpop.f32.mrf.mxu0  ;;  %v21866_v40 = vpop.f32.mrf.mxu1 }
 0x4cd   : > { %v21844_v44 = vpop.f32.mrf.mxu0  ;;  %v21872_v46 = vpop.f32.mrf.mxu1 }
 0x4cf   : > { %v21846_v43 = vpop.f32.mrf.mxu0 }
 0x4d1   : > { %v21850_v5 = vpop.f32.mrf.mxu0 }
 0x4d3   : > { %v21852_v34 = vpop.f32.mrf.mxu0 }
 0x4d4   : > { %22597 = vst [vmem:[#allocation38_spill] sm:$0xff] %v21852_v34 }
 0x4d5   : > { %v21856_v59 = vpop.f32.mrf.mxu0 }
 0x4d6   : > { %22598 = vst [vmem:[#allocation39_spill] sm:$0xff] %v21856_v59  ;;  %v21878_v59 = vpop.f32.mrf.mxu1 }
 0x4d7   : > { %v21858_v16 = vpop.f32.mrf.mxu0  ;;  %22606 = vst [vmem:[#allocation47_spill] sm:$0xff] %v21878_v59 }
 0x4d8   : > { %22599 = vst [vmem:[#allocation40_spill] sm:$0xff] %v21858_v16 }
 0x4d9   : > { %v21862_v3 = vpop.f32.mrf.mxu0 }
 0x4da   : > { %22600 = vst [vmem:[#allocation41_spill] sm:$0xff] %v21862_v3  ;;  %v21884_v3 = vpop.f32.mrf.mxu1 }
 0x4db   : > { %v21864_v4 = vpop.f32.mrf.mxu0  ;;  %22609 = vst [vmem:[#allocation50_spill] sm:$0xff] %v21884_v3 }
 0x4dc   : > { %22601 = vst [vmem:[#allocation42_spill] sm:$0xff] %v21864_v4 }
 0x4dd   : > { %v21868_v19 = vpop.f32.mrf.mxu0 }
 0x4de   : > { %22602 = vst [vmem:[#allocation43_spill] sm:$0xff] %v21868_v19  ;;  %v21890_v19 = vpop.f32.mrf.mxu1 }
 0x4df   : > { %v21870_v10 = vpop.f32.mrf.mxu0  ;;  %22612 = vst [vmem:[#allocation53_spill] sm:$0xff] %v21890_v19 }
 0x4e0   : > { %22603 = vst [vmem:[#allocation44_spill] sm:$0xff] %v21870_v10 }
 0x4e1   : > { %v21874_v18 = vpop.f32.mrf.mxu0 }
 0x4e2   : > { %22604 = vst [vmem:[#allocation45_spill] sm:$0xff] %v21874_v18  ;;  %v21896_v18 = vpop.f32.mrf.mxu1 }
 0x4e3   : > { %v21876_v37 = vpop.f32.mrf.mxu0  ;;  %22615 = vst [vmem:[#allocation56_spill] sm:$0xff] %v21896_v18 }
 0x4e4   : > { %22605 = vst [vmem:[#allocation46_spill] sm:$0xff] %v21876_v37 }
 0x4e5   : > { %v21880_v16 = vpop.f32.mrf.mxu0 }
 0x4e6   : > { %22607 = vst [vmem:[#allocation48_spill] sm:$0xff] %v21880_v16  ;;  %v11386_v16 = vadd.f32 %v21658_v50, %v21665_v39 }
 0x4e7   : > { %v21882_v49 = vpop.f32.mrf.mxu0 }
 0x4e8   : > { %22608 = vst [vmem:[#allocation49_spill] sm:$0xff] %v21882_v49  ;;  %v11777_v3 = vadd.f32 %v17332_v2, %v11386_v16 }
 0x4e9   : > { %v21886_v4 = vpop.f32.mrf.mxu0 }
 0x4ea   : > { %22610 = vst [vmem:[#allocation51_spill] sm:$0xff] %v21886_v4  ;;  %v11385_v4 = vadd.f32 %v21667_v15, %v21669_v13  ;;  %v12167_v50 = vadd.f32 %v17388_v55, %v11777_v3  ;;  %v11390_v15 = vadd.f32 %v21682_v35, %v21687_v54  ;;  %v11392_v3 = vadd.f32 %v21693_v63, %v21698_v32 }
 0x4eb   : > { %v21888_v34 = vpop.f32.mrf.mxu0  ;;  %v11394_v55 = vadd.f32 %v21704_v20, %v21709_v29 }
 0x4ec   : > { %22611 = vst [vmem:[#allocation52_spill] sm:$0xff] %v21888_v34  ;;  %v21906_v34 = vpop.f32.mrf.mxu1  ;;  %v11783_v63 = vadd.f32 %v21832_v62, %v11392_v3  ;;  %v11393_v62 = vadd.f32 %v21711_v41, %v21713_v38 }
 0x4ed   : > { %v21892_v10 = vpop.f32.mrf.mxu0  ;;  %v11785_v29 = vadd.f32 %v21838_v9, %v11394_v55  ;;  %v11395_v9 = vadd.f32 %v21722_v42, %v21724_v48 }
 0x4ee   : > { %22613 = vst [vmem:[#allocation54_spill] sm:$0xff] %v21892_v10  ;;  %v11776_v10 = vadd.f32 %v11617_v7, %v11385_v4  ;;  %v12173_v20 = vadd.f32 %v21848_v53, %v11783_v63  ;;  %v11784_v38 = vadd.f32 %v21840_v14, %v11393_v62 }
 0x4ef   : > { %v21894_v24 = vpop.f32.mrf.mxu0  ;;  %v11786_v48 = vadd.f32 %v21846_v43, %v11395_v9  ;;  %v22629_v9 = vld [vmem:[#allocation18_spill] sm:$0xff] }
 0x4f0   : > { %22614 = vst [vmem:[#allocation55_spill] sm:$0xff] %v21894_v24  ;;  %v11388_v24 = vadd.f32 %v21671_v6, %v21676_v23  ;;  %v12166_v13 = vadd.f32 %v12007_v51, %v11776_v10  ;;  %v21923_v6 = vld [vmem:[%s22331_s4] ss:$0 sm:$0xff]  ;;  %v12174_v42 = vadd.f32 %v21866_v40, %v11784_v38  ;;  %v22618_v40 = vld [vmem:[#allocation13_spill] sm:$0xff] }
 0x4f1   : > { %v21898_v37 = vpop.f32.mrf.mxu0  ;;  %v11400_v43 = vadd.f32 %v22618_v40, %v21742_v17  ;;  %v22623_v17 = vld [vmem:[#allocation50_spill] sm:$0xff] }
 0x4f2   : > { %22616 = vst [vmem:[#allocation57_spill] sm:$0xff] %v21898_v37  ;;  %v11387_v37 = vadd.f32 %v21678_v52, %v21680_v36  ;;  %v11779_v39 = vadd.f32 %v17335_v1, %v11388_v24  ;;  %v11389_v52 = vadd.f32 %v21689_v45, %v21691_v56  ;;  %v11781_v24 = vadd.f32 %v17338_v47, %v11390_v15 }
 0x4f3   : > { %v21902_v49 = vpop.f32.mrf.mxu0  ;;  %v11391_v45 = vadd.f32 %v21700_v22, %v21702_v11 }
 0x4f4   : > { %22617 = vst [vmem:[#allocation58_spill] sm:$0xff] %v21902_v49  ;;  %v21916_v49 = vpop.f32.mrf.mxu1  ;;  %v11778_v16 = vadd.f32 %v11627_v61, %v11387_v37  ;;  %v12169_v36 = vadd.f32 %v17391_v57, %v11779_v39  ;;  %v11780_v10 = vadd.f32 %v21828_v25, %v11389_v52  ;;  %v12171_v51 = vadd.f32 %v21836_v27, %v11781_v24 }
 0x4f5   : > { %v21908_v19 = vpop.f32.mrf.mxu0  ;;  %v11782_v22 = vadd.f32 %v21834_v26, %v11391_v45 }
 0x4f6   : > { %v21929_v7 = vpop.f32.mrf.mxu1  ;;  %v12168_v37 = vadd.f32 %v21830_v60, %v11778_v16 }
 0x4f7   : > { %v21912_v18 = vpop.f32.mrf.mxu0  ;;  %v12172_v41 = vadd.f32 %v21854_v31, %v11782_v22  ;;  %v11398_v31 = vadd.f32 %v21726_v8, %v21731_v12  ;;  %v22624_v22 = vld [vmem:[#allocation39_spill] sm:$0xff] }
 0x4f8   : > { %v21941_v57 = vpop.f32.mrf.mxu1 }
 0x4f9   : > { %v17444_v59 = vpop.f32.mrf.mxu0  ;;  %v11789_v12 = vadd.f32 %v21850_v5, %v11398_v31  ;;  %v22621_v5 = vld [vmem:[#allocation14_spill] sm:$0xff]  ;;  %v22632_v31 = vld [vmem:[#allocation41_spill] sm:$0xff] }
 0x4fa   : > { %v12557_v2 = vadd.f32 %v17444_v59, %v12167_v50  ;;  %v12170_v50 = vadd.f32 %v21842_v21, %v11780_v10  ;;  %v11396_v21 = vadd.f32 %v21715_v33, %v21720_v0  ;;  %v21955_v26 = vpop.f32.mrf.mxu1  ;;  %v12175_v33 = vadd.f32 %v21860_v58, %v11785_v29 }
 0x4fb   : > { %v12397_v23 = vpop.f32.mrf.mxu0 }
 0x4fc   : > { %v12556_v4 = vadd.f32 %v12397_v23, %v12166_v13  ;;  %v12596_v35 = vadd.f32 %v21923_v6, %v12557_v2  ;;  %v11787_v0 = vadd.f32 %v21844_v44, %v11396_v21  ;;  %v21969_v14 = vpop.f32.mrf.mxu1  ;;  %v11397_v44 = vadd.f32 %v21733_v28, %v21735_v30  ;;  %v22620_v30 = vld [vmem:[#allocation38_spill] sm:$0xff] }
 0x4fd   : > { %v17447_v54 = vpop.f32.mrf.mxu0 }
 0x4fe   : > { %v12595_v59 = vadd.f32 %v21923_v6, %v12556_v4  ;;  %v12559_v61 = vadd.f32 %v17447_v54, %v12169_v36  ;;  %v12628_v60 = vmax.f32 %v12596_v35, 0.0  ;;  %v12177_v8 = vadd.f32 %v21872_v46, %v11787_v0  ;;  %v21983_v45 = vpop.f32.mrf.mxu1 }
 0x4ff   : > { %v12407_v56 = vpop.f32.mrf.mxu0 }
 0x500   : > { %v12627_v32 = vmax.f32 %v12595_v59, 0.0  ;;  %v12558_v1 = vadd.f32 %v12407_v56, %v12168_v37  ;;  %v12598_v25 = vadd.f32 %v21923_v6, %v12559_v61 }
 0x501   : > { %v17450_v47 = vpop.f32.mrf.mxu0 }
 0x502   : > { %v12597_v11 = vadd.f32 %v21923_v6, %v12558_v1  ;;  %v12561_v27 = vadd.f32 %v17450_v47, %v12171_v51  ;;  %17498 = vmatprep.mubr.msk.f32.mxu1 %vm641_vm2, %v12627_v32  ;;  %v12630_v16 = vmax.f32 %v12598_v25, 0.0  ;;  %v22619_v32 = vld [vmem:[#allocation47_spill] sm:$0xff]  ;;  %v11788_v1 = vadd.f32 %v22620_v30, %v11397_v44 }
 0x503   : > { %v12417_v39 = vpop.f32.mrf.mxu0  ;;  %17499 = vmatmul.mubr.msk.f32.vlgmr.msra.gmra.mxu1 %vm641_vm2, %v12628_v60  ;;  %v12176_v28 = vadd.f32 %v22619_v32, %v11786_v48  ;;  %v22622_v60 = vld [vmem:[#allocation12_spill] sm:$0xff]  ;;  %v22634_v48 = vld [vmem:[#allocation19_spill] sm:$0xff] }
 0x504   : > { %v12629_v15 = vmax.f32 %v12597_v11, 0.0  ;;  %v12560_v13 = vadd.f32 %v12417_v39, %v12170_v50  ;;  %v12600_v2 = vadd.f32 %v21923_v6, %v12561_v27  ;;  %v11399_v25 = vadd.f32 %v22622_v60, %v22621_v5  ;;  %v22625_v39 = vld [vmem:[#allocation16_spill] sm:$0xff]  ;;  %v22638_v30 = vld [vmem:[#allocation43_spill] sm:$0xff]  ;;  %v22640_v5 = vld [vmem:[#allocation25_spill] sm:$0xff] }
 0x505   : > { %v17453_v23 = vpop.f32.mrf.mxu0  ;;  %v12179_v50 = vadd.f32 %v22623_v17, %v11789_v12  ;;  %v11791_v11 = vadd.f32 %v22624_v22, %v11400_v43 }
 0x506   : > { %v12599_v52 = vadd.f32 %v21923_v6, %v12560_v13  ;;  %v12563_v53 = vadd.f32 %v17453_v23, %v12173_v20  ;;  %17501 = vmatprep.mubr.msk.f32.mxu1 %vm641_vm2, %v12629_v15  ;;  %v12632_v3 = vmax.f32 %v12600_v2, 0.0  ;;  %v22626_v20 = vld [vmem:[#allocation15_spill] sm:$0xff]  ;;  %v21997_v15 = vpop.f32.mrf.mxu1  ;;  %v22627_v2 = vld [vmem:[#allocation53_spill] sm:$0xff] }
 0x507   : > { %v12427_v36 = vpop.f32.mrf.mxu0  ;;  %17502 = vmatmul.mubr.msk.f32.gmra.mxu1 %vm641_vm2, %v12630_v16  ;;  %v11402_v29 = vadd.f32 %v22626_v20, %v22625_v39  ;;  %v12178_v23 = vadd.f32 %v22627_v2, %v11788_v1  ;;  %v22642_v39 = vld [vmem:[#allocation4_spill] sm:$0xff]  ;;  %v22643_v20 = vld [vmem:[#allocation22_spill] sm:$0xff] }
 0x508   : > { %v12631_v24 = vmax.f32 %v12599_v52, 0.0  ;;  %v12562_v4 = vadd.f32 %v12427_v36, %v12172_v41  ;;  %v12602_v35 = vadd.f32 %v21923_v6, %v12563_v53  ;;  %v22628_v41 = vld [vmem:[#allocation40_spill] sm:$0xff]  ;;  %v22630_v36 = vld [vmem:[#allocation17_spill] sm:$0xff] }
 0x509   : > { %v17456_v54 = vpop.f32.mrf.mxu0  ;;  %v11790_v38 = vadd.f32 %v22628_v41, %v11399_v25 }
 0x50a   : > { %v12601_v37 = vadd.f32 %v21923_v6, %v12562_v4  ;;  %v12565_v58 = vadd.f32 %v17456_v54, %v12175_v33  ;;  %17504 = vmatprep.mubr.msk.f32.mxu1 %vm641_vm2, %v12631_v24  ;;  %v12634_v56 = vmax.f32 %v12602_v35, 0.0  ;;  %v11401_v33 = vadd.f32 %v22630_v36, %v22629_v9  ;;  %v22631_v24 = vld [vmem:[#allocation56_spill] sm:$0xff] }
 0x50b   : > { %v12437_v10 = vpop.f32.mrf.mxu0  ;;  %17505 = vmatmul.mubr.msk.f32.gmra.mxu1 %vm641_vm2, %v12632_v3  ;;  %v12181_v4 = vadd.f32 %v22631_v24, %v11791_v11  ;;  %v11793_v3 = vadd.f32 %v22632_v31, %v11402_v29  ;;  %v12180_v12 = vadd.f32 %v21906_v34, %v11790_v38  ;;  %v22639_v34 = vld [vmem:[#allocation26_spill] sm:$0xff]  ;;  %v22641_v11 = vld [vmem:[#allocation44_spill] sm:$0xff]  ;;  %v11405_v29 = vadd.f32 %v22643_v20, %v22642_v39  ;;  %v22646_v38 = vld [vmem:[#allocation3_spill] sm:$0xff] }
 0x50c   : > { %v12633_v59 = vmax.f32 %v12601_v37, 0.0  ;;  %v12564_v61 = vadd.f32 %v12437_v10, %v12174_v42  ;;  %v12604_v51 = vadd.f32 %v21923_v6, %v12565_v58  ;;  %v22633_v42 = vld [vmem:[#allocation20_spill] sm:$0xff]  ;;  %v22011_v58 = vpop.f32.mrf.mxu1  ;;  %v11406_v60 = vadd.f32 %v22640_v5, %v22639_v34  ;;  %v22647_v24 = vld [vmem:[#allocation46_spill] sm:$0xff]  ;;  %v22656_v5 = vld [vmem:[#allocation51_spill] sm:$0xff] }
 0x50d   : > { %v17459_v63 = vpop.f32.mrf.mxu0  ;;  %v11404_v37 = vadd.f32 %v22634_v48, %v22633_v42  ;;  %v22659_v20 = vld [vmem:[#allocation52_spill] sm:$0xff] }
 0x50e   : > { %v12603_v55 = vadd.f32 %v21923_v6, %v12564_v61  ;;  %v12567_v46 = vadd.f32 %v17459_v63, %v12177_v8  ;;  %17507 = vmatprep.mubr.msk.f32.mxu1 %vm641_vm2, %v12633_v59  ;;  %v12636_v13 = vmax.f32 %v12604_v51, 0.0  ;;  %v22635_v59 = vld [vmem:[#allocation42_spill] sm:$0xff]  ;;  %v22637_v51 = vld [vmem:[#allocation21_spill] sm:$0xff]  ;;  %v22025_v25 = vpop.f32.mrf.mxu1 }
 0x50f   : > { %v12447_v47 = vpop.f32.mrf.mxu0  ;;  %17508 = vmatmul.mubr.msk.f32.gmra.mxu1 %vm641_vm2, %v12634_v56  ;;  %v11792_v61 = vadd.f32 %v22635_v59, %v11401_v33  ;;  %v22636_v56 = vld [vmem:[#allocation24_spill] sm:$0xff]  ;;  %v11795_v1 = vadd.f32 %v22638_v30, %v11404_v37 }
 0x510   : > { %v12635_v27 = vmax.f32 %v12603_v55, 0.0  ;;  %v12566_v62 = vadd.f32 %v12447_v47, %v12176_v28  ;;  %v12606_v21 = vadd.f32 %v21923_v6, %v12567_v46  ;;  %v11403_v63 = vadd.f32 %v22637_v51, %v22636_v56  ;;  %v22650_v37 = vld [vmem:[#allocation48_spill] sm:$0xff] }
 0x511   : > { %v17462_v16 = vpop.f32.mrf.mxu0  ;;  %v12183_v28 = vadd.f32 %v21916_v49, %v11793_v3  ;;  %v12182_v22 = vadd.f32 %v21929_v7, %v11792_v61  ;;  %v22645_v7 = vld [vmem:[#allocation5_spill] sm:$0xff] }
 0x512   : > { %v12605_v52 = vadd.f32 %v21923_v6, %v12566_v62  ;;  %v12569_v53 = vadd.f32 %v17462_v16, %v12179_v50  ;;  %17510 = vmatprep.mubr.msk.f32.mxu1 %vm641_vm2, %v12635_v27  ;;  %v12638_v44 = vmax.f32 %v12606_v21, 0.0  ;;  %v11794_v27 = vadd.f32 %v22641_v11, %v11403_v63  ;;  %v22644_v16 = vld [vmem:[#allocation45_spill] sm:$0xff] }
 0x513   : > { %v12457_v0 = vpop.f32.mrf.mxu0  ;;  %17511 = vmatmul.mubr.msk.f32.gmra.mxu1 %vm641_vm2, %v12636_v13  ;;  %v12185_v21 = vadd.f32 %v21941_v57, %v11795_v1  ;;  %v11797_v2 = vadd.f32 %v22644_v16, %v11406_v60  ;;  %v22648_v57 = vld [vmem:[#allocation7_spill] sm:$0xff]  ;;  %v22653_v63 = vld [vmem:[#allocation49_spill] sm:$0xff]  ;;  %v22661_v16 = vld [vmem:[#allocation28_spill] sm:$0xff] }
 0x514   : > { %v12637_v35 = vmax.f32 %v12605_v52, 0.0  ;;  %v12568_v54 = vadd.f32 %v12457_v0, %v12178_v23  ;;  %v12608_v10 = vadd.f32 %v21923_v6, %v12569_v53  ;;  %v11408_v52 = vadd.f32 %v22646_v38, %v22645_v7  ;;  %v12127_v53 = vpop.f32.mrf.mxu1  ;;  %v22655_v1 = vld [vmem:[#allocation23_spill] sm:$0xff]  ;;  %v22662_v7 = vld [vmem:[#allocation54_spill] sm:$0xff] }
 0x515   : > { %v17465_v8 = vpop.f32.mrf.mxu0  ;;  %v12184_v0 = vadd.f32 %v21955_v26, %v11794_v27  ;;  %v12187_v48 = vadd.f32 %v21969_v14, %v11797_v2  ;;  %v22651_v26 = vld [vmem:[#allocation10_spill] sm:$0xff]  ;;  %v22654_v14 = vld [vmem:[#allocation9_spill] sm:$0xff] }
 0x516   : > { %v12607_v40 = vadd.f32 %v21923_v6, %v12568_v54  ;;  %v12571_v43 = vadd.f32 %v17465_v8, %v12181_v4  ;;  %17513 = vmatprep.mubr.msk.f32.mxu1 %vm641_vm2, %v12637_v35  ;;  %v12640_v47 = vmax.f32 %v12608_v10, 0.0  ;;  %v11796_v4 = vadd.f32 %v22647_v24, %v11405_v29  ;;  %v22649_v35 = vld [vmem:[#allocation6_spill] sm:$0xff]  ;;  %v17427_v61 = vpop.f32.mrf.mxu1 }
 0x517   : > { %v12467_v32 = vpop.f32.mrf.mxu0  ;;  %17514 = vmatmul.mubr.msk.f32.gmra.mxu1 %vm641_vm2, %v12638_v44  ;;  %v11407_v54 = vadd.f32 %v22649_v35, %v22648_v57  ;;  %v11799_v44 = vadd.f32 %v22650_v37, %v11408_v52  ;;  %v22665_v57 = vld [vmem:[#allocation55_spill] sm:$0xff] }
 0x518   : > { %v12639_v55 = vmax.f32 %v12607_v40, 0.0  ;;  %v12570_v46 = vadd.f32 %v12467_v32, %v12180_v12  ;;  %v12610_v17 = vadd.f32 %v21923_v6, %v12571_v43  ;;  %v22652_v12 = vld [vmem:[#allocation8_spill] sm:$0xff]  ;;  %v12186_v51 = vadd.f32 %v21983_v45, %v11796_v4  ;;  %v22657_v45 = vld [vmem:[#allocation27_spill] sm:$0xff]  ;;  %v12137_v11 = vpop.f32.mrf.mxu1 }
 0x519   : > { %v17468_v50 = vpop.f32.mrf.mxu0  ;;  %v11410_v59 = vadd.f32 %v22652_v12, %v22651_v26  ;;  %v11798_v32 = vadd.f32 %v22653_v63, %v11407_v54  ;;  %v12189_v34 = vadd.f32 %v21997_v15, %v11799_v44  ;;  %v22660_v15 = vld [vmem:[#allocation29_spill] sm:$0xff] }
 0x51a   : > { %v12609_v62 = vadd.f32 %v21923_v6, %v12570_v46  ;;  %v12573_v49 = vadd.f32 %v17468_v50, %v12183_v28  ;;  %17516 = vmatprep.mubr.msk.f32.mxu1 %vm641_vm2, %v12639_v55  ;;  %v12642_v9 = vmax.f32 %v12610_v17, 0.0  ;;  %v11409_v55 = vadd.f32 %v22655_v1, %v22654_v14  ;;  %v22658_v50 = vld [vmem:[#allocation11_spill] sm:$0xff] }
 0x51b   : > { %v12477_v13 = vpop.f32.mrf.mxu0  ;;  %17517 = vmatmul.mubr.msk.f32.gmra.mxu1 %vm641_vm2, %v12640_v47  ;;  %v11801_v60 = vadd.f32 %v22656_v5, %v11410_v59  ;;  %v12188_v39 = vadd.f32 %v22011_v58, %v11798_v32  ;;  %v11411_v2 = vadd.f32 %v22661_v16, %v22660_v15  ;;  %v22663_v58 = vld [vmem:[#allocation31_spill] sm:$0xff] }
 0x51c   : > { %v12641_v23 = vmax.f32 %v12609_v62, 0.0  ;;  %v12572_v41 = vadd.f32 %v12477_v13, %v12182_v22  ;;  %v12612_v36 = vadd.f32 %v21923_v6, %v12573_v49  ;;  %v11412_v22 = vadd.f32 %v22658_v50, %v22657_v45 }
 0x51d   : > { %v17471_v33 = vpop.f32.mrf.mxu0  ;;  %v11800_v29 = vadd.f32 %v22659_v20, %v11409_v55  ;;  %v11802_v35 = vadd.f32 %v22665_v57, %v11411_v2 }
 0x51e   : > { %v12611_v31 = vadd.f32 %v21923_v6, %v12572_v41  ;;  %v12575_v3 = vadd.f32 %v17471_v33, %v12185_v21  ;;  %17519 = vmatprep.mubr.msk.f32.mxu1 %vm641_vm2, %v12641_v23  ;;  %v12644_v40 = vmax.f32 %v12612_v36, 0.0  ;;  %v12191_v41 = vadd.f32 %v22025_v25, %v11801_v60  ;;  %v22664_v36 = vld [vmem:[#allocation30_spill] sm:$0xff]  ;;  %v22666_v25 = vld [vmem:[#allocation33_spill] sm:$0xff] }
 0x51f   : > { %v12487_v42 = vpop.f32.mrf.mxu0  ;;  %17520 = vmatmul.mubr.msk.f32.gmra.mxu1 %vm641_vm2, %v12642_v9  ;;  %v11803_v38 = vadd.f32 %v22662_v7, %v11412_v22  ;;  %v11414_v33 = vadd.f32 %v22664_v36, %v22663_v58 }
 0x520   : > { %v12643_v10 = vmax.f32 %v12611_v31, 0.0  ;;  %v12574_v8 = vadd.f32 %v12487_v42, %v12184_v0  ;;  %v12614_v43 = vadd.f32 %v21923_v6, %v12575_v3  ;;  %v17430_v0 = vpop.f32.mrf.mxu1  ;;  %v12190_v3 = vadd.f32 %v12127_v53, %v11800_v29  ;;  %v22670_v53 = vld [vmem:[#allocation34_spill] sm:$0xff] }
 0x521   : > { %v17474_v56 = vpop.f32.mrf.mxu0 }
 0x522   : > { %v12613_v28 = vadd.f32 %v21923_v6, %v12574_v8  ;;  %v12577_v30 = vadd.f32 %v17474_v56, %v12187_v48  ;;  %17522 = vmatprep.mubr.msk.f32.mxu1 %vm641_vm2, %v12643_v10  ;;  %v12646_v27 = vmax.f32 %v12614_v43, 0.0  ;;  %v22667_v48 = vld [vmem:[#allocation32_spill] sm:$0xff]  ;;  %v12193_v10 = vadd.f32 %v17427_v61, %v11803_v38  ;;  %v22668_v8 = vld [vmem:[#allocation57_spill] sm:$0xff]  ;;  %v12147_v56 = vpop.f32.mrf.mxu1 }
 0x523   : > { %v12497_v46 = vpop.f32.mrf.mxu0  ;;  %17523 = vmatmul.mubr.msk.f32.gmra.mxu1 %vm641_vm2, %v12644_v40  ;;  %v11413_v37 = vadd.f32 %v22667_v48, %v22666_v25  ;;  %v11805_v26 = vadd.f32 %v22668_v8, %v11414_v33  ;;  %v22669_v40 = vld [vmem:[#allocation35_spill] sm:$0xff]  ;;  %v22672_v61 = vld [vmem:[#allocation37_spill] sm:$0xff] }
 0x524   : > { %v12645_v47 = vmax.f32 %v12613_v28, 0.0  ;;  %v12576_v17 = vadd.f32 %v12497_v46, %v12186_v51  ;;  %v12616_v62 = vadd.f32 %v21923_v6, %v12577_v30  ;;  %v11416_v43 = vadd.f32 %v22670_v53, %v22669_v40  ;;  %v22671_v30 = vld [vmem:[#allocation58_spill] sm:$0xff]  ;;  %v22673_v46 = vld [vmem:[#allocation36_spill] sm:$0xff]  ;;  %v17433_v50 = vpop.f32.mrf.mxu1 }
 0x525   : > { %v17477_v49 = vpop.f32.mrf.mxu0  ;;  %v12192_v28 = vadd.f32 %v12137_v11, %v11802_v35  ;;  %v11804_v14 = vadd.f32 %v22671_v30, %v11413_v37  ;;  %v12195_v60 = vadd.f32 %v17430_v0, %v11805_v26 }
 0x526   : > { %v12615_v13 = vadd.f32 %v21923_v6, %v12576_v17  ;;  %v12579_v21 = vadd.f32 %v17477_v49, %v12189_v34  ;;  %17525 = vmatprep.mubr.msk.f32.mxu1 %vm641_vm2, %v12645_v47  ;;  %v12648_v24 = vmax.f32 %v12616_v62, 0.0  ;;  %v11415_v34 = vadd.f32 %v22673_v46, %v22672_v61  ;;  %v12157_v15 = vpop.f32.mrf.mxu1 }
 0x527   : > { %v12507_v23 = vpop.f32.mrf.mxu0  ;;  %17526 = vmatmul.mubr.msk.f32.gmra.mxu1 %vm641_vm2, %v12646_v27  ;;  %v11807_v47 = vadd.f32 %v21908_v19, %v11416_v43  ;;  %v12194_v62 = vadd.f32 %v12147_v56, %v11804_v14 }
 0x528   : > { %v12647_v52 = vmax.f32 %v12615_v13, 0.0  ;;  %v12578_v9 = vadd.f32 %v12507_v23, %v12188_v39  ;;  %v12618_v4 = vadd.f32 %v21923_v6, %v12579_v21  ;;  %v11806_v49 = vadd.f32 %v21912_v18, %v11415_v34 }
 0x529   : > { %v17480_v31 = vpop.f32.mrf.mxu0  ;;  %v12197_v13 = vadd.f32 %v17433_v50, %v11807_v47 }
 0x52a   : > { %v12617_v54 = vadd.f32 %v21923_v6, %v12578_v9  ;;  %v12581_v42 = vadd.f32 %v17480_v31, %v12191_v41  ;;  %17528 = vmatprep.mubr.msk.f32.mxu1 %vm641_vm2, %v12647_v52  ;;  %v12650_v51 = vmax.f32 %v12618_v4, 0.0  ;;  %v12196_v41 = vadd.f32 %v12157_v15, %v11806_v49  ;;  %v22112_v4 = vld [vmem:[%s22333_s6] ss:$0 sm:$0xff] }
 0x52b   : > { %v12517_v44 = vpop.f32.mrf.mxu0  ;;  %17529 = vmatmul.mubr.msk.f32.gmra.mxu1 %vm641_vm2, %v12648_v24 }
 0x52c   : > { %v12649_v12 = vmax.f32 %v12617_v54, 0.0  ;;  %v12580_v59 = vadd.f32 %v12517_v44, %v12190_v3  ;;  %v12620_v63 = vadd.f32 %v21923_v6, %v12581_v42  ;;  %v13024_v3 = vld [vmem:[%s22117_s11 + $0x8] sm:$0xff]  ;;  %v13023_v42 = vld [vmem:[%s22117_s11] sm:$0xff] }
 0x52d   : > { %v17483_v32 = vpop.f32.mrf.mxu0 }
 0x52e   : > { %v12619_v1 = vadd.f32 %v21923_v6, %v12580_v59  ;;  %v12583_v55 = vadd.f32 %v17483_v32, %v12193_v10  ;;  %17531 = vmatprep.mubr.msk.f32.mxu1 %vm641_vm2, %v12649_v12  ;;  %v12652_v22 = vmax.f32 %v12620_v63, 0.0  ;;  %v13026_v10 = vld [vmem:[%s22117_s11 + $0x18] sm:$0xff] }
 0x52f   : > { %v12527_v5 = vpop.f32.mrf.mxu0  ;;  %17532 = vmatmul.mubr.msk.f32.gmra.mxu1 %vm641_vm2, %v12650_v51  ;;  %v13025_v51 = vld [vmem:[%s22117_s11 + $0x10] sm:$0xff] }
 0x530   : > { %v12651_v17 = vmax.f32 %v12619_v1, 0.0  ;;  %v12582_v45 = vadd.f32 %v12527_v5, %v12192_v28  ;;  %v12622_v11 = vadd.f32 %v21923_v6, %v12583_v55  ;;  %v13028_v1 = vld [vmem:[%s22117_s11 + $0x28] sm:$0xff] }
 0x531   : > { %v17486_v27 = vpop.f32.mrf.mxu0 }
 0x532   : > { %v12621_v39 = vadd.f32 %v21923_v6, %v12582_v45  ;;  %v12585_v20 = vadd.f32 %v17486_v27, %v12195_v60  ;;  %17534 = vmatprep.mubr.msk.f32.mxu1 %vm641_vm2, %v12651_v17  ;;  %v12654_v16 = vmax.f32 %v12622_v11, 0.0  ;;  %v13027_v60 = vld [vmem:[%s22117_s11 + $0x20] sm:$0xff] }
 0x533   : > { %v12537_v29 = vpop.f32.mrf.mxu0  ;;  %17535 = vmatmul.mubr.msk.f32.gmra.mxu1 %vm641_vm2, %v12652_v22 }
 0x534   : > { %v12653_v19 = vmax.f32 %v12621_v39, 0.0  ;;  %v12584_v21 = vadd.f32 %v12537_v29, %v12194_v62  ;;  %v12624_v2 = vadd.f32 %v21923_v6, %v12585_v20 }
 0x535   : > { %v17489_v23 = vpop.f32.mrf.mxu0 }
 0x536   : > { %v12623_v7 = vadd.f32 %v21923_v6, %v12584_v21  ;;  %v12587_v18 = vadd.f32 %v17489_v23, %v12197_v13  ;;  %17537 = vmatprep.mubr.msk.f32.mxu1 %vm641_vm2, %v12653_v19  ;;  %v12656_v58 = vmax.f32 %v12624_v2, 0.0  ;;  %v13030_v19 = vld [vmem:[%s22117_s11 + $0x38] sm:$0xff] }
 0x537   : > { %v12547_v38 = vpop.f32.mrf.mxu0  ;;  %17538 = vmatmul.mubr.msk.f32.gmra.mxu1 %vm641_vm2, %v12654_v16 }
 0x538   : > { %v12655_v52 = vmax.f32 %v12623_v7, 0.0  ;;  %v12586_v9 = vadd.f32 %v12547_v38, %v12196_v41  ;;  %v12626_v36 = vadd.f32 %v21923_v6, %v12587_v18 }
 0x53a   : > { %v12625_v33 = vadd.f32 %v21923_v6, %v12586_v9  ;;  %17540 = vmatprep.mubr.msk.f32.mxu1 %vm641_vm2, %v12655_v52  ;;  %v12658_v24 = vmax.f32 %v12626_v36, 0.0  ;;  %v13029_v52 = vld [vmem:[%s22117_s11 + $0x30] sm:$0xff] }
 0x53b   : > { %17541 = vmatmul.mubr.msk.f32.gmra.mxu1 %vm641_vm2, %v12656_v58 }
 0x53c   : > { %v12657_v0 = vmax.f32 %v12625_v33, 0.0 }
 0x53e   : > { %17543 = vmatprep.mubr.msk.f32.mxu1 %vm641_vm2, %v12657_v0 }
 0x53f   : > { %17544 = vmatmul.mubr.msk.f32.gmra.mxu1 %vm641_vm2, %v12658_v24 }
 0x5c3   : > { %v17500_v6 = vpop.f32.mrf.mxu1 }
 0x5c4   : > { %v12838_v31 = vadd.f32 %v17500_v6, %v22112_v4 }
 0x5c5   : > { %v12832_v57 = vpop.f32.mrf.mxu1 }
 0x5c6   : > { %v12992_v35 = vmax.f32 %v12838_v31, 0.0  ;;  %v12833_v54 = vadd.f32 %v22112_v4, %v12832_v57 }
 0x5c7   : > { %v17503_v25 = vpop.f32.mrf.mxu1 }
 0x5c8   : > { %v13056_v48 = vadd.f32 %v13024_v3, %v12992_v35  ;;  %v12991_v37 = vmax.f32 %v12833_v54, 0.0  ;;  %v12848_v44 = vadd.f32 %v17503_v25, %v22112_v4  ;;  %v13032_v3 = vld [vmem:[%s22117_s11 + $0x48] sm:$0xff] }
 0x5c9   : > { %v12842_v8 = vpop.f32.mrf.mxu1 }
 0x5ca   : > { %13089 = vst.msk [vmem:[%s22125_s14 + $0x8] sm:$0xff] %vm13087_vm3, %v13056_v48  ;;  %v13055_v26 = vadd.f32 %v13023_v42, %v12991_v37  ;;  %v12994_v12 = vmax.f32 %v12848_v44, 0.0  ;;  %v13192_v59 = vmul.f32 %v13056_v48, %v13056_v48  ;;  %v12843_v40 = vadd.f32 %v22112_v4, %v12842_v8 }
 0x5cb   : > { %v17506_v53 = vpop.f32.mrf.mxu1  ;;  %v13121_v61 = vsel %vm13087_vm3, %v13056_v48, 0.0  ;;  %v13031_v48 = vld [vmem:[%s22117_s11 + $0x40] sm:$0xff] }
 0x5cc   : > { %13088 = vst.msk [vmem:[%s22125_s14] sm:$0xff] %vm13087_vm3, %v13055_v26  ;;  %v13191_v43 = vmul.f32 %v13055_v26, %v13055_v26  ;;  %v13058_v56 = vadd.f32 %v13026_v10, %v12994_v12  ;;  %v13120_v63 = vsel %vm13087_vm3, %v13055_v26, 0.0  ;;  %v12993_v32 = vmax.f32 %v12843_v40, 0.0 }
 0x5cd   : > { %v12858_v28 = vadd.f32 %v17506_v53, %v22112_v4  ;;  %v12852_v30 = vpop.f32.mrf.mxu1  ;;  %v13224_v46 = vsel %vm13087_vm3, %v13192_v59, 0.0  ;;  %v13122_v17 = vadd.f32 %v13121_v61, %v13120_v63 }
 0x5ce   : > { %v13223_v14 = vsel %vm13087_vm3, %v13191_v43, 0.0  ;;  %13091 = vst.msk [vmem:[%s22125_s14 + $0x18] sm:$0xff] %vm13087_vm3, %v13058_v56  ;;  %v12853_v55 = vadd.f32 %v22112_v4, %v12852_v30  ;;  %v13057_v34 = vadd.f32 %v13025_v51, %v12993_v32  ;;  %v13194_v45 = vmul.f32 %v13058_v56, %v13058_v56 }
 0x5cf   : > { %v12996_v5 = vmax.f32 %v12858_v28, 0.0  ;;  %v17509_v47 = vpop.f32.mrf.mxu1  ;;  %v13225_v11 = vadd.f32 %v13224_v46, %v13223_v14  ;;  %v13125_v15 = vsel %vm13087_vm3, %v13058_v56, 0.0  ;;  %v13034_v28 = vld [vmem:[%s22117_s11 + $0x58] sm:$0xff] }
 0x5d0   : > { %v12995_v50 = vmax.f32 %v12853_v55, 0.0  ;;  %v12868_v22 = vadd.f32 %v17509_v47, %v22112_v4  ;;  %13090 = vst.msk [vmem:[%s22125_s14 + $0x10] sm:$0xff] %vm13087_vm3, %v13057_v34  ;;  %v13123_v27 = vsel %vm13087_vm3, %v13057_v34, 0.0  ;;  %v13193_v62 = vmul.f32 %v13057_v34, %v13057_v34  ;;  %v13033_v47 = vld [vmem:[%s22117_s11 + $0x50] sm:$0xff] }
 0x5d1   : > { %v13060_v49 = vadd.f32 %v13028_v1, %v12996_v5  ;;  %v12862_v39 = vpop.f32.mrf.mxu1  ;;  %v13124_v20 = vadd.f32 %v13123_v27, %v13122_v17  ;;  %v13228_v9 = vsel %vm13087_vm3, %v13194_v45, 0.0 }
 0x5d2   : > { %v13059_v29 = vadd.f32 %v13027_v60, %v12995_v50  ;;  %v12998_v13 = vmax.f32 %v12868_v22, 0.0  ;;  %v12863_v21 = vadd.f32 %v22112_v4, %v12862_v39  ;;  %v13226_v16 = vsel %vm13087_vm3, %v13193_v62, 0.0  ;;  %v13036_v39 = vld [vmem:[%s22117_s11 + $0x68] sm:$0xff] }
 0x5d3   : > { %13093 = vst.msk [vmem:[%s22125_s14 + $0x28] sm:$0xff] %vm13087_vm3, %v13060_v49  ;;  %v13196_v2 = vmul.f32 %v13060_v49, %v13060_v49  ;;  %v17512_v23 = vpop.f32.mrf.mxu1  ;;  %v13227_v41 = vadd.f32 %v13226_v16, %v13225_v11  ;;  %v13126_v7 = vadd.f32 %v13125_v15, %v13124_v20  ;;  %v13129_v35 = vsel %vm13087_vm3, %v13060_v49, 0.0  ;;  %v13035_v15 = vld [vmem:[%s22117_s11 + $0x60] sm:$0xff] }
 0x5d4   : > { %13092 = vst.msk [vmem:[%s22125_s14 + $0x20] sm:$0xff] %vm13087_vm3, %v13059_v29  ;;  %v13127_v18 = vsel %vm13087_vm3, %v13059_v29, 0.0  ;;  %v13195_v38 = vmul.f32 %v13059_v29, %v13059_v29  ;;  %v13062_v58 = vadd.f32 %v13030_v19, %v12998_v13  ;;  %v12997_v36 = vmax.f32 %v12863_v21, 0.0 }
 0x5d5   : > { %v12878_v33 = vadd.f32 %v17512_v23, %v22112_v4  ;;  %v12872_v0 = vpop.f32.mrf.mxu1  ;;  %v13128_v24 = vadd.f32 %v13127_v18, %v13126_v7  ;;  %v13229_v6 = vadd.f32 %v13228_v9, %v13227_v41  ;;  %v13232_v54 = vsel %vm13087_vm3, %v13196_v2, 0.0 }
 0x5d6   : > { %v13230_v31 = vsel %vm13087_vm3, %v13195_v38, 0.0  ;;  %v12873_v57 = vadd.f32 %v22112_v4, %v12872_v0  ;;  %13095 = vst.msk [vmem:[%s22125_s14 + $0x38] sm:$0xff] %vm13087_vm3, %v13062_v58  ;;  %v13061_v42 = vadd.f32 %v13029_v52, %v12997_v36  ;;  %v13198_v12 = vmul.f32 %v13062_v58, %v13062_v58 }
 0x5d7   : > { %v13000_v25 = vmax.f32 %v12878_v33, 0.0  ;;  %v17515_v37 = vpop.f32.mrf.mxu1  ;;  %v13231_v44 = vadd.f32 %v13230_v31, %v13229_v6  ;;  %v13130_v10 = vadd.f32 %v13129_v35, %v13128_v24  ;;  %v13133_v30 = vsel %vm13087_vm3, %v13062_v58, 0.0  ;;  %v13038_v6 = vld [vmem:[%s22117_s11 + $0x78] sm:$0xff] }
 0x5d8   : > { %v12999_v8 = vmax.f32 %v12873_v57, 0.0  ;;  %v12888_v26 = vadd.f32 %v17515_v37, %v22112_v4  ;;  %13094 = vst.msk [vmem:[%s22125_s14 + $0x30] sm:$0xff] %vm13087_vm3, %v13061_v42  ;;  %v13131_v59 = vsel %vm13087_vm3, %v13061_v42, 0.0  ;;  %v13197_v40 = vmul.f32 %v13061_v42, %v13061_v42 }
 0x5d9   : > { %v13064_v53 = vadd.f32 %v13032_v3, %v13000_v25  ;;  %v12882_v43 = vpop.f32.mrf.mxu1  ;;  %v13132_v56 = vadd.f32 %v13131_v59, %v13130_v10  ;;  %v13233_v51 = vadd.f32 %v13232_v54, %v13231_v44  ;;  %v13236_v17 = vsel %vm13087_vm3, %v13198_v12, 0.0  ;;  %v13037_v44 = vld [vmem:[%s22117_s11 + $0x70] sm:$0xff] }
 0x5da   : > { %v13063_v63 = vadd.f32 %v13031_v48, %v12999_v8  ;;  %v13002_v32 = vmax.f32 %v12888_v26, 0.0  ;;  %v13234_v14 = vsel %vm13087_vm3, %v13197_v40, 0.0  ;;  %v12883_v55 = vadd.f32 %v22112_v4, %v12882_v43 }
 0x5db   : > { %13097 = vst.msk [vmem:[%s22125_s14 + $0x48] sm:$0xff] %vm13087_vm3, %v13064_v53  ;;  %v13200_v1 = vmul.f32 %v13064_v53, %v13064_v53  ;;  %v17518_v61 = vpop.f32.mrf.mxu1  ;;  %v13235_v46 = vadd.f32 %v13234_v14, %v13233_v51  ;;  %v13134_v34 = vadd.f32 %v13133_v30, %v13132_v56  ;;  %v13137_v29 = vsel %vm13087_vm3, %v13064_v53, 0.0  ;;  %v13040_v56 = vld [vmem:[%s22117_s11 + $0x88] sm:$0xff]  ;;  %v13039_v14 = vld [vmem:[%s22117_s11 + $0x80] sm:$0xff] }
 0x5dc   : > { %13096 = vst.msk [vmem:[%s22125_s14 + $0x40] sm:$0xff] %vm13087_vm3, %v13063_v63  ;;  %v13135_v5 = vsel %vm13087_vm3, %v13063_v63, 0.0  ;;  %v13199_v60 = vmul.f32 %v13063_v63, %v13063_v63  ;;  %v13066_v45 = vadd.f32 %v13034_v28, %v13002_v32  ;;  %v13001_v50 = vmax.f32 %v12883_v55, 0.0 }
 0x5dd   : > { %v12898_v22 = vadd.f32 %v17518_v61, %v22112_v4  ;;  %v12892_v11 = vpop.f32.mrf.mxu1  ;;  %v13136_v27 = vadd.f32 %v13135_v5, %v13134_v34  ;;  %v13237_v62 = vadd.f32 %v13236_v17, %v13235_v46  ;;  %v13240_v13 = vsel %vm13087_vm3, %v13200_v1, 0.0 }
 0x5de   : > { %v13238_v49 = vsel %vm13087_vm3, %v13199_v60, 0.0  ;;  %v12893_v20 = vadd.f32 %v22112_v4, %v12892_v11  ;;  %13099 = vst.msk [vmem:[%s22125_s14 + $0x58] sm:$0xff] %vm13087_vm3, %v13066_v45  ;;  %v13065_v19 = vadd.f32 %v13033_v47, %v13001_v50  ;;  %v13202_v18 = vmul.f32 %v13066_v45, %v13066_v45 }
 0x5df   : > { %v13004_v21 = vmax.f32 %v12898_v22, 0.0  ;;  %v17521_v16 = vpop.f32.mrf.mxu1  ;;  %v13239_v2 = vadd.f32 %v13238_v49, %v13237_v62  ;;  %v13138_v23 = vadd.f32 %v13137_v29, %v13136_v27  ;;  %v13141_v31 = vsel %vm13087_vm3, %v13066_v45, 0.0  ;;  %v13042_v62 = vld [vmem:[%s22117_s11 + $0x98] sm:$0xff] }
 0x5e0   : > { %v13003_v41 = vmax.f32 %v12893_v20, 0.0  ;;  %v12908_v7 = vadd.f32 %v17521_v16, %v22112_v4  ;;  %13098 = vst.msk [vmem:[%s22125_s14 + $0x50] sm:$0xff] %vm13087_vm3, %v13065_v19  ;;  %v13139_v38 = vsel %vm13087_vm3, %v13065_v19, 0.0  ;;  %v13201_v52 = vmul.f32 %v13065_v19, %v13065_v19 }
 0x5e1   : > { %v13068_v9 = vadd.f32 %v13036_v39, %v13004_v21  ;;  %v12902_v58 = vpop.f32.mrf.mxu1  ;;  %v13140_v36 = vadd.f32 %v13139_v38, %v13138_v23  ;;  %v13241_v33 = vadd.f32 %v13240_v13, %v13239_v2  ;;  %v13244_v10 = vsel %vm13087_vm3, %v13202_v18, 0.0  ;;  %v13041_v2 = vld [vmem:[%s22117_s11 + $0x90] sm:$0xff] }
 0x5e2   : > { %v13067_v0 = vadd.f32 %v13035_v15, %v13003_v41  ;;  %v13006_v24 = vmax.f32 %v12908_v7, 0.0  ;;  %v13242_v3 = vsel %vm13087_vm3, %v13201_v52, 0.0  ;;  %v12903_v35 = vadd.f32 %v22112_v4, %v12902_v58 }
 0x5e3   : > { %13101 = vst.msk [vmem:[%s22125_s14 + $0x68] sm:$0xff] %vm13087_vm3, %v13068_v9  ;;  %v13204_v57 = vmul.f32 %v13068_v9, %v13068_v9  ;;  %v17524_v54 = vpop.f32.mrf.mxu1  ;;  %v13243_v42 = vadd.f32 %v13242_v3, %v13241_v33  ;;  %v13142_v25 = vadd.f32 %v13141_v31, %v13140_v36  ;;  %v13145_v63 = vsel %vm13087_vm3, %v13068_v9, 0.0  ;;  %v13044_v36 = vld [vmem:[%s22117_s11 + $0xa8] sm:$0xff]  ;;  %v13043_v3 = vld [vmem:[%s22117_s11 + $0xa0] sm:$0xff] }
 0x5e4   : > { %13100 = vst.msk [vmem:[%s22125_s14 + $0x60] sm:$0xff] %vm13087_vm3, %v13067_v0  ;;  %v13143_v48 = vsel %vm13087_vm3, %v13067_v0, 0.0  ;;  %v13203_v37 = vmul.f32 %v13067_v0, %v13067_v0  ;;  %v13070_v8 = vadd.f32 %v13038_v6, %v13006_v24  ;;  %v13005_v26 = vmax.f32 %v12903_v35, 0.0 }
 0x5e5   : > { %v12918_v12 = vadd.f32 %v17524_v54, %v22112_v4  ;;  %v12912_v59 = vpop.f32.mrf.mxu1  ;;  %v13144_v40 = vadd.f32 %v13143_v48, %v13142_v25  ;;  %v13245_v53 = vadd.f32 %v13244_v10, %v13243_v42  ;;  %v13248_v32 = vsel %vm13087_vm3, %v13204_v57, 0.0 }
 0x5e6   : > { %v13246_v43 = vsel %vm13087_vm3, %v13203_v37, 0.0  ;;  %v12913_v51 = vadd.f32 %v22112_v4, %v12912_v59  ;;  %13103 = vst.msk [vmem:[%s22125_s14 + $0x78] sm:$0xff] %vm13087_vm3, %v13070_v8  ;;  %v13069_v28 = vadd.f32 %v13037_v44, %v13005_v26  ;;  %v13206_v5 = vmul.f32 %v13070_v8, %v13070_v8 }
 0x5e7   : > { %v13008_v30 = vmax.f32 %v12918_v12, 0.0  ;;  %v17527_v1 = vpop.f32.mrf.mxu1  ;;  %v13247_v55 = vadd.f32 %v13246_v43, %v13245_v53  ;;  %v13146_v61 = vadd.f32 %v13145_v63, %v13144_v40  ;;  %v13149_v49 = vsel %vm13087_vm3, %v13070_v8, 0.0  ;;  %v13046_v53 = vld [vmem:[%s22117_s11 + $0xb8] sm:$0xff] }
 0x5e8   : > { %v13007_v46 = vmax.f32 %v12913_v51, 0.0  ;;  %v12928_v34 = vadd.f32 %v17527_v1, %v22112_v4  ;;  %13102 = vst.msk [vmem:[%s22125_s14 + $0x70] sm:$0xff] %vm13087_vm3, %v13069_v28  ;;  %v13147_v60 = vsel %vm13087_vm3, %v13069_v28, 0.0  ;;  %v13205_v47 = vmul.f32 %v13069_v28, %v13069_v28 }
 0x5e9   : > { %v13072_v17 = vadd.f32 %v13040_v56, %v13008_v30  ;;  %v12922_v45 = vpop.f32.mrf.mxu1  ;;  %v13148_v50 = vadd.f32 %v13147_v60, %v13146_v61  ;;  %v13249_v22 = vadd.f32 %v13248_v32, %v13247_v55  ;;  %v13252_v23 = vsel %vm13087_vm3, %v13206_v5, 0.0  ;;  %v13045_v55 = vld [vmem:[%s22117_s11 + $0xb0] sm:$0xff] }
 0x5ea   : > { %v13071_v11 = vadd.f32 %v13039_v14, %v13007_v46  ;;  %v13010_v27 = vmax.f32 %v12928_v34, 0.0  ;;  %v13250_v39 = vsel %vm13087_vm3, %v13205_v47, 0.0  ;;  %v12923_v29 = vadd.f32 %v22112_v4, %v12922_v45 }
 0x5eb   : > { %13105 = vst.msk [vmem:[%s22125_s14 + $0x88] sm:$0xff] %vm13087_vm3, %v13072_v17  ;;  %v13208_v20 = vmul.f32 %v13072_v17, %v13072_v17  ;;  %v17530_v13 = vpop.f32.mrf.mxu1  ;;  %v13251_v19 = vadd.f32 %v13250_v39, %v13249_v22  ;;  %v13150_v21 = vadd.f32 %v13149_v49, %v13148_v50  ;;  %v13153_v0 = vsel %vm13087_vm3, %v13072_v17, 0.0  ;;  %v13048_v50 = vld [vmem:[%s22117_s11 + $0xc8] sm:$0xff]  ;;  %v13047_v39 = vld [vmem:[%s22117_s11 + $0xc0] sm:$0xff] }
 0x5ec   : > { %13104 = vst.msk [vmem:[%s22125_s14 + $0x80] sm:$0xff] %vm13087_vm3, %v13071_v11  ;;  %v13151_v15 = vsel %vm13087_vm3, %v13071_v11, 0.0  ;;  %v13207_v16 = vmul.f32 %v13071_v11, %v13071_v11  ;;  %v13074_v41 = vadd.f32 %v13042_v62, %v13010_v27  ;;  %v13009_v7 = vmax.f32 %v12923_v29, 0.0 }
 0x5ed   : > { %v12938_v18 = vadd.f32 %v17530_v13, %v22112_v4  ;;  %v12932_v38 = vpop.f32.mrf.mxu1  ;;  %v13152_v52 = vadd.f32 %v13151_v15, %v13150_v21  ;;  %v13253_v9 = vadd.f32 %v13252_v23, %v13251_v19  ;;  %v13256_v24 = vsel %vm13087_vm3, %v13208_v20, 0.0 }
 0x5ee   : > { %v13254_v58 = vsel %vm13087_vm3, %v13207_v16, 0.0  ;;  %v12933_v33 = vadd.f32 %v22112_v4, %v12932_v38  ;;  %13107 = vst.msk [vmem:[%s22125_s14 + $0x98] sm:$0xff] %vm13087_vm3, %v13074_v41  ;;  %v13073_v6 = vadd.f32 %v13041_v2, %v13009_v7  ;;  %v13210_v48 = vmul.f32 %v13074_v41, %v13074_v41 }
 0x5ef   : > { %v13012_v31 = vmax.f32 %v12938_v18, 0.0  ;;  %v17533_v57 = vpop.f32.mrf.mxu1  ;;  %v13255_v35 = vadd.f32 %v13254_v58, %v13253_v9  ;;  %v13154_v54 = vadd.f32 %v13153_v0, %v13152_v52  ;;  %v13157_v43 = vsel %vm13087_vm3, %v13074_v41, 0.0  ;;  %v13050_v9 = vld [vmem:[%s22117_s11 + $0xd8] sm:$0xff] }
 0x5f0   : > { %v13011_v42 = vmax.f32 %v12933_v33, 0.0  ;;  %v12948_v25 = vadd.f32 %v17533_v57, %v22112_v4  ;;  %13106 = vst.msk [vmem:[%s22125_s14 + $0x90] sm:$0xff] %vm13087_vm3, %v13073_v6  ;;  %v13155_v37 = vsel %vm13087_vm3, %v13073_v6, 0.0  ;;  %v13209_v44 = vmul.f32 %v13073_v6, %v13073_v6 }
 0x5f1   : > { %v13076_v10 = vadd.f32 %v13044_v36, %v13012_v31  ;;  %v12942_v8 = vpop.f32.mrf.mxu1  ;;  %v13156_v26 = vadd.f32 %v13155_v37, %v13154_v54  ;;  %v13257_v12 = vadd.f32 %v13256_v24, %v13255_v35  ;;  %v13260_v61 = vsel %vm13087_vm3, %v13210_v48, 0.0  ;;  %v13049_v35 = vld [vmem:[%s22117_s11 + $0xd0] sm:$0xff] }
 0x5f2   : > { %v13075_v59 = vadd.f32 %v13043_v3, %v13011_v42  ;;  %v13014_v40 = vmax.f32 %v12948_v25, 0.0  ;;  %v13258_v56 = vsel %vm13087_vm3, %v13209_v44, 0.0  ;;  %v12943_v63 = vadd.f32 %v22112_v4, %v12942_v8 }
 0x5f3   : > { %13109 = vst.msk [vmem:[%s22125_s14 + $0xa8] sm:$0xff] %vm13087_vm3, %v13076_v10  ;;  %v13212_v51 = vmul.f32 %v13076_v10, %v13076_v10  ;;  %v17536_v32 = vpop.f32.mrf.mxu1  ;;  %v13259_v28 = vadd.f32 %v13258_v56, %v13257_v12  ;;  %v13158_v30 = vadd.f32 %v13157_v43, %v13156_v26  ;;  %v13161_v11 = vsel %vm13087_vm3, %v13076_v10, 0.0  ;;  %v13052_v26 = vld [vmem:[%s22117_s11 + $0xe8] sm:$0xff]  ;;  %v13051_v56 = vld [vmem:[%s22117_s11 + $0xe0] sm:$0xff] }
 0x5f4   : > { %13108 = vst.msk [vmem:[%s22125_s14 + $0xa0] sm:$0xff] %vm13087_vm3, %v13075_v59  ;;  %v13159_v14 = vsel %vm13087_vm3, %v13075_v59, 0.0  ;;  %v13211_v1 = vmul.f32 %v13075_v59, %v13075_v59  ;;  %v13078_v46 = vadd.f32 %v13046_v53, %v13014_v40  ;;  %v13013_v34 = vmax.f32 %v12943_v63, 0.0 }
 0x5f5   : > { %v12958_v5 = vadd.f32 %v17536_v32, %v22112_v4  ;;  %v12952_v60 = vpop.f32.mrf.mxu1  ;;  %v13160_v47 = vadd.f32 %v13159_v14, %v13158_v30  ;;  %v13261_v17 = vadd.f32 %v13260_v61, %v13259_v28  ;;  %v13264_v27 = vsel %vm13087_vm3, %v13212_v51, 0.0 }
 0x5f6   : > { %v13262_v45 = vsel %vm13087_vm3, %v13211_v1, 0.0  ;;  %v12953_v22 = vadd.f32 %v22112_v4, %v12952_v60  ;;  %13111 = vst.msk [vmem:[%s22125_s14 + $0xb8] sm:$0xff] %vm13087_vm3, %v13078_v46  ;;  %v13077_v62 = vadd.f32 %v13045_v55, %v13013_v34  ;;  %v13214_v15 = vmul.f32 %v13078_v46, %v13078_v46 }
 0x5f7   : > { %v13016_v49 = vmax.f32 %v12958_v5, 0.0  ;;  %v17539_v20 = vpop.f32.mrf.mxu1  ;;  %v13263_v29 = vadd.f32 %v13262_v45, %v13261_v17  ;;  %v13162_v13 = vadd.f32 %v13161_v11, %v13160_v47  ;;  %v13165_v58 = vsel %vm13087_vm3, %v13078_v46, 0.0  ;;  %v13054_v17 = vld [vmem:[%s22117_s11 + $0xf8] sm:$0xff] }
 0x5f8   : > { %v13015_v19 = vmax.f32 %v12953_v22, 0.0  ;;  %v12968_v21 = vadd.f32 %v17539_v20, %v22112_v4  ;;  %13110 = vst.msk [vmem:[%s22125_s14 + $0xb0] sm:$0xff] %vm13087_vm3, %v13077_v62  ;;  %v13163_v16 = vsel %vm13087_vm3, %v13077_v62, 0.0  ;;  %v13213_v2 = vmul.f32 %v13077_v62, %v13077_v62 }
 0x5f9   : > { %v13080_v23 = vadd.f32 %v13048_v50, %v13016_v49  ;;  %v12962_v41 = vpop.f32.mrf.mxu1  ;;  %v13164_v7 = vadd.f32 %v13163_v16, %v13162_v13  ;;  %v13265_v18 = vadd.f32 %v13264_v27, %v13263_v29  ;;  %v13268_v54 = vsel %vm13087_vm3, %v13214_v15, 0.0 }
 0x5fa   : > { %v13079_v38 = vadd.f32 %v13047_v39, %v13015_v19  ;;  %v13018_v52 = vmax.f32 %v12968_v21, 0.0  ;;  %v13266_v36 = vsel %vm13087_vm3, %v13213_v2, 0.0  ;;  %v12963_v0 = vadd.f32 %v22112_v4, %v12962_v41  ;;  %v13053_v39 = vld [vmem:[%s22117_s11 + $0xf0] sm:$0xff] }
 0x5fb   : > { %13113 = vst.msk [vmem:[%s22125_s14 + $0xc8] sm:$0xff] %vm13087_vm3, %v13080_v23  ;;  %v13216_v33 = vmul.f32 %v13080_v23, %v13080_v23  ;;  %v17542_v24 = vpop.f32.mrf.mxu1  ;;  %v13267_v6 = vadd.f32 %v13266_v36, %v13265_v18  ;;  %v13166_v31 = vadd.f32 %v13165_v58, %v13164_v7  ;;  %v13169_v59 = vsel %vm13087_vm3, %v13080_v23, 0.0 }
 0x5fc   : > { %13112 = vst.msk [vmem:[%s22125_s14 + $0xc0] sm:$0xff] %vm13087_vm3, %v13079_v38  ;;  %v13167_v3 = vsel %vm13087_vm3, %v13079_v38, 0.0  ;;  %v13215_v57 = vmul.f32 %v13079_v38, %v13079_v38  ;;  %v13082_v42 = vadd.f32 %v13050_v9, %v13018_v52  ;;  %v13017_v25 = vmax.f32 %v12963_v0, 0.0 }
 0x5fd   : > { %v12978_v48 = vadd.f32 %v17542_v24, %v22112_v4  ;;  %v12972_v37 = vpop.f32.mrf.mxu1  ;;  %v13168_v44 = vadd.f32 %v13167_v3, %v13166_v31  ;;  %v13269_v10 = vadd.f32 %v13268_v54, %v13267_v6  ;;  %v13272_v40 = vsel %vm13087_vm3, %v13216_v33, 0.0 }
 0x5fe   : > { %v13270_v8 = vsel %vm13087_vm3, %v13215_v57, 0.0  ;;  %v12973_v12 = vadd.f32 %v22112_v4, %v12972_v37  ;;  %13115 = vst.msk [vmem:[%s22125_s14 + $0xd8] sm:$0xff] %vm13087_vm3, %v13082_v42  ;;  %v13081_v53 = vadd.f32 %v13049_v35, %v13017_v25  ;;  %v13218_v14 = vmul.f32 %v13082_v42, %v13082_v42 }
 0x5ff   : > { %v13020_v43 = vmax.f32 %v12978_v48, 0.0  ;;  %v17545_v51 = vpop.f32.mrf.mxu1  ;;  %v13271_v63 = vadd.f32 %v13270_v8, %v13269_v10  ;;  %v13170_v32 = vadd.f32 %v13169_v59, %v13168_v44  ;;  %v13173_v45 = vsel %vm13087_vm3, %v13082_v42, 0.0 }
 0x600   : > { %v13019_v28 = vmax.f32 %v12973_v12, 0.0  ;;  %v12988_v30 = vadd.f32 %v17545_v51, %v22112_v4  ;;  %13114 = vst.msk [vmem:[%s22125_s14 + $0xd0] sm:$0xff] %vm13087_vm3, %v13081_v53  ;;  %v13171_v1 = vsel %vm13087_vm3, %v13081_v53, 0.0  ;;  %v13217_v55 = vmul.f32 %v13081_v53, %v13081_v53 }
 0x601   : > { %v13084_v61 = vadd.f32 %v13052_v26, %v13020_v43  ;;  %v12982_v46 = vpop.f32.mrf.mxu1  ;;  %v13172_v34 = vadd.f32 %v13171_v1, %v13170_v32  ;;  %v13273_v5 = vadd.f32 %v13272_v40, %v13271_v63  ;;  %v13276_v20 = vsel %vm13087_vm3, %v13218_v14, 0.0 }
 0x602   : > { %v13083_v60 = vadd.f32 %v13051_v56, %v13019_v28  ;;  %v13022_v47 = vmax.f32 %v12988_v30, 0.0  ;;  %v13274_v50 = vsel %vm13087_vm3, %v13217_v55, 0.0  ;;  %v12983_v22 = vadd.f32 %v22112_v4, %v12982_v46 }
 0x603   : > { %13117 = vst.msk [vmem:[%s22125_s14 + $0xe8] sm:$0xff] %vm13087_vm3, %v13084_v61  ;;  %v13275_v11 = vadd.f32 %v13274_v50, %v13273_v5  ;;  %v13174_v27 = vadd.f32 %v13173_v45, %v13172_v34  ;;  %v13220_v29 = vmul.f32 %v13084_v61, %v13084_v61  ;;  %v13177_v4 = vsel %vm13087_vm3, %v13084_v61, 0.0 }
 0x604   : > { %13116 = vst.msk [vmem:[%s22125_s14 + $0xe0] sm:$0xff] %vm13087_vm3, %v13083_v60  ;;  %v13175_v62 = vsel %vm13087_vm3, %v13083_v60, 0.0  ;;  %v13219_v49 = vmul.f32 %v13083_v60, %v13083_v60  ;;  %v13086_v13 = vadd.f32 %v13054_v17, %v13022_v47  ;;  %v13021_v19 = vmax.f32 %v12983_v22, 0.0 }
 0x605   : > { %v13176_v21 = vadd.f32 %v13175_v62, %v13174_v27  ;;  %v13277_v15 = vadd.f32 %v13276_v20, %v13275_v11  ;;  %v13280_v7 = vsel %vm13087_vm3, %v13220_v29, 0.0 }
 0x606   : > { %v13278_v16 = vsel %vm13087_vm3, %v13219_v49, 0.0  ;;  %13119 = vst.msk [vmem:[%s22125_s14 + $0xf8] sm:$0xff] %vm13087_vm3, %v13086_v13  ;;  %v13085_v2 = vadd.f32 %v13053_v39, %v13021_v19  ;;  %v13222_v18 = vmul.f32 %v13086_v13, %v13086_v13  ;;  %v13181_v36 = vsel %vm13087_vm3, %v13086_v13, 0.0 }
 0x607   : > { %v13279_v23 = vadd.f32 %v13278_v16, %v13277_v15  ;;  %v13178_v41 = vadd.f32 %v13177_v4, %v13176_v21 }
 0x608   : > { %13118 = vst.msk [vmem:[%s22125_s14 + $0xf0] sm:$0xff] %vm13087_vm3, %v13085_v2  ;;  %v13179_v38 = vsel %vm13087_vm3, %v13085_v2, 0.0  ;;  %v13221_v52 = vmul.f32 %v13085_v2, %v13085_v2  ;;  %v13284_v6 = vsel %vm13087_vm3, %v13222_v18, 0.0 }
 0x609   : > { %v13180_v9 = vadd.f32 %v13179_v38, %v13178_v41  ;;  %v13281_v58 = vadd.f32 %v13280_v7, %v13279_v23 }
 0x60a   : > { %v13282_v33 = vsel %vm13087_vm3, %v13221_v52, 0.0 }
 0x60b   : > { %v13182_v0 = vadd.f32 %v13181_v36, %v13180_v9  ;;  %v13283_v24 = vadd.f32 %v13282_v33, %v13281_v58 }
 0x60d   : > { %v13183_v31 = vrot.slane %v13182_v0, 4  ;;  %v13285_v3 = vadd.f32 %v13284_v6, %v13283_v24 }
 0x60f   : > { %v13184_v57 = vadd.f32 %v13183_v31, %v13182_v0  ;;  %v13286_v35 = vrot.slane %v13285_v3, 4 }
 0x611   : > { %v13185_v54 = vrot.slane %v13184_v57, 2  ;;  %v13287_v42 = vadd.f32 %v13286_v35, %v13285_v3 }
 0x613   : > { %v13186_v25 = vadd.f32 %v13185_v54, %v13184_v57  ;;  %v13288_v48 = vrot.slane %v13287_v42, 2 }
 0x615   : > { %v13187_v37 = vrot.slane %v13186_v25, 1  ;;  %v13289_v44 = vadd.f32 %v13288_v48, %v13287_v42 }
 0x617   : > { %v13188_v10 = vadd.f32 %v13187_v37, %v13186_v25  ;;  %v13290_v8 = vrot.slane %v13289_v44, 1 }
 0x619   : > { %13190 = vst.msk [vmem:[%s366_s17] sm:$0x1] %vm13189_vm4, %v13188_v10  ;;  %v13291_v26 = vadd.f32 %v13290_v8, %v13289_v44 }
 0x61b   : > { %13292 = vst.msk [vmem:[%s369_s20] sm:$0x1] %vm13189_vm4, %v13291_v26 }
 0x61c PF: > { %s20_s30 = sadd.s32 1, %s17566_s30  }
 0x61d   : > { %p17_p4 = scmp.ge.s32.totalorder %s20_s30, 4  }
 0x61f   :  { %19 = sbr.rel (!%p17_p4) target bundleno = 1 (0x1), region = 147 }

</bundles_post_ra>
